<compile_context>
chip_gen: v7x
topology: tpu7x:2x2x1
jax: 0.10.0
libtpu: 0.0.40
codegen_flags: <defaults>
</compile_context>

<pallas_src>
import functools

import jax
import jax.numpy as jnp
from jax.experimental import pallas as pl
from jax.experimental.pallas import tpu as pltpu


# ----------------------------------------------------------------------------
# helpers
# ----------------------------------------------------------------------------
def _round_up(x, m):
    return ((x + m - 1) // m) * m


def _pick_tile(n, tile_n):
    """Largest lane tile <= tile_n; prefer one that divides n (no un-pad slice)."""
    n128 = _round_up(n, 128)
    tn = min(tile_n, n128)
    if n128 == n:
        for cand in range(tn, 0, -128):
            if n % cand == 0:
                return cand
    return tn


def _dot(w_ref, a_bf16):
    """MXU matmul: (Cout, Cin) bf16 @ (Cin, tn) bf16 -> (Cout, tn) f32."""
    return jnp.dot(w_ref[...], a_bf16, preferred_element_type=jnp.float32)


def _l2norm_channels(x):
    """F.normalize(p=2, dim=channels); clamp matches torch's eps=1e-12."""
    ss = jnp.sum(x * x, axis=0, keepdims=True)
    return x * jax.lax.rsqrt(jnp.maximum(ss, 1e-24))


@functools.lru_cache(maxsize=None)
def _compiler_params():
    vmem_limit = 32 * 1024 * 1024
    try:
        cap = pltpu.get_tpu_info().vmem_capacity_bytes
        vmem_limit = int(min(cap // 2, 64 * 1024 * 1024))
    except Exception:
        pass
    return pltpu.CompilerParams(
        dimension_semantics=("parallel", "parallel"),
        vmem_limit_bytes=vmem_limit)


# ----------------------------------------------------------------------------
# Pallas kernels
# ----------------------------------------------------------------------------
def _point_branch_kernel(
        # activations, block (1, C_i, tn), already bf16
        x0_ref, x1_ref, x2_ref, x3_ref, xv_ref,
        # stacked layer-1: per_point_pn ∥ point_classifer (shared 736-K part)
        w1s, b1s, clvw,
        # per_point_pn layers 2, 3 (BN+ReLU on all)
        pn_w2, pn_b2, pn_w3, pn_b3,
        # point_classifer layers 2, 3 (no norm/act at last)
        cl_w2, cl_b2, cl_w3, cl_b3,
        # stacked pc_feature-l1 ∥ pc_score-l1
        fs_w1, fs_b1,
        # pc_feature_layer layers 2, 3
        pf_w2, pf_b2, pf_w3, pf_b3,
        # pc_score_layer layer 2 + final 64->1 reduction vector
        ps_w2, ps_b2, ps_w3,
        # outputs
        feat_ref, score_ref, class_ref,
        # scratch: (736, tn) bf16 shared-activation slab
        xcat_ref):
    bf16 = jnp.bfloat16
    xv = xv_ref[0]                                   # (128, tn) bf16

    # --- assemble the 736-channel shared slab once (K-fusion) ---------------
    xcat_ref[0:32, :] = x0_ref[0]
    xcat_ref[32:96, :] = x1_ref[0]
    xcat_ref[96:224, :] = x2_ref[0]
    xcat_ref[224:736, :] = x3_ref[0]
    x_shared = xcat_ref[...]                         # (736, tn) bf16

    # --- per_point_pn-l1 ∥ point_classifer-l1 (Cout 512, single big-K dot) --
    h12 = _dot(w1s, x_shared) + b1s[...]             # (512, tn) f32
    h_pn = jnp.maximum(h12[0:256], 0.0).astype(bf16)
    h_cl = jnp.maximum(h12[256:512] + _dot(clvw, xv), 0.0).astype(bf16)

    # --- per_point_pn layers 2, 3 -------------------------------------------
    h_pn = jnp.maximum(_dot(pn_w2, h_pn) + pn_b2[...], 0.0).astype(bf16)
    pc_label = jnp.maximum(_dot(pn_w3, h_pn) + pn_b3[...], 0.0).astype(bf16)  # (128, tn)

    # --- point_classifer layers 2, 3 (dropout = identity at eval) -----------
    h_cl = jnp.maximum(_dot(cl_w2, h_cl) + cl_b2[...], 0.0).astype(bf16)
    pc_class = _dot(cl_w3, h_cl) + cl_b3[...]        # (HW_fine, tn) f32

    # --- pc_feature-l1 ∥ pc_score-l1 (both read pc_label, Cout 256) ---------
    fs = jnp.maximum(_dot(fs_w1, pc_label) + fs_b1[...], 0.0)   # (256, tn) f32
    f1 = fs[0:128].astype(bf16)
    s1 = fs[128:256].astype(bf16)

    # --- pc_feature_layer tail + fused F.normalize --------------------------
    f = jnp.maximum(_dot(pf_w2, f1) + pf_b2[...], 0.0).astype(bf16)
    f = _dot(pf_w3, f) + pf_b3[...]                  # (64, tn) f32
    f = _l2norm_channels(f)

    # --- pc_score_layer tail: 64->1 as a channel reduction + sigmoid --------
    s = jnp.maximum(_dot(ps_w2, s1) + ps_b2[...], 0.0)              # (64, tn) f32
    s = jax.nn.sigmoid(jnp.sum(s * ps_w3[...], axis=0, keepdims=True))  # (1, tn)

    feat_ref[0] = f.astype(feat_ref.dtype)
    score_ref[0] = s.astype(score_ref.dtype)
    class_ref[0] = pc_class.astype(class_ref.dtype)


def _img_branch_kernel(
        x_ref,
        fs_w1, fs_b1,
        f_w2, f_b2, f_w3, f_b3,
        s_w2, s_b2, s_w3,
        feat_ref, score_ref):
    bf16 = jnp.bfloat16
    x = x_ref[0]                                      # (64, tn) bf16

    # img_feature-l1 ∥ img_score-l1 (Cout 128)
    fs = jnp.maximum(_dot(fs_w1, x) + fs_b1[...], 0.0)   # (128, tn) f32
    f1 = fs[0:64].astype(bf16)
    s1 = fs[64:128].astype(bf16)

    # img_feature_layer tail + fused F.normalize
    f = jnp.maximum(_dot(f_w2, f1) + f_b2[...], 0.0).astype(bf16)
    f = _dot(f_w3, f) + f_b3[...]                     # (64, tn) f32
    f = _l2norm_channels(f)

    # img_score_layer tail: 64->1 channel reduction + sigmoid
    s = jnp.maximum(_dot(s_w2, s1) + s_b2[...], 0.0)                # (64, tn) f32
    s = jax.nn.sigmoid(jnp.sum(s * s_w3[...], axis=0, keepdims=True))   # (1, tn)

    feat_ref[0] = f.astype(feat_ref.dtype)
    score_ref[0] = s.astype(score_ref.dtype)


# ----------------------------------------------------------------------------
# pallas_call wrappers
# ----------------------------------------------------------------------------
def point_branch_forward(P, i2p0, i2p1, first_pn, second_pn, voxel, tile_n=1024):
    B, _, N = i2p0.shape
    hw_fine = P["cl_w3"].shape[0]
    tn = _pick_tile(N, tile_n)
    n_pad = _round_up(N, tn)

    def prep(x):
        x = x.astype(jnp.bfloat16)
        if n_pad != N:
            x = jnp.pad(x, ((0, 0), (0, 0), (0, n_pad - N)))
        return x

    xs = [prep(x) for x in (i2p0, i2p1, first_pn, second_pn, voxel)]

    weight_args = [P["w1_stack"], P["b1_stack"], P["clv_w1"],
                   P["pn_w2"], P["pn_b2"], P["pn_w3"], P["pn_b3"],
                   P["cl_w2"], P["cl_b2"], P["cl_w3"], P["cl_b3"],
                   P["fs_w1"], P["fs_b1"],
                   P["pf_w2"], P["pf_b2"], P["pf_w3"], P["pf_b3"],
                   P["ps_w2"], P["ps_b2"], P["ps_w3vec"]]

    in_specs = ([pl.BlockSpec((1, x.shape[1], tn), lambda n, b: (b, 0, n))
                 for x in xs]
                + [pl.BlockSpec(w.shape, lambda n, b: (0, 0))
                   for w in weight_args])
    out_shapes = (jax.ShapeDtypeStruct((B, 64, n_pad), jnp.float32),
                  jax.ShapeDtypeStruct((B, 1, n_pad), jnp.float32),
                  jax.ShapeDtypeStruct((B, hw_fine, n_pad), jnp.float32))
    out_specs = (pl.BlockSpec((1, 64, tn), lambda n, b: (b, 0, n)),
                 pl.BlockSpec((1, 1, tn), lambda n, b: (b, 0, n)),
                 pl.BlockSpec((1, hw_fine, tn), lambda n, b: (b, 0, n)))

    feat, score, cls = pl.pallas_call(
        _point_branch_kernel,
        out_shape=out_shapes,
        grid=(n_pad // tn, B),                       # points-tiles outermost
        in_specs=in_specs,
        out_specs=out_specs,
        scratch_shapes=[pltpu.VMEM((736, tn), jnp.bfloat16)],
        compiler_params=_compiler_params(),
    )(*xs, *weight_args)

    if n_pad != N:
        feat, score, cls = feat[..., :N], score[..., :N], cls[..., :N]
    return feat, score, cls


def img_branch_forward(P, img_rows, tile_n=1024):
    B, C, L = img_rows.shape
    tn = _pick_tile(L, tile_n)
    l_pad = _round_up(L, tn)
    x = img_rows.astype(jnp.bfloat16)
    if l_pad != L:
        x = jnp.pad(x, ((0, 0), (0, 0), (0, l_pad - L)))

    weight_args = [P["fs_w1"], P["fs_b1"],
                   P["f_w2"], P["f_b2"], P["f_w3"], P["f_b3"],
                   P["s_w2"], P["s_b2"], P["s_w3vec"]]

    in_specs = ([pl.BlockSpec((1, C, tn), lambda n, b: (b, 0, n))]
                + [pl.BlockSpec(w.shape, lambda n, b: (0, 0))
                   for w in weight_args])
    out_shapes = (jax.ShapeDtypeStruct((B, 64, l_pad), jnp.float32),
                  jax.ShapeDtypeStruct((B, 1, l_pad), jnp.float32))
    out_specs = (pl.BlockSpec((1, 64, tn), lambda n, b: (b, 0, n)),
                 pl.BlockSpec((1, 1, tn), lambda n, b: (b, 0, n)))

    feat, score = pl.pallas_call(
        _img_branch_kernel,
        out_shape=out_shapes,
        grid=(l_pad // tn, B),
        in_specs=in_specs,
        out_specs=out_specs,
        compiler_params=_compiler_params(),
    )(x, *weight_args)

    if l_pad != L:
        feat, score = feat[..., :L], score[..., :L]
    return feat, score


# ----------------------------------------------------------------------------
# deterministic synthetic parameters (shapes follow MAI2P.__init__)
# ----------------------------------------------------------------------------
def _prep_affine_layer(key, cin, cout, has_norm=True):
    """Conv(1x1, bias=False) [+ eval BatchNorm].  BN scale folded into the
    weight rows; returns (bf16 weight (cout, cin), f32 bias (cout, 1))."""
    kw, ks, kb = jax.random.split(key, 3)
    std = 1.0 / jnp.sqrt(jnp.float32(cin))
    w = jax.random.normal(kw, (cout, cin), jnp.float32) * std
    if has_norm:
        scale = 1.0 + 0.1 * jax.random.normal(ks, (cout, 1), jnp.float32)
        bias = 0.1 * jax.random.normal(kb, (cout, 1), jnp.float32)
    else:
        scale = jnp.ones((cout, 1), jnp.float32)
        bias = jnp.zeros((cout, 1), jnp.float32)
    return (w * scale).astype(jnp.bfloat16), bias


def make_params(key, hw_fine):
    ks = jax.random.split(key, 18)
    # per_point_pn: PointNet(736, [256, 256, 128], norm_act_at_last=True)
    pn_w1, pn_b1 = _prep_affine_layer(ks[0], 736, 256, True)
    pn_w2, pn_b2 = _prep_affine_layer(ks[1], 256, 256, True)
    pn_w3, pn_b3 = _prep_affine_layer(ks[2], 256, 128, True)
    # point_classifer: PointNet(864, [256, 256, hw_fine], norm_act_at_last=False)
    cl_w1, cl_b1 = _prep_affine_layer(ks[3], 864, 256, True)
    cl_w2, cl_b2 = _prep_affine_layer(ks[4], 256, 256, True)
    cl_w3, cl_b3 = _prep_affine_layer(ks[5], 256, hw_fine, False)
    # pc_feature_layer: 128 -> 128 -> 128 -> 64, BN all, ReLU except last
    pf_w1, pf_b1 = _prep_affine_layer(ks[6], 128, 128, True)
    pf_w2, pf_b2 = _prep_affine_layer(ks[7], 128, 128, True)
    pf_w3, pf_b3 = _prep_affine_layer(ks[8], 128, 64, True)
    # pc_score_layer: 128 -> 128 -> 64 (BN+ReLU), Conv(64->1, no bias)+Sigmoid
    ps_w1, ps_b1 = _prep_affine_layer(ks[9], 128, 128, True)
    ps_w2, ps_b2 = _prep_affine_layer(ks[10], 128, 64, True)
    ps_w3 = jax.random.normal(ks[11], (64, 1), jnp.float32) / jnp.sqrt(64.0)
    # img_feature_layer: 64 -> 64 -> 64 -> 64, BN all
    if_w1, if_b1 = _prep_affine_layer(ks[12], 64, 64, True)
    if_w2, if_b2 = _prep_affine_layer(ks[13], 64, 64, True)
    if_w3, if_b3 = _prep_affine_layer(ks[14], 64, 64, True)
    # img_score_layer: 64 -> 64 -> 64 (BN+ReLU), Conv(64->1, no bias)+Sigmoid
    is_w1, is_b1 = _prep_affine_layer(ks[15], 64, 64, True)
    is_w2, is_b2 = _prep_affine_layer(ks[16], 64, 64, True)
    is_w3 = jax.random.normal(ks[17], (64, 1), jnp.float32) / jnp.sqrt(64.0)

    # --- head stacking (perf): pn-l1 ∥ cl-l1 shared-K, pf-l1 ∥ ps-l1, if ∥ is
    point = dict(
        w1_stack=jnp.concatenate([pn_w1, cl_w1[:, :736]], axis=0),   # (512, 736)
        b1_stack=jnp.concatenate([pn_b1, cl_b1], axis=0),            # (512, 1)
        clv_w1=cl_w1[:, 736:],                                       # (256, 128)
        pn_w2=pn_w2, pn_b2=pn_b2, pn_w3=pn_w3, pn_b3=pn_b3,
        cl_w2=cl_w2, cl_b2=cl_b2, cl_w3=cl_w3, cl_b3=cl_b3,
        fs_w1=jnp.concatenate([pf_w1, ps_w1], axis=0),               # (256, 128)
        fs_b1=jnp.concatenate([pf_b1, ps_b1], axis=0),               # (256, 1)
        pf_w2=pf_w2, pf_b2=pf_b2, pf_w3=pf_w3, pf_b3=pf_b3,
        ps_w2=ps_w2, ps_b2=ps_b2, ps_w3vec=ps_w3)
    image = dict(
        fs_w1=jnp.concatenate([if_w1, is_w1], axis=0),               # (128, 64)
        fs_b1=jnp.concatenate([if_b1, is_b1], axis=0),               # (128, 1)
        f_w2=if_w2, f_b2=if_b2, f_w3=if_w3, f_b3=if_b3,
        s_w2=is_w2, s_b2=is_b2, s_w3vec=is_w3)
    return {"point": point, "image": image}


# ----------------------------------------------------------------------------
# MAI2P head forward
# ----------------------------------------------------------------------------
def mai2p_head_forward(params, i2p0, i2p1, first_pn_out, second_pn_out,
                       voxel_feat, p2i_feature):
    B, C_img, H2, W2 = p2i_feature.shape

    # point branch (per_point_pn, point_classifer, pc_feature/score + normalize)
    pc_feature_norm, pc_score, pc_class_scores = point_branch_forward(
        params["point"], i2p0, i2p1, first_pn_out, second_pn_out, voxel_feat)

    # image branch (img_feature/score layers + normalize)
    img_rows = p2i_feature.reshape(B, C_img, H2 * W2)
    img_feature_norm, img_score_flat = img_branch_forward(params["image"], img_rows)
    img_score = img_score_flat.reshape(B, 1, H2, W2)

    return (img_feature_norm, pc_feature_norm, img_score, pc_score,
            pc_class_scores)


# ----------------------------------------------------------------------------
# main
# ----------------------------------------------------------------------------
if __name__ == "__main__":
    # small "Options": img_H=32, img_W=32, img_fine_resolution_scale=8
    H_fine_res, W_fine_res = 4, 4
    HW_FINE = H_fine_res * W_fine_res          # point_classifer output channels
    B, N = 2, 128                              # batch, number of points
    H2, W2 = 8, 8                              # P2I fused image feature map

    key = jax.random.PRNGKey(0)
    kp, k0, k1, k2, k3, k4, k5 = jax.random.split(key, 7)
    params = make_params(kp, HW_FINE)

    # deterministic stand-ins for the external backbone outputs (see TODO above)
    i2p0 = jax.random.normal(k0, (B, 32, N), jnp.float32)    # I2P_feature_set[0]
    i2p1 = jax.random.normal(k1, (B, 64, N), jnp.float32)    # I2P_feature_set[1]
    first_pn_out = jax.random.normal(k2, (B, 128, N), jnp.float32)
    second_pn_out = jax.random.normal(k3, (B, 512, N), jnp.float32)
    voxel_feat = jax.random.normal(k4, (B, 128, N), jnp.float32)
    p2i_feature = jax.random.normal(k5, (B, 64, H2, W2), jnp.float32)

    fwd = jax.jit(functools.partial(mai2p_head_forward, params))
    outs = fwd(i2p0, i2p1, first_pn_out, second_pn_out, voxel_feat, p2i_feature)
    outs = jax.block_until_ready(outs)

    (img_feature_norm, pc_feature_norm, img_score, pc_score,
     pc_class_scores) = outs
    assert img_feature_norm.shape == (B, 64, H2 * W2)
    assert pc_feature_norm.shape == (B, 64, N)
    assert img_score.shape == (B, 1, H2, W2)
    assert pc_score.shape == (B, 1, N)
    assert pc_class_scores.shape == (B, HW_FINE, N)
    assert all(bool(jnp.isfinite(o).all()) for o in outs)
    print("KERNEL_OK")
</pallas_src>

<mosaic_0001>
module attributes {stable_mosaic.version = 11 : i64} {
  func.func @_point_branch_kernel(%arg0: i32, %arg1: i32, %arg2: memref<1x32x128xbf16, #tpu.memory_space<vmem>>, %arg3: memref<1x64x128xbf16, #tpu.memory_space<vmem>>, %arg4: memref<1x128x128xbf16, #tpu.memory_space<vmem>>, %arg5: memref<1x512x128xbf16, #tpu.memory_space<vmem>>, %arg6: memref<1x128x128xbf16, #tpu.memory_space<vmem>>, %arg7: memref<512x736xbf16, #tpu.memory_space<vmem>>, %arg8: memref<512x1xf32, #tpu.memory_space<vmem>>, %arg9: memref<256x128xbf16, #tpu.memory_space<vmem>>, %arg10: memref<256x256xbf16, #tpu.memory_space<vmem>>, %arg11: memref<256x1xf32, #tpu.memory_space<vmem>>, %arg12: memref<128x256xbf16, #tpu.memory_space<vmem>>, %arg13: memref<128x1xf32, #tpu.memory_space<vmem>>, %arg14: memref<256x256xbf16, #tpu.memory_space<vmem>>, %arg15: memref<256x1xf32, #tpu.memory_space<vmem>>, %arg16: memref<16x256xbf16, #tpu.memory_space<vmem>>, %arg17: memref<16x1xf32, #tpu.memory_space<vmem>>, %arg18: memref<256x128xbf16, #tpu.memory_space<vmem>>, %arg19: memref<256x1xf32, #tpu.memory_space<vmem>>, %arg20: memref<128x128xbf16, #tpu.memory_space<vmem>>, %arg21: memref<128x1xf32, #tpu.memory_space<vmem>>, %arg22: memref<64x128xbf16, #tpu.memory_space<vmem>>, %arg23: memref<64x1xf32, #tpu.memory_space<vmem>>, %arg24: memref<64x128xbf16, #tpu.memory_space<vmem>>, %arg25: memref<64x1xf32, #tpu.memory_space<vmem>>, %arg26: memref<64x1xf32, #tpu.memory_space<vmem>>, %arg27: memref<1x64x128xf32, #tpu.memory_space<vmem>>, %arg28: memref<1x1x128xf32, #tpu.memory_space<vmem>>, %arg29: memref<1x16x128xf32, #tpu.memory_space<vmem>>, %arg30: memref<736x128xbf16, #tpu.memory_space<vmem>>) attributes {dimension_semantics = [#tpu.dimension_semantics<parallel>, #tpu.dimension_semantics<parallel>], iteration_bounds = array<i64: 1, 2>, scalar_prefetch = 0 : i64, scratch_operands = 1 : i64, tpu.core_type = #tpu.core_type<tc>, window_params = [{transform_indices = @transform_0, window_bounds = array<i64: 1, 32, 128>}, {transform_indices = @transform_1, window_bounds = array<i64: 1, 64, 128>}, {transform_indices = @transform_2, window_bounds = array<i64: 1, 128, 128>}, {transform_indices = @transform_3, window_bounds = array<i64: 1, 512, 128>}, {transform_indices = @transform_4, window_bounds = array<i64: 1, 128, 128>}, {pipeline_mode = #tpu.pipeline_mode<synchronous>, transform_indices = @transform_5, window_bounds = array<i64: 512, 736>}, {pipeline_mode = #tpu.pipeline_mode<synchronous>, transform_indices = @transform_6, window_bounds = array<i64: 512, 1>}, {pipeline_mode = #tpu.pipeline_mode<synchronous>, transform_indices = @transform_7, window_bounds = array<i64: 256, 128>}, {pipeline_mode = #tpu.pipeline_mode<synchronous>, transform_indices = @transform_8, window_bounds = array<i64: 256, 256>}, {pipeline_mode = #tpu.pipeline_mode<synchronous>, transform_indices = @transform_9, window_bounds = array<i64: 256, 1>}, {pipeline_mode = #tpu.pipeline_mode<synchronous>, transform_indices = @transform_10, window_bounds = array<i64: 128, 256>}, {pipeline_mode = #tpu.pipeline_mode<synchronous>, transform_indices = @transform_11, window_bounds = array<i64: 128, 1>}, {pipeline_mode = #tpu.pipeline_mode<synchronous>, transform_indices = @transform_12, window_bounds = array<i64: 256, 256>}, {pipeline_mode = #tpu.pipeline_mode<synchronous>, transform_indices = @transform_13, window_bounds = array<i64: 256, 1>}, {pipeline_mode = #tpu.pipeline_mode<synchronous>, transform_indices = @transform_14, window_bounds = array<i64: 16, 256>}, {pipeline_mode = #tpu.pipeline_mode<synchronous>, transform_indices = @transform_15, window_bounds = array<i64: 16, 1>}, {pipeline_mode = #tpu.pipeline_mode<synchronous>, transform_indices = @transform_16, window_bounds = array<i64: 256, 128>}, {pipeline_mode = #tpu.pipeline_mode<synchronous>, transform_indices = @transform_17, window_bounds = array<i64: 256, 1>}, {pipeline_mode = #tpu.pipeline_mode<synchronous>, transform_indices = @transform_18, window_bounds = array<i64: 128, 128>}, {pipeline_mode = #tpu.pipeline_mode<synchronous>, transform_indices = @transform_19, window_bounds = array<i64: 128, 1>}, {pipeline_mode = #tpu.pipeline_mode<synchronous>, transform_indices = @transform_20, window_bounds = array<i64: 64, 128>}, {pipeline_mode = #tpu.pipeline_mode<synchronous>, transform_indices = @transform_21, window_bounds = array<i64: 64, 1>}, {pipeline_mode = #tpu.pipeline_mode<synchronous>, transform_indices = @transform_22, window_bounds = array<i64: 64, 128>}, {pipeline_mode = #tpu.pipeline_mode<synchronous>, transform_indices = @transform_23, window_bounds = array<i64: 64, 1>}, {pipeline_mode = #tpu.pipeline_mode<synchronous>, transform_indices = @transform_24, window_bounds = array<i64: 64, 1>}, {transform_indices = @transform_25, window_bounds = array<i64: 1, 64, 128>}, {transform_indices = @transform_26, window_bounds = array<i64: 1, 1, 128>}, {transform_indices = @transform_27, window_bounds = array<i64: 1, 16, 128>}]} {
    %c0 = arith.constant 0 : index
    %c0_0 = arith.constant 0 : index
    %c0_1 = arith.constant 0 : index
    %0 = vector.load %arg6[%c0, %c0_0, %c0_1] : memref<1x128x128xbf16, #tpu.memory_space<vmem>>, vector<1x128x128xbf16>
    %1 = vector.shape_cast %0 : vector<1x128x128xbf16> to vector<128x128xbf16>
    %c0_2 = arith.constant 0 : index
    %c0_3 = arith.constant 0 : index
    %c0_4 = arith.constant 0 : index
    %2 = vector.load %arg2[%c0_2, %c0_3, %c0_4] : memref<1x32x128xbf16, #tpu.memory_space<vmem>>, vector<1x32x128xbf16>
    %3 = vector.shape_cast %2 : vector<1x32x128xbf16> to vector<32x128xbf16>
    %c0_5 = arith.constant 0 : index
    %c0_6 = arith.constant 0 : index
    %4 = vector.load %arg30[%c0_5, %c0_6] : memref<736x128xbf16, #tpu.memory_space<vmem>>, vector<32x128xbf16>
    tpu.vector_store %arg30[%c0_5, %c0_6], %3 {strides = array<i32>} : memref<736x128xbf16, #tpu.memory_space<vmem>>, vector<32x128xbf16>,
    %c0_7 = arith.constant 0 : index
    %c0_8 = arith.constant 0 : index
    %c0_9 = arith.constant 0 : index
    %5 = vector.load %arg3[%c0_7, %c0_8, %c0_9] : memref<1x64x128xbf16, #tpu.memory_space<vmem>>, vector<1x64x128xbf16>
    %6 = vector.shape_cast %5 : vector<1x64x128xbf16> to vector<64x128xbf16>
    %c32 = arith.constant 32 : index
    %c0_10 = arith.constant 0 : index
    %7 = vector.load %arg30[%c32, %c0_10] : memref<736x128xbf16, #tpu.memory_space<vmem>>, vector<64x128xbf16>
    tpu.vector_store %arg30[%c32, %c0_10], %6 {strides = array<i32>} : memref<736x128xbf16, #tpu.memory_space<vmem>>, vector<64x128xbf16>,
    %c0_11 = arith.constant 0 : index
    %c0_12 = arith.constant 0 : index
    %c0_13 = arith.constant 0 : index
    %8 = vector.load %arg4[%c0_11, %c0_12, %c0_13] : memref<1x128x128xbf16, #tpu.memory_space<vmem>>, vector<1x128x128xbf16>
    %9 = vector.shape_cast %8 : vector<1x128x128xbf16> to vector<128x128xbf16>
    %c96 = arith.constant 96 : index
    %c0_14 = arith.constant 0 : index
    %10 = vector.load %arg30[%c96, %c0_14] : memref<736x128xbf16, #tpu.memory_space<vmem>>, vector<128x128xbf16>
    tpu.vector_store %arg30[%c96, %c0_14], %9 {strides = array<i32>} : memref<736x128xbf16, #tpu.memory_space<vmem>>, vector<128x128xbf16>,
    %c0_15 = arith.constant 0 : index
    %c0_16 = arith.constant 0 : index
    %c0_17 = arith.constant 0 : index
    %11 = vector.load %arg5[%c0_15, %c0_16, %c0_17] : memref<1x512x128xbf16, #tpu.memory_space<vmem>>, vector<1x512x128xbf16>
    %12 = vector.shape_cast %11 : vector<1x512x128xbf16> to vector<512x128xbf16>
    %c224 = arith.constant 224 : index
    %c0_18 = arith.constant 0 : index
    %13 = vector.load %arg30[%c224, %c0_18] : memref<736x128xbf16, #tpu.memory_space<vmem>>, vector<512x128xbf16>
    tpu.vector_store %arg30[%c224, %c0_18], %12 {strides = array<i32>} : memref<736x128xbf16, #tpu.memory_space<vmem>>, vector<512x128xbf16>,
    %c0_19 = arith.constant 0 : index
    %c0_20 = arith.constant 0 : index
    %14 = vector.load %arg30[%c0_19, %c0_20] : memref<736x128xbf16, #tpu.memory_space<vmem>>, vector<736x128xbf16>
    %c0_21 = arith.constant 0 : index
    %c0_22 = arith.constant 0 : index
    %15 = vector.load %arg7[%c0_21, %c0_22] : memref<512x736xbf16, #tpu.memory_space<vmem>>, vector<512x736xbf16>
    %cst = arith.constant dense<0.000000e+00> : vector<512x128xf32>
    %16 = tpu.matmul %15, %14, %cst {dimension_numbers = #tpu.dot_dimension_numbers<[1], [0], [0], [1], [0, 0, 1, 1], [], []>} : vector<512x736xbf16>, vector<736x128xbf16>, vector<512x128xf32> -> vector<512x128xf32>
    %c0_23 = arith.constant 0 : index
    %c0_24 = arith.constant 0 : index
    %17 = vector.load %arg8[%c0_23, %c0_24] : memref<512x1xf32, #tpu.memory_space<vmem>>, vector<512x1xf32>
    %18 = vector.broadcast %17 : vector<512x1xf32> to vector<512x128xf32>
    %19 = arith.addf %16, %18 : vector<512x128xf32>
    %20 = vector.extract_strided_slice %19 {offsets = [0, 0], sizes = [256, 128], strides = [1, 1]} : vector<512x128xf32> to vector<256x128xf32>
    %cst_25 = arith.constant 0.000000e+00 : f32
    %21 = vector.broadcast %cst_25 : f32 to vector<256x128xf32>
    %22 = arith.maximumf %20, %21 : vector<256x128xf32>
    %23 = arith.truncf %22 : vector<256x128xf32> to vector<256x128xbf16>
    %24 = vector.extract_strided_slice %19 {offsets = [256, 0], sizes = [256, 128], strides = [1, 1]} : vector<512x128xf32> to vector<256x128xf32>
    %c0_26 = arith.constant 0 : index
    %c0_27 = arith.constant 0 : index
    %25 = vector.load %arg9[%c0_26, %c0_27] : memref<256x128xbf16, #tpu.memory_space<vmem>>, vector<256x128xbf16>
    %cst_28 = arith.constant dense<0.000000e+00> : vector<256x128xf32>
    %26 = tpu.matmul %25, %1, %cst_28 {dimension_numbers = #tpu.dot_dimension_numbers<[1], [0], [0], [1], [0, 0, 1, 1], [], []>} : vector<256x128xbf16>, vector<128x128xbf16>, vector<256x128xf32> -> vector<256x128xf32>
    %27 = arith.addf %24, %26 : vector<256x128xf32>
    %cst_29 = arith.constant 0.000000e+00 : f32
    %28 = vector.broadcast %cst_29 : f32 to vector<256x128xf32>
    %29 = arith.maximumf %27, %28 : vector<256x128xf32>
    %30 = arith.truncf %29 : vector<256x128xf32> to vector<256x128xbf16>
    %c0_30 = arith.constant 0 : index
    %c0_31 = arith.constant 0 : index
    %31 = vector.load %arg10[%c0_30, %c0_31] : memref<256x256xbf16, #tpu.memory_space<vmem>>, vector<256x256xbf16>
    %cst_32 = arith.constant dense<0.000000e+00> : vector<256x128xf32>
    %32 = tpu.matmul %31, %23, %cst_32 {dimension_numbers = #tpu.dot_dimension_numbers<[1], [0], [0], [1], [0, 0, 1, 1], [], []>} : vector<256x256xbf16>, vector<256x128xbf16>, vector<256x128xf32> -> vector<256x128xf32>
    %c0_33 = arith.constant 0 : index
    %c0_34 = arith.constant 0 : index
    %33 = vector.load %arg11[%c0_33, %c0_34] : memref<256x1xf32, #tpu.memory_space<vmem>>, vector<256x1xf32>
    %34 = vector.broadcast %33 : vector<256x1xf32> to vector<256x128xf32>
    %35 = arith.addf %32, %34 : vector<256x128xf32>
    %cst_35 = arith.constant 0.000000e+00 : f32
    %36 = vector.broadcast %cst_35 : f32 to vector<256x128xf32>
    %37 = arith.maximumf %35, %36 : vector<256x128xf32>
    %38 = arith.truncf %37 : vector<256x128xf32> to vector<256x128xbf16>
    %c0_36 = arith.constant 0 : index
    %c0_37 = arith.constant 0 : index
    %39 = vector.load %arg12[%c0_36, %c0_37] : memref<128x256xbf16, #tpu.memory_space<vmem>>, vector<128x256xbf16>
    %cst_38 = arith.constant dense<0.000000e+00> : vector<128x128xf32>
    %40 = tpu.matmul %39, %38, %cst_38 {dimension_numbers = #tpu.dot_dimension_numbers<[1], [0], [0], [1], [0, 0, 1, 1], [], []>} : vector<128x256xbf16>, vector<256x128xbf16>, vector<128x128xf32> -> vector<128x128xf32>
    %c0_39 = arith.constant 0 : index
    %c0_40 = arith.constant 0 : index
    %41 = vector.load %arg13[%c0_39, %c0_40] : memref<128x1xf32, #tpu.memory_space<vmem>>, vector<128x1xf32>
    %42 = vector.broadcast %41 : vector<128x1xf32> to vector<128x128xf32>
    %43 = arith.addf %40, %42 : vector<128x128xf32>
    %cst_41 = arith.constant 0.000000e+00 : f32
    %44 = vector.broadcast %cst_41 : f32 to vector<128x128xf32>
    %45 = arith.maximumf %43, %44 : vector<128x128xf32>
    %46 = arith.truncf %45 : vector<128x128xf32> to vector<128x128xbf16>
    %c0_42 = arith.constant 0 : index
    %c0_43 = arith.constant 0 : index
    %47 = vector.load %arg14[%c0_42, %c0_43] : memref<256x256xbf16, #tpu.memory_space<vmem>>, vector<256x256xbf16>
    %cst_44 = arith.constant dense<0.000000e+00> : vector<256x128xf32>
    %48 = tpu.matmul %47, %30, %cst_44 {dimension_numbers = #tpu.dot_dimension_numbers<[1], [0], [0], [1], [0, 0, 1, 1], [], []>} : vector<256x256xbf16>, vector<256x128xbf16>, vector<256x128xf32> -> vector<256x128xf32>
    %c0_45 = arith.constant 0 : index
    %c0_46 = arith.constant 0 : index
    %49 = vector.load %arg15[%c0_45, %c0_46] : memref<256x1xf32, #tpu.memory_space<vmem>>, vector<256x1xf32>
    %50 = vector.broadcast %49 : vector<256x1xf32> to vector<256x128xf32>
    %51 = arith.addf %48, %50 : vector<256x128xf32>
    %cst_47 = arith.constant 0.000000e+00 : f32
    %52 = vector.broadcast %cst_47 : f32 to vector<256x128xf32>
    %53 = arith.maximumf %51, %52 : vector<256x128xf32>
    %54 = arith.truncf %53 : vector<256x128xf32> to vector<256x128xbf16>
    %c0_48 = arith.constant 0 : index
    %c0_49 = arith.constant 0 : index
    %55 = vector.load %arg16[%c0_48, %c0_49] : memref<16x256xbf16, #tpu.memory_space<vmem>>, vector<16x256xbf16>
    %cst_50 = arith.constant dense<0.000000e+00> : vector<16x128xf32>
    %56 = tpu.matmul %55, %54, %cst_50 {dimension_numbers = #tpu.dot_dimension_numbers<[1], [0], [0], [1], [0, 0, 1, 1], [], []>} : vector<16x256xbf16>, vector<256x128xbf16>, vector<16x128xf32> -> vector<16x128xf32>
    %c0_51 = arith.constant 0 : index
    %c0_52 = arith.constant 0 : index
    %57 = vector.load %arg17[%c0_51, %c0_52] : memref<16x1xf32, #tpu.memory_space<vmem>>, vector<16x1xf32>
    %58 = vector.broadcast %57 : vector<16x1xf32> to vector<16x128xf32>
    %59 = arith.addf %56, %58 : vector<16x128xf32>
    %c0_53 = arith.constant 0 : index
    %c0_54 = arith.constant 0 : index
    %60 = vector.load %arg18[%c0_53, %c0_54] : memref<256x128xbf16, #tpu.memory_space<vmem>>, vector<256x128xbf16>
    %cst_55 = arith.constant dense<0.000000e+00> : vector<256x128xf32>
    %61 = tpu.matmul %60, %46, %cst_55 {dimension_numbers = #tpu.dot_dimension_numbers<[1], [0], [0], [1], [0, 0, 1, 1], [], []>} : vector<256x128xbf16>, vector<128x128xbf16>, vector<256x128xf32> -> vector<256x128xf32>
    %c0_56 = arith.constant 0 : index
    %c0_57 = arith.constant 0 : index
    %62 = vector.load %arg19[%c0_56, %c0_57] : memref<256x1xf32, #tpu.memory_space<vmem>>, vector<256x1xf32>
    %63 = vector.broadcast %62 : vector<256x1xf32> to vector<256x128xf32>
    %64 = arith.addf %61, %63 : vector<256x128xf32>
    %cst_58 = arith.constant 0.000000e+00 : f32
    %65 = vector.broadcast %cst_58 : f32 to vector<256x128xf32>
    %66 = arith.maximumf %64, %65 : vector<256x128xf32>
    %67 = vector.extract_strided_slice %66 {offsets = [0, 0], sizes = [128, 128], strides = [1, 1]} : vector<256x128xf32> to vector<128x128xf32>
    %68 = arith.truncf %67 : vector<128x128xf32> to vector<128x128xbf16>
    %69 = vector.extract_strided_slice %66 {offsets = [128, 0], sizes = [128, 128], strides = [1, 1]} : vector<256x128xf32> to vector<128x128xf32>
    %70 = arith.truncf %69 : vector<128x128xf32> to vector<128x128xbf16>
    %c0_59 = arith.constant 0 : index
    %c0_60 = arith.constant 0 : index
    %71 = vector.load %arg20[%c0_59, %c0_60] : memref<128x128xbf16, #tpu.memory_space<vmem>>, vector<128x128xbf16>
    %cst_61 = arith.constant dense<0.000000e+00> : vector<128x128xf32>
    %72 = tpu.matmul %71, %68, %cst_61 {dimension_numbers = #tpu.dot_dimension_numbers<[1], [0], [0], [1], [0, 0, 1, 1], [], []>} : vector<128x128xbf16>, vector<128x128xbf16>, vector<128x128xf32> -> vector<128x128xf32>
    %c0_62 = arith.constant 0 : index
    %c0_63 = arith.constant 0 : index
    %73 = vector.load %arg21[%c0_62, %c0_63] : memref<128x1xf32, #tpu.memory_space<vmem>>, vector<128x1xf32>
    %74 = vector.broadcast %73 : vector<128x1xf32> to vector<128x128xf32>
    %75 = arith.addf %72, %74 : vector<128x128xf32>
    %cst_64 = arith.constant 0.000000e+00 : f32
    %76 = vector.broadcast %cst_64 : f32 to vector<128x128xf32>
    %77 = arith.maximumf %75, %76 : vector<128x128xf32>
    %78 = arith.truncf %77 : vector<128x128xf32> to vector<128x128xbf16>
    %c0_65 = arith.constant 0 : index
    %c0_66 = arith.constant 0 : index
    %79 = vector.load %arg22[%c0_65, %c0_66] : memref<64x128xbf16, #tpu.memory_space<vmem>>, vector<64x128xbf16>
    %cst_67 = arith.constant dense<0.000000e+00> : vector<64x128xf32>
    %80 = tpu.matmul %79, %78, %cst_67 {dimension_numbers = #tpu.dot_dimension_numbers<[1], [0], [0], [1], [0, 0, 1, 1], [], []>} : vector<64x128xbf16>, vector<128x128xbf16>, vector<64x128xf32> -> vector<64x128xf32>
    %c0_68 = arith.constant 0 : index
    %c0_69 = arith.constant 0 : index
    %81 = vector.load %arg23[%c0_68, %c0_69] : memref<64x1xf32, #tpu.memory_space<vmem>>, vector<64x1xf32>
    %82 = vector.broadcast %81 : vector<64x1xf32> to vector<64x128xf32>
    %83 = arith.addf %80, %82 : vector<64x128xf32>
    %84 = arith.mulf %83, %83 : vector<64x128xf32>
    %cst_70 = arith.constant dense<0.000000e+00> : vector<128xf32>
    %85 = vector.multi_reduction <add>, %84, %cst_70 [0] : vector<64x128xf32> to vector<128xf32>
    %86 = vector.shape_cast %85 : vector<128xf32> to vector<1x128xf32>
    %cst_71 = arith.constant 1.000000e-24 : f32
    %87 = vector.broadcast %cst_71 : f32 to vector<1x128xf32>
    %88 = arith.maximumf %86, %87 : vector<1x128xf32>
    %89 = math.rsqrt %88 : vector<1x128xf32>
    %90 = vector.broadcast %89 : vector<1x128xf32> to vector<64x128xf32>
    %91 = arith.mulf %83, %90 : vector<64x128xf32>
    %c0_72 = arith.constant 0 : index
    %c0_73 = arith.constant 0 : index
    %92 = vector.load %arg24[%c0_72, %c0_73] : memref<64x128xbf16, #tpu.memory_space<vmem>>, vector<64x128xbf16>
    %cst_74 = arith.constant dense<0.000000e+00> : vector<64x128xf32>
    %93 = tpu.matmul %92, %70, %cst_74 {dimension_numbers = #tpu.dot_dimension_numbers<[1], [0], [0], [1], [0, 0, 1, 1], [], []>} : vector<64x128xbf16>, vector<128x128xbf16>, vector<64x128xf32> -> vector<64x128xf32>
    %c0_75 = arith.constant 0 : index
    %c0_76 = arith.constant 0 : index
    %94 = vector.load %arg25[%c0_75, %c0_76] : memref<64x1xf32, #tpu.memory_space<vmem>>, vector<64x1xf32>
    %95 = vector.broadcast %94 : vector<64x1xf32> to vector<64x128xf32>
    %96 = arith.addf %93, %95 : vector<64x128xf32>
    %cst_77 = arith.constant 0.000000e+00 : f32
    %97 = vector.broadcast %cst_77 : f32 to vector<64x128xf32>
    %98 = arith.maximumf %96, %97 : vector<64x128xf32>
    %c0_78 = arith.constant 0 : index
    %c0_79 = arith.constant 0 : index
    %99 = vector.load %arg26[%c0_78, %c0_79] : memref<64x1xf32, #tpu.memory_space<vmem>>, vector<64x1xf32>
    %100 = vector.broadcast %99 : vector<64x1xf32> to vector<64x128xf32>
    %101 = arith.mulf %98, %100 : vector<64x128xf32>
    %cst_80 = arith.constant dense<0.000000e+00> : vector<128xf32>
    %102 = vector.multi_reduction <add>, %101, %cst_80 [0] : vector<64x128xf32> to vector<128xf32>
    %103 = vector.shape_cast %102 : vector<128xf32> to vector<1x128xf32>
    %104 = arith.negf %103 : vector<1x128xf32>
    %105 = math.exp %104 : vector<1x128xf32>
    %cst_81 = arith.constant 1.000000e+00 : f32
    %106 = vector.broadcast %cst_81 : f32 to vector<1x128xf32>
    %107 = arith.addf %106, %105 : vector<1x128xf32>
    %108 = arith.divf %106, %107 : vector<1x128xf32>
    %c0_82 = arith.constant 0 : index
    %c0_83 = arith.constant 0 : index
    %c0_84 = arith.constant 0 : index
    %109 = vector.load %arg27[%c0_82, %c0_83, %c0_84] : memref<1x64x128xf32, #tpu.memory_space<vmem>>, vector<1x64x128xf32>
    %110 = vector.shape_cast %109 : vector<1x64x128xf32> to vector<64x128xf32>
    %111 = vector.shape_cast %91 : vector<64x128xf32> to vector<1x64x128xf32>
    tpu.vector_store %arg27[%c0_82, %c0_83, %c0_84], %111 {strides = array<i32>} : memref<1x64x128xf32, #tpu.memory_space<vmem>>, vector<1x64x128xf32>,
    %c0_85 = arith.constant 0 : index
    %c0_86 = arith.constant 0 : index
    %c0_87 = arith.constant 0 : index
    %112 = vector.load %arg28[%c0_85, %c0_86, %c0_87] : memref<1x1x128xf32, #tpu.memory_space<vmem>>, vector<1x1x128xf32>
    %113 = vector.shape_cast %112 : vector<1x1x128xf32> to vector<1x128xf32>
    %114 = vector.shape_cast %108 : vector<1x128xf32> to vector<1x1x128xf32>
    tpu.vector_store %arg28[%c0_85, %c0_86, %c0_87], %114 {strides = array<i32>} : memref<1x1x128xf32, #tpu.memory_space<vmem>>, vector<1x1x128xf32>,
    %c0_88 = arith.constant 0 : index
    %c0_89 = arith.constant 0 : index
    %c0_90 = arith.constant 0 : index
    %115 = vector.load %arg29[%c0_88, %c0_89, %c0_90] : memref<1x16x128xf32, #tpu.memory_space<vmem>>, vector<1x16x128xf32>
    %116 = vector.shape_cast %115 : vector<1x16x128xf32> to vector<16x128xf32>
    %117 = vector.shape_cast %59 : vector<16x128xf32> to vector<1x16x128xf32>
    tpu.vector_store %arg29[%c0_88, %c0_89, %c0_90], %117 {strides = array<i32>} : memref<1x16x128xf32, #tpu.memory_space<vmem>>, vector<1x16x128xf32>,
    return
  }
  func.func @transform_0(%arg0: i32, %arg1: i32) -> (i32, i32, i32) {
    %c0_i32 = arith.constant 0 : i32
    %c0_i32_0 = arith.constant 0 : i32
    return %arg1, %c0_i32, %arg0 : i32, i32, i32
  }
  func.func @transform_1(%arg0: i32, %arg1: i32) -> (i32, i32, i32) {
    %c0_i32 = arith.constant 0 : i32
    %c0_i32_0 = arith.constant 0 : i32
    return %arg1, %c0_i32, %arg0 : i32, i32, i32
  }
  func.func @transform_2(%arg0: i32, %arg1: i32) -> (i32, i32, i32) {
    %c0_i32 = arith.constant 0 : i32
    %c0_i32_0 = arith.constant 0 : i32
    return %arg1, %c0_i32, %arg0 : i32, i32, i32
  }
  func.func @transform_3(%arg0: i32, %arg1: i32) -> (i32, i32, i32) {
    %c0_i32 = arith.constant 0 : i32
    %c0_i32_0 = arith.constant 0 : i32
    return %arg1, %c0_i32, %arg0 : i32, i32, i32
  }
  func.func @transform_4(%arg0: i32, %arg1: i32) -> (i32, i32, i32) {
    %c0_i32 = arith.constant 0 : i32
    %c0_i32_0 = arith.constant 0 : i32
    return %arg1, %c0_i32, %arg0 : i32, i32, i32
  }
  func.func @transform_5(%arg0: i32, %arg1: i32) -> (i32, i32) {
    %c0_i32 = arith.constant 0 : i32
    %c0_i32_0 = arith.constant 0 : i32
    %c0_i32_1 = arith.constant 0 : i32
    return %c0_i32, %c0_i32_0 : i32, i32
  }
  func.func @transform_6(%arg0: i32, %arg1: i32) -> (i32, i32) {
    %c0_i32 = arith.constant 0 : i32
    %c0_i32_0 = arith.constant 0 : i32
    %c0_i32_1 = arith.constant 0 : i32
    return %c0_i32, %c0_i32_0 : i32, i32
  }
  func.func @transform_7(%arg0: i32, %arg1: i32) -> (i32, i32) {
    %c0_i32 = arith.constant 0 : i32
    %c0_i32_0 = arith.constant 0 : i32
    %c0_i32_1 = arith.constant 0 : i32
    return %c0_i32, %c0_i32_0 : i32, i32
  }
  func.func @transform_8(%arg0: i32, %arg1: i32) -> (i32, i32) {
    %c0_i32 = arith.constant 0 : i32
    %c0_i32_0 = arith.constant 0 : i32
    %c0_i32_1 = arith.constant 0 : i32
    return %c0_i32, %c0_i32_0 : i32, i32
  }
  func.func @transform_9(%arg0: i32, %arg1: i32) -> (i32, i32) {
    %c0_i32 = arith.constant 0 : i32
    %c0_i32_0 = arith.constant 0 : i32
    %c0_i32_1 = arith.constant 0 : i32
    return %c0_i32, %c0_i32_0 : i32, i32
  }
  func.func @transform_10(%arg0: i32, %arg1: i32) -> (i32, i32) {
    %c0_i32 = arith.constant 0 : i32
    %c0_i32_0 = arith.constant 0 : i32
    %c0_i32_1 = arith.constant 0 : i32
    return %c0_i32, %c0_i32_0 : i32, i32
  }
  func.func @transform_11(%arg0: i32, %arg1: i32) -> (i32, i32) {
    %c0_i32 = arith.constant 0 : i32
    %c0_i32_0 = arith.constant 0 : i32
    %c0_i32_1 = arith.constant 0 : i32
    return %c0_i32, %c0_i32_0 : i32, i32
  }
  func.func @transform_12(%arg0: i32, %arg1: i32) -> (i32, i32) {
    %c0_i32 = arith.constant 0 : i32
    %c0_i32_0 = arith.constant 0 : i32
    %c0_i32_1 = arith.constant 0 : i32
    return %c0_i32, %c0_i32_0 : i32, i32
  }
  func.func @transform_13(%arg0: i32, %arg1: i32) -> (i32, i32) {
    %c0_i32 = arith.constant 0 : i32
    %c0_i32_0 = arith.constant 0 : i32
    %c0_i32_1 = arith.constant 0 : i32
    return %c0_i32, %c0_i32_0 : i32, i32
  }
  func.func @transform_14(%arg0: i32, %arg1: i32) -> (i32, i32) {
    %c0_i32 = arith.constant 0 : i32
    %c0_i32_0 = arith.constant 0 : i32
    %c0_i32_1 = arith.constant 0 : i32
    return %c0_i32, %c0_i32_0 : i32, i32
  }
  func.func @transform_15(%arg0: i32, %arg1: i32) -> (i32, i32) {
    %c0_i32 = arith.constant 0 : i32
    %c0_i32_0 = arith.constant 0 : i32
    %c0_i32_1 = arith.constant 0 : i32
    return %c0_i32, %c0_i32_0 : i32, i32
  }
  func.func @transform_16(%arg0: i32, %arg1: i32) -> (i32, i32) {
    %c0_i32 = arith.constant 0 : i32
    %c0_i32_0 = arith.constant 0 : i32
    %c0_i32_1 = arith.constant 0 : i32
    return %c0_i32, %c0_i32_0 : i32, i32
  }
  func.func @transform_17(%arg0: i32, %arg1: i32) -> (i32, i32) {
    %c0_i32 = arith.constant 0 : i32
    %c0_i32_0 = arith.constant 0 : i32
    %c0_i32_1 = arith.constant 0 : i32
    return %c0_i32, %c0_i32_0 : i32, i32
  }
  func.func @transform_18(%arg0: i32, %arg1: i32) -> (i32, i32) {
    %c0_i32 = arith.constant 0 : i32
    %c0_i32_0 = arith.constant 0 : i32
    %c0_i32_1 = arith.constant 0 : i32
    return %c0_i32, %c0_i32_0 : i32, i32
  }
  func.func @transform_19(%arg0: i32, %arg1: i32) -> (i32, i32) {
    %c0_i32 = arith.constant 0 : i32
    %c0_i32_0 = arith.constant 0 : i32
    %c0_i32_1 = arith.constant 0 : i32
    return %c0_i32, %c0_i32_0 : i32, i32
  }
  func.func @transform_20(%arg0: i32, %arg1: i32) -> (i32, i32) {
    %c0_i32 = arith.constant 0 : i32
    %c0_i32_0 = arith.constant 0 : i32
    %c0_i32_1 = arith.constant 0 : i32
    return %c0_i32, %c0_i32_0 : i32, i32
  }
  func.func @transform_21(%arg0: i32, %arg1: i32) -> (i32, i32) {
    %c0_i32 = arith.constant 0 : i32
    %c0_i32_0 = arith.constant 0 : i32
    %c0_i32_1 = arith.constant 0 : i32
    return %c0_i32, %c0_i32_0 : i32, i32
  }
  func.func @transform_22(%arg0: i32, %arg1: i32) -> (i32, i32) {
    %c0_i32 = arith.constant 0 : i32
    %c0_i32_0 = arith.constant 0 : i32
    %c0_i32_1 = arith.constant 0 : i32
    return %c0_i32, %c0_i32_0 : i32, i32
  }
  func.func @transform_23(%arg0: i32, %arg1: i32) -> (i32, i32) {
    %c0_i32 = arith.constant 0 : i32
    %c0_i32_0 = arith.constant 0 : i32
    %c0_i32_1 = arith.constant 0 : i32
    return %c0_i32, %c0_i32_0 : i32, i32
  }
  func.func @transform_24(%arg0: i32, %arg1: i32) -> (i32, i32) {
    %c0_i32 = arith.constant 0 : i32
    %c0_i32_0 = arith.constant 0 : i32
    %c0_i32_1 = arith.constant 0 : i32
    return %c0_i32, %c0_i32_0 : i32, i32
  }
  func.func @transform_25(%arg0: i32, %arg1: i32) -> (i32, i32, i32) {
    %c0_i32 = arith.constant 0 : i32
    %c0_i32_0 = arith.constant 0 : i32
    return %arg1, %c0_i32, %arg0 : i32, i32, i32
  }
  func.func @transform_26(%arg0: i32, %arg1: i32) -> (i32, i32, i32) {
    %c0_i32 = arith.constant 0 : i32
    %c0_i32_0 = arith.constant 0 : i32
    return %arg1, %c0_i32, %arg0 : i32, i32, i32
  }
  func.func @transform_27(%arg0: i32, %arg1: i32) -> (i32, i32, i32) {
    %c0_i32 = arith.constant 0 : i32
    %c0_i32_0 = arith.constant 0 : i32
    return %arg1, %c0_i32, %arg0 : i32, i32, i32
  }
}

module attributes {stable_mosaic.version = 11 : i64} {
  func.func @_img_branch_kernel(%arg0: i32, %arg1: i32, %arg2: memref<1x64x128xbf16, #tpu.memory_space<vmem>>, %arg3: memref<128x64xbf16, #tpu.memory_space<vmem>>, %arg4: memref<128x1xf32, #tpu.memory_space<vmem>>, %arg5: memref<64x64xbf16, #tpu.memory_space<vmem>>, %arg6: memref<64x1xf32, #tpu.memory_space<vmem>>, %arg7: memref<64x64xbf16, #tpu.memory_space<vmem>>, %arg8: memref<64x1xf32, #tpu.memory_space<vmem>>, %arg9: memref<64x64xbf16, #tpu.memory_space<vmem>>, %arg10: memref<64x1xf32, #tpu.memory_space<vmem>>, %arg11: memref<64x1xf32, #tpu.memory_space<vmem>>, %arg12: memref<1x64x128xf32, #tpu.memory_space<vmem>>, %arg13: memref<1x1x128xf32, #tpu.memory_space<vmem>>) attributes {dimension_semantics = [#tpu.dimension_semantics<parallel>, #tpu.dimension_semantics<parallel>], iteration_bounds = array<i64: 1, 2>, scalar_prefetch = 0 : i64, scratch_operands = 0 : i64, tpu.core_type = #tpu.core_type<tc>, window_params = [{transform_indices = @transform_0, window_bounds = array<i64: 1, 64, 128>}, {pipeline_mode = #tpu.pipeline_mode<synchronous>, transform_indices = @transform_1, window_bounds = array<i64: 128, 64>}, {pipeline_mode = #tpu.pipeline_mode<synchronous>, transform_indices = @transform_2, window_bounds = array<i64: 128, 1>}, {pipeline_mode = #tpu.pipeline_mode<synchronous>, transform_indices = @transform_3, window_bounds = array<i64: 64, 64>}, {pipeline_mode = #tpu.pipeline_mode<synchronous>, transform_indices = @transform_4, window_bounds = array<i64: 64, 1>}, {pipeline_mode = #tpu.pipeline_mode<synchronous>, transform_indices = @transform_5, window_bounds = array<i64: 64, 64>}, {pipeline_mode = #tpu.pipeline_mode<synchronous>, transform_indices = @transform_6, window_bounds = array<i64: 64, 1>}, {pipeline_mode = #tpu.pipeline_mode<synchronous>, transform_indices = @transform_7, window_bounds = array<i64: 64, 64>}, {pipeline_mode = #tpu.pipeline_mode<synchronous>, transform_indices = @transform_8, window_bounds = array<i64: 64, 1>}, {pipeline_mode = #tpu.pipeline_mode<synchronous>, transform_indices = @transform_9, window_bounds = array<i64: 64, 1>}, {transform_indices = @transform_10, window_bounds = array<i64: 1, 64, 128>}, {transform_indices = @transform_11, window_bounds = array<i64: 1, 1, 128>}]} {
    %c0 = arith.constant 0 : index
    %c0_0 = arith.constant 0 : index
    %c0_1 = arith.constant 0 : index
    %0 = vector.load %arg2[%c0, %c0_0, %c0_1] : memref<1x64x128xbf16, #tpu.memory_space<vmem>>, vector<1x64x128xbf16>
    %1 = vector.shape_cast %0 : vector<1x64x128xbf16> to vector<64x128xbf16>
    %c0_2 = arith.constant 0 : index
    %c0_3 = arith.constant 0 : index
    %2 = vector.load %arg3[%c0_2, %c0_3] : memref<128x64xbf16, #tpu.memory_space<vmem>>, vector<128x64xbf16>
    %cst = arith.constant dense<0.000000e+00> : vector<128x128xf32>
    %3 = tpu.matmul %2, %1, %cst {dimension_numbers = #tpu.dot_dimension_numbers<[1], [0], [0], [1], [0, 0, 1, 1], [], []>} : vector<128x64xbf16>, vector<64x128xbf16>, vector<128x128xf32> -> vector<128x128xf32>
    %c0_4 = arith.constant 0 : index
    %c0_5 = arith.constant 0 : index
    %4 = vector.load %arg4[%c0_4, %c0_5] : memref<128x1xf32, #tpu.memory_space<vmem>>, vector<128x1xf32>
    %5 = vector.broadcast %4 : vector<128x1xf32> to vector<128x128xf32>
    %6 = arith.addf %3, %5 : vector<128x128xf32>
    %cst_6 = arith.constant 0.000000e+00 : f32
    %7 = vector.broadcast %cst_6 : f32 to vector<128x128xf32>
    %8 = arith.maximumf %6, %7 : vector<128x128xf32>
    %9 = vector.extract_strided_slice %8 {offsets = [0, 0], sizes = [64, 128], strides = [1, 1]} : vector<128x128xf32> to vector<64x128xf32>
    %10 = arith.truncf %9 : vector<64x128xf32> to vector<64x128xbf16>
    %11 = vector.extract_strided_slice %8 {offsets = [64, 0], sizes = [64, 128], strides = [1, 1]} : vector<128x128xf32> to vector<64x128xf32>
    %12 = arith.truncf %11 : vector<64x128xf32> to vector<64x128xbf16>
    %c0_7 = arith.constant 0 : index
    %c0_8 = arith.constant 0 : index
    %13 = vector.load %arg5[%c0_7, %c0_8] : memref<64x64xbf16, #tpu.memory_space<vmem>>, vector<64x64xbf16>
    %cst_9 = arith.constant dense<0.000000e+00> : vector<64x128xf32>
    %14 = tpu.matmul %13, %10, %cst_9 {dimension_numbers = #tpu.dot_dimension_numbers<[1], [0], [0], [1], [0, 0, 1, 1], [], []>} : vector<64x64xbf16>, vector<64x128xbf16>, vector<64x128xf32> -> vector<64x128xf32>
    %c0_10 = arith.constant 0 : index
    %c0_11 = arith.constant 0 : index
    %15 = vector.load %arg6[%c0_10, %c0_11] : memref<64x1xf32, #tpu.memory_space<vmem>>, vector<64x1xf32>
    %16 = vector.broadcast %15 : vector<64x1xf32> to vector<64x128xf32>
    %17 = arith.addf %14, %16 : vector<64x128xf32>
    %cst_12 = arith.constant 0.000000e+00 : f32
    %18 = vector.broadcast %cst_12 : f32 to vector<64x128xf32>
    %19 = arith.maximumf %17, %18 : vector<64x128xf32>
    %20 = arith.truncf %19 : vector<64x128xf32> to vector<64x128xbf16>
    %c0_13 = arith.constant 0 : index
    %c0_14 = arith.constant 0 : index
    %21 = vector.load %arg7[%c0_13, %c0_14] : memref<64x64xbf16, #tpu.memory_space<vmem>>, vector<64x64xbf16>
    %cst_15 = arith.constant dense<0.000000e+00> : vector<64x128xf32>
    %22 = tpu.matmul %21, %20, %cst_15 {dimension_numbers = #tpu.dot_dimension_numbers<[1], [0], [0], [1], [0, 0, 1, 1], [], []>} : vector<64x64xbf16>, vector<64x128xbf16>, vector<64x128xf32> -> vector<64x128xf32>
    %c0_16 = arith.constant 0 : index
    %c0_17 = arith.constant 0 : index
    %23 = vector.load %arg8[%c0_16, %c0_17] : memref<64x1xf32, #tpu.memory_space<vmem>>, vector<64x1xf32>
    %24 = vector.broadcast %23 : vector<64x1xf32> to vector<64x128xf32>
    %25 = arith.addf %22, %24 : vector<64x128xf32>
    %26 = arith.mulf %25, %25 : vector<64x128xf32>
    %cst_18 = arith.constant dense<0.000000e+00> : vector<128xf32>
    %27 = vector.multi_reduction <add>, %26, %cst_18 [0] : vector<64x128xf32> to vector<128xf32>
    %28 = vector.shape_cast %27 : vector<128xf32> to vector<1x128xf32>
    %cst_19 = arith.constant 1.000000e-24 : f32
    %29 = vector.broadcast %cst_19 : f32 to vector<1x128xf32>
    %30 = arith.maximumf %28, %29 : vector<1x128xf32>
    %31 = math.rsqrt %30 : vector<1x128xf32>
    %32 = vector.broadcast %31 : vector<1x128xf32> to vector<64x128xf32>
    %33 = arith.mulf %25, %32 : vector<64x128xf32>
    %c0_20 = arith.constant 0 : index
    %c0_21 = arith.constant 0 : index
    %34 = vector.load %arg9[%c0_20, %c0_21] : memref<64x64xbf16, #tpu.memory_space<vmem>>, vector<64x64xbf16>
    %cst_22 = arith.constant dense<0.000000e+00> : vector<64x128xf32>
    %35 = tpu.matmul %34, %12, %cst_22 {dimension_numbers = #tpu.dot_dimension_numbers<[1], [0], [0], [1], [0, 0, 1, 1], [], []>} : vector<64x64xbf16>, vector<64x128xbf16>, vector<64x128xf32> -> vector<64x128xf32>
    %c0_23 = arith.constant 0 : index
    %c0_24 = arith.constant 0 : index
    %36 = vector.load %arg10[%c0_23, %c0_24] : memref<64x1xf32, #tpu.memory_space<vmem>>, vector<64x1xf32>
    %37 = vector.broadcast %36 : vector<64x1xf32> to vector<64x128xf32>
    %38 = arith.addf %35, %37 : vector<64x128xf32>
    %cst_25 = arith.constant 0.000000e+00 : f32
    %39 = vector.broadcast %cst_25 : f32 to vector<64x128xf32>
    %40 = arith.maximumf %38, %39 : vector<64x128xf32>
    %c0_26 = arith.constant 0 : index
    %c0_27 = arith.constant 0 : index
    %41 = vector.load %arg11[%c0_26, %c0_27] : memref<64x1xf32, #tpu.memory_space<vmem>>, vector<64x1xf32>
    %42 = vector.broadcast %41 : vector<64x1xf32> to vector<64x128xf32>
    %43 = arith.mulf %40, %42 : vector<64x128xf32>
    %cst_28 = arith.constant dense<0.000000e+00> : vector<128xf32>
    %44 = vector.multi_reduction <add>, %43, %cst_28 [0] : vector<64x128xf32> to vector<128xf32>
    %45 = vector.shape_cast %44 : vector<128xf32> to vector<1x128xf32>
    %46 = arith.negf %45 : vector<1x128xf32>
    %47 = math.exp %46 : vector<1x128xf32>
    %cst_29 = arith.constant 1.000000e+00 : f32
    %48 = vector.broadcast %cst_29 : f32 to vector<1x128xf32>
    %49 = arith.addf %48, %47 : vector<1x128xf32>
    %50 = arith.divf %48, %49 : vector<1x128xf32>
    %c0_30 = arith.constant 0 : index
    %c0_31 = arith.constant 0 : index
    %c0_32 = arith.constant 0 : index
    %51 = vector.load %arg12[%c0_30, %c0_31, %c0_32] : memref<1x64x128xf32, #tpu.memory_space<vmem>>, vector<1x64x128xf32>
    %52 = vector.shape_cast %51 : vector<1x64x128xf32> to vector<64x128xf32>
    %53 = vector.shape_cast %33 : vector<64x128xf32> to vector<1x64x128xf32>
    tpu.vector_store %arg12[%c0_30, %c0_31, %c0_32], %53 {strides = array<i32>} : memref<1x64x128xf32, #tpu.memory_space<vmem>>, vector<1x64x128xf32>,
    %c0_33 = arith.constant 0 : index
    %c0_34 = arith.constant 0 : index
    %c0_35 = arith.constant 0 : index
    %54 = vector.load %arg13[%c0_33, %c0_34, %c0_35] : memref<1x1x128xf32, #tpu.memory_space<vmem>>, vector<1x1x128xf32>
    %55 = vector.shape_cast %54 : vector<1x1x128xf32> to vector<1x128xf32>
    %56 = vector.shape_cast %50 : vector<1x128xf32> to vector<1x1x128xf32>
    tpu.vector_store %arg13[%c0_33, %c0_34, %c0_35], %56 {strides = array<i32>} : memref<1x1x128xf32, #tpu.memory_space<vmem>>, vector<1x1x128xf32>,
    return
  }
  func.func @transform_0(%arg0: i32, %arg1: i32) -> (i32, i32, i32) {
    %c0_i32 = arith.constant 0 : i32
    %c0_i32_0 = arith.constant 0 : i32
    return %arg1, %c0_i32, %arg0 : i32, i32, i32
  }
  func.func @transform_1(%arg0: i32, %arg1: i32) -> (i32, i32) {
    %c0_i32 = arith.constant 0 : i32
    %c0_i32_0 = arith.constant 0 : i32
    %c0_i32_1 = arith.constant 0 : i32
    return %c0_i32, %c0_i32_0 : i32, i32
  }
  func.func @transform_2(%arg0: i32, %arg1: i32) -> (i32, i32) {
    %c0_i32 = arith.constant 0 : i32
    %c0_i32_0 = arith.constant 0 : i32
    %c0_i32_1 = arith.constant 0 : i32
    return %c0_i32, %c0_i32_0 : i32, i32
  }
  func.func @transform_3(%arg0: i32, %arg1: i32) -> (i32, i32) {
    %c0_i32 = arith.constant 0 : i32
    %c0_i32_0 = arith.constant 0 : i32
    %c0_i32_1 = arith.constant 0 : i32
    return %c0_i32, %c0_i32_0 : i32, i32
  }
  func.func @transform_4(%arg0: i32, %arg1: i32) -> (i32, i32) {
    %c0_i32 = arith.constant 0 : i32
    %c0_i32_0 = arith.constant 0 : i32
    %c0_i32_1 = arith.constant 0 : i32
    return %c0_i32, %c0_i32_0 : i32, i32
  }
  func.func @transform_5(%arg0: i32, %arg1: i32) -> (i32, i32) {
    %c0_i32 = arith.constant 0 : i32
    %c0_i32_0 = arith.constant 0 : i32
    %c0_i32_1 = arith.constant 0 : i32
    return %c0_i32, %c0_i32_0 : i32, i32
  }
  func.func @transform_6(%arg0: i32, %arg1: i32) -> (i32, i32) {
    %c0_i32 = arith.constant 0 : i32
    %c0_i32_0 = arith.constant 0 : i32
    %c0_i32_1 = arith.constant 0 : i32
    return %c0_i32, %c0_i32_0 : i32, i32
  }
  func.func @transform_7(%arg0: i32, %arg1: i32) -> (i32, i32) {
    %c0_i32 = arith.constant 0 : i32
    %c0_i32_0 = arith.constant 0 : i32
    %c0_i32_1 = arith.constant 0 : i32
    return %c0_i32, %c0_i32_0 : i32, i32
  }
  func.func @transform_8(%arg0: i32, %arg1: i32) -> (i32, i32) {
    %c0_i32 = arith.constant 0 : i32
    %c0_i32_0 = arith.constant 0 : i32
    %c0_i32_1 = arith.constant 0 : i32
    return %c0_i32, %c0_i32_0 : i32, i32
  }
  func.func @transform_9(%arg0: i32, %arg1: i32) -> (i32, i32) {
    %c0_i32 = arith.constant 0 : i32
    %c0_i32_0 = arith.constant 0 : i32
    %c0_i32_1 = arith.constant 0 : i32
    return %c0_i32, %c0_i32_0 : i32, i32
  }
  func.func @transform_10(%arg0: i32, %arg1: i32) -> (i32, i32, i32) {
    %c0_i32 = arith.constant 0 : i32
    %c0_i32_0 = arith.constant 0 : i32
    return %arg1, %c0_i32, %arg0 : i32, i32, i32
  }
  func.func @transform_11(%arg0: i32, %arg1: i32) -> (i32, i32, i32) {
    %c0_i32 = arith.constant 0 : i32
    %c0_i32_0 = arith.constant 0 : i32
    return %arg1, %c0_i32, %arg0 : i32, i32, i32
  }
}

</mosaic_0001>

<bundles_post_ra>
// kernel: mai2p_head_forward.3
= control target key start
LH: loop header
LB: loop body
LE: loop exit
PB: predicated region body
PF: predicated region fallthrough
CT: control target
= control target key end

     0   :  { %17 = vsyncpa [#allocation3], 0  ;;  %s2317_s0 = inlined_call_operand.vmem [shape: bf16[2,64,128], index: 0, kind: input, shape index: {}]   ;;  %s2318_s1 = inlined_call_operand.vmem [shape: bf16[128,64], index: 1, kind: input, shape index: {}]   ;;  %s2319_s2 = inlined_call_operand.vmem [shape: f32[128,1], index: 2, kind: input, shape index: {}]   ;;  %s2320_s3 = inlined_call_operand.vmem [shape: bf16[64,64], index: 3, kind: input, shape index: {}]   ;;  %s2321_s4 = inlined_call_operand.vmem [shape: f32[64,1], index: 4, kind: input, shape index: {}]   ;;  %s2322_s5 = inlined_call_operand.vmem [shape: bf16[64,64], index: 5, kind: input, shape index: {}]   ;;  %s2323_s6 = inlined_call_operand.vmem [shape: f32[64,1], index: 6, kind: input, shape index: {}]   ;;  %s2324_s7 = inlined_call_operand.vmem [shape: bf16[64,64], index: 7, kind: input, shape index: {}]   ;;  %s2325_s8 = inlined_call_operand.vmem [shape: f32[64,1], index: 8, kind: input, shape index: {}]   ;;  %s2326_s9 = inlined_call_operand.vmem [shape: f32[64,1], index: 9, kind: input, shape index: {}]   ;;  %s2327_s10 = inlined_call_operand.hbm [shape: f32[2,64,128], index: 10, kind: output, shape index: {0}]   ;;  %s2328_s11 = inlined_call_operand.vmem [shape: f32[2,1,128], index: 11, kind: output, shape index: {1}]  }
   0x1   :  { %19 = vsyncpa [#allocation3 + $0x1], 0  ;;  %s1890_s17 = smov 0   ;;  %s1892_s18 = smov 0  }
   0x2   :  { %s1894_s19 = smov 0   ;;  %s1896_s20 = smov 0  }
   0x3   :  { %s1898_s21 = smov 0   ;;  %s1900_s22 = smov 0  }
   0x4 LB: > { %2332 = sst [smem:[#allocation5_spill]] %s1812_s19  ;;  %s1480_s23 = sadd.s32 4294967295, %s1824_s22   ;;  %s1824_s22 = sphi %s1900_s22, %s25_s22   ;;  %s1820_s21 = sphi %s1898_s21, %s2341_s21   ;;  %s1816_s20 = sphi %s1896_s20, %s2340_s20   ;;  %s1812_s19 = sphi %s1894_s19, %s2339_s19   ;;  %s1808_s18 = sphi %s1892_s18, %s2343_s18   ;;  %s1804_s17 = sphi %s1890_s17, %s2342_s17  }
   0x5   : > { %2333 = sst [smem:[#allocation6_spill]] %s1820_s21  ;;  %s1481_s24 = sadd.s32 4294967294, %s1824_s22  }
   0x6   : > { %s34_s25 = sadd.s32 1, %s1820_s21  ;;  %s263_s26 = sadd.s32 1, %s1812_s19 }
   0x7   : > { %p35_p0 = scmp.ge.s32.totalorder %s34_s25, 2  ;;  %p273_p1 = scmp.ne.s32.totalorder %s1812_s19, %s1808_s18 }
   0x8   : > { %p274_p2 = scmp.eq.s32.totalorder %s1480_s23, 1  ;;  %p279_p3 = scmp.ne.s32.totalorder %s1808_s18, %s1804_s17 }
   0x9   : > { %s2345_s25 = smov (%p35_p0, %s34_s25), 0  ;;  %p280_p5 = scmp.eq.s32.totalorder %s1481_s24, 1 }
   0xa   : > { %2334 = sst [smem:[#allocation7_spill]] %s2345_s25  ;;  %p1930_p4 = por %p274_p2, %p273_p1 }
   0xb   : > { %s258_s28 = ssub.s32 %s1820_s21, %s2345_s25  ;;  %p1484_p6 = scmp.ge.s32.totalorder %s1824_s22, 1 }
   0xc   : > { %p261_p7 = scmp.eq.s32.totalorder %s258_s28, 0  ;;  %p1937_p8 = por %p280_p5, %p279_p3 }
   0xd   : > { %p364_p9 = scmp.lt.s32.totalorder %s1824_s22, 3 }
   0xe   : > { %s1943_s30 = scalar_select %p261_p7, %s1812_s19, %s263_s26  }
   0xf   : > { %p365_p10 = pnand %p1484_p6, %p364_p9 }
  0x10   : > { %2337 = sst [smem:[#allocation8_spill]] %s1943_s30  ;;  %p413_p11 = scmp.lt.s32.totalorder (!%p365_p10), %s1816_s20, 1  ;;  %v452_v0 = vld [vmem:[%s2319_s2] sm:$0xff] (!%p365_p10)  ;;  %v454_v1 = vld [vmem:[%s2319_s2 + $0x10] sm:$0xff] (!%p365_p10)  ;;  %v1826_v2 = vmov (!%p365_p10), 0   ;;  %vm612_vm0 = vcmask (!%p365_p10), 523264  }
  0x11   : > { %368 = sbr.rel (%p365_p10) target bundleno = 810 (0x32a), region = 60  ;;  %1714 = vset.pattern.permute.xlu0 (!%p365_p10), %v1826_v2  ;;  %1715 = vset.pattern.permute.xlu1 (!%p365_p10), %v1826_v2  ;;  %v1720_v3 = vld [vmem:[%s2318_s1] sm:$0xff] (!%p365_p10)   ;;  %v453_v4 = vld [vmem:[%s2319_s2 + $0x8] sm:$0xff] (!%p365_p10)  ;;  %v455_v5 = vld [vmem:[%s2319_s2 + $0x18] sm:$0xff] (!%p365_p10)  ;;  %s402_s19 = sand.u32 (!%p365_p10), 1, %s1808_s18  }
  0x12   : > { %470 = vperm.xlu0 (!%p365_p10), %1714, %v452_v0   ;;  %480 = vperm.xlu1 (!%p365_p10), %1715, %v454_v1   ;;  %v456_v6 = vld [vmem:[%s2319_s2 + $0x20] sm:$0xff] (!%p365_p10)  ;;  %v457_v9 = vld [vmem:[%s2319_s2 + $0x28] sm:$0xff] (!%p365_p10)  ;;  %v458_v11 = vld [vmem:[%s2319_s2 + $0x30] sm:$0xff] (!%p365_p10)  ;;  %s1485_s30 = sshll.u32 (!%p365_p10), %s402_s19, 6  ;;  %s1539_s28 = sshll.u32 (!%p365_p10), %s1816_s20, 10 }
  0x13   : > { %1584 = vmatprep.mubr.msk.bf16.mxu0 (!%p365_p10), %vm612_vm0, %v1720_v3  ;;  %v459_v12 = vld [vmem:[%s2319_s2 + $0x38] sm:$0xff] (!%p365_p10)  ;;  %v766_v14 = vld [vmem:[%s2321_s4] sm:$0xff] (!%p365_p10)  ;;  %v767_v15 = vld [vmem:[%s2321_s4 + $0x8] sm:$0xff] (!%p365_p10)  ;;  %s404_s12 = scalar_lea.vmem (!%p365_p10), [#allocation2], %s1485_s30  ;;  %s2260_s23 = scalar_lea.hbm (!%p365_p10), %s2327_s10, %s1539_s28 }
  0x14   : > { %v768_v16 = vld [vmem:[%s2321_s4 + $0x10] sm:$0xff] (!%p365_p10)  ;;  %v1721_v17 = vld [vmem:[%s2318_s1 + $0x8] sm:$0xff] (!%p365_p10)   ;;  %v769_v18 = vld [vmem:[%s2321_s4 + $0x18] sm:$0xff] (!%p365_p10)  ;;  %s1373_s13 = sshll.u32 (!%p365_p10), %s404_s12, 4  ;;  %s2262_s13 = int_to_ptr.vmem [resolvable:$true] %s1373_s13 }
  0x15   : > { %v1722_v19 = vld [vmem:[%s2318_s1 + $0x10] sm:$0xff] (!%p365_p10)   ;;  %v460_v20 = vld [vmem:[%s2319_s2 + $0x40] sm:$0xff] (!%p365_p10)  ;;  %v461_v21 = vld [vmem:[%s2319_s2 + $0x48] sm:$0xff] (!%p365_p10)  ;;  %s1746_s24 = scalar_lea.vmem (!%p365_p10), %s2262_s13, 1024 }
  0x16   : > { %475 = vperm.xlu0 (!%p365_p10), %1714, %v453_v4   ;;  %485 = vperm.xlu1 (!%p365_p10), %1715, %v455_v5   ;;  %v1723_v22 = vld [vmem:[%s2318_s1 + $0x18] sm:$0xff] (!%p365_p10)   ;;  %v1724_v23 = vld [vmem:[%s2318_s1 + $0x20] sm:$0xff] (!%p365_p10)   ;;  %v771_v25 = vld [vmem:[%s2321_s4 + $0x28] sm:$0xff] (!%p365_p10)  ;;  %p1747_p12 = scmp.ne.s32.totalorder (!%p365_p10), %s2262_s13, %s1746_s24 }
  0x17   : > { %v770_v24 = vld [vmem:[%s2321_s4 + $0x20] sm:$0xff] (!%p365_p10)  ;;  %v462_v26 = vld [vmem:[%s2319_s2 + $0x50] sm:$0xff] (!%p365_p10)  ;;  %v463_v27 = vld [vmem:[%s2319_s2 + $0x58] sm:$0xff] (!%p365_p10) }
  0x18   : > { %s1953_s16 = scalar_select %p413_p11, %s1816_s20, 1  ;;  %v772_v28 = vld [vmem:[%s2321_s4 + $0x30] sm:$0xff]  ;;  %v1725_v29 = vld [vmem:[%s2318_s1 + $0x28] sm:$0xff]   ;;  %v773_v30 = vld [vmem:[%s2321_s4 + $0x38] sm:$0xff] }
  0x19   : > { %v1726_v31 = vld [vmem:[%s2318_s1 + $0x30] sm:$0xff]   ;;  %v464_v32 = vld [vmem:[%s2319_s2 + $0x60] sm:$0xff]  ;;  %v465_v33 = vld [vmem:[%s2319_s2 + $0x68] sm:$0xff]  ;;  %s2267_s20 = scalar_lea.sflag [#allocation3], %s402_s19  ;;  %p1748_p13 = pnand %p1747_p12, %p1930_p4 }
  0x1a   : > { %s1538_s14 = sshll.u32 %s1953_s16, 5  ;;  %490 = vperm.xlu0 %1714, %v456_v6   ;;  %495 = vperm.xlu1 %1715, %v457_v9   ;;  %v466_v34 = vld [vmem:[%s2319_s2 + $0x70] sm:$0xff]  ;;  %v1727_v35 = vld [vmem:[%s2318_s1 + $0x38] sm:$0xff]   ;;  %v1115_v37 = vld [vmem:[%s2325_s8] sm:$0xff] }
  0x1b   : > { %s420_s21 = scalar_lea.vmem %s2317_s0, %s1538_s14  ;;  %v467_v36 = vld [vmem:[%s2319_s2 + $0x78] sm:$0xff]  ;;  %v1116_v38 = vld [vmem:[%s2325_s8 + $0x8] sm:$0xff]  ;;  %v1117_v39 = vld [vmem:[%s2325_s8 + $0x10] sm:$0xff]  ;;  %p1749_p0 = pneg %p1748_p13 }
  0x1c   : > { %v1716_v7 = vld [vmem:[%s420_s21] sm:$0xff]   ;;  %v1717_v8 = vld [vmem:[%s420_s21 + $0x8] sm:$0xff]   ;;  %v1718_v10 = vld [vmem:[%s420_s21 + $0x10] sm:$0xff]  }
  0x1d   : > { %1576 = vmatprep.subr.bf16.mxu0 %v1716_v7  ;;  %v1719_v13 = vld [vmem:[%s420_s21 + $0x18] sm:$0xff]   ;;  %v1268_v41 = vld [vmem:[%s2326_s9] sm:$0xff]  ;;  %v1269_v42 = vld [vmem:[%s2326_s9 + $0x8] sm:$0xff]  ;;  %s1827_s21 = smov [#allocation2]  }
  0x1e   : > { %1577 = vmatpush3.bf16.msra.mxu0 %v1716_v7  ;;  %500 = vperm.xlu0 %1714, %v458_v11   ;;  %v1118_v40 = vld [vmem:[%s2325_s8 + $0x18] sm:$0xff]  ;;  %v1119_v43 = vld [vmem:[%s2325_s8 + $0x20] sm:$0xff]  ;;  %v1270_v44 = vld [vmem:[%s2326_s9 + $0x10] sm:$0xff]  ;;  %s1750_s25 = sshll.u32 %s1827_s21, 4  ;;  %s1751_s25 = int_to_ptr.vmem [resolvable:$false] %s1750_s25 }
  0x1f   : > { %1578 = vmatprep.subr.bf16.mxu0 %v1717_v8  ;;  %505 = vperm.xlu1 %1715, %v459_v12   ;;  %v1120_v45 = vld [vmem:[%s2325_s8 + $0x28] sm:$0xff]  ;;  %v1271_v46 = vld [vmem:[%s2326_s9 + $0x18] sm:$0xff]  ;;  %v1121_v47 = vld [vmem:[%s2325_s8 + $0x30] sm:$0xff]  ;;  %s1752_s26 = scalar_lea.vmem %s1751_s25, 2048  ;;  %p1753_p1 = scmp.lt.s32.totalorder %s2262_s13, %s1751_s25 }
  0x20   : > { %v1272_v48 = vld [vmem:[%s2326_s9 + $0x20] sm:$0xff]  ;;  %v932_v50 = vld [vmem:[%s2323_s6 + $0x8] sm:$0xff]  ;;  %v1122_v51 = vld [vmem:[%s2325_s8 + $0x38] sm:$0xff]  ;;  %p1754_p2 = scmp.lt.s32.totalorder %s1752_s26, %s1746_s24 }
  0x21   : > { %v931_v49 = vld [vmem:[%s2323_s6] sm:$0xff]  ;;  %v1273_v52 = vld [vmem:[%s2326_s9 + $0x28] sm:$0xff]  ;;  %v933_v53 = vld [vmem:[%s2323_s6 + $0x10] sm:$0xff] }
  0x22   : > { %1579 = vmatpush3.bf16.msra.mxu0 %v1717_v8  ;;  %776 = vperm.xlu0 %1714, %v766_v14   ;;  %v1274_v54 = vld [vmem:[%s2326_s9 + $0x30] sm:$0xff]  ;;  %v934_v55 = vld [vmem:[%s2323_s6 + $0x18] sm:$0xff]  ;;  %v935_v57 = vld [vmem:[%s2323_s6 + $0x20] sm:$0xff]  ;;  %p1755_p3 = por %p1754_p2, %p1753_p1 }
  0x23   : > { %1580 = vmatprep.subr.bf16.mxu0 %v1718_v10  ;;  %781 = vperm.xlu1 %1715, %v767_v15   ;;  %v1275_v56 = vld [vmem:[%s2326_s9 + $0x38] sm:$0xff]  ;;  %v936_v58 = vld [vmem:[%s2323_s6 + $0x28] sm:$0xff]  ;;  %v937_v59 = vld [vmem:[%s2323_s6 + $0x30] sm:$0xff] }
  0x24   : > { %v938_v60 = vld [vmem:[%s2323_s6 + $0x38] sm:$0xff]  ;;  %v1728_v61 = vld [vmem:[%s2320_s3] sm:$0xff]   ;;  %p1756_p5 = pnand %p1755_p3, %p1749_p0 }
  0x25   : > { %1608 = vmatprep.mubr.msk.bf16.mxu1 %vm612_vm0, %v1728_v61  ;;  %v1732_v62 = vld [vmem:[%s2324_s7] sm:$0xff]   ;;  %v1729_v61 = vld [vmem:[%s2320_s3 + $0x8] sm:$0xff]  }
  0x26   : > { %1581 = vmatpush3.bf16.msra.mxu0 %v1718_v10  ;;  %786 = vperm.xlu0 %1714, %v768_v16  }
  0x27   : > { %1582 = vmatprep.subr.bf16.mxu0 %v1719_v13  ;;  %791 = vperm.xlu1 %1715, %v769_v18  }
  0x2a   : > { %1583 = vmatpush3.bf16.msra.mxu0 %v1719_v13  ;;  %510 = vperm.xlu0 %1714, %v460_v20  }
  0x2b   : > { %515 = vperm.xlu1 %1715, %v461_v21  }
  0x2d   : > { %1585 = vmatmul.mubr.msk.bf16.vlgmr.msra.gmra.mrb[0].mxu0 %vm612_vm0, %v1721_v17 }
  0x2e   : > { %1588 = vmatprep.mubr.msk.bf16.mxu0 %vm612_vm0, %v1722_v19  ;;  %796 = vperm.xlu0 %1714, %v770_v24  }
  0x2f   : > { %801 = vperm.xlu1 %1715, %v771_v25  }
  0x32   : > { %520 = vperm.xlu0 %1714, %v462_v26  }
  0x33   : > { %525 = vperm.xlu1 %1715, %v463_v27  }
  0x35   : > { %1589 = vmatmul.mubr.msk.bf16.gmra.mrb[4].mxu0 %vm612_vm0, %v1723_v22 }
  0x36   : > { %1592 = vmatprep.mubr.msk.bf16.mxu0 %vm612_vm0, %v1724_v23  ;;  %806 = vperm.xlu0 %1714, %v772_v28  }
  0x37   : > { %811 = vperm.xlu1 %1715, %v773_v30  }
  0x3a   : > { %530 = vperm.xlu0 %1714, %v464_v32  }
  0x3b   : > { %535 = vperm.xlu1 %1715, %v465_v33  }
  0x3d   : > { %1593 = vmatmul.mubr.msk.bf16.gmra.mrb[8].mxu0 %vm612_vm0, %v1725_v29 }
  0x3e   : > { %1596 = vmatprep.mubr.msk.bf16.mxu0 %vm612_vm0, %v1726_v31  ;;  %540 = vperm.xlu0 %1714, %v466_v34  }
  0x3f   : > { %545 = vperm.xlu1 %1715, %v467_v36  }
  0x42   : > { %1125 = vperm.xlu0 %1714, %v1115_v37  }
  0x43   : > { %1130 = vperm.xlu1 %1715, %v1116_v38  }
  0x45   : > { %1597 = vmatmul.mubr.msk.bf16.gmra.mrb[12].mxu0 %vm612_vm0, %v1727_v35 }
  0x46   : > { %1135 = vperm.xlu0 %1714, %v1117_v39   ;;  %1640 = vmatprep.mubr.msk.bf16.mxu0 %vm612_vm0, %v1732_v62 }
  0x47   : > { %1140 = vperm.xlu1 %1715, %v1118_v40  }
  0x4a   : > { %1278 = vperm.xlu0 %1714, %v1268_v41  }
  0x4b   : > { %1283 = vperm.xlu1 %1715, %v1269_v42  }
  0x4e   : > { %1145 = vperm.xlu0 %1714, %v1119_v43  }
  0x4f   : > { %1288 = vperm.xlu1 %1715, %v1270_v44  }
  0x52   : > { %1150 = vperm.xlu0 %1714, %v1120_v45  }
  0x53   : > { %1293 = vperm.xlu1 %1715, %v1271_v46  }
  0x56   : > { %1155 = vperm.xlu0 %1714, %v1121_v47  }
  0x57   : > { %1298 = vperm.xlu1 %1715, %v1272_v48  }
  0x5a   : > { %941 = vperm.xlu0 %1714, %v931_v49  }
  0x5b   : > { %946 = vperm.xlu1 %1715, %v932_v50  }
  0x5e   : > { %1160 = vperm.xlu0 %1714, %v1122_v51  }
  0x5f   : > { %1303 = vperm.xlu1 %1715, %v1273_v52  }
  0x62   : > { %951 = vperm.xlu0 %1714, %v933_v53  }
  0x63   : > { %1308 = vperm.xlu1 %1715, %v1274_v54  }
  0x66   : > { %956 = vperm.xlu0 %1714, %v934_v55  }
  0x67   : > { %1313 = vperm.xlu1 %1715, %v1275_v56  }
  0x6a   : > { %961 = vperm.xlu0 %1714, %v935_v57  }
  0x6b   : > { %966 = vperm.xlu1 %1715, %v936_v58  }
  0x6e   : > { %971 = vperm.xlu0 %1714, %v937_v59  }
  0x6f   : > { %976 = vperm.xlu1 %1715, %v938_v60  }
  0x91   : > { %v471_v63 = vpop.permute.xlu0 %470  ;;  %v481_v0 = vpop.permute.xlu1 %480 }
  0x95   : > { %v476_v1 = vpop.permute.xlu0 %475  ;;  %v486_v2 = vpop.permute.xlu1 %485 }
  0x99   : > { %v491_v3 = vpop.permute.xlu0 %490  ;;  %v496_v4 = vpop.permute.xlu1 %495 }
  0x9d   : > { %v501_v5 = vpop.permute.xlu0 %500 }
  0x9e   : > { %v506_v6 = vpop.permute.xlu1 %505 }
  0xa1   : > { %v2137_v7 = vpop.permute.xlu0 %776 }
  0xa2   : > { %v2139_v8 = vpop.permute.xlu1 %781 }
  0xa5   : > { %v2141_v9 = vpop.permute.xlu0 %786 }
  0xa6   : > { %v2143_v10 = vpop.permute.xlu1 %791 }
  0xa9   : > { %v511_v11 = vpop.permute.xlu0 %510 }
  0xaa   : > { %v516_v12 = vpop.permute.xlu1 %515 }
  0xad   : > { %v2145_v13 = vpop.permute.xlu0 %796 }
  0xae   : > { %v2147_v17 = vpop.permute.xlu1 %801 }
  0xb1   : > { %v521_v25 = vpop.permute.xlu0 %520 }
  0xb2   : > { %v526_v29 = vpop.permute.xlu1 %525 }
  0xb5   : > { %v2149_v38 = vpop.permute.xlu0 %806 }
  0xb6   : > { %v2151_v42 = vpop.permute.xlu1 %811 }
  0xb9   : > { %v531_v50 = vpop.permute.xlu0 %530 }
  0xba   : > { %v536_v55 = vpop.permute.xlu1 %535 }
 0x100   : > { %v1586_v14 = vpop.f32.mrb[0].mxu0 }
 0x101   : > { %v680_v15 = vadd.f32 %v1586_v14, %v481_v0  ;;  %v671_v16 = vpop.f32.mrb[1].mxu0  ;;  %v541_v0 = vpop.permute.xlu0 %540 }
 0x102   : > { %v672_v18 = vadd.f32 %v671_v16, %v471_v63  ;;  %v1587_v19 = vpop.f32.mrb[2].mxu0  ;;  %v1730_v63 = vld [vmem:[%s2320_s3 + $0x10] sm:$0xff]  }
 0x103   : > { %v683_v20 = vadd.f32 %v1587_v19, %v486_v2  ;;  %v674_v21 = vpop.f32.mrb[3].mxu0  ;;  %v736_v23 = vmax.f32 %v680_v15, 0.0 }
 0x104   : > { %v675_v22 = vadd.f32 %v674_v21, %v476_v1  ;;  %v734_v26 = vmax.f32 %v672_v18, 0.0  ;;  %v1731_v21 = vld [vmem:[%s2320_s3 + $0x18] sm:$0xff]  }
 0x105   : > { %v737_v24 = vmax.f32 %v683_v20, 0.0 }
 0x106   : > { %v735_v27 = vmax.f32 %v675_v22, 0.0 }
 0x107   : > { %v751_v28 = vpack.c.bf16 %v737_v24, %v736_v23  ;;  %v1733_v24 = vld [vmem:[%s2324_s7 + $0x8] sm:$0xff]  }
 0x108   : > { %v1590_v30 = vpop.f32.mrb[4].mxu0  ;;  %v750_v31 = vpack.c.bf16 %v735_v27, %v734_v26 }
 0x109   : > { %v696_v32 = vadd.f32 %v1590_v30, %v501_v5  ;;  %v687_v33 = vpop.f32.mrb[5].mxu0  ;;  %v546_v5 = vpop.permute.xlu1 %545 }
 0x10a   : > { %v688_v34 = vadd.f32 %v687_v33, %v491_v3  ;;  %v1591_v35 = vpop.f32.mrb[6].mxu0  ;;  %1600 = vmatprep.subr.bf16.mxu1 %v750_v31 }
 0x10b   : > { %v699_v36 = vadd.f32 %v1591_v35, %v506_v6  ;;  %v690_v37 = vpop.f32.mrb[7].mxu0  ;;  %1601 = vmatpush3.bf16.msra.mxu1 %v750_v31  ;;  %v740_v40 = vmax.f32 %v696_v32, 0.0 }
 0x10c   : > { %v691_v39 = vadd.f32 %v690_v37, %v496_v4  ;;  %1602 = vmatprep.subr.bf16.mxu1 %v751_v28  ;;  %v738_v43 = vmax.f32 %v688_v34, 0.0 }
 0x10d   : > { %v741_v41 = vmax.f32 %v699_v36, 0.0  ;;  %v1131_v31 = vpop.permute.xlu1 %1130 }
 0x10e   : > { %v739_v44 = vmax.f32 %v691_v39, 0.0 }
 0x10f   : > { %v753_v45 = vpack.c.bf16 %v741_v41, %v740_v40  ;;  %1603 = vmatpush3.bf16.msra.mxu1 %v751_v28 }
 0x110   : > { %v752_v46 = vpack.c.bf16 %v739_v44, %v738_v43  ;;  %v1594_v47 = vpop.f32.mrb[8].mxu0 }
 0x111   : > { %v712_v48 = vadd.f32 %v1594_v47, %v521_v25  ;;  %v703_v49 = vpop.f32.mrb[9].mxu0  ;;  %v1734_v25 = vld [vmem:[%s2322_s5] sm:$0xff]   ;;  %v1141_v44 = vpop.permute.xlu1 %1140 }
 0x112   : > { %v704_v51 = vadd.f32 %v703_v49, %v511_v11  ;;  %v1595_v52 = vpop.f32.mrb[10].mxu0  ;;  %1604 = vmatprep.subr.bf16.mxu1 %v752_v46  ;;  %v1126_v47 = vpop.permute.xlu0 %1125 }
 0x113   : > { %v715_v53 = vadd.f32 %v1595_v52, %v526_v29  ;;  %v706_v54 = vpop.f32.mrb[11].mxu0  ;;  %1605 = vmatpush3.bf16.msra.mxu1 %v752_v46  ;;  %v744_v57 = vmax.f32 %v712_v48, 0.0 }
 0x114   : > { %v707_v56 = vadd.f32 %v706_v54, %v516_v12  ;;  %1606 = vmatprep.subr.bf16.mxu1 %v753_v45  ;;  %v742_v59 = vmax.f32 %v704_v51, 0.0 }
 0x115   : > { %v745_v58 = vmax.f32 %v715_v53, 0.0  ;;  %v1284_v53 = vpop.permute.xlu1 %1283 }
 0x116   : > { %v743_v60 = vmax.f32 %v707_v56, 0.0 }
 0x117   : > { %v2156_v62 = vpack.c.bf16 %v745_v58, %v744_v57  ;;  %1607 = vmatpush3.bf16.msra.mxu1 %v753_v45 }
 0x118   : > { %v2161_v1 = vpack.c.bf16 %v743_v60, %v742_v59  ;;  %v1598_v2 = vpop.f32.mrb[12].mxu0 }
 0x119   : > { %v728_v3 = vadd.f32 %v1598_v2, %v541_v0  ;;  %v719_v4 = vpop.f32.mrb[13].mxu0 }
 0x11a   : > { %v720_v6 = vadd.f32 %v719_v4, %v531_v50  ;;  %v1599_v11 = vpop.f32.mrb[14].mxu0  ;;  %1609 = vmatmul.mubr.msk.bf16.vlgmr.msra.gmra.mrb[0].mxu1 %vm612_vm0, %v1729_v61  ;;  %1632 = vmatprep.subr.bf16.mxu0 %v2161_v1 }
 0x11b   : > { %v731_v12 = vadd.f32 %v1599_v11, %v546_v5  ;;  %v722_v14 = vpop.f32.mrb[15].mxu0  ;;  %1633 = vmatpush3.bf16.msra.mxu0 %v2161_v1  ;;  %1612 = vmatprep.mubr.msk.bf16.mxu1 %vm612_vm0, %v1730_v63  ;;  %v748_v16 = vmax.f32 %v728_v3, 0.0  ;;  %v1289_v63 = vpop.permute.xlu1 %1288  ;;  %v1735_v3 = vld [vmem:[%s2322_s5 + $0x8] sm:$0xff]   ;;  %v1736_v5 = vld [vmem:[%s2322_s5 + $0x10] sm:$0xff]  }
 0x11c   : > { %v723_v15 = vadd.f32 %v722_v14, %v536_v55  ;;  %1634 = vmatprep.subr.bf16.mxu0 %v2156_v62  ;;  %v746_v19 = vmax.f32 %v720_v6, 0.0 }
 0x11d   : > { %v749_v18 = vmax.f32 %v731_v12, 0.0 }
 0x11e   : > { %v747_v20 = vmax.f32 %v723_v15, 0.0 }
 0x11f   : > { %v2171_v22 = vpack.c.bf16 %v749_v18, %v748_v16  ;;  %1635 = vmatpush3.bf16.msra.mxu0 %v2156_v62  ;;  %v1294_v16 = vpop.permute.xlu1 %1293 }
 0x120   : > { %v2174_v23 = vpack.c.bf16 %v747_v20, %v746_v19  ;;  %v1737_v20 = vld [vmem:[%s2322_s5 + $0x18] sm:$0xff]  }
 0x122   : > { %1613 = vmatmul.mubr.msk.bf16.gmra.mrb[4].mxu1 %vm612_vm0, %v1731_v21  ;;  %1636 = vmatprep.subr.bf16.mxu0 %v2174_v23 }
 0x123   : > { %1637 = vmatpush3.bf16.msra.mxu0 %v2174_v23  ;;  %1624 = vmatprep.mubr.msk.bf16.mxu1 %vm612_vm0, %v1734_v25 }
 0x124   : > { %1638 = vmatprep.subr.bf16.mxu0 %v2171_v22 }
 0x127   : > { %1639 = vmatpush3.bf16.msra.mxu0 %v2171_v22 }
 0x12a   : > { %1641 = vmatmul.mubr.msk.bf16.vlgmr.msra.gmra.mrb[16].mxu0 %vm612_vm0, %v1733_v24  ;;  %v1738_v24 = vld [vmem:[%s2324_s7 + $0x10] sm:$0xff]  }
 0x1ed   : > { %v1610_v26 = vpop.f32.mrb[0].mxu1 }
 0x1ee   : > { %v889_v27 = vadd.f32 %v1610_v26, %v2141_v9  ;;  %v880_v28 = vpop.f32.mrb[1].mxu1 }
 0x1ef   : > { %v881_v29 = vadd.f32 %v880_v28, %v2137_v7  ;;  %v1611_v30 = vpop.f32.mrb[2].mxu1 }
 0x1f0   : > { %v892_v32 = vadd.f32 %v1611_v30, %v2143_v10  ;;  %v883_v33 = vpop.f32.mrb[3].mxu1  ;;  %v913_v35 = vmax.f32 %v889_v27, 0.0  ;;  %v1299_v27 = vpop.permute.xlu1 %1298 }
 0x1f1   : > { %v884_v34 = vadd.f32 %v883_v33, %v2139_v8  ;;  %v911_v37 = vmax.f32 %v881_v29, 0.0 }
 0x1f2   : > { %v914_v36 = vmax.f32 %v892_v32, 0.0 }
 0x1f3   : > { %v912_v39 = vmax.f32 %v884_v34, 0.0 }
 0x1f4   : > { %v920_v40 = vpack.c.bf16 %v914_v36, %v913_v35  ;;  %v947_v29 = vpop.permute.xlu1 %946 }
 0x1f5   : > { %v919_v41 = vpack.c.bf16 %v912_v39, %v911_v37  ;;  %v1614_v43 = vpop.f32.mrb[4].mxu1 }
 0x1f6   : > { %v905_v9 = vadd.f32 %v1614_v43, %v2149_v38  ;;  %v896_v45 = vpop.f32.mrb[5].mxu1 }
 0x1f7   : > { %v897_v7 = vadd.f32 %v896_v45, %v2145_v13  ;;  %v1615_v46 = vpop.f32.mrb[6].mxu1  ;;  %1616 = vmatprep.subr.bf16.mxu1 %v919_v41  ;;  %v1136_v13 = vpop.permute.xlu0 %1135 }
 0x1f8   : > { %v908_v10 = vadd.f32 %v1615_v46, %v2151_v42  ;;  %v899_v48 = vpop.f32.mrb[7].mxu1  ;;  %1617 = vmatpush3.bf16.msra.mxu1 %v919_v41  ;;  %v917_v49 = vmax.f32 %v905_v9, 0.0 }
 0x1f9   : > { %v900_v8 = vadd.f32 %v899_v48, %v2147_v17  ;;  %1618 = vmatprep.subr.bf16.mxu1 %v920_v40  ;;  %v915_v51 = vmax.f32 %v897_v7, 0.0 }
 0x1fa   : > { %v918_v50 = vmax.f32 %v908_v10, 0.0 }
 0x1fb   : > { %v916_v52 = vmax.f32 %v900_v8, 0.0  ;;  %v1279_v4 = vpop.permute.xlu0 %1278 }
 0x1fc   : > { %v922_v54 = vpack.c.bf16 %v918_v50, %v917_v49  ;;  %1619 = vmatpush3.bf16.msra.mxu1 %v920_v40 }
 0x1fd   : > { %v921_v38 = vpack.c.bf16 %v916_v52, %v915_v51  ;;  %v1642_v55 = vpop.f32.mrb[16].mxu0 }
 0x1fe   : > { %v1229_v56 = vpop.f32.mrb[17].mxu0  ;;  %v1238_v57 = vadd.f32 %v1642_v55, %v1136_v13 }
 0x1ff   : > { %v1230_v58 = vadd.f32 %v1229_v56, %v1126_v47  ;;  %1620 = vmatprep.subr.bf16.mxu1 %v921_v38  ;;  %v1643_v42 = vpop.f32.mrb[18].mxu0 }
 0x200   : > { %1621 = vmatpush3.bf16.msra.mxu1 %v921_v38  ;;  %v1232_v59 = vpop.f32.mrb[19].mxu0  ;;  %v1241_v17 = vadd.f32 %v1643_v42, %v1141_v44  ;;  %v1262_v0 = vmax.f32 %v1238_v57, 0.0 }
 0x201   : > { %v1260_v60 = vmax.f32 %v1230_v58, 0.0  ;;  %v1233_v61 = vadd.f32 %v1232_v59, %v1131_v31  ;;  %1622 = vmatprep.subr.bf16.mxu1 %v922_v54 }
 0x202   : > { %v1263_v11 = vmax.f32 %v1241_v17, 0.0  ;;  %v1318_v14 = vmul.f32 %v1289_v63, %v1262_v0 }
 0x203   : > { %v1261_v2 = vmax.f32 %v1233_v61, 0.0  ;;  %v1316_v6 = vmul.f32 %v1279_v4, %v1260_v60 }
 0x204   : > { %1623 = vmatpush3.bf16.msra.mxu1 %v922_v54  ;;  %v1319_v18 = vmul.f32 %v1294_v16, %v1263_v11 }
 0x205   : > { %v1317_v12 = vmul.f32 %v1284_v53, %v1261_v2  ;;  %1648 = vmatprep.subr.bf16.mxu1 %v2161_v1 }
 0x207   : > { %v1324_v15 = vadd.f32 %v1317_v12, %v1316_v6  ;;  %1625 = vmatmul.mubr.msk.bf16.vlgmr.msra.gmra.mrb[8].mxu1 %vm612_vm0, %v1735_v3 }
 0x208   : > { %1652 = vmatpush3.bf16.msra.mxu1 %v2161_v1  ;;  %1628 = vmatprep.mubr.msk.bf16.mxu1 %vm612_vm0, %v1736_v5  ;;  %v1739_v1 = vld [vmem:[%s2324_s7 + $0x18] sm:$0xff]  }
 0x209   : > { %v1325_v19 = vadd.f32 %v1324_v15, %v1318_v14  ;;  %1649 = vmatprep.subr.bf16.mxu1 %v2156_v62 }
 0x20b   : > { %v2211_v21 = vadd.f32 %v1325_v19, %v1319_v18 }
 0x20c   : > { %1653 = vmatpush3.bf16.msra.mxu1 %v2156_v62  ;;  %v1146_v62 = vpop.permute.xlu0 %1145 }
 0x20d   : > { %1650 = vmatprep.subr.bf16.mxu1 %v2174_v23 }
 0x20f   : > { %1629 = vmatmul.mubr.msk.bf16.gmra.mrb[12].mxu1 %vm612_vm0, %v1737_v20 }
 0x210   : > { %1654 = vmatpush3.bf16.msra.mxu1 %v2174_v23  ;;  %1644 = vmatprep.mubr.msk.bf16.mxu1 %vm612_vm0, %v1738_v24  ;;  %v1151_v25 = vpop.permute.xlu0 %1150  ;;  %v1304_v23 = vpop.permute.xlu1 %1303 }
 0x211   : > { %1651 = vmatprep.subr.bf16.mxu1 %v2171_v22 }
 0x214   : > { %1655 = vmatpush3.bf16.msra.mxu1 %v2171_v22  ;;  %v1156_v26 = vpop.permute.xlu0 %1155  ;;  %v1309_v32 = vpop.permute.xlu1 %1308 }
 0x217   : > { %1645 = vmatmul.mubr.msk.bf16.vlgmr.msra.gmra.mrb[16].mxu1 %vm612_vm0, %v1739_v1 }
 0x218   : > { %v942_v28 = vpop.permute.xlu0 %941  ;;  %v1314_v35 = vpop.permute.xlu1 %1313 }
 0x21c   : > { %v1161_v30 = vpop.permute.xlu0 %1160  ;;  %v967_v7 = vpop.permute.xlu1 %966 }
 0x220   : > { %v952_v31 = vpop.permute.xlu0 %951  ;;  %v977_v56 = vpop.permute.xlu1 %976 }
 0x224   : > { %v957_v33 = vpop.permute.xlu0 %956 }
 0x228   : > { %v962_v43 = vpop.permute.xlu0 %961 }
 0x22c   : > { %v972_v52 = vpop.permute.xlu0 %971 }
 0x2da   : > { %v1626_v34 = vpop.f32.mrb[8].mxu1 }
 0x2db   : > { %v1045_v36 = vpop.f32.mrb[9].mxu1  ;;  %v2229_v40 = vadd.f32 %v1626_v34, %v952_v31 }
 0x2dc   : > { %v2227_v37 = vadd.f32 %v1045_v36, %v942_v28  ;;  %v1627_v39 = vpop.f32.mrb[10].mxu1 }
 0x2dd   : > { %v1048_v22 = vpop.f32.mrb[11].mxu1  ;;  %v2235_v9 = vadd.f32 %v1627_v39, %v957_v33  ;;  %v1078_v46 = vmul.f32 %v2229_v40, %v2229_v40 }
 0x2de   : > { %v2231_v41 = vadd.f32 %v1048_v22, %v947_v29  ;;  %v1076_v44 = vmul.f32 %v2227_v37, %v2227_v37 }
 0x2df   : > { %v1079_v8 = vmul.f32 %v2235_v9, %v2235_v9 }
 0x2e0   : > { %v1077_v45 = vmul.f32 %v2231_v41, %v2231_v41 }
 0x2e2   : > { %v1084_v47 = vadd.f32 %v1077_v45, %v1076_v44  ;;  %v1630_v10 = vpop.f32.mrb[12].mxu1 }
 0x2e3   : > { %v1061_v48 = vpop.f32.mrb[13].mxu1  ;;  %v2245_v54 = vadd.f32 %v1630_v10, %v972_v52 }
 0x2e4   : > { %v1085_v49 = vadd.f32 %v1084_v47, %v1078_v46  ;;  %v2243_v50 = vadd.f32 %v1061_v48, %v962_v43  ;;  %v1631_v51 = vpop.f32.mrb[14].mxu1 }
 0x2e5   : > { %v1064_v53 = vpop.f32.mrb[15].mxu1  ;;  %v1073_v58 = vadd.f32 %v1631_v51, %v977_v56  ;;  %v1082_v59 = vmul.f32 %v2245_v54, %v2245_v54 }
 0x2e6   : > { %v1080_v38 = vmul.f32 %v2243_v50, %v2243_v50  ;;  %v1086_v55 = vadd.f32 %v1085_v49, %v1079_v8  ;;  %v1065_v13 = vadd.f32 %v1064_v53, %v967_v7 }
 0x2e7   : > { %v1083_v63 = vmul.f32 %v1073_v58, %v1073_v58 }
 0x2e8   : > { %v1087_v57 = vadd.f32 %v1086_v55, %v1080_v38  ;;  %v1081_v42 = vmul.f32 %v1065_v13, %v1065_v13 }
 0x2ea   : > { %v1088_v60 = vadd.f32 %v1087_v57, %v1081_v42  ;;  %v1646_v17 = vpop.f32.mrb[16].mxu1 }
 0x2eb   : > { %v1245_v61 = vpop.f32.mrb[17].mxu1  ;;  %v1254_v2 = vadd.f32 %v1646_v17, %v1156_v26 }
 0x2ec   : > { %v1089_v0 = vadd.f32 %v1088_v60, %v1082_v59  ;;  %v1246_v3 = vadd.f32 %v1245_v61, %v1146_v62  ;;  %v1647_v4 = vpop.f32.mrb[18].mxu1 }
 0x2ed   : > { %v1248_v5 = vpop.f32.mrb[19].mxu1  ;;  %v1257_v12 = vadd.f32 %v1647_v4, %v1161_v30  ;;  %v1266_v16 = vmax.f32 %v1254_v2, 0.0 }
 0x2ee   : > { %v1090_v6 = vadd.f32 %v1089_v0, %v1083_v63  ;;  %v1264_v11 = vmax.f32 %v1246_v3, 0.0  ;;  %v1249_v14 = vadd.f32 %v1248_v5, %v1151_v25 }
 0x2ef   : > { %v1267_v1 = vmax.f32 %v1257_v12, 0.0  ;;  %v1322_v31 = vmul.f32 %v1309_v32, %v1266_v16 }
 0x2f0   : > { %v1091_v15 = vrot.slane %v1090_v6, 4  ;;  %v1320_v18 = vmul.f32 %v1299_v27, %v1264_v11  ;;  %v1265_v19 = vmax.f32 %v1249_v14, 0.0 }
 0x2f1   : > { %v1323_v33 = vmul.f32 %v1314_v35, %v1267_v1 }
 0x2f2   : > { %v1092_v20 = vadd.f32 %v1091_v15, %v1090_v6  ;;  %v1327_v24 = vadd.f32 %v2211_v21, %v1320_v18  ;;  %v1321_v28 = vmul.f32 %v1304_v23, %v1265_v19 }
 0x2f4   : > { %v1093_v29 = vrot.slane %v1092_v20, 2  ;;  %v1328_v26 = vadd.f32 %v1327_v24, %v1321_v28 }
 0x2f6   : > { %v1094_v62 = vadd.f32 %v1093_v29, %v1092_v20  ;;  %v1329_v34 = vadd.f32 %v1328_v26, %v1322_v31 }
 0x2f8   : > { %v1095_v36 = vrot.slane %v1094_v62, 1  ;;  %v1330_v30 = vadd.f32 %v1329_v34, %v1323_v33 }
 0x2fa   : > { %v1096_v25 = vadd.f32 %v1095_v36, %v1094_v62  ;;  %v1331_v39 = vrot.slane %v1330_v30, 4 }
 0x2fc   : > { %v1097_v22 = vmax.f32 %v1096_v25, 1e-24  ;;  %v1332_v27 = vadd.f32 %v1331_v39, %v1330_v30 }
 0x2fe   : > { %1740 = vrsqrt.f32 %v1097_v22  ;;  %v1333_v43 = vrot.slane %v1332_v27, 2 }
 0x300   : > { %v1334_v21 = vadd.f32 %v1333_v43, %v1332_v27 }
 0x302   : > { %v1335_v44 = vrot.slane %v1334_v21, 1 }
 0x304   : > { %v1336_v23 = vadd.f32 %v1335_v44, %v1334_v21 }
 0x306   : > { %v1532_v45 = vmul.f32 -1.442695, %v1336_v23 }
 0x308   : > { %v1741_v32 = vpop.eup %1740  ;;  %1742 = vpow2.f32 %v1532_v45 }
 0x309   : > { %v1104_v35 = vmul.f32 %v1741_v32, %v1065_v13  ;;  %v1099_v7 = vmul.f32 %v1741_v32, %v2227_v37  ;;  %v1100_v46 = vmul.f32 %v1741_v32, %v2231_v41  ;;  %v1101_v47 = vmul.f32 %v1741_v32, %v2229_v40 }
 0x30a   : > { %v1102_v10 = vmul.f32 %v1741_v32, %v2235_v9  ;;  %v1103_v48 = vmul.f32 %v1741_v32, %v2243_v50  ;;  %v1105_v37 = vmul.f32 %v1741_v32, %v2245_v54  ;;  %v1106_v8 = vmul.f32 %v1741_v32, %v1073_v58 }
 0x30b   : > { %1348 = vst [vmem:[%s404_s12 + $0x28] sm:$0xff] %v1104_v35  ;;  %1343 = vst [vmem:[%s404_s12] sm:$0xff] %v1099_v7 }
 0x30c   : > { %1344 = vst [vmem:[%s404_s12 + $0x8] sm:$0xff] %v1100_v46  ;;  %1345 = vst [vmem:[%s404_s12 + $0x10] sm:$0xff] %v1101_v47 }
 0x30d   : > { %1346 = vst [vmem:[%s404_s12 + $0x18] sm:$0xff] %v1102_v10  ;;  %1347 = vst [vmem:[%s404_s12 + $0x20] sm:$0xff] %v1103_v48 }
 0x30e   : > { %1349 = vst [vmem:[%s404_s12 + $0x30] sm:$0xff] %v1105_v37  ;;  %1350 = vst [vmem:[%s404_s12 + $0x38] sm:$0xff] %v1106_v8 }
 0x30f   : > { %1759 = shalt.err (!%p1756_p5)
}
 0x310   : > { %s1760_s19 = scalar_lea.hbm %s2260_s23, 1024  ;;  %s1764_s12 = scalar_lea.hbm %s2327_s10, 2048 }
 0x311   : > { %p1761_p6 = scmp.ne.s32.totalorder %s2260_s23, %s1760_s19  ;;  %p1765_p10 = scmp.lt.u32.totalorder %s2260_s23, %s2327_s10 }
 0x312   : > { %p1766_p11 = scmp.lt.u32.totalorder %s1764_s12, %s1760_s19  ;;  %p1768_p13 = scmp.lt.u32.totalorder %s1760_s19, %s2260_s23 }
 0x313   : > { %p1762_p7 = pnand %p1761_p6, %p1930_p4 }
 0x314   : > { %p1767_p12 = por %p1766_p11, %p1765_p10 }
 0x315   : > { %p1763_p9 = pneg %p1762_p7 }
 0x316   : > { %p1769_p0 = por %p1768_p13, %p1767_p12 }
 0x318   : > { %p1770_p1 = pnand %p1769_p0, %p1763_p9 }
 0x31a   : > { %1773 = shalt.err (!%p1770_p1)
}
 0x31b   : > { %s1828_s24 = smov 128   ;;  %s1829_s21 = smov 8   ;;  %v1743_v40 = vpop.eup %1742 }
 0x31c   : > { %1656 = dma.vmem_to_hbm [thread:$0]  (%p1930_p4), %s2262_s13, 1024, %s2260_s23, %s2267_s20, %s1828_s24, %s1828_s24, %s1829_s21   ;;  %v1340_v41 = vadd.f32 1.0, %v1743_v40 }
 0x31d   : > { %s426_s30 = scalar_lea.vmem %s2328_s11, %s1953_s16 }
 0x31e   : > { %1744 = vrcp.f32 %v1340_v41 }
 0x328   : > { %v1745_v9 = vpop.eup %1744 }
 0x329   : > { %1351 = vst [vmem:[%s426_s30] sm:$0x1] %v1745_v9 }
 0x32a PF: > { %p1662_p2 = scmp.ge.s32.totalorder %s1824_s22, 2  ;;  %s1391_s19 = sand.u32 1, %s1804_s17  }
 0x32b   : > { %s1392_s28 = scalar_lea.sflag [#allocation3], %s1391_s19 }
 0x32c   : > { %p1659_p3 = pnand %p1662_p2, %p1937_p8 }
 0x32e   : > { %1799 = dma.done.wait (!%p1659_p3), %s1392_s28, 1024  }
 0x32f   : > { %1801 = vsyncadd (!%p1659_p3), %s1392_s28, 4294966272  ;;  %s25_s22 = sadd.s32 1, %s1824_s22   ;;  %s2338_s27 = sld [smem:[#allocation5_spill]] }
 0x330   : > { %p22_p4 = scmp.ge.s32.totalorder %s25_s22, 4   ;;  %s2339_s19 = sld [smem:[#allocation8_spill]] }
 0x331   : > { %s2340_s20 = sld [smem:[#allocation6_spill]]  ;;  %s2341_s21 = sld [smem:[#allocation7_spill]] }
 0x332   : > { %s2342_s17 = smov %s1808_s18  ;;  %24 = sbr.rel (!%p22_p4) target bundleno = 4 (0x4), region = 107 }
 0x335   : > { %s2343_s18 = smov %s2338_s27 }
 0x339   :  { %1406 = vsyncpa [#allocation3], 1 }
 0x33a   :  { %1408 = vsyncpa [#allocation3 + $0x1], 1 }

// kernel: mai2p_head_forward.2
= control target key start
LH: loop header
LB: loop body
LE: loop exit
PB: predicated region body
PF: predicated region fallthrough
CT: control target
= control target key end

     0   :  { %s12657_s0 = inlined_call_operand.vmem [shape: bf16[2,32,128], index: 0, kind: input, shape index: {}]   ;;  %s12658_s1 = inlined_call_operand.vmem [shape: bf16[2,64,128], index: 1, kind: input, shape index: {}]   ;;  %s12659_s2 = inlined_call_operand.vmem [shape: bf16[2,128,128], index: 2, kind: input, shape index: {}]   ;;  %s12660_s3 = inlined_call_operand.vmem [shape: bf16[2,512,128], index: 3, kind: input, shape index: {}]   ;;  %s12661_s4 = inlined_call_operand.vmem [shape: bf16[2,128,128], index: 4, kind: input, shape index: {}]   ;;  %s12662_s5 = inlined_call_operand.vmem [shape: bf16[512,736], index: 5, kind: input, shape index: {}]   ;;  %s12663_s6 = inlined_call_operand.vmem [shape: f32[512,1], index: 6, kind: input, shape index: {}]   ;;  %s12664_s7 = inlined_call_operand.vmem [shape: bf16[256,128], index: 7, kind: input, shape index: {}]   ;;  %s12665_s8 = inlined_call_operand.vmem [shape: bf16[256,256], index: 8, kind: input, shape index: {}]   ;;  %s12666_s9 = inlined_call_operand.vmem [shape: f32[256,1], index: 9, kind: input, shape index: {}]   ;;  %s12667_s10 = inlined_call_operand.vmem [shape: bf16[128,256], index: 10, kind: input, shape index: {}]   ;;  %s12668_s11 = inlined_call_operand.vmem [shape: f32[128,1], index: 11, kind: input, shape index: {}]   ;;  %s12669_s12 = inlined_call_operand.vmem [shape: bf16[256,256], index: 12, kind: input, shape index: {}]   ;;  %s12670_s13 = inlined_call_operand.vmem [shape: f32[256,1], index: 13, kind: input, shape index: {}]   ;;  %s12671_s14 = inlined_call_operand.vmem [shape: bf16[16,256], index: 14, kind: input, shape index: {}]   ;;  %s12672_s15 = inlined_call_operand.vmem [shape: f32[16,1], index: 15, kind: input, shape index: {}]   ;;  %s12673_s16 = inlined_call_operand.vmem [shape: bf16[256,128], index: 16, kind: input, shape index: {}]   ;;  %s12674_s17 = inlined_call_operand.vmem [shape: f32[256,1], index: 17, kind: input, shape index: {}]   ;;  %s12675_s18 = inlined_call_operand.vmem [shape: bf16[128,128], index: 18, kind: input, shape index: {}]   ;;  %s12676_s19 = inlined_call_operand.vmem [shape: f32[128,1], index: 19, kind: input, shape index: {}]   ;;  %s12677_s20 = inlined_call_operand.vmem [shape: bf16[64,128], index: 20, kind: input, shape index: {}]   ;;  %s12678_s21 = inlined_call_operand.vmem [shape: f32[64,1], index: 21, kind: input, shape index: {}]   ;;  %s12679_s22 = inlined_call_operand.vmem [shape: bf16[64,128], index: 22, kind: input, shape index: {}]   ;;  %s12680_s23 = inlined_call_operand.vmem [shape: f32[64,1], index: 23, kind: input, shape index: {}]   ;;  %s12681_s24 = inlined_call_operand.vmem [shape: f32[64,1], index: 24, kind: input, shape index: {}]   ;;  %s12682_s25 = inlined_call_operand.hbm [shape: f32[2,64,128], index: 25, kind: output, shape index: {0}]   ;;  %s12683_s26 = inlined_call_operand.hbm [shape: f32[2,1,128], index: 26, kind: output, shape index: {1}]   ;;  %s12684_s27 = inlined_call_operand.hbm [shape: f32[2,16,128], index: 27, kind: output, shape index: {2}]  }
   0x1   :  { %12717 = sst [smem:[#allocation127_spill]] %s12657_s0 }
   0x2   :  { %12718 = sst [smem:[#allocation128_spill]] %s12658_s1 }
   0x3   :  { %12719 = sst [smem:[#allocation129_spill]] %s12659_s2 }
   0x4   :  { %12720 = sst [smem:[#allocation130_spill]] %s12660_s3 }
   0x5   :  { %12721 = sst [smem:[#allocation131_spill]] %s12661_s4 }
   0x6   :  { %12722 = sst [smem:[#allocation132_spill]] %s12662_s5 }
   0x7   :  { %12723 = sst [smem:[#allocation133_spill]] %s12663_s6 }
   0x8   :  { %12724 = sst [smem:[#allocation134_spill]] %s12664_s7 }
   0x9   :  { %12725 = sst [smem:[#allocation135_spill]] %s12665_s8 }
   0xa   :  { %12726 = sst [smem:[#allocation136_spill]] %s12666_s9 }
   0xb   :  { %12727 = sst [smem:[#allocation137_spill]] %s12667_s10 }
   0xc   :  { %12728 = sst [smem:[#allocation138_spill]] %s12668_s11 }
   0xd   :  { %12729 = sst [smem:[#allocation139_spill]] %s12669_s12 }
   0xe   :  { %12730 = sst [smem:[#allocation140_spill]] %s12670_s13 }
   0xf   :  { %12731 = sst [smem:[#allocation141_spill]] %s12671_s14 }
  0x10   :  { %12732 = sst [smem:[#allocation142_spill]] %s12682_s25 }
  0x11   :  { %12733 = sst [smem:[#allocation143_spill]] %s12683_s26 }
  0x12   :  { %12734 = sst [smem:[#allocation144_spill]] %s12684_s27 }
  0x13   :  { %33 = vsyncpa [#allocation4], 0 }
  0x14   :  { %35 = vsyncpa [#allocation4 + $0x1], 0 }
  0x15   :  { %36 = vsyncpa [#allocation6], 0 }
  0x16   :  { %38 = vsyncpa [#allocation6 + $0x1], 0  ;;  %s9668_s7 = smov 0   ;;  %s9670_s4 = smov 0  }
  0x17   :  { %s9672_s8 = smov 0   ;;  %s9674_s30 = smov 0  }
  0x18   :  { %s9676_s9 = smov 0   ;;  %s9678_s5 = smov 0  }
  0x19 LB: > { %12735 = sst [smem:[#allocation10_spill]] %s9500_s7  ;;  %s12693_s28 = sadd.s32 4294967295, %s9520_s5   ;;  %s9520_s5 = sphi %s9678_s5, %s44_s5   ;;  %s9516_s9 = sphi %s9676_s9, %s13047_s9   ;;  %s9512_s30 = sphi %s9674_s30, %s13046_s30   ;;  %s9508_s8 = sphi %s9672_s8, %s13045_s8   ;;  %s9504_s4 = sphi %s9670_s4, %s13049_s4   ;;  %s9500_s7 = sphi %s9668_s7, %s13048_s7  }
  0x1a   : > { %12736 = sst [smem:[#allocation11_spill]] %s9508_s8  ;;  %s12692_s0 = sadd.s32 4294967294, %s9520_s5  }
  0x1b   : > { %12737 = sst [smem:[#allocation12_spill]] %s9512_s30  ;;  %s53_s10 = sadd.s32 1, %s9516_s9 }
  0x1c   : > { %12738 = sst [smem:[#allocation13_spill]] %s9516_s9  ;;  %s625_s29 = sadd.s32 1, %s9508_s8 }
  0x1d   : > { %12739 = sst [smem:[#allocation14_spill]] %s9520_s5  ;;  %p54_p0 = scmp.ge.s32.totalorder %s53_s10, 2 }
  0x1e   : > { %p635_p1 = scmp.ne.s32.totalorder %s9508_s8, %s9504_s4  ;;  %p636_p2 = scmp.eq.s32.totalorder %s12693_s28, 1 }
  0x1f   : > { %p641_p3 = scmp.ne.s32.totalorder %s9504_s4, %s9500_s7  ;;  %s13051_s10 = smov (%p54_p0, %s53_s10), 0 }
  0x20   : > { %12740 = sst [smem:[#allocation15_spill]] %s13051_s10  ;;  %p9710_p4 = por %p636_p2, %p635_p1 }
  0x21   : > { %p642_p5 = scmp.eq.s32.totalorder %s12692_s0, 1  ;;  %s620_s6 = ssub.s32 %s9516_s9, %s13051_s10 }
  0x22   : > { %s12741_s1 = scalar_select %p9710_p4, 1, 0 }
  0x23   : > { %p7455_p6 = scmp.ge.s32.totalorder %s9520_s5, 1  ;;  %p623_p7 = scmp.eq.s32.totalorder %s620_s6, 0 }
  0x24   : > { %12742 = sst [smem:[#allocation16_spill]] %s12741_s1  ;;  %p9719_p8 = por %p642_p5, %p641_p3 }
  0x25   : > { %p831_p9 = scmp.lt.s32.totalorder %s9520_s5, 3 }
  0x26   : > { %s12743_s11 = scalar_select %p9719_p8, 1, 0 }
  0x27   : > { %s9725_s2 = scalar_select %p623_p7, %s9508_s8, %s625_s29  }
  0x28   : > { %12744 = sst [smem:[#allocation17_spill]] %s12743_s11  ;;  %p832_p10 = pnand %p7455_p6, %p831_p9 }
  0x29   : > { %12745 = sst [smem:[#allocation18_spill]] %s9725_s2 }
  0x2a   : > { %835 = sbr.rel (%p832_p10) target bundleno = 2522 (0x9da), region = 120 }
  0x31   : > { %p947_p11 = scmp.lt.s32.totalorder %s9512_s30, 1  ;;  %v12708_v0 = vmov 0   ;;  %s12746_s28 = sld [smem:[#allocation132_spill]]  ;;  %vm2968_vm0 = vcmask 785408  }
  0x32   : > { %3065 = vmatprep.subr.bf16.mxu0 %v12708_v0  ;;  %8862 = vset.pattern.permute.xlu1 %v12708_v0  ;;  %s12747_s8 = sld [smem:[#allocation127_spill]]  ;;  %s12748_s7 = sld [smem:[#allocation129_spill]] }
  0x33   : > { %s9734_s6 = scalar_select %p947_p11, %s9512_s30, 1  ;;  %8861 = vset.pattern.permute.xlu0 %v12708_v0  ;;  %8467 = vmatprep.subr.bf16.mxu1 %v12708_v0 }
  0x34   : > { %s12749_s25 = sld [smem:[#allocation128_spill]]  ;;  %s12751_s1 = sld [smem:[#allocation133_spill]] }
  0x35   : > { %s7886_s29 = sshll.u32 %s9734_s6, 4  ;;  %s7888_s10 = sshll.u32 %s9734_s6, 6 }
  0x36   : > { %s7887_s26 = sshll.u32 %s9734_s6, 5  ;;  %s12752_s11 = sld [smem:[#allocation131_spill]] }
  0x37   : > { %v8881_v1 = vld [vmem:[%s12746_s28 + $0x4] ss:$24 sps:$4 sm:$0xff]   ;;  %v8879_v21 = vld [vmem:[%s12746_s28] ss:$24 sps:$4 sm:$0xff]   ;;  %v8882_v23 = vld [vmem:[%s12746_s28 + $0x34] ss:$24 sps:$4 sm:$0xff]  }
  0x38   : > { %3097 = vmatprep.mubr.bf16.mxu0 %v8881_v1  ;;  %s954_s0 = scalar_lea.vmem %s12747_s8, %s7886_s29  ;;  %s9748_s27 = scalar_lea.vmem %s12748_s7, %s7888_s10  ;;  %v8884_v29 = vld [vmem:[%s12746_s28 + $0x30] ss:$24 sps:$4 sm:$0xff]   ;;  %v8885_v31 = vld [vmem:[%s12746_s28 + $0x64] ss:$24 sps:$4 sm:$0xff]   ;;  %v8887_v37 = vld [vmem:[%s12746_s28 + $0x60] ss:$24 sps:$4 sm:$0xff]  }
  0x39   : > { %v8863_v2 = vld [vmem:[%s954_s0] sm:$0xff]   ;;  %v8864_v3 = vld [vmem:[%s954_s0 + $0x8] sm:$0xff]   ;;  %s7889_s7 = sshll.u32 %s9734_s6, 8  ;;  %s12750_s8 = sld [smem:[#allocation130_spill]]  ;;  %v8871_v10 = vld [vmem:[%s9748_s27 + $0x10] sm:$0xff]  }
  0x3a   : > { %3066 = vmatpush1.bf16.msra.mxu0 %v8863_v2  ;;  %s962_s30 = scalar_lea.vmem %s12749_s25, %s7887_s26  ;;  %8483 = vmatpush1.bf16.msra.mxu1 %v8863_v2  ;;  %v8869_v8 = vld [vmem:[%s9748_s27] sm:$0xff]   ;;  %v8870_v9 = vld [vmem:[%s9748_s27 + $0x8] sm:$0xff]   ;;  %v8872_v11 = vld [vmem:[%s9748_s27 + $0x18] sm:$0xff]   ;;  %s12753_s29 = sld [smem:[#allocation136_spill]] }
  0x3b   : > { %3067 = vmatprep.subr.bf16.mxu0 %v12708_v0  ;;  %8468 = vmatprep.subr.bf16.mxu1 %v12708_v0  ;;  %v8865_v4 = vld [vmem:[%s962_s30] sm:$0xff]   ;;  %v8866_v5 = vld [vmem:[%s962_s30 + $0x8] sm:$0xff]   ;;  %v8867_v6 = vld [vmem:[%s962_s30 + $0x10] sm:$0xff]   ;;  %s12754_s13 = sld [smem:[#allocation140_spill]]  ;;  %s12953_s12 = sld [smem:[#allocation139_spill]] }
  0x3c   : > { %v8868_v7 = vld [vmem:[%s962_s30 + $0x18] sm:$0xff]   ;;  %v8873_v12 = vld [vmem:[%s9748_s27 + $0x20] sm:$0xff]   ;;  %v8874_v13 = vld [vmem:[%s9748_s27 + $0x28] sm:$0xff]   ;;  %s9956_s2 = scalar_lea.vmem %s12752_s11, %s7888_s10  ;;  %s12829_s11 = sld [smem:[#allocation134_spill]] }
  0x3d   : > { %v8875_v14 = vld [vmem:[%s9748_s27 + $0x30] sm:$0xff]   ;;  %v8876_v15 = vld [vmem:[%s9748_s27 + $0x38] sm:$0xff]   ;;  %v1672_v17 = vld [vmem:[%s12751_s1 + $0x80] sm:$0xff]  ;;  %s12861_s10 = sld [smem:[#allocation135_spill]]  ;;  %s12955_s14 = sld [smem:[#allocation141_spill]] }
  0x3e   : > { %3068 = vmatpush1.bf16.msra.mxu0 %v8864_v3  ;;  %8484 = vmatpush1.bf16.msra.mxu1 %v8864_v3  ;;  %v1656_v18 = vld [vmem:[%s12751_s1] sm:$0xff]  ;;  %v1673_v20 = vld [vmem:[%s12751_s1 + $0x88] sm:$0xff]  ;;  %v1674_v25 = vld [vmem:[%s12751_s1 + $0x90] sm:$0xff]  ;;  %s13019_s26 = sld [smem:[#allocation12_spill]]  ;;  %s9523_s6 = smov [#allocation3]  }
  0x3f   : > { %3069 = vmatprep.subr.bf16.mxu0 %v12708_v0  ;;  %8469 = vmatprep.subr.bf16.mxu1 %v12708_v0  ;;  %s9764_s9 = scalar_lea.vmem %s12750_s8, %s7889_s7  ;;  %v1657_v22 = vld [vmem:[%s12751_s1 + $0x8] sm:$0xff]  ;;  %v1675_v26 = vld [vmem:[%s12751_s1 + $0x98] sm:$0xff]  ;;  %v1658_v28 = vld [vmem:[%s12751_s1 + $0x10] sm:$0xff]  ;;  %s12784_s7 = sld [smem:[#allocation138_spill]] }
  0x40   : > { %v8877_v16 = vld [vmem:[%s9764_s9] sm:$0xff]   ;;  %v8878_v19 = vld [vmem:[%s9764_s9 + $0x8] sm:$0xff]   ;;  %1802 = vperm.xlu0 %8861, %v1672_v17   ;;  %1722 = vperm.xlu1 %8862, %v1656_v18   ;;  %v8906_v24 = vld [vmem:[%s9764_s9 + $0x10] sm:$0xff]   ;;  %s12332_s8 = sand.u32 1, %s9504_s4  }
  0x41   : > { %v8912_v27 = vld [vmem:[%s9764_s9 + $0x18] sm:$0xff]   ;;  %v8917_v32 = vld [vmem:[%s9764_s9 + $0x20] sm:$0xff]   ;;  %v1677_v34 = vld [vmem:[%s12751_s1 + $0xa8] sm:$0xff]  ;;  %s7457_s30 = sshll.u32 %s12332_s8, 4 }
  0x42   : > { %3070 = vmatpush1.bf16.msra.mxu0 %v8865_v4  ;;  %8485 = vmatpush1.bf16.msra.mxu1 %v8865_v4  ;;  %v1659_v30 = vld [vmem:[%s12751_s1 + $0x18] sm:$0xff]  ;;  %v1676_v33 = vld [vmem:[%s12751_s1 + $0xa0] sm:$0xff]  ;;  %v8921_v35 = vld [vmem:[%s9764_s9 + $0x28] sm:$0xff]   ;;  %s12337_s5 = scalar_lea.vmem [#allocation7], %s7457_s30  ;;  %s7456_s30 = sshll.u32 %s12332_s8, 6 }
  0x43   : > { %3071 = vmatprep.subr.bf16.mxu0 %v12708_v0  ;;  %8470 = vmatprep.subr.bf16.mxu1 %v12708_v0  ;;  %v1660_v36 = vld [vmem:[%s12751_s1 + $0x20] sm:$0xff]  ;;  %v1661_v38 = vld [vmem:[%s12751_s1 + $0x28] sm:$0xff]  ;;  %v8925_v40 = vld [vmem:[%s9764_s9 + $0x30] sm:$0xff]  }
  0x44   : > { %1807 = vperm.xlu0 %8861, %v1673_v20   ;;  %1727 = vperm.xlu1 %8862, %v1657_v22   ;;  %v8888_v39 = vld [vmem:[%s12746_s28 + $0x94] ss:$24 sps:$4 sm:$0xff]   ;;  %v1679_v42 = vld [vmem:[%s12751_s1 + $0xb8] sm:$0xff]  ;;  %v8890_v45 = vld [vmem:[%s12746_s28 + $0x90] ss:$24 sps:$4 sm:$0xff]   ;;  %s7891_s0 = sshll.u32 %s13019_s26, 10 }
  0x45   : > { %v1678_v41 = vld [vmem:[%s12751_s1 + $0xb0] sm:$0xff]  ;;  %v8926_v43 = vld [vmem:[%s9764_s9 + $0x38] sm:$0xff]   ;;  %v8930_v48 = vld [vmem:[%s9764_s9 + $0x40] sm:$0xff]   ;;  %s12785_s25 = smov %s12784_s7 }
  0x46   : > { %3072 = vmatpush1.bf16.msra.mxu0 %v8866_v5  ;;  %8486 = vmatpush1.bf16.msra.mxu1 %v8866_v5  ;;  %v1662_v44 = vld [vmem:[%s12751_s1 + $0x30] sm:$0xff]  ;;  %v1663_v46 = vld [vmem:[%s12751_s1 + $0x38] sm:$0xff]  ;;  %v1680_v49 = vld [vmem:[%s12751_s1 + $0xc0] sm:$0xff] }
  0x47   : > { %3073 = vmatprep.subr.bf16.mxu0 %v12708_v0  ;;  %8471 = vmatprep.subr.bf16.mxu1 %v12708_v0  ;;  %v8891_v47 = vld [vmem:[%s12746_s28 + $0xc4] ss:$24 sps:$4 sm:$0xff]   ;;  %v1681_v50 = vld [vmem:[%s12751_s1 + $0xc8] sm:$0xff]  ;;  %v8893_v53 = vld [vmem:[%s12746_s28 + $0xc0] ss:$24 sps:$4 sm:$0xff]  }
  0x48   : > { %1812 = vperm.xlu0 %8861, %v1674_v25   ;;  %1817 = vperm.xlu1 %8862, %v1675_v26   ;;  %v8931_v51 = vld [vmem:[%s9764_s9 + $0x48] sm:$0xff]   ;;  %v1664_v52 = vld [vmem:[%s12751_s1 + $0x40] sm:$0xff]  ;;  %v8935_v56 = vld [vmem:[%s9764_s9 + $0x50] sm:$0xff]  }
  0x49   : > { %v1665_v54 = vld [vmem:[%s12751_s1 + $0x48] sm:$0xff]  ;;  %v1682_v57 = vld [vmem:[%s12751_s1 + $0xd0] sm:$0xff]  ;;  %v1683_v58 = vld [vmem:[%s12751_s1 + $0xd8] sm:$0xff] }
  0x4a   : > { %3074 = vmatpush1.bf16.msra.mxu0 %v8867_v6  ;;  %8487 = vmatpush1.bf16.msra.mxu1 %v8867_v6  ;;  %v8894_v55 = vld [vmem:[%s12746_s28 + $0xf4] ss:$24 sps:$4 sm:$0xff]   ;;  %v8936_v59 = vld [vmem:[%s9764_s9 + $0x58] sm:$0xff]   ;;  %v8896_v61 = vld [vmem:[%s12746_s28 + $0xf0] ss:$24 sps:$4 sm:$0xff]  }
  0x4b   : > { %3075 = vmatprep.subr.bf16.mxu0 %v12708_v0  ;;  %8472 = vmatprep.subr.bf16.mxu1 %v12708_v0  ;;  %v1666_v60 = vld [vmem:[%s12751_s1 + $0x50] sm:$0xff]  ;;  %v1667_v62 = vld [vmem:[%s12751_s1 + $0x58] sm:$0xff]  ;;  %v8940_v1 = vld [vmem:[%s9764_s9 + $0x60] sm:$0xff]  }
  0x4c   : > { %1732 = vperm.xlu0 %8861, %v1658_v28   ;;  %1737 = vperm.xlu1 %8862, %v1659_v30   ;;  %v8897_v63 = vld [vmem:[%s12746_s28 + $0x124] ss:$24 sps:$4 sm:$0xff]   ;;  %v1685_v3 = vld [vmem:[%s12751_s1 + $0xe8] sm:$0xff]  ;;  %v8899_v6 = vld [vmem:[%s12746_s28 + $0x120] ss:$24 sps:$4 sm:$0xff]  }
  0x4d   : > { %v1684_v2 = vld [vmem:[%s12751_s1 + $0xe0] sm:$0xff]  ;;  %v8941_v4 = vld [vmem:[%s9764_s9 + $0x68] sm:$0xff]   ;;  %v4447_v25 = vld [vmem:[%s12753_s29 + $0x90] sm:$0xff] }
  0x4e   : > { %3076 = vmatpush1.bf16.msra.mxu0 %v8868_v7  ;;  %8488 = vmatpush1.bf16.msra.mxu1 %v8868_v7  ;;  %v1668_v5 = vld [vmem:[%s12751_s1 + $0x60] sm:$0xff]  ;;  %v1669_v7 = vld [vmem:[%s12751_s1 + $0x68] sm:$0xff]  ;;  %v4448_v26 = vld [vmem:[%s12753_s29 + $0x98] sm:$0xff] }
  0x4f   : > { %3077 = vmatprep.subr.bf16.mxu0 %v12708_v0  ;;  %8473 = vmatprep.subr.bf16.mxu1 %v12708_v0  ;;  %v8950_v17 = vld [vmem:[%s9764_s9 + $0x80] sm:$0xff]   ;;  %v8951_v20 = vld [vmem:[%s9764_s9 + $0x88] sm:$0xff]  }
  0x50   : > { %1822 = vperm.xlu0 %8861, %v1676_v33   ;;  %1827 = vperm.xlu1 %8862, %v1677_v34   ;;  %v4445_v18 = vld [vmem:[%s12753_s29 + $0x80] sm:$0xff]  ;;  %v8909_v28 = vld [vmem:[%s12746_s28 + $0x1b0] ss:$24 sps:$4 sm:$0xff]  }
  0x51   : > { %v8905_v22 = vld [vmem:[%s12746_s28 + $0x180] ss:$24 sps:$4 sm:$0xff]   ;;  %v8910_v30 = vld [vmem:[%s12746_s28 + $0x1e4] ss:$24 sps:$4 sm:$0xff]  }
  0x52   : > { %3078 = vmatpush1.bf16.msra.mxu0 %v8869_v8  ;;  %8489 = vmatpush1.bf16.msra.mxu1 %v8869_v8  ;;  %v8900_v8 = vld [vmem:[%s12746_s28 + $0x154] ss:$24 sps:$4 sm:$0xff]   ;;  %v4433_v33 = vld [vmem:[%s12753_s29 + $0x20] sm:$0xff] }
  0x53   : > { %3079 = vmatprep.subr.bf16.mxu0 %v12708_v0  ;;  %8474 = vmatprep.subr.bf16.mxu1 %v12708_v0  ;;  %v8913_v34 = vld [vmem:[%s12746_s28 + $0x1e0] ss:$24 sps:$4 sm:$0xff]  }
  0x54   : > { %1742 = vperm.xlu0 %8861, %v1660_v36   ;;  %1747 = vperm.xlu1 %8862, %v1661_v38   ;;  %v8914_v36 = vld [vmem:[%s12746_s28 + $0x214] ss:$24 sps:$4 sm:$0xff]   ;;  %v4452_v38 = vld [vmem:[%s12753_s29 + $0xb8] sm:$0xff] }
  0x56   : > { %3080 = vmatpush1.bf16.msra.mxu0 %v8870_v9  ;;  %8490 = vmatpush1.bf16.msra.mxu1 %v8870_v9  ;;  %v8945_v9 = vld [vmem:[%s9764_s9 + $0x70] sm:$0xff]  }
  0x57   : > { %3081 = vmatprep.subr.bf16.mxu0 %v12708_v0  ;;  %8475 = vmatprep.subr.bf16.mxu1 %v12708_v0 }
  0x58   : > { %1832 = vperm.xlu0 %8861, %v1678_v41   ;;  %1837 = vperm.xlu1 %8862, %v1679_v42   ;;  %v4436_v41 = vld [vmem:[%s12753_s29 + $0x38] sm:$0xff] }
  0x59   : > { %v8918_v42 = vld [vmem:[%s12746_s28 + $0x244] ss:$24 sps:$4 sm:$0xff]  }
  0x5a   : > { %3082 = vmatpush1.bf16.msra.mxu0 %v8871_v10  ;;  %8491 = vmatpush1.bf16.msra.mxu1 %v8871_v10  ;;  %v1686_v10 = vld [vmem:[%s12751_s1 + $0xf0] sm:$0xff] }
  0x5b   : > { %3083 = vmatprep.subr.bf16.mxu0 %v12708_v0  ;;  %8476 = vmatprep.subr.bf16.mxu1 %v12708_v0 }
  0x5c   : > { %1752 = vperm.xlu0 %8861, %v1662_v44   ;;  %1757 = vperm.xlu1 %8862, %v1663_v46   ;;  %v4454_v44 = vld [vmem:[%s12753_s29 + $0xc8] sm:$0xff]  ;;  %v8920_v46 = vld [vmem:[%s12746_s28 + $0x240] ss:$24 sps:$4 sm:$0xff]  }
  0x5e   : > { %3084 = vmatpush1.bf16.msra.mxu0 %v8872_v11  ;;  %8492 = vmatpush1.bf16.msra.mxu1 %v8872_v11  ;;  %v1687_v11 = vld [vmem:[%s12751_s1 + $0xf8] sm:$0xff] }
  0x5f   : > { %3085 = vmatprep.subr.bf16.mxu0 %v12708_v0  ;;  %8477 = vmatprep.subr.bf16.mxu1 %v12708_v0 }
  0x60   : > { %1842 = vperm.xlu0 %8861, %v1680_v49   ;;  %1847 = vperm.xlu1 %8862, %v1681_v50   ;;  %v4455_v49 = vld [vmem:[%s12753_s29 + $0xd0] sm:$0xff]  ;;  %v4456_v50 = vld [vmem:[%s12753_s29 + $0xd8] sm:$0xff] }
  0x62   : > { %3086 = vmatpush1.bf16.msra.mxu0 %v8873_v12  ;;  %8493 = vmatpush1.bf16.msra.mxu1 %v8873_v12  ;;  %v8946_v12 = vld [vmem:[%s9764_s9 + $0x78] sm:$0xff]  }
  0x63   : > { %3087 = vmatprep.subr.bf16.mxu0 %v12708_v0  ;;  %8478 = vmatprep.subr.bf16.mxu1 %v12708_v0 }
  0x64   : > { %1762 = vperm.xlu0 %8861, %v1664_v52   ;;  %1767 = vperm.xlu1 %8862, %v1665_v54   ;;  %v8924_v52 = vld [vmem:[%s12746_s28 + $0x270] ss:$24 sps:$4 sm:$0xff]   ;;  %v8927_v54 = vld [vmem:[%s12746_s28 + $0x2a4] ss:$24 sps:$4 sm:$0xff]  }
  0x66   : > { %3088 = vmatpush1.bf16.msra.mxu0 %v8874_v13  ;;  %8494 = vmatpush1.bf16.msra.mxu1 %v8874_v13  ;;  %v1670_v13 = vld [vmem:[%s12751_s1 + $0x70] sm:$0xff] }
  0x67   : > { %3089 = vmatprep.subr.bf16.mxu0 %v12708_v0  ;;  %8479 = vmatprep.subr.bf16.mxu1 %v12708_v0 }
  0x68   : > { %1852 = vperm.xlu0 %8861, %v1682_v57   ;;  %1857 = vperm.xlu1 %8862, %v1683_v58   ;;  %v4441_v57 = vld [vmem:[%s12753_s29 + $0x60] sm:$0xff] }
  0x69   : > { %v8929_v58 = vld [vmem:[%s12746_s28 + $0x2a0] ss:$24 sps:$4 sm:$0xff]  }
  0x6a   : > { %3090 = vmatpush1.bf16.msra.mxu0 %v8875_v14  ;;  %8495 = vmatpush1.bf16.msra.mxu1 %v8875_v14  ;;  %v8902_v14 = vld [vmem:[%s12746_s28 + $0x150] ss:$24 sps:$4 sm:$0xff]  }
  0x6b   : > { %3091 = vmatprep.subr.bf16.mxu0 %v12708_v0  ;;  %8480 = vmatprep.subr.bf16.mxu1 %v12708_v0 }
  0x6c   : > { %1772 = vperm.xlu0 %8861, %v1666_v60   ;;  %1777 = vperm.xlu1 %8862, %v1667_v62   ;;  %v8932_v60 = vld [vmem:[%s12746_s28 + $0x2d4] ss:$24 sps:$4 sm:$0xff]   ;;  %v4460_v62 = vld [vmem:[%s12753_s29 + $0xf8] sm:$0xff] }
  0x6e   : > { %3092 = vmatpush1.bf16.msra.mxu0 %v8876_v15  ;;  %8496 = vmatpush1.bf16.msra.mxu1 %v8876_v15  ;;  %v1671_v15 = vld [vmem:[%s12751_s1 + $0x78] sm:$0xff] }
  0x6f   : > { %3093 = vmatprep.subr.bf16.mxu0 %v12708_v0  ;;  %8481 = vmatprep.subr.bf16.mxu1 %v12708_v0 }
  0x70   : > { %1862 = vperm.xlu0 %8861, %v1684_v2   ;;  %1867 = vperm.xlu1 %8862, %v1685_v3   ;;  %v4444_v2 = vld [vmem:[%s12753_s29 + $0x78] sm:$0xff] }
  0x71   : > { %v8937_v3 = vld [vmem:[%s12746_s28 + $0x304] ss:$24 sps:$4 sm:$0xff]  }
  0x72   : > { %3094 = vmatpush1.bf16.msra.mxu0 %v8877_v16  ;;  %8497 = vmatpush1.bf16.msra.mxu1 %v8877_v16  ;;  %v8903_v16 = vld [vmem:[%s12746_s28 + $0x184] ss:$24 sps:$4 sm:$0xff]  }
  0x73   : > { %3095 = vmatprep.subr.bf16.mxu0 %v12708_v0  ;;  %8482 = vmatprep.subr.bf16.mxu1 %v12708_v0 }
  0x74   : > { %1782 = vperm.xlu0 %8861, %v1668_v5   ;;  %1787 = vperm.xlu1 %8862, %v1669_v7   ;;  %v1704_v5 = vld [vmem:[%s12751_s1 + $0x180] sm:$0xff] }
  0x76   : > { %3096 = vmatpush1.bf16.msra.mxu0 %v8878_v19  ;;  %8498 = vmatpush1.bf16.msra.mxu1 %v8878_v19  ;;  %v4446_v19 = vld [vmem:[%s12753_s29 + $0x88] sm:$0xff] }
  0x77   : > { %3354 = vmatprep.subr.bf16.mxu0 %v12708_v0 }
  0x78   : > { %1872 = vperm.xlu0 %8861, %v1686_v10   ;;  %1877 = vperm.xlu1 %8862, %v1687_v11   ;;  %v1689_v10 = vld [vmem:[%s12751_s1 + $0x108] sm:$0xff] }
  0x79   : > { %3098 = vmatmul.mubr.bf16.vlgmr.msra.gmra.mrb[0].mxu0 %v8879_v21  ;;  %v4429_v21 = vld [vmem:[%s12753_s29] sm:$0xff]  ;;  %v8942_v11 = vld [vmem:[%s12746_s28 + $0x334] ss:$24 sps:$4 sm:$0xff]  }
  0x7a   : > { %3105 = vmatprep.mubr.bf16.mxu0 %v8882_v23  ;;  %3355 = vmatpush1.bf16.msra.mxu0 %v8906_v24  ;;  %v4430_v23 = vld [vmem:[%s12753_s29 + $0x8] sm:$0xff] }
  0x7b   : > { %3356 = vmatprep.subr.bf16.mxu0 %v12708_v0  ;;  %v8907_v24 = vld [vmem:[%s12746_s28 + $0x1b4] ss:$24 sps:$4 sm:$0xff]  }
  0x7c   : > { %1792 = vperm.xlu0 %8861, %v1670_v13   ;;  %1797 = vperm.xlu1 %8862, %v1671_v15   ;;  %v1707_v15 = vld [vmem:[%s12751_s1 + $0x198] sm:$0xff] }
  0x7e   : > { %3357 = vmatpush1.bf16.msra.mxu0 %v8912_v27  ;;  %v4431_v27 = vld [vmem:[%s12753_s29 + $0x10] sm:$0xff] }
  0x7f   : > { %3358 = vmatprep.subr.bf16.mxu0 %v12708_v0 }
  0x80   : > { %4543 = vperm.xlu0 %8861, %v4445_v18   ;;  %4548 = vperm.xlu1 %8862, %v4446_v19   ;;  %v8944_v18 = vld [vmem:[%s12746_s28 + $0x330] ss:$24 sps:$4 sm:$0xff]  }
  0x81   : > { %3106 = vmatmul.mubr.bf16.gmra.mrb[4].mxu0 %v8884_v29  ;;  %v4432_v29 = vld [vmem:[%s12753_s29 + $0x18] sm:$0xff] }
  0x82   : > { %3113 = vmatprep.mubr.bf16.mxu0 %v8885_v31  ;;  %3359 = vmatpush1.bf16.msra.mxu0 %v8917_v32  ;;  %v4449_v31 = vld [vmem:[%s12753_s29 + $0xa0] sm:$0xff]  ;;  %v4450_v32 = vld [vmem:[%s12753_s29 + $0xa8] sm:$0xff] }
  0x83   : > { %3360 = vmatprep.subr.bf16.mxu0 %v12708_v0 }
  0x84   : > { %4463 = vperm.xlu0 %8861, %v4429_v21   ;;  %4468 = vperm.xlu1 %8862, %v4430_v23   ;;  %v8947_v21 = vld [vmem:[%s12746_s28 + $0x364] ss:$24 sps:$4 sm:$0xff]  }
  0x86   : > { %3361 = vmatpush1.bf16.msra.mxu0 %v8921_v35  ;;  %v4434_v35 = vld [vmem:[%s12753_s29 + $0x28] sm:$0xff] }
  0x87   : > { %3362 = vmatprep.subr.bf16.mxu0 %v12708_v0 }
  0x88   : > { %4553 = vperm.xlu0 %8861, %v4447_v25   ;;  %4558 = vperm.xlu1 %8862, %v4448_v26   ;;  %v1709_v25 = vld [vmem:[%s12751_s1 + $0x1a8] sm:$0xff] }
  0x89   : > { %3114 = vmatmul.mubr.bf16.gmra.mrb[8].mxu0 %v8887_v37  ;;  %v4451_v37 = vld [vmem:[%s12753_s29 + $0xb0] sm:$0xff] }
  0x8a   : > { %3121 = vmatprep.mubr.bf16.mxu0 %v8888_v39  ;;  %3363 = vmatpush1.bf16.msra.mxu0 %v8925_v40  ;;  %v4435_v39 = vld [vmem:[%s12753_s29 + $0x30] sm:$0xff] }
  0x8b   : > { %3364 = vmatprep.subr.bf16.mxu0 %v12708_v0  ;;  %v8916_v40 = vld [vmem:[%s12746_s28 + $0x210] ss:$24 sps:$4 sm:$0xff]  }
  0x8c   : > { %4473 = vperm.xlu0 %8861, %v4431_v27   ;;  %4478 = vperm.xlu1 %8862, %v4432_v29   ;;  %v1692_v27 = vld [vmem:[%s12751_s1 + $0x120] sm:$0xff] }
  0x8e   : > { %3365 = vmatpush1.bf16.msra.mxu0 %v8926_v43  ;;  %v4453_v43 = vld [vmem:[%s12753_s29 + $0xc0] sm:$0xff] }
  0x8f   : > { %3366 = vmatprep.subr.bf16.mxu0 %v12708_v0 }
  0x90   : > { %4563 = vperm.xlu0 %8861, %v4449_v31   ;;  %4568 = vperm.xlu1 %8862, %v4450_v32   ;;  %v8954_v31 = vld [vmem:[%s12746_s28 + $0xc] ss:$24 sps:$4 sm:$0xff]  }
  0x91   : > { %3122 = vmatmul.mubr.bf16.gmra.mrb[12].mxu0 %v8890_v45  ;;  %v4437_v45 = vld [vmem:[%s12753_s29 + $0x40] sm:$0xff] }
  0x92   : > { %3129 = vmatprep.mubr.bf16.mxu0 %v8891_v47  ;;  %3367 = vmatpush1.bf16.msra.mxu0 %v8930_v48  ;;  %v4438_v47 = vld [vmem:[%s12753_s29 + $0x48] sm:$0xff] }
  0x93   : > { %3368 = vmatprep.subr.bf16.mxu0 %v12708_v0  ;;  %v8922_v48 = vld [vmem:[%s12746_s28 + $0x274] ss:$24 sps:$4 sm:$0xff]  }
  0x94   : > { %4483 = vperm.xlu0 %8861, %v4433_v33   ;;  %4488 = vperm.xlu1 %8862, %v4434_v35   ;;  %v1711_v35 = vld [vmem:[%s12751_s1 + $0x1b8] sm:$0xff] }
  0x96   : > { %3369 = vmatpush1.bf16.msra.mxu0 %v8931_v51  ;;  %v4439_v51 = vld [vmem:[%s12753_s29 + $0x50] sm:$0xff] }
  0x97   : > { %3370 = vmatprep.subr.bf16.mxu0 %v12708_v0 }
  0x98   : > { %4573 = vperm.xlu0 %8861, %v4451_v37   ;;  %4578 = vperm.xlu1 %8862, %v4452_v38   ;;  %v1694_v37 = vld [vmem:[%s12751_s1 + $0x130] sm:$0xff]  ;;  %v8952_v38 = vld [vmem:[%s12746_s28 + $0x8] ss:$24 sps:$4 sm:$0xff]  }
  0x99   : > { %3130 = vmatmul.mubr.bf16.gmra.mrb[16].mxu0 %v8893_v53  ;;  %v4440_v53 = vld [vmem:[%s12753_s29 + $0x58] sm:$0xff] }
  0x9a   : > { %3137 = vmatprep.mubr.bf16.mxu0 %v8894_v55  ;;  %3371 = vmatpush1.bf16.msra.mxu0 %v8935_v56  ;;  %v4457_v55 = vld [vmem:[%s12753_s29 + $0xe0] sm:$0xff]  ;;  %v4458_v56 = vld [vmem:[%s12753_s29 + $0xe8] sm:$0xff] }
  0x9b   : > { %3372 = vmatprep.subr.bf16.mxu0 %v12708_v0 }
  0x9c   : > { %4493 = vperm.xlu0 %8861, %v4435_v39   ;;  %4498 = vperm.xlu1 %8862, %v4436_v41   ;;  %v8955_v41 = vld [vmem:[%s12746_s28 + $0x3c] ss:$24 sps:$4 sm:$0xff]  }
  0x9e   : > { %3373 = vmatpush1.bf16.msra.mxu0 %v8936_v59  ;;  %v4442_v59 = vld [vmem:[%s12753_s29 + $0x68] sm:$0xff] }
  0x9f   : > { %3374 = vmatprep.subr.bf16.mxu0 %v12708_v0 }
  0xa0   : > { %4583 = vperm.xlu0 %8861, %v4453_v43   ;;  %4588 = vperm.xlu1 %8862, %v4454_v44  }
  0xa1   : > { %3138 = vmatmul.mubr.bf16.gmra.mrb[20].mxu0 %v8896_v61  ;;  %v4459_v61 = vld [vmem:[%s12753_s29 + $0xf0] sm:$0xff] }
  0xa2   : > { %3145 = vmatprep.mubr.bf16.mxu0 %v8897_v63  ;;  %3375 = vmatpush1.bf16.msra.mxu0 %v8940_v1  ;;  %v4443_v63 = vld [vmem:[%s12753_s29 + $0x70] sm:$0xff] }
  0xa3   : > { %3376 = vmatprep.subr.bf16.mxu0 %v12708_v0  ;;  %v8934_v1 = vld [vmem:[%s12746_s28 + $0x2d0] ss:$24 sps:$4 sm:$0xff]  }
  0xa4   : > { %4503 = vperm.xlu0 %8861, %v4437_v45   ;;  %4508 = vperm.xlu1 %8862, %v4438_v47   ;;  %v1712_v45 = vld [vmem:[%s12751_s1 + $0x1c0] sm:$0xff]  ;;  %v8989_v47 = vld [vmem:[%s9764_s9 + $0x98] sm:$0xff]  }
  0xa6   : > { %3377 = vmatpush1.bf16.msra.mxu0 %v8941_v4 }
  0xa7   : > { %3378 = vmatprep.subr.bf16.mxu0 %v12708_v0 }
  0xa8   : > { %4593 = vperm.xlu0 %8861, %v4455_v49   ;;  %4598 = vperm.xlu1 %8862, %v4456_v50   ;;  %v1696_v50 = vld [vmem:[%s12751_s1 + $0x140] sm:$0xff] }
  0xa9   : > { %3146 = vmatmul.mubr.bf16.gmra.mrb[24].mxu0 %v8899_v6  ;;  %v1705_v6 = vld [vmem:[%s12751_s1 + $0x188] sm:$0xff] }
  0xaa   : > { %3153 = vmatprep.mubr.bf16.mxu0 %v8900_v8  ;;  %3379 = vmatpush1.bf16.msra.mxu0 %v8945_v9  ;;  %v1688_v8 = vld [vmem:[%s12751_s1 + $0x100] sm:$0xff] }
  0xab   : > { %3380 = vmatprep.subr.bf16.mxu0 %v12708_v0  ;;  %v8939_v9 = vld [vmem:[%s12746_s28 + $0x300] ss:$24 sps:$4 sm:$0xff]  }
  0xac   : > { %4513 = vperm.xlu0 %8861, %v4439_v51   ;;  %4518 = vperm.xlu1 %8862, %v4440_v53   ;;  %v8957_v51 = vld [vmem:[%s12746_s28 + $0x38] ss:$24 sps:$4 sm:$0xff]   ;;  %v8958_v53 = vld [vmem:[%s12746_s28 + $0x6c] ss:$24 sps:$4 sm:$0xff]  }
  0xae   : > { %3381 = vmatpush1.bf16.msra.mxu0 %v8946_v12 }
  0xaf   : > { %3382 = vmatprep.subr.bf16.mxu0 %v12708_v0 }
  0xb0   : > { %4603 = vperm.xlu0 %8861, %v4457_v55   ;;  %4608 = vperm.xlu1 %8862, %v4458_v56  }
  0xb1   : > { %3154 = vmatmul.mubr.bf16.gmra.mrb[28].mxu0 %v8902_v14  ;;  %v1706_v14 = vld [vmem:[%s12751_s1 + $0x190] sm:$0xff] }
  0xb2   : > { %3161 = vmatprep.mubr.bf16.mxu0 %v8903_v16  ;;  %3383 = vmatpush1.bf16.msra.mxu0 %v8950_v17  ;;  %v1690_v17 = vld [vmem:[%s12751_s1 + $0x110] sm:$0xff] }
  0xb3   : > { %3384 = vmatprep.subr.bf16.mxu0 %v12708_v0 }
  0xb4   : > { %4523 = vperm.xlu0 %8861, %v4441_v57   ;;  %4528 = vperm.xlu1 %8862, %v4442_v59   ;;  %v1714_v57 = vld [vmem:[%s12751_s1 + $0x1d0] sm:$0xff]  ;;  %v9003_v59 = vld [vmem:[%s9764_s9 + $0xa8] sm:$0xff]  }
  0xb6   : > { %3385 = vmatpush1.bf16.msra.mxu0 %v8951_v20  ;;  %v1691_v20 = vld [vmem:[%s12751_s1 + $0x118] sm:$0xff] }
  0xb7   : > { %3643 = vmatprep.subr.bf16.mxu0 %v12708_v0 }
  0xb8   : > { %4613 = vperm.xlu0 %8861, %v4459_v61   ;;  %4618 = vperm.xlu1 %8862, %v4460_v62   ;;  %v1698_v62 = vld [vmem:[%s12751_s1 + $0x150] sm:$0xff] }
  0xb9   : > { %3162 = vmatmul.mubr.bf16.gmra.mrb[32].mxu0 %v8905_v22 }
  0xba   : > { %3169 = vmatprep.mubr.bf16.mxu0 %v8907_v24  ;;  %v1708_v24 = vld [vmem:[%s12751_s1 + $0x1a0] sm:$0xff] }
  0xbc   : > { %4533 = vperm.xlu0 %8861, %v4443_v63   ;;  %4538 = vperm.xlu1 %8862, %v4444_v2   ;;  %v8960_v63 = vld [vmem:[%s12746_s28 + $0x68] ss:$24 sps:$4 sm:$0xff]   ;;  %v8961_v2 = vld [vmem:[%s12746_s28 + $0x9c] ss:$24 sps:$4 sm:$0xff]  }
  0xbf   : > { %v10128_v4 = vpop.permute.xlu0 %1802  ;;  %v10136_v7 = vpop.permute.xlu1 %1722 }
  0xc0   : > { %1962 = vperm.xlu0 %8861, %v1704_v5   ;;  %1967 = vperm.xlu1 %8862, %v1705_v6   ;;  %v9012_v5 = vld [vmem:[%s9764_s9 + $0xb0] sm:$0xff]  }
  0xc1   : > { %3170 = vmatmul.mubr.bf16.gmra.mrb[36].mxu0 %v8909_v28  ;;  %v8949_v28 = vld [vmem:[%s12746_s28 + $0x360] ss:$24 sps:$4 sm:$0xff]  }
  0xc2   : > { %3177 = vmatprep.mubr.bf16.mxu0 %v8910_v30  ;;  %v1693_v30 = vld [vmem:[%s12751_s1 + $0x128] sm:$0xff] }
  0xc3   : > { %v10150_v12 = vpop.permute.xlu0 %1807  ;;  %v10152_v13 = vpop.permute.xlu1 %1727 }
  0xc4   : > { %1882 = vperm.xlu0 %8861, %v1688_v8   ;;  %1887 = vperm.xlu1 %8862, %v1689_v10   ;;  %v1716_v8 = vld [vmem:[%s12751_s1 + $0x1e0] sm:$0xff] }
  0xc7   : > { %v10160_v16 = vpop.permute.xlu0 %1812  ;;  %v10168_v19 = vpop.permute.xlu1 %1817 }
  0xc8   : > { %1972 = vperm.xlu0 %8861, %v1706_v14   ;;  %1977 = vperm.xlu1 %8862, %v1707_v15   ;;  %v1700_v14 = vld [vmem:[%s12751_s1 + $0x160] sm:$0xff]  ;;  %v8963_v15 = vld [vmem:[%s12746_s28 + $0x98] ss:$24 sps:$4 sm:$0xff]  }
  0xc9   : > { %3178 = vmatmul.mubr.bf16.gmra.mrb[40].mxu0 %v8913_v34  ;;  %v1710_v34 = vld [vmem:[%s12751_s1 + $0x1b0] sm:$0xff] }
  0xca   : > { %3185 = vmatprep.mubr.bf16.mxu0 %v8914_v36 }
  0xcb   : > { %v10176_v22 = vpop.permute.xlu0 %1732  ;;  %v10178_v23 = vpop.permute.xlu1 %1737 }
  0xcc   : > { %1892 = vperm.xlu0 %8861, %v1690_v17   ;;  %1897 = vperm.xlu1 %8862, %v1691_v20   ;;  %v1701_v17 = vld [vmem:[%s12751_s1 + $0x168] sm:$0xff] }
  0xcf   : > { %v10186_v26 = vpop.permute.xlu0 %1822  ;;  %v10194_v29 = vpop.permute.xlu1 %1827 }
  0xd0   : > { %1982 = vperm.xlu0 %8861, %v1708_v24   ;;  %1987 = vperm.xlu1 %8862, %v1709_v25   ;;  %v1718_v24 = vld [vmem:[%s12751_s1 + $0x1f0] sm:$0xff]  ;;  %v1719_v25 = vld [vmem:[%s12751_s1 + $0x1f8] sm:$0xff] }
  0xd1   : > { %3186 = vmatmul.mubr.bf16.gmra.mrb[44].mxu0 %v8916_v40  ;;  %v1695_v40 = vld [vmem:[%s12751_s1 + $0x138] sm:$0xff] }
  0xd2   : > { %3193 = vmatprep.mubr.bf16.mxu0 %v8918_v42  ;;  %v8979_v42 = vld [vmem:[%s9764_s9 + $0x90] sm:$0xff]  }
  0xd3   : > { %v10202_v32 = vpop.permute.xlu0 %1742  ;;  %v10204_v33 = vpop.permute.xlu1 %1747 }
  0xd4   : > { %1902 = vperm.xlu0 %8861, %v1692_v27   ;;  %1907 = vperm.xlu1 %8862, %v1693_v30   ;;  %v1702_v30 = vld [vmem:[%s12751_s1 + $0x170] sm:$0xff] }
  0xd7   : > { %v10212_v36 = vpop.permute.xlu0 %1832  ;;  %v10220_v39 = vpop.permute.xlu1 %1837 }
  0xd8   : > { %1992 = vperm.xlu0 %8861, %v1710_v34   ;;  %1997 = vperm.xlu1 %8862, %v1711_v35   ;;  %v1703_v34 = vld [vmem:[%s12751_s1 + $0x178] sm:$0xff] }
  0xd9   : > { %3194 = vmatmul.mubr.bf16.gmra.mrb[48].mxu0 %v8920_v46  ;;  %v1713_v46 = vld [vmem:[%s12751_s1 + $0x1c8] sm:$0xff]  ;;  %v8967_v35 = vld [vmem:[%s12746_s28 + $0xfc] ss:$24 sps:$4 sm:$0xff]  }
  0xda   : > { %3201 = vmatprep.mubr.bf16.mxu0 %v8922_v48 }
  0xdb   : > { %v10229_v43 = vpop.permute.xlu0 %1752  ;;  %v10231_v44 = vpop.permute.xlu1 %1757 }
  0xdc   : > { %1912 = vperm.xlu0 %8861, %v1694_v37   ;;  %1917 = vperm.xlu1 %8862, %v1695_v40   ;;  %v9020_v40 = vld [vmem:[%s9764_s9 + $0xb8] sm:$0xff]  }
  0xdf   : > { %v10240_v48 = vpop.permute.xlu0 %1842  ;;  %v10243_v49 = vpop.permute.xlu1 %1847 }
  0xe0   : > { %2002 = vperm.xlu0 %8861, %v1712_v45   ;;  %2007 = vperm.xlu1 %8862, %v1713_v46  }
  0xe1   : > { %3202 = vmatmul.mubr.bf16.gmra.mrb[52].mxu0 %v8924_v52  ;;  %v1697_v52 = vld [vmem:[%s12751_s1 + $0x148] sm:$0xff] }
  0xe2   : > { %3209 = vmatprep.mubr.bf16.mxu0 %v8927_v54  ;;  %v8996_v54 = vld [vmem:[%s9764_s9 + $0xa0] sm:$0xff]  }
  0xe3   : > { %v10258_v55 = vpop.permute.xlu0 %1762  ;;  %v10261_v56 = vpop.permute.xlu1 %1767 }
  0xe4   : > { %1922 = vperm.xlu0 %8861, %v1696_v50   ;;  %1927 = vperm.xlu1 %8862, %v1697_v52   ;;  %v8969_v50 = vld [vmem:[%s12746_s28 + $0xf8] ss:$24 sps:$4 sm:$0xff]   ;;  %v8970_v52 = vld [vmem:[%s12746_s28 + $0x12c] ss:$24 sps:$4 sm:$0xff]  }
  0xe7   : > { %v10273_v61 = vpop.permute.xlu1 %1857 }
  0xe8   : > { %2012 = vperm.xlu0 %8861, %v1714_v57   ;;  %v5353_v57 = vld [vmem:[%s12754_s13 + $0x90] sm:$0xff] }
  0xe9   : > { %3210 = vmatmul.mubr.bf16.gmra.mrb[56].mxu0 %v8929_v58  ;;  %v1715_v58 = vld [vmem:[%s12751_s1 + $0x1d8] sm:$0xff] }
  0xea   : > { %3217 = vmatprep.mubr.bf16.mxu0 %v8932_v60  ;;  %v10270_v60 = vpop.permute.xlu0 %1852  ;;  %2017 = vperm.xlu1 %8862, %v1715_v58   ;;  %v5354_v58 = vld [vmem:[%s12754_s13 + $0x98] sm:$0xff] }
  0xeb   : > { %v10290_v6 = vpop.permute.xlu1 %1777 }
  0xec   : > { %1932 = vperm.xlu0 %8861, %v1698_v62  }
  0xf0   : > { %2022 = vperm.xlu0 %8861, %v1716_v8  }
  0xf1   : > { %3218 = vmatmul.mubr.bf16.gmra.mrb[60].mxu0 %v8934_v1  ;;  %v1699_v1 = vld [vmem:[%s12751_s1 + $0x158] sm:$0xff] }
  0xf2   : > { %3225 = vmatprep.mubr.bf16.mxu0 %v8937_v3  ;;  %v10287_v3 = vpop.permute.xlu0 %1772  ;;  %1937 = vperm.xlu1 %8862, %v1699_v1   ;;  %v8972_v1 = vld [vmem:[%s12746_s28 + $0x128] ss:$24 sps:$4 sm:$0xff]  }
  0xf4   : > { %1942 = vperm.xlu0 %8861, %v1700_v14   ;;  %v5355_v14 = vld [vmem:[%s12754_s13 + $0xa0] sm:$0xff] }
  0xf6   : > { %v10299_v10 = vpop.permute.xlu0 %1862 }
  0xf8   : > { %2032 = vperm.xlu0 %8861, %v1718_v24  }
  0xf9   : > { %3226 = vmatmul.mubr.bf16.gmra.mrb[64].mxu0 %v8939_v9  ;;  %v1717_v9 = vld [vmem:[%s12751_s1 + $0x1e8] sm:$0xff] }
  0xfa   : > { %3233 = vmatprep.mubr.bf16.mxu0 %v8942_v11  ;;  %v10301_v11 = vpop.permute.xlu1 %1867  ;;  %2027 = vperm.xlu1 %8862, %v1717_v9   ;;  %v10316_v20 = vpop.permute.xlu0 %1782 }
  0xfc   : > { %1952 = vperm.xlu0 %8861, %v1702_v30   ;;  %v8975_v30 = vld [vmem:[%s12746_s28 + $0x158] ss:$24 sps:$4 sm:$0xff]  }
  0xfe   : > { %1947 = vperm.xlu1 %8862, %v1701_v17   ;;  %v10326_v27 = vpop.permute.xlu0 %1872  ;;  %v9027_v17 = vld [vmem:[%s9764_s9 + $0xc0] sm:$0xff]  }
 0x101   : > { %3234 = vmatmul.mubr.bf16.gmra.mrb[68].mxu0 %v8944_v18  ;;  %v8964_v18 = vld [vmem:[%s12746_s28 + $0xcc] ss:$24 sps:$4 sm:$0xff]  }
 0x102   : > { %3241 = vmatprep.mubr.bf16.mxu0 %v8947_v21  ;;  %v10318_v21 = vpop.permute.xlu1 %1787  ;;  %2037 = vperm.xlu1 %8862, %v1719_v25   ;;  %v10342_v37 = vpop.permute.xlu0 %1792  ;;  %v5339_v25 = vld [vmem:[%s12754_s13 + $0x20] sm:$0xff] }
 0x106   : > { %1957 = vperm.xlu1 %8862, %v1703_v34   ;;  %v10353_v45 = vpop.permute.xlu0 %4543  ;;  %v8976_v34 = vld [vmem:[%s12746_s28 + $0x18c] ss:$24 sps:$4 sm:$0xff]  }
 0x107   : > { %12755 = vst [vmem:[#allocation19_spill] sm:$0xff] %v10353_v45  ;;  %v9086_v45 = vld [vmem:[%s12746_s28 + $0x4b4] ss:$24 sps:$4 sm:$0xff]  }
 0x109   : > { %3242 = vmatmul.mubr.bf16.gmra.mrb[72].mxu0 %v8949_v28  ;;  %v10328_v28 = vpop.permute.xlu1 %1877 }
 0x10a   : > { %3386 = vmatprep.mubr.bf16.mxu0 %v8954_v31  ;;  %v8966_v31 = vld [vmem:[%s12746_s28 + $0xc8] ss:$24 sps:$4 sm:$0xff]  }
 0x111   : > { %3387 = vmatmul.mubr.bf16.vlgmr.msra.gmra.mrb[0].mxu0 %v8952_v38  ;;  %v10344_v38 = vpop.permute.xlu1 %1797 }
 0x112   : > { %3394 = vmatprep.mubr.bf16.mxu0 %v8955_v41  ;;  %3644 = vmatpush1.bf16.msra.mxu0 %v8979_v42  ;;  %v5351_v41 = vld [vmem:[%s12754_s13 + $0x80] sm:$0xff]  ;;  %v5352_v42 = vld [vmem:[%s12754_s13 + $0x88] sm:$0xff] }
 0x113   : > { %3645 = vmatprep.subr.bf16.mxu0 %v12708_v0  ;;  %5449 = vperm.xlu0 %8861, %v5351_v41   ;;  %v5357_v41 = vld [vmem:[%s12754_s13 + $0xb0] sm:$0xff] }
 0x114   : > { %5454 = vperm.xlu1 %8862, %v5352_v42   ;;  %v5358_v42 = vld [vmem:[%s12754_s13 + $0xb8] sm:$0xff] }
 0x115   : > { %v10355_v46 = vpop.permute.xlu1 %4548 }
 0x116   : > { %3646 = vmatpush1.bf16.msra.mxu0 %v8989_v47  ;;  %12756 = vst [vmem:[#allocation20_spill] sm:$0xff] %v10355_v46  ;;  %v5335_v47 = vld [vmem:[%s12754_s13] sm:$0xff]  ;;  %v9009_v46 = vld [vmem:[%s12746_s28 + $0x338] ss:$24 sps:$4 sm:$0xff]  }
 0x117   : > { %3647 = vmatprep.subr.bf16.mxu0 %v12708_v0  ;;  %5369 = vperm.xlu0 %8861, %v5335_v47  }
 0x119   : > { %3395 = vmatmul.mubr.bf16.gmra.mrb[4].mxu0 %v8957_v51  ;;  %v5336_v51 = vld [vmem:[%s12754_s13 + $0x8] sm:$0xff] }
 0x11a   : > { %3402 = vmatprep.mubr.bf16.mxu0 %v8958_v53  ;;  %3648 = vmatpush1.bf16.msra.mxu0 %v8996_v54  ;;  %v10370_v53 = vpop.permute.xlu0 %4463  ;;  %v10372_v54 = vpop.permute.xlu1 %4468 }
 0x11b   : > { %3649 = vmatprep.subr.bf16.mxu0 %v12708_v0  ;;  %12757 = vst [vmem:[#allocation21_spill] sm:$0xff] %v10370_v53  ;;  %12758 = vst [vmem:[#allocation22_spill] sm:$0xff] %v10372_v54  ;;  %5374 = vperm.xlu1 %8862, %v5336_v51   ;;  %v5341_v51 = vld [vmem:[%s12754_s13 + $0x30] sm:$0xff] }
 0x11c   : > { %5459 = vperm.xlu0 %8861, %v5353_v57   ;;  %v5342_v57 = vld [vmem:[%s12754_s13 + $0x38] sm:$0xff]  ;;  %v9122_v53 = vld [vmem:[%s12746_s28 + $0x5d4] ss:$24 sps:$4 sm:$0xff]  }
 0x11d   : > { %v9030_v54 = vld [vmem:[%s12746_s28 + $0x458] ss:$24 sps:$4 sm:$0xff]  }
 0x11e   : > { %3650 = vmatpush1.bf16.msra.mxu0 %v9003_v59  ;;  %v10380_v59 = vpop.permute.xlu0 %4553  ;;  %v10382_v62 = vpop.permute.xlu1 %4558 }
 0x11f   : > { %3651 = vmatprep.subr.bf16.mxu0 %v12708_v0  ;;  %12759 = vst [vmem:[#allocation23_spill] sm:$0xff] %v10380_v59  ;;  %12760 = vst [vmem:[#allocation24_spill] sm:$0xff] %v10382_v62  ;;  %5464 = vperm.xlu1 %8862, %v5354_v58   ;;  %v8980_v58 = vld [vmem:[%s12746_s28 + $0x1bc] ss:$24 sps:$4 sm:$0xff]   ;;  %v5019_v62 = vld [vmem:[%s12785_s25 + $0x68] sm:$0xff] }
 0x120   : > { %v9006_v59 = vld [vmem:[%s12746_s28 + $0x308] ss:$24 sps:$4 sm:$0xff]  }
 0x121   : > { %3403 = vmatmul.mubr.bf16.gmra.mrb[8].mxu0 %v8960_v63  ;;  %v5337_v63 = vld [vmem:[%s12754_s13 + $0x10] sm:$0xff] }
 0x122   : > { %3410 = vmatprep.mubr.bf16.mxu0 %v8961_v2  ;;  %3652 = vmatpush1.bf16.msra.mxu0 %v9012_v5  ;;  %v5338_v2 = vld [vmem:[%s12754_s13 + $0x18] sm:$0xff]  ;;  %v10396_v8 = vpop.permute.xlu0 %4473  ;;  %v10398_v9 = vpop.permute.xlu1 %4478 }
 0x123   : > { %3653 = vmatprep.subr.bf16.mxu0 %v12708_v0  ;;  %v8973_v5 = vld [vmem:[%s12746_s28 + $0x15c] ss:$24 sps:$4 sm:$0xff]   ;;  %12761 = vst [vmem:[#allocation25_spill] sm:$0xff] %v10396_v8  ;;  %12762 = vst [vmem:[#allocation26_spill] sm:$0xff] %v10398_v9  ;;  %5379 = vperm.xlu0 %8861, %v5337_v63   ;;  %v9118_v8 = vld [vmem:[%s12746_s28 + $0x5a0] ss:$24 sps:$4 sm:$0xff]  }
 0x124   : > { %5384 = vperm.xlu1 %8862, %v5338_v2   ;;  %v5359_v2 = vld [vmem:[%s12754_s13 + $0xc0] sm:$0xff] }
 0x125   : > { %v9116_v9 = vld [vmem:[%s12746_s28 + $0x5a4] ss:$24 sps:$4 sm:$0xff]  }
 0x126   : > { %3654 = vmatpush1.bf16.msra.mxu0 %v9020_v40  ;;  %v10409_v24 = vpop.permute.xlu1 %4568 }
 0x127   : > { %3655 = vmatprep.subr.bf16.mxu0 %v12708_v0  ;;  %12764 = vst [vmem:[#allocation28_spill] sm:$0xff] %v10409_v24  ;;  %5469 = vperm.xlu0 %8861, %v5355_v14   ;;  %v9034_v14 = vld [vmem:[%s9764_s9 + $0xc8] sm:$0xff]  }
 0x129   : > { %3411 = vmatmul.mubr.bf16.gmra.mrb[12].mxu0 %v8963_v15  ;;  %v5356_v15 = vld [vmem:[%s12754_s13 + $0xa8] sm:$0xff] }
 0x12a   : > { %3418 = vmatprep.mubr.bf16.mxu0 %v8964_v18  ;;  %v10407_v18 = vpop.permute.xlu0 %4563  ;;  %3656 = vmatpush1.bf16.msra.mxu0 %v9027_v17  ;;  %v10426_v40 = vpop.permute.xlu1 %4488 }
 0x12b   : > { %12763 = vst [vmem:[#allocation27_spill] sm:$0xff] %v10407_v18  ;;  %5474 = vperm.xlu1 %8862, %v5356_v15   ;;  %3657 = vmatprep.subr.bf16.mxu0 %v12708_v0  ;;  %12766 = vst [vmem:[#allocation30_spill] sm:$0xff] %v10426_v40  ;;  %v9072_v18 = vld [vmem:[%s9764_s9 + $0xf0] sm:$0xff]  }
 0x12c   : > { %5389 = vperm.xlu0 %8861, %v5339_v25   ;;  %v5343_v25 = vld [vmem:[%s12754_s13 + $0x40] sm:$0xff]  ;;  %v9110_v40 = vld [vmem:[%s12746_s28 + $0x574] ss:$24 sps:$4 sm:$0xff]  }
 0x12e   : > { %3658 = vmatpush1.bf16.msra.mxu0 %v9034_v14  ;;  %v8986_v14 = vld [vmem:[%s12746_s28 + $0x21c] ss:$24 sps:$4 sm:$0xff]  }
 0x12f   : > { %3659 = vmatprep.subr.bf16.mxu0 %v12708_v0  ;;  %v5366_v0 = vld [vmem:[%s12754_s13 + $0xf8] sm:$0xff] }
 0x130   : > { %5479 = vperm.xlu0 %8861, %v5357_v41  }
 0x131   : > { %3419 = vmatmul.mubr.bf16.gmra.mrb[16].mxu0 %v8966_v31  ;;  %v5340_v31 = vld [vmem:[%s12754_s13 + $0x28] sm:$0xff] }
 0x132   : > { %3426 = vmatprep.mubr.bf16.mxu0 %v8967_v35  ;;  %v10424_v35 = vpop.permute.xlu0 %4483  ;;  %5394 = vperm.xlu1 %8862, %v5340_v31   ;;  %v5344_v31 = vld [vmem:[%s12754_s13 + $0x48] sm:$0xff] }
 0x133   : > { %12765 = vst [vmem:[#allocation29_spill] sm:$0xff] %v10424_v35 }
 0x134   : > { %5399 = vperm.xlu0 %8861, %v5341_v51   ;;  %v5361_v51 = vld [vmem:[%s12754_s13 + $0xd0] sm:$0xff] }
 0x136   : > { %v10434_v47 = vpop.permute.xlu0 %4573  ;;  %5484 = vperm.xlu1 %8862, %v5358_v42  }
 0x137   : > { %12767 = vst [vmem:[#allocation31_spill] sm:$0xff] %v10434_v47  ;;  %v9065_v47 = vld [vmem:[%s12746_s28 + $0x424] ss:$24 sps:$4 sm:$0xff]  }
 0x138   : > { %5489 = vperm.xlu0 %8861, %v5359_v2  }
 0x139   : > { %3427 = vmatmul.mubr.bf16.gmra.mrb[20].mxu0 %v8969_v50  ;;  %v10436_v50 = vpop.permute.xlu1 %4578 }
 0x13a   : > { %3434 = vmatprep.mubr.bf16.mxu0 %v8970_v52  ;;  %12768 = vst [vmem:[#allocation32_spill] sm:$0xff] %v10436_v50  ;;  %v8978_v52 = vld [vmem:[%s12746_s28 + $0x188] ss:$24 sps:$4 sm:$0xff]   ;;  %v10450_v63 = vpop.permute.xlu0 %4493  ;;  %5404 = vperm.xlu1 %8862, %v5342_v57   ;;  %v5345_v57 = vld [vmem:[%s12754_s13 + $0x50] sm:$0xff]  ;;  %v5013_v50 = vld [vmem:[%s12785_s25 + $0x38] sm:$0xff] }
 0x13b   : > { %12769 = vst [vmem:[#allocation33_spill] sm:$0xff] %v10450_v63  ;;  %v9024_v63 = vld [vmem:[%s12746_s28 + $0x42c] ss:$24 sps:$4 sm:$0xff]  }
 0x13c   : > { %5409 = vperm.xlu0 %8861, %v5343_v25  }
 0x13e   : > { %v10461_v15 = vpop.permute.xlu0 %4583 }
 0x13f   : > { %12771 = vst [vmem:[#allocation35_spill] sm:$0xff] %v10461_v15  ;;  %v5010_v15 = vld [vmem:[%s12785_s25 + $0x20] sm:$0xff] }
 0x140   : > { %5499 = vperm.xlu0 %8861, %v5361_v51  }
 0x141   : > { %3435 = vmatmul.mubr.bf16.gmra.mrb[24].mxu0 %v8972_v1  ;;  %v10452_v1 = vpop.permute.xlu1 %4498 }
 0x142   : > { %3442 = vmatprep.mubr.bf16.mxu0 %v8973_v5  ;;  %12770 = vst [vmem:[#allocation34_spill] sm:$0xff] %v10452_v1  ;;  %v5360_v5 = vld [vmem:[%s12754_s13 + $0xc8] sm:$0xff]  ;;  %v10478_v41 = vpop.permute.xlu0 %4503 }
 0x143   : > { %5494 = vperm.xlu1 %8862, %v5360_v5   ;;  %12773 = vst [vmem:[#allocation37_spill] sm:$0xff] %v10478_v41  ;;  %v5346_v5 = vld [vmem:[%s12754_s13 + $0x58] sm:$0xff] }
 0x144   : > { %5419 = vperm.xlu0 %8861, %v5345_v57   ;;  %v8988_v57 = vld [vmem:[%s12746_s28 + $0x218] ss:$24 sps:$4 sm:$0xff]   ;;  %v9104_v41 = vld [vmem:[%s12746_s28 + $0x544] ss:$24 sps:$4 sm:$0xff]  }
 0x145   : > { %v10463_v17 = vpop.permute.xlu1 %4588 }
 0x146   : > { %12772 = vst [vmem:[#allocation36_spill] sm:$0xff] %v10463_v17  ;;  %v10494_v2 = vpop.permute.xlu0 %4593 }
 0x147   : > { %5414 = vperm.xlu1 %8862, %v5344_v31   ;;  %12775 = vst [vmem:[#allocation39_spill] sm:$0xff] %v10494_v2  ;;  %v5364_v31 = vld [vmem:[%s12754_s13 + $0xe8] sm:$0xff]  ;;  %v9051_v2 = vld [vmem:[%s12746_s28 + $0x3c4] ss:$24 sps:$4 sm:$0xff]  }
 0x149   : > { %3443 = vmatmul.mubr.bf16.gmra.mrb[28].mxu0 %v8975_v30  ;;  %v8982_v30 = vld [vmem:[%s12746_s28 + $0x1b8] ss:$24 sps:$4 sm:$0xff]   ;;  %v10480_v42 = vpop.permute.xlu1 %4508 }
 0x14a   : > { %3450 = vmatprep.mubr.bf16.mxu0 %v8976_v34  ;;  %v8983_v34 = vld [vmem:[%s12746_s28 + $0x1ec] ss:$24 sps:$4 sm:$0xff]   ;;  %12774 = vst [vmem:[#allocation38_spill] sm:$0xff] %v10480_v42  ;;  %v9019_v42 = vld [vmem:[%s12746_s28 + $0x3c8] ss:$24 sps:$4 sm:$0xff]  }
 0x14d   : > { %v10502_v25 = vpop.permute.xlu1 %4598 }
 0x14e   : > { %12776 = vst [vmem:[#allocation40_spill] sm:$0xff] %v10502_v25 }
 0x151   : > { %3451 = vmatmul.mubr.bf16.gmra.mrb[32].mxu0 %v8978_v52  ;;  %v5362_v52 = vld [vmem:[%s12754_s13 + $0xd8] sm:$0xff]  ;;  %v10512_v51 = vpop.permute.xlu1 %4518 }
 0x152   : > { %3458 = vmatprep.mubr.bf16.mxu0 %v8980_v58  ;;  %5504 = vperm.xlu1 %8862, %v5362_v52   ;;  %v8985_v58 = vld [vmem:[%s12746_s28 + $0x1e8] ss:$24 sps:$4 sm:$0xff]   ;;  %12778 = vst [vmem:[#allocation42_spill] sm:$0xff] %v10512_v51  ;;  %v9098_v51 = vld [vmem:[%s12746_s28 + $0x514] ss:$24 sps:$4 sm:$0xff]  }
 0x153   : > { %v5347_v52 = vld [vmem:[%s12754_s13 + $0x60] sm:$0xff] }
 0x155   : > { %v10535_v25 = vpop.permute.xlu1 %4608 }
 0x156   : > { %5424 = vperm.xlu1 %8862, %v5346_v5   ;;  %v8990_v5 = vld [vmem:[%s12746_s28 + $0x24c] ss:$24 sps:$4 sm:$0xff]   ;;  %12780 = vst [vmem:[#allocation44_spill] sm:$0xff] %v10535_v25  ;;  %v5350_v25 = vld [vmem:[%s12754_s13 + $0x78] sm:$0xff] }
 0x159   : > { %3459 = vmatmul.mubr.bf16.gmra.mrb[36].mxu0 %v8982_v30  ;;  %v5363_v30 = vld [vmem:[%s12754_s13 + $0xe0] sm:$0xff] }
 0x15a   : > { %3466 = vmatprep.mubr.bf16.mxu0 %v8983_v34  ;;  %v10510_v34 = vpop.permute.xlu0 %4513  ;;  %5509 = vperm.xlu0 %8861, %v5363_v30   ;;  %v9044_v30 = vld [vmem:[%s9764_s9 + $0xd0] sm:$0xff]  }
 0x15b   : > { %12777 = vst [vmem:[#allocation41_spill] sm:$0xff] %v10510_v34  ;;  %5514 = vperm.xlu1 %8862, %v5364_v31   ;;  %v5365_v31 = vld [vmem:[%s12754_s13 + $0xf0] sm:$0xff]  ;;  %3660 = vmatpush1.bf16.msra.mxu0 %v9044_v30 }
 0x15c   : > { %v9100_v34 = vld [vmem:[%s12746_s28 + $0x510] ss:$24 sps:$4 sm:$0xff]  }
 0x15e   : > { %5429 = vperm.xlu0 %8861, %v5347_v52   ;;  %v9045_v52 = vld [vmem:[%s12746_s28 + $0x390] ss:$24 sps:$4 sm:$0xff]  }
 0x161   : > { %3467 = vmatmul.mubr.bf16.gmra.mrb[40].mxu0 %v8985_v58  ;;  %v5348_v58 = vld [vmem:[%s12754_s13 + $0x68] sm:$0xff] }
 0x162   : > { %3474 = vmatprep.mubr.bf16.mxu0 %v8986_v14  ;;  %5434 = vperm.xlu1 %8862, %v5348_v58   ;;  %v10526_v14 = vpop.permute.xlu0 %4603  ;;  %v5349_v58 = vld [vmem:[%s12754_s13 + $0x70] sm:$0xff] }
 0x163   : > { %12779 = vst [vmem:[#allocation43_spill] sm:$0xff] %v10526_v14  ;;  %5519 = vperm.xlu0 %8861, %v5365_v31   ;;  %v12781_v14 = vmov 0   ;;  %v10558_v31 = vpop.permute.xlu1 %4528 }
 0x164   : > { %3661 = vmatprep.subr.bf16.mxu0 %v12781_v14  ;;  %12783 = vst [vmem:[#allocation46_spill] sm:$0xff] %v10558_v31  ;;  %v9092_v31 = vld [vmem:[%s12746_s28 + $0x4e4] ss:$24 sps:$4 sm:$0xff]  }
 0x166   : > { %5524 = vperm.xlu1 %8862, %v5366_v0   ;;  %v8993_v0 = vld [vmem:[%s12746_s28 + $0x27c] ss:$24 sps:$4 sm:$0xff]   ;;  %v10556_v30 = vpop.permute.xlu0 %4523 }
 0x167   : > { %12782 = vst [vmem:[#allocation45_spill] sm:$0xff] %v10556_v30  ;;  %5439 = vperm.xlu0 %8861, %v5349_v58   ;;  %v9053_v58 = vld [vmem:[%s12746_s28 + $0x3c0] ss:$24 sps:$4 sm:$0xff]  }
 0x169   : > { %3475 = vmatmul.mubr.bf16.gmra.mrb[44].mxu0 %v8988_v57  ;;  %v9047_v57 = vld [vmem:[%s12746_s28 + $0x394] ss:$24 sps:$4 sm:$0xff]  }
 0x16a   : > { %3482 = vmatprep.mubr.bf16.mxu0 %v8990_v5  ;;  %3249 = vmatprep.mubr.bf16.mxu1 %v9047_v57  ;;  %v8992_v5 = vld [vmem:[%s12746_s28 + $0x248] ss:$24 sps:$4 sm:$0xff]   ;;  %v10578_v17 = vpop.permute.xlu0 %4613 }
 0x16b   : > { %3250 = vmatmul.mubr.bf16.vlgmr.msra.gmra.mrb[0].mxu1 %v9045_v52  ;;  %5444 = vperm.xlu1 %8862, %v5350_v25   ;;  %v5006_v52 = vld [vmem:[%s12784_s7] sm:$0xff]  ;;  %v5007_v57 = vld [vmem:[%s12785_s25 + $0x8] sm:$0xff]  ;;  %v5008_v25 = vld [vmem:[%s12785_s25 + $0x10] sm:$0xff]  ;;  %12786 = vst [vmem:[#allocation47_spill] sm:$0xff] %v10578_v17  ;;  %s13028_s7 = sld [smem:[#allocation142_spill]] }
 0x16c   : > { %5024 = vperm.xlu0 %8861, %v5006_v52   ;;  %3257 = vmatprep.mubr.bf16.mxu1 %v9051_v2  ;;  %v8997_v2 = vld [vmem:[%s12746_s28 + $0x2ac] ss:$24 sps:$4 sm:$0xff]   ;;  %v10586_v52 = vpop.permute.xlu1 %4618 }
 0x16d   : > { %12787 = vst [vmem:[#allocation48_spill] sm:$0xff] %v10586_v52  ;;  %v9058_v17 = vld [vmem:[%s12746_s28 + $0x3f4] ss:$24 sps:$4 sm:$0xff]   ;;  %v8999_v52 = vld [vmem:[%s12746_s28 + $0x2a8] ss:$24 sps:$4 sm:$0xff]  }
 0x16f   : > { %5029 = vperm.xlu1 %8862, %v5007_v57   ;;  %v9057_v57 = vld [vmem:[%s9764_s9 + $0xd8] sm:$0xff]  }
 0x170   : > { %5034 = vperm.xlu0 %8861, %v5008_v25   ;;  %v9060_v25 = vld [vmem:[%s12746_s28 + $0x3f0] ss:$24 sps:$4 sm:$0xff]   ;;  %3662 = vmatpush1.bf16.msra.mxu0 %v9057_v57 }
 0x171   : > { %3483 = vmatmul.mubr.bf16.gmra.mrb[48].mxu0 %v8992_v5  ;;  %v8995_v5 = vld [vmem:[%s12746_s28 + $0x278] ss:$24 sps:$4 sm:$0xff]   ;;  %3663 = vmatprep.subr.bf16.mxu0 %v12781_v14  ;;  %s13029_s1 = smov %s13028_s7 }
 0x172   : > { %3490 = vmatprep.mubr.bf16.mxu0 %v8993_v0  ;;  %v5009_v0 = vld [vmem:[%s12785_s25 + $0x18] sm:$0xff] }
 0x173   : > { %3258 = vmatmul.mubr.bf16.gmra.mrb[4].mxu1 %v9053_v58  ;;  %5039 = vperm.xlu1 %8862, %v5009_v0   ;;  %v5011_v58 = vld [vmem:[%s12785_s25 + $0x28] sm:$0xff]  ;;  %v10603_v0 = vpop.permute.xlu1 %4538 }
 0x174   : > { %5044 = vperm.xlu0 %8861, %v5010_v15   ;;  %12789 = vst [vmem:[#allocation50_spill] sm:$0xff] %v10603_v0  ;;  %3265 = vmatprep.mubr.bf16.mxu1 %v9058_v17  ;;  %v9000_v15 = vld [vmem:[%s12746_s28 + $0x2dc] ss:$24 sps:$4 sm:$0xff]   ;;  %v9064_v17 = vld [vmem:[%s9764_s9 + $0xe0] sm:$0xff]  }
 0x175   : > { %3664 = vmatpush1.bf16.msra.mxu0 %v9064_v17  ;;  %v5017_v17 = vld [vmem:[%s12785_s25 + $0x58] sm:$0xff] }
 0x176   : > { %3665 = vmatprep.subr.bf16.mxu0 %v12781_v14 }
 0x177   : > { %5049 = vperm.xlu1 %8862, %v5011_v58   ;;  %v5014_v58 = vld [vmem:[%s12785_s25 + $0x40] sm:$0xff]  ;;  %v10630_v24 = vpop.permute.xlu1 %1967 }
 0x178   : > { %12791 = vst [vmem:[#allocation52_spill] sm:$0xff] %v10630_v24 }
 0x179   : > { %3491 = vmatmul.mubr.bf16.gmra.mrb[52].mxu0 %v8995_v5  ;;  %v10601_v5 = vpop.permute.xlu0 %4533 }
 0x17a   : > { %3498 = vmatprep.mubr.bf16.mxu0 %v8997_v2  ;;  %12788 = vst [vmem:[#allocation49_spill] sm:$0xff] %v10601_v5  ;;  %v5012_v2 = vld [vmem:[%s12785_s25 + $0x30] sm:$0xff] }
 0x17b   : > { %3266 = vmatmul.mubr.bf16.gmra.mrb[8].mxu1 %v9060_v25  ;;  %5054 = vperm.xlu0 %8861, %v5012_v2   ;;  %v5015_v25 = vld [vmem:[%s12785_s25 + $0x48] sm:$0xff]  ;;  %v5016_v2 = vld [vmem:[%s12785_s25 + $0x50] sm:$0xff] }
 0x17c   : > { %5059 = vperm.xlu1 %8862, %v5013_v50   ;;  %v9067_v50 = vld [vmem:[%s12746_s28 + $0x420] ss:$24 sps:$4 sm:$0xff]   ;;  %3273 = vmatprep.mubr.bf16.mxu1 %v9065_v47  ;;  %v9004_v47 = vld [vmem:[%s12746_s28 + $0x30c] ss:$24 sps:$4 sm:$0xff]   ;;  %v9014_v5 = vld [vmem:[%s12746_s28 + $0x39c] ss:$24 sps:$4 sm:$0xff]  }
 0x17d   : > { %v10619_v57 = vpop.permute.xlu0 %1962 }
 0x17e   : > { %12790 = vst [vmem:[#allocation51_spill] sm:$0xff] %v10619_v57 }
 0x17f   : > { %5064 = vperm.xlu0 %8861, %v5014_v58  }
 0x180   : > { %5069 = vperm.xlu1 %8862, %v5015_v25   ;;  %v10652_v25 = vpop.permute.xlu1 %1887 }
 0x181   : > { %3499 = vmatmul.mubr.bf16.gmra.mrb[56].mxu0 %v8999_v52  ;;  %v9068_v52 = vld [vmem:[%s9764_s9 + $0xe8] sm:$0xff]   ;;  %v10649_v58 = vpop.permute.xlu0 %1882 }
 0x182   : > { %3506 = vmatprep.mubr.bf16.mxu0 %v9000_v15  ;;  %v9002_v15 = vld [vmem:[%s12746_s28 + $0x2d8] ss:$24 sps:$4 sm:$0xff]   ;;  %3666 = vmatpush1.bf16.msra.mxu0 %v9068_v52  ;;  %v9073_v52 = vld [vmem:[%s12746_s28 + $0x454] ss:$24 sps:$4 sm:$0xff]  }
 0x183   : > { %3274 = vmatmul.mubr.bf16.gmra.mrb[12].mxu1 %v9067_v50  ;;  %5074 = vperm.xlu0 %8861, %v5016_v2   ;;  %v5018_v50 = vld [vmem:[%s12785_s25 + $0x60] sm:$0xff]  ;;  %v9075_v2 = vld [vmem:[%s12746_s28 + $0x450] ss:$24 sps:$4 sm:$0xff]  }
 0x184   : > { %3667 = vmatprep.subr.bf16.mxu0 %v12781_v14  ;;  %5079 = vperm.xlu1 %8862, %v5017_v17   ;;  %v9076_v17 = vld [vmem:[%s9764_s9 + $0xf8] sm:$0xff]   ;;  %s933_s9 = scalar_lea.vmem [#allocation3], %s7456_s30  ;;  %s12527_s30 = scalar_lea.hbm %s13028_s7, %s7891_s0 }
 0x185   : > { %3281 = vmatprep.mubr.bf16.mxu1 %v9073_v52  ;;  %v5994_v52 = vld [vmem:[%s12674_s17 + $0x8] sm:$0xff]  ;;  %s7210_s27 = sshll.u32 %s933_s9, 4  ;;  %s9386_s7 = sshll.u32 %s9523_s6, 4  ;;  %s12519_s27 = int_to_ptr.vmem [resolvable:$true] %s7210_s27  ;;  %s9387_s7 = int_to_ptr.vmem [resolvable:$false] %s9386_s7 }
 0x186   : > { %3668 = vmatpush1.bf16.msra.mxu0 %v9072_v18  ;;  %v5021_v18 = vld [vmem:[%s12785_s25 + $0x78] sm:$0xff]  ;;  %s9382_s3 = scalar_lea.vmem %s12519_s27, 1024  ;;  %p9389_p1 = scmp.lt.s32.totalorder %s12519_s27, %s9387_s7 }
 0x187   : > { %5084 = vperm.xlu0 %8861, %v5018_v50   ;;  %3669 = vmatprep.subr.bf16.mxu0 %v12781_v14  ;;  %v10683_v14 = vpop.permute.xlu1 %1977  ;;  %v5993_v50 = vld [vmem:[%s12674_s17] sm:$0xff]  ;;  %p9383_p12 = scmp.ne.s32.totalorder %s12519_s27, %s9382_s3 }
 0x188   : > { %5089 = vperm.xlu1 %8862, %v5019_v62   ;;  %v9007_v62 = vld [vmem:[%s12746_s28 + $0x33c] ss:$24 sps:$4 sm:$0xff]   ;;  %12793 = vst [vmem:[#allocation54_spill] sm:$0xff] %v10683_v14 }
 0x189   : > { %3507 = vmatmul.mubr.bf16.gmra.mrb[60].mxu0 %v9002_v15  ;;  %v5020_v15 = vld [vmem:[%s12785_s25 + $0x70] sm:$0xff]  ;;  %p9384_p13 = pnand %p9383_p12, %p9710_p4 }
 0x18a   : > { %3514 = vmatprep.mubr.bf16.mxu0 %v9004_v47  ;;  %v10675_v47 = vpop.permute.xlu0 %1972  ;;  %3670 = vmatpush1.bf16.msra.mxu0 %v9076_v17  ;;  %v9082_v17 = vld [vmem:[%s12746_s28 + $0x480] ss:$24 sps:$4 sm:$0xff]  }
 0x18b   : > { %12792 = vst [vmem:[#allocation53_spill] sm:$0xff] %v10675_v47  ;;  %3282 = vmatmul.mubr.bf16.gmra.mrb[16].mxu1 %v9075_v2  ;;  %5094 = vperm.xlu0 %8861, %v5020_v15   ;;  %v9080_v2 = vld [vmem:[%s12746_s28 + $0x484] ss:$24 sps:$4 sm:$0xff]   ;;  %p9385_p0 = pneg %p9384_p13 }
 0x18c   : > { %5099 = vperm.xlu1 %8862, %v5021_v18   ;;  %3289 = vmatprep.mubr.bf16.mxu1 %v9080_v2  ;;  %v5995_v18 = vld [vmem:[%s12674_s17 + $0x10] sm:$0xff]  ;;  %v5997_v2 = vld [vmem:[%s12674_s17 + $0x20] sm:$0xff] }
 0x18e   : > { %v10697_v15 = vpop.permute.xlu0 %1892 }
 0x18f   : > { %6027 = vperm.xlu0 %8861, %v5993_v50   ;;  %v9010_v50 = vld [vmem:[%s12746_s28 + $0x36c] ss:$24 sps:$4 sm:$0xff]  }
 0x190   : > { %6032 = vperm.xlu1 %8862, %v5994_v52  }
 0x191   : > { %3515 = vmatmul.mubr.bf16.gmra.mrb[64].mxu0 %v9006_v59  ;;  %v10699_v59 = vpop.permute.xlu1 %1897 }
 0x192   : > { %3522 = vmatprep.mubr.bf16.mxu0 %v9007_v62  ;;  %v5996_v62 = vld [vmem:[%s12674_s17 + $0x18] sm:$0xff]  ;;  %v10713_v52 = vpop.permute.xlu0 %1982 }
 0x193   : > { %3290 = vmatmul.mubr.bf16.gmra.mrb[20].mxu1 %v9082_v17  ;;  %6037 = vperm.xlu0 %8861, %v5995_v18   ;;  %12794 = vst [vmem:[#allocation55_spill] sm:$0xff] %v10713_v52  ;;  %v5998_v17 = vld [vmem:[%s12674_s17 + $0x28] sm:$0xff]  ;;  %v5999_v18 = vld [vmem:[%s12674_s17 + $0x30] sm:$0xff] }
 0x194   : > { %6042 = vperm.xlu1 %8862, %v5996_v62   ;;  %3297 = vmatprep.mubr.bf16.mxu1 %v9086_v45  ;;  %v9013_v62 = vld [vmem:[%s12746_s28 + $0x368] ss:$24 sps:$4 sm:$0xff]  }
 0x195   : > { %v10724_v0 = vpop.permute.xlu1 %1987 }
 0x196   : > { %12795 = vst [vmem:[#allocation56_spill] sm:$0xff] %v10724_v0 }
 0x197   : > { %6047 = vperm.xlu0 %8861, %v5997_v2   ;;  %v10741_v2 = vpop.permute.xlu0 %1902 }
 0x198   : > { %6052 = vperm.xlu1 %8862, %v5998_v17   ;;  %v6001_v17 = vld [vmem:[%s12674_s17 + $0x40] sm:$0xff] }
 0x199   : > { %3523 = vmatmul.mubr.bf16.gmra.mrb[68].mxu0 %v9009_v46  ;;  %v9088_v46 = vld [vmem:[%s12746_s28 + $0x4b0] ss:$24 sps:$4 sm:$0xff]   ;;  %v10743_v45 = vpop.permute.xlu1 %1907 }
 0x19a   : > { %3530 = vmatprep.mubr.bf16.mxu0 %v9010_v50  ;;  %v6000_v50 = vld [vmem:[%s12674_s17 + $0x38] sm:$0xff] }
 0x19b   : > { %3298 = vmatmul.mubr.bf16.gmra.mrb[24].mxu1 %v9088_v46  ;;  %6057 = vperm.xlu0 %8861, %v5999_v18   ;;  %v6002_v46 = vld [vmem:[%s12674_s17 + $0x48] sm:$0xff]  ;;  %v9094_v18 = vld [vmem:[%s12746_s28 + $0x4e0] ss:$24 sps:$4 sm:$0xff]   ;;  %v10763_v30 = vpop.permute.xlu0 %1992 }
 0x19c   : > { %6062 = vperm.xlu1 %8862, %v6000_v50   ;;  %3305 = vmatprep.mubr.bf16.mxu1 %v9092_v31  ;;  %v9016_v50 = vld [vmem:[%s12746_s28 + $0x398] ss:$24 sps:$4 sm:$0xff]   ;;  %12796 = vst [vmem:[#allocation57_spill] sm:$0xff] %v10763_v30  ;;  %v9017_v31 = vld [vmem:[%s12746_s28 + $0x3cc] ss:$24 sps:$4 sm:$0xff]  }
 0x19f   : > { %6067 = vperm.xlu0 %8861, %v6001_v17   ;;  %v10771_v17 = vpop.permute.xlu1 %1997 }
 0x1a0   : > { %6072 = vperm.xlu1 %8862, %v6002_v46   ;;  %12797 = vst [vmem:[#allocation58_spill] sm:$0xff] %v10771_v17  ;;  %v6005_v46 = vld [vmem:[%s12674_s17 + $0x60] sm:$0xff]  ;;  %v9141_v17 = vld [vmem:[%s9956_s2 + $0x8] sm:$0xff]  }
 0x1a1   : > { %3531 = vmatmul.mubr.bf16.gmra.mrb[72].mxu0 %v9013_v62  ;;  %v6003_v62 = vld [vmem:[%s12674_s17 + $0x50] sm:$0xff] }
 0x1a2   : > { %3538 = vmatprep.mubr.bf16.mxu0 %v9014_v5  ;;  %v6004_v5 = vld [vmem:[%s12674_s17 + $0x58] sm:$0xff] }
 0x1a3   : > { %3306 = vmatmul.mubr.bf16.gmra.mrb[28].mxu1 %v9094_v18  ;;  %6077 = vperm.xlu0 %8861, %v6003_v62   ;;  %v6006_v18 = vld [vmem:[%s12674_s17 + $0x68] sm:$0xff]  ;;  %v10785_v62 = vpop.permute.xlu0 %1912 }
 0x1a4   : > { %6082 = vperm.xlu1 %8862, %v6004_v5   ;;  %3313 = vmatprep.mubr.bf16.mxu1 %v9098_v51  ;;  %v6007_v5 = vld [vmem:[%s12674_s17 + $0x70] sm:$0xff] }
 0x1a5   : > { %v9021_v51 = vld [vmem:[%s12746_s28 + $0x3fc] ss:$24 sps:$4 sm:$0xff]  }
 0x1a7   : > { %6087 = vperm.xlu0 %8861, %v6005_v46   ;;  %v10801_v46 = vpop.permute.xlu0 %2002 }
 0x1a8   : > { %6092 = vperm.xlu1 %8862, %v6006_v18   ;;  %12798 = vst [vmem:[#allocation59_spill] sm:$0xff] %v10801_v46  ;;  %v6506_v18 = vld [vmem:[%s12676_s19] sm:$0xff] }
 0x1a9   : > { %3539 = vmatmul.mubr.bf16.gmra.mrb[76].mxu0 %v9016_v50  ;;  %v10787_v50 = vpop.permute.xlu1 %1917 }
 0x1aa   : > { %3546 = vmatprep.mubr.bf16.mxu0 %v9017_v31  ;;  %v6008_v31 = vld [vmem:[%s12674_s17 + $0x78] sm:$0xff] }
 0x1ab   : > { %3314 = vmatmul.mubr.bf16.gmra.mrb[32].mxu1 %v9100_v34  ;;  %6097 = vperm.xlu0 %8861, %v6007_v5   ;;  %v6507_v34 = vld [vmem:[%s12676_s19 + $0x8] sm:$0xff]  ;;  %v6508_v5 = vld [vmem:[%s12676_s19 + $0x10] sm:$0xff] }
 0x1ac   : > { %6102 = vperm.xlu1 %8862, %v6008_v31   ;;  %3321 = vmatprep.mubr.bf16.mxu1 %v9104_v41  ;;  %v9023_v31 = vld [vmem:[%s12746_s28 + $0x3f8] ss:$24 sps:$4 sm:$0xff]  }
 0x1ad   : > { %v10812_v1 = vpop.permute.xlu1 %2007 }
 0x1ae   : > { %12799 = vst [vmem:[#allocation60_spill] sm:$0xff] %v10812_v1 }
 0x1af   : > { %6524 = vperm.xlu0 %8861, %v6506_v18   ;;  %v10829_v18 = vpop.permute.xlu0 %1922 }
 0x1b0   : > { %6529 = vperm.xlu1 %8862, %v6507_v34   ;;  %v6510_v34 = vld [vmem:[%s12676_s19 + $0x20] sm:$0xff] }
 0x1b1   : > { %3547 = vmatmul.mubr.bf16.gmra.mrb[80].mxu0 %v9019_v42  ;;  %v9106_v42 = vld [vmem:[%s12746_s28 + $0x540] ss:$24 sps:$4 sm:$0xff]   ;;  %v10831_v41 = vpop.permute.xlu1 %1927 }
 0x1b2   : > { %3554 = vmatprep.mubr.bf16.mxu0 %v9021_v51  ;;  %v6509_v51 = vld [vmem:[%s12676_s19 + $0x18] sm:$0xff]  ;;  %12800 = vst [vmem:[#allocation61_spill] sm:$0xff] %v10831_v41 }
 0x1b3   : > { %3322 = vmatmul.mubr.bf16.gmra.mrb[36].mxu1 %v9106_v42  ;;  %6534 = vperm.xlu0 %8861, %v6508_v5   ;;  %v6511_v42 = vld [vmem:[%s12676_s19 + $0x28] sm:$0xff]  ;;  %v10851_v35 = vpop.permute.xlu0 %2012 }
 0x1b4   : > { %6539 = vperm.xlu1 %8862, %v6509_v51   ;;  %v9112_v5 = vld [vmem:[%s12746_s28 + $0x570] ss:$24 sps:$4 sm:$0xff]   ;;  %3329 = vmatprep.mubr.bf16.mxu1 %v9110_v40  ;;  %12801 = vst [vmem:[#allocation62_spill] sm:$0xff] %v10851_v35  ;;  %v9028_v40 = vld [vmem:[%s12746_s28 + $0x45c] ss:$24 sps:$4 sm:$0xff]  }
 0x1b5   : > { %v9026_v51 = vld [vmem:[%s12746_s28 + $0x428] ss:$24 sps:$4 sm:$0xff]  }
 0x1b7   : > { %6544 = vperm.xlu0 %8861, %v6510_v34   ;;  %v10859_v34 = vpop.permute.xlu1 %2017 }
 0x1b8   : > { %6549 = vperm.xlu1 %8862, %v6511_v42   ;;  %12802 = vst [vmem:[#allocation63_spill] sm:$0xff] %v10859_v34  ;;  %v6514_v42 = vld [vmem:[%s12676_s19 + $0x40] sm:$0xff] }
 0x1b9   : > { %3555 = vmatmul.mubr.bf16.gmra.mrb[84].mxu0 %v9023_v31  ;;  %v6512_v31 = vld [vmem:[%s12676_s19 + $0x30] sm:$0xff] }
 0x1ba   : > { %3562 = vmatprep.mubr.bf16.mxu0 %v9024_v63  ;;  %v6513_v63 = vld [vmem:[%s12676_s19 + $0x38] sm:$0xff] }
 0x1bb   : > { %3330 = vmatmul.mubr.bf16.gmra.mrb[40].mxu1 %v9112_v5  ;;  %6554 = vperm.xlu0 %8861, %v6512_v31   ;;  %v6515_v5 = vld [vmem:[%s12676_s19 + $0x48] sm:$0xff]  ;;  %v10873_v31 = vpop.permute.xlu0 %1932 }
 0x1bc   : > { %6559 = vperm.xlu1 %8862, %v6513_v63   ;;  %12803 = vst [vmem:[#allocation64_spill] sm:$0xff] %v10873_v31  ;;  %3337 = vmatprep.mubr.bf16.mxu1 %v9116_v9  ;;  %v6516_v63 = vld [vmem:[%s12676_s19 + $0x50] sm:$0xff]  ;;  %v9031_v9 = vld [vmem:[%s12746_s28 + $0x48c] ss:$24 sps:$4 sm:$0xff]  }
 0x1bf   : > { %6564 = vperm.xlu0 %8861, %v6514_v42   ;;  %v10889_v42 = vpop.permute.xlu0 %2022 }
 0x1c0   : > { %6569 = vperm.xlu1 %8862, %v6515_v5   ;;  %12805 = vst [vmem:[#allocation66_spill] sm:$0xff] %v10889_v42  ;;  %v6518_v5 = vld [vmem:[%s12676_s19 + $0x60] sm:$0xff]  ;;  %v6011_v42 = vld [vmem:[%s12674_s17 + $0x90] sm:$0xff] }
 0x1c1   : > { %3563 = vmatmul.mubr.bf16.gmra.mrb[88].mxu0 %v9026_v51  ;;  %v10875_v51 = vpop.permute.xlu1 %1937 }
 0x1c2   : > { %3570 = vmatprep.mubr.bf16.mxu0 %v9028_v40  ;;  %12804 = vst [vmem:[#allocation65_spill] sm:$0xff] %v10875_v51  ;;  %v6517_v40 = vld [vmem:[%s12676_s19 + $0x58] sm:$0xff] }
 0x1c3   : > { %3338 = vmatmul.mubr.bf16.gmra.mrb[44].mxu1 %v9118_v8  ;;  %6574 = vperm.xlu0 %8861, %v6516_v63   ;;  %v6519_v8 = vld [vmem:[%s12676_s19 + $0x68] sm:$0xff]  ;;  %v6520_v63 = vld [vmem:[%s12676_s19 + $0x70] sm:$0xff] }
 0x1c4   : > { %6579 = vperm.xlu1 %8862, %v6517_v40   ;;  %3345 = vmatprep.mubr.bf16.mxu1 %v9122_v53  ;;  %v9033_v40 = vld [vmem:[%s12746_s28 + $0x488] ss:$24 sps:$4 sm:$0xff]  }
 0x1c5   : > { %v10900_v34 = vpop.permute.xlu1 %2027 }
 0x1c6   : > { %12806 = vst [vmem:[#allocation67_spill] sm:$0xff] %v10900_v34  ;;  %v9035_v34 = vld [vmem:[%s12746_s28 + $0x4bc] ss:$24 sps:$4 sm:$0xff]  }
 0x1c7   : > { %6584 = vperm.xlu0 %8861, %v6518_v5   ;;  %v10917_v5 = vpop.permute.xlu0 %1942 }
 0x1c8   : > { %6589 = vperm.xlu1 %8862, %v6519_v8   ;;  %12807 = vst [vmem:[#allocation68_spill] sm:$0xff] %v10917_v5  ;;  %v6009_v8 = vld [vmem:[%s12674_s17 + $0x80] sm:$0xff] }
 0x1c9   : > { %3571 = vmatmul.mubr.bf16.gmra.mrb[92].mxu0 %v9030_v54  ;;  %v9124_v54 = vld [vmem:[%s12746_s28 + $0x5d0] ss:$24 sps:$4 sm:$0xff]   ;;  %v10919_v53 = vpop.permute.xlu1 %1947 }
 0x1ca   : > { %3578 = vmatprep.mubr.bf16.mxu0 %v9031_v9  ;;  %v6521_v9 = vld [vmem:[%s12676_s19 + $0x78] sm:$0xff]  ;;  %12808 = vst [vmem:[#allocation69_spill] sm:$0xff] %v10919_v53 }
 0x1cb   : > { %3346 = vmatmul.mubr.bf16.gmra.mrb[48].mxu1 %v9124_v54  ;;  %6594 = vperm.xlu0 %8861, %v6520_v63   ;;  %v6010_v54 = vld [vmem:[%s12674_s17 + $0x88] sm:$0xff]  ;;  %v9037_v63 = vld [vmem:[%s12746_s28 + $0x4b8] ss:$24 sps:$4 sm:$0xff]  }
 0x1cc   : > { %6599 = vperm.xlu1 %8862, %v6521_v9   ;;  %v6012_v9 = vld [vmem:[%s12674_s17 + $0x98] sm:$0xff] }
 0x1cf   : > { %6107 = vperm.xlu0 %8861, %v6009_v8   ;;  %v10941_v8 = vpop.permute.xlu1 %2037 }
 0x1d0   : > { %6112 = vperm.xlu1 %8862, %v6010_v54   ;;  %12810 = vst [vmem:[#allocation71_spill] sm:$0xff] %v10941_v8  ;;  %v6013_v54 = vld [vmem:[%s12674_s17 + $0xa0] sm:$0xff]  ;;  %v6018_v8 = vld [vmem:[%s12674_s17 + $0xc8] sm:$0xff] }
 0x1d1   : > { %3579 = vmatmul.mubr.bf16.gmra.mrb[96].mxu0 %v9033_v40  ;;  %v10933_v40 = vpop.permute.xlu0 %2032 }
 0x1d2   : > { %3586 = vmatprep.mubr.bf16.mxu0 %v9035_v34  ;;  %12809 = vst [vmem:[#allocation70_spill] sm:$0xff] %v10933_v40  ;;  %v9038_v34 = vld [vmem:[%s12746_s28 + $0x4ec] ss:$24 sps:$4 sm:$0xff]  }
 0x1d3   : > { %6117 = vperm.xlu0 %8861, %v6011_v42   ;;  %v6014_v40 = vld [vmem:[%s12674_s17 + $0xa8] sm:$0xff]  ;;  %v10951_v1 = vpop.permute.xlu1 %1957  ;;  %v6015_v42 = vld [vmem:[%s12674_s17 + $0xb0] sm:$0xff] }
 0x1d4   : > { %6122 = vperm.xlu1 %8862, %v6012_v9   ;;  %12812 = vst [vmem:[#allocation73_spill] sm:$0xff] %v10951_v1  ;;  %v6016_v9 = vld [vmem:[%s12674_s17 + $0xb8] sm:$0xff] }
 0x1d5   : > { %v10949_v35 = vpop.permute.xlu0 %1952  ;;  %v9154_v1 = vld [vmem:[%s12746_s28 + $0x2e0] ss:$24 sps:$4 sm:$0xff]  }
 0x1d6   : > { %12811 = vst [vmem:[#allocation72_spill] sm:$0xff] %v10949_v35 }
 0x1d7   : > { %6127 = vperm.xlu0 %8861, %v6013_v54   ;;  %v6017_v54 = vld [vmem:[%s12674_s17 + $0xc0] sm:$0xff]  ;;  %v10973_v46 = vpop.permute.xlu1 %5454 }
 0x1d8   : > { %6132 = vperm.xlu1 %8862, %v6014_v40   ;;  %12814 = vst [vmem:[#allocation75_spill] sm:$0xff] %v10973_v46  ;;  %v6022_v46 = vld [vmem:[%s12674_s17 + $0xe8] sm:$0xff] }
 0x1d9   : > { %3587 = vmatmul.mubr.bf16.gmra.mrb[100].mxu0 %v9037_v63  ;;  %v9040_v63 = vld [vmem:[%s12746_s28 + $0x4e8] ss:$24 sps:$4 sm:$0xff]   ;;  %v10965_v40 = vpop.permute.xlu0 %5449 }
 0x1da   : > { %3594 = vmatprep.mubr.bf16.mxu0 %v9038_v34  ;;  %v9041_v34 = vld [vmem:[%s12746_s28 + $0x51c] ss:$24 sps:$4 sm:$0xff]   ;;  %12813 = vst [vmem:[#allocation74_spill] sm:$0xff] %v10965_v40 }
 0x1db   : > { %6137 = vperm.xlu0 %8861, %v6015_v42   ;;  %v6019_v42 = vld [vmem:[%s12674_s17 + $0xd0] sm:$0xff] }
 0x1dc   : > { %6142 = vperm.xlu1 %8862, %v6016_v9   ;;  %v6020_v9 = vld [vmem:[%s12674_s17 + $0xd8] sm:$0xff] }
 0x1dd   : > { %v10987_v40 = vpop.permute.xlu0 %5369 }
 0x1de   : > { %12815 = vst [vmem:[#allocation76_spill] sm:$0xff] %v10987_v40  ;;  %v6955_v40 = vld [vmem:[%s12680_s23] sm:$0xff] }
 0x1df   : > { %6147 = vperm.xlu0 %8861, %v6017_v54   ;;  %v6021_v54 = vld [vmem:[%s12674_s17 + $0xe0] sm:$0xff] }
 0x1e0   : > { %6152 = vperm.xlu1 %8862, %v6018_v8   ;;  %v10989_v8 = vpop.permute.xlu1 %5374 }
 0x1e1   : > { %3595 = vmatmul.mubr.bf16.gmra.mrb[104].mxu0 %v9040_v63  ;;  %v9043_v63 = vld [vmem:[%s12746_s28 + $0x518] ss:$24 sps:$4 sm:$0xff]   ;;  %12816 = vst [vmem:[#allocation77_spill] sm:$0xff] %v10989_v8 }
 0x1e2   : > { %3602 = vmatprep.mubr.bf16.mxu0 %v9041_v34  ;;  %v9048_v34 = vld [vmem:[%s12746_s28 + $0x54c] ss:$24 sps:$4 sm:$0xff]   ;;  %v6024_v8 = vld [vmem:[%s12674_s17 + $0xf8] sm:$0xff] }
 0x1e3   : > { %6157 = vperm.xlu0 %8861, %v6019_v42   ;;  %v6023_v42 = vld [vmem:[%s12674_s17 + $0xf0] sm:$0xff] }
 0x1e4   : > { %6162 = vperm.xlu1 %8862, %v6020_v9   ;;  %v11003_v9 = vpop.permute.xlu0 %5459 }
 0x1e5   : > { %12817 = vst [vmem:[#allocation78_spill] sm:$0xff] %v11003_v9  ;;  %v6956_v9 = vld [vmem:[%s12680_s23 + $0x8] sm:$0xff] }
 0x1e7   : > { %6167 = vperm.xlu0 %8861, %v6021_v54   ;;  %v11011_v54 = vpop.permute.xlu1 %5464 }
 0x1e8   : > { %6172 = vperm.xlu1 %8862, %v6022_v46   ;;  %12818 = vst [vmem:[#allocation79_spill] sm:$0xff] %v11011_v54  ;;  %v9140_v46 = vld [vmem:[%s9956_s2] sm:$0xff]   ;;  %v11021_v30 = vpop.permute.xlu0 %5379 }
 0x1e9   : > { %3603 = vmatmul.mubr.bf16.gmra.mrb[108].mxu0 %v9043_v63  ;;  %v9050_v63 = vld [vmem:[%s12746_s28 + $0x548] ss:$24 sps:$4 sm:$0xff]   ;;  %8291 = vmatprep.subr.bf16.mxu1 %v9140_v46  ;;  %12819 = vst [vmem:[#allocation80_spill] sm:$0xff] %v11021_v30  ;;  %v9146_v30 = vld [vmem:[%s9956_s2 + $0x18] sm:$0xff]  }
 0x1ea   : > { %3610 = vmatprep.mubr.bf16.mxu0 %v9048_v34  ;;  %v9054_v34 = vld [vmem:[%s12746_s28 + $0x57c] ss:$24 sps:$4 sm:$0xff]   ;;  %8292 = vmatpush3.bf16.msra.mxu1 %v9140_v46  ;;  %v7100_v54 = vld [vmem:[%s12681_s24] sm:$0xff] }
 0x1eb   : > { %6177 = vperm.xlu0 %8861, %v6023_v42   ;;  %8293 = vmatprep.subr.bf16.mxu1 %v9141_v17  ;;  %v6957_v42 = vld [vmem:[%s12680_s23 + $0x10] sm:$0xff] }
 0x1ec   : > { %6182 = vperm.xlu1 %8862, %v6024_v8   ;;  %v11023_v8 = vpop.permute.xlu1 %5384  ;;  %v11038_v46 = vpop.permute.xlu0 %5469 }
 0x1ed   : > { %12820 = vst [vmem:[#allocation81_spill] sm:$0xff] %v11023_v8  ;;  %12821 = vst [vmem:[#allocation82_spill] sm:$0xff] %v11038_v46  ;;  %v7101_v8 = vld [vmem:[%s12681_s24 + $0x8] sm:$0xff] }
 0x1ee   : > { %8294 = vmatpush3.bf16.msra.mxu1 %v9141_v17  ;;  %v6959_v17 = vld [vmem:[%s12680_s23 + $0x20] sm:$0xff]  ;;  %v9151_v46 = vld [vmem:[%s9956_s2 + $0x28] sm:$0xff]  }
 0x1ef   : > { %6965 = vperm.xlu0 %8861, %v6955_v40   ;;  %v9061_v40 = vld [vmem:[%s12746_s28 + $0x5ac] ss:$24 sps:$4 sm:$0xff]  }
 0x1f0   : > { %6970 = vperm.xlu1 %8862, %v6956_v9   ;;  %v9145_v9 = vld [vmem:[%s9956_s2 + $0x10] sm:$0xff]   ;;  %v11047_v0 = vpop.permute.xlu1 %5474 }
 0x1f1   : > { %3611 = vmatmul.mubr.bf16.gmra.mrb[112].mxu0 %v9050_v63  ;;  %v9056_v63 = vld [vmem:[%s12746_s28 + $0x578] ss:$24 sps:$4 sm:$0xff]   ;;  %12822 = vst [vmem:[#allocation83_spill] sm:$0xff] %v11047_v0  ;;  %8295 = vmatprep.subr.bf16.mxu1 %v9145_v9 }
 0x1f2   : > { %3618 = vmatprep.mubr.bf16.mxu0 %v9054_v34  ;;  %v6958_v34 = vld [vmem:[%s12680_s23 + $0x18] sm:$0xff]  ;;  %8296 = vmatpush3.bf16.msra.mxu1 %v9145_v9  ;;  %v6960_v9 = vld [vmem:[%s12680_s23 + $0x28] sm:$0xff] }
 0x1f3   : > { %6975 = vperm.xlu0 %8861, %v6957_v42   ;;  %8297 = vmatprep.subr.bf16.mxu1 %v9146_v30  ;;  %v9063_v42 = vld [vmem:[%s12746_s28 + $0x5a8] ss:$24 sps:$4 sm:$0xff]   ;;  %v7103_v0 = vld [vmem:[%s12681_s24 + $0x18] sm:$0xff] }
 0x1f4   : > { %6980 = vperm.xlu1 %8862, %v6958_v34   ;;  %v9069_v34 = vld [vmem:[%s12746_s28 + $0x5dc] ss:$24 sps:$4 sm:$0xff]  }
 0x1f6   : > { %8298 = vmatpush3.bf16.msra.mxu1 %v9146_v30  ;;  %v6961_v30 = vld [vmem:[%s12680_s23 + $0x30] sm:$0xff] }
 0x1f7   : > { %7110 = vperm.xlu0 %8861, %v7100_v54   ;;  %v11061_v54 = vpop.permute.xlu0 %5389 }
 0x1f8   : > { %7115 = vperm.xlu1 %8862, %v7101_v8   ;;  %12823 = vst [vmem:[#allocation84_spill] sm:$0xff] %v11061_v54  ;;  %v11063_v8 = vpop.permute.xlu1 %5394 }
 0x1f9   : > { %3619 = vmatmul.mubr.bf16.gmra.mrb[116].mxu0 %v9056_v63  ;;  %v7102_v63 = vld [vmem:[%s12681_s24 + $0x10] sm:$0xff]  ;;  %12824 = vst [vmem:[#allocation85_spill] sm:$0xff] %v11063_v8  ;;  %v9156_v8 = vld [vmem:[%s9956_s2 + $0x38] sm:$0xff]  }
 0x1fa   : > { %3626 = vmatprep.mubr.bf16.mxu0 %v9061_v40  ;;  %v9150_v40 = vld [vmem:[%s9956_s2 + $0x20] sm:$0xff]  }
 0x1fb   : > { %6985 = vperm.xlu0 %8861, %v6959_v17   ;;  %8299 = vmatprep.subr.bf16.mxu1 %v9150_v40  ;;  %v9071_v17 = vld [vmem:[%s12746_s28 + $0x5d8] ss:$24 sps:$4 sm:$0xff]  }
 0x1fc   : > { %7120 = vperm.xlu1 %8862, %v7102_v63   ;;  %8300 = vmatpush3.bf16.msra.mxu1 %v9150_v40  ;;  %v7104_v63 = vld [vmem:[%s12681_s24 + $0x20] sm:$0xff]  ;;  %v9155_v40 = vld [vmem:[%s9956_s2 + $0x30] sm:$0xff]   ;;  %s12921_s2 = sld [smem:[#allocation137_spill]] }
 0x1fd   : > { %8301 = vmatprep.subr.bf16.mxu1 %v9151_v46 }
 0x1ff   : > { %6990 = vperm.xlu0 %8861, %v6960_v9   ;;  %v6962_v9 = vld [vmem:[%s12680_s23 + $0x38] sm:$0xff] }
 0x200   : > { %7125 = vperm.xlu1 %8862, %v7103_v0   ;;  %v9079_v0 = vld [vmem:[%s12746_s28 + $0x14] ss:$24 sps:$4 sm:$0xff]   ;;  %8302 = vmatpush3.bf16.msra.mxu1 %v9151_v46 }
 0x201   : > { %3627 = vmatmul.mubr.bf16.gmra.mrb[120].mxu0 %v9063_v42  ;;  %v11079_v42 = vpop.permute.xlu0 %5479  ;;  %8303 = vmatprep.subr.bf16.mxu1 %v9155_v40 }
 0x202   : > { %3634 = vmatprep.mubr.bf16.mxu0 %v9069_v34  ;;  %12825 = vst [vmem:[#allocation86_spill] sm:$0xff] %v11079_v42  ;;  %v11087_v34 = vpop.permute.xlu1 %5484  ;;  %v7105_v42 = vld [vmem:[%s12681_s24 + $0x28] sm:$0xff] }
 0x203   : > { %12826 = vst [vmem:[#allocation87_spill] sm:$0xff] %v11087_v34  ;;  %6995 = vperm.xlu0 %8861, %v6961_v30   ;;  %v6779_v30 = vld [vmem:[%s12678_s21] sm:$0xff]  ;;  %v7106_v34 = vld [vmem:[%s12681_s24 + $0x30] sm:$0xff] }
 0x204   : > { %7130 = vperm.xlu1 %8862, %v7104_v63   ;;  %8304 = vmatpush3.bf16.msra.mxu1 %v9155_v40  ;;  %v6780_v63 = vld [vmem:[%s12678_s21 + $0x8] sm:$0xff] }
 0x205   : > { %v11098_v54 = vpop.permute.xlu0 %5399  ;;  %8305 = vmatprep.subr.bf16.mxu1 %v9156_v8  ;;  %v9161_v40 = vld [vmem:[%s12829_s11 + $0x8] sm:$0xff]  }
 0x206   : > { %12827 = vst [vmem:[#allocation88_spill] sm:$0xff] %v11098_v54  ;;  %v11100_v46 = vpop.permute.xlu1 %5404 }
 0x207   : > { %7000 = vperm.xlu0 %8861, %v6962_v9   ;;  %12828 = vst [vmem:[#allocation89_spill] sm:$0xff] %v11100_v46  ;;  %v9147_v46 = vld [vmem:[%s12746_s28 + $0x2b4] ss:$24 sps:$4 sm:$0xff]  }
 0x208   : > { %7135 = vperm.xlu1 %8862, %v7105_v42   ;;  %8306 = vmatpush3.bf16.msra.mxu1 %v9156_v8  ;;  %v9160_v42 = vld [vmem:[%s12829_s11] sm:$0xff]   ;;  %v6781_v8 = vld [vmem:[%s12678_s21 + $0x10] sm:$0xff] }
 0x209   : > { %3635 = vmatmul.mubr.bf16.gmra.mrb[124].mxu0 %v9071_v17  ;;  %v9077_v17 = vld [vmem:[%s12746_s28 + $0x10] ss:$24 sps:$4 sm:$0xff]   ;;  %v11120_v9 = vpop.permute.xlu0 %5489  ;;  %8307 = vmatprep.mubr.bf16.mxu1 %v9160_v42  ;;  %v6782_v42 = vld [vmem:[%s12678_s21 + $0x18] sm:$0xff] }
 0x20a   : > { %7706 = vmatprep.mubr.msk.bf16.mxu0 %vm2968_vm0, %v9079_v0  ;;  %v9083_v0 = vld [vmem:[%s12746_s28 + $0x44] ss:$24 sps:$4 sm:$0xff]   ;;  %12830 = vst [vmem:[#allocation90_spill] sm:$0xff] %v11120_v9 }
 0x20b   : > { %6789 = vperm.xlu0 %8861, %v6779_v30   ;;  %v11129_v30 = vpop.permute.xlu1 %5494  ;;  %8308 = vmatmul.mubr.bf16.vlgmr.msra.gmra.mrb[52].mxu1 %v9161_v40  ;;  %v6783_v40 = vld [vmem:[%s12678_s21 + $0x20] sm:$0xff]  ;;  %v6786_v9 = vld [vmem:[%s12678_s21 + $0x38] sm:$0xff] }
 0x20c   : > { %6794 = vperm.xlu1 %8862, %v6780_v63   ;;  %12831 = vst [vmem:[#allocation91_spill] sm:$0xff] %v11129_v30  ;;  %v9085_v63 = vld [vmem:[%s12746_s28 + $0x40] ss:$24 sps:$4 sm:$0xff]  }
 0x20d   : > { %v11143_v30 = vpop.permute.xlu0 %5409 }
 0x20e   : > { %12832 = vst [vmem:[#allocation92_spill] sm:$0xff] %v11143_v30 }
 0x20f   : > { %7140 = vperm.xlu0 %8861, %v7106_v34   ;;  %v11145_v34 = vpop.permute.xlu1 %5414 }
 0x210   : > { %6799 = vperm.xlu1 %8862, %v6781_v8   ;;  %12833 = vst [vmem:[#allocation93_spill] sm:$0xff] %v11145_v34  ;;  %v6784_v8 = vld [vmem:[%s12678_s21 + $0x28] sm:$0xff]  ;;  %v5898_v34 = vld [vmem:[%s12672_s15] sm:$0xff] }
 0x211   : > { %3676 = vmatmul.mubr.bf16.vlgmr.msra.gmra.mrb[0].mxu0 %v9077_v17  ;;  %v7107_v17 = vld [vmem:[%s12681_s24 + $0x38] sm:$0xff] }
 0x212   : > { %7707 = vmatprep.mubr.msk.bf16.mxu0 %vm2968_vm0, %v9083_v0  ;;  %v9089_v0 = vld [vmem:[%s12746_s28 + $0x74] ss:$24 sps:$4 sm:$0xff]  }
 0x213   : > { %7145 = vperm.xlu0 %8861, %v7107_v17   ;;  %v6785_v17 = vld [vmem:[%s12678_s21 + $0x30] sm:$0xff] }
 0x214   : > { %6804 = vperm.xlu1 %8862, %v6782_v42   ;;  %v11160_v42 = vpop.permute.xlu0 %5499 }
 0x215   : > { %12834 = vst [vmem:[#allocation94_spill] sm:$0xff] %v11160_v42  ;;  %v9169_v42 = vld [vmem:[%s12829_s11 + $0x18] sm:$0xff]  }
 0x217   : > { %6809 = vperm.xlu0 %8861, %v6783_v40   ;;  %v11168_v40 = vpop.permute.xlu1 %5504 }
 0x218   : > { %6814 = vperm.xlu1 %8862, %v6784_v8   ;;  %12835 = vst [vmem:[#allocation95_spill] sm:$0xff] %v11168_v40  ;;  %v9168_v8 = vld [vmem:[%s12829_s11 + $0x10] sm:$0xff]   ;;  %v5899_v40 = vld [vmem:[%s12672_s15 + $0x8] sm:$0xff] }
 0x219   : > { %3684 = vmatmul.mubr.bf16.gmra.mrb[4].mxu0 %v9085_v63  ;;  %v9091_v63 = vld [vmem:[%s12746_s28 + $0x70] ss:$24 sps:$4 sm:$0xff]   ;;  %8311 = vmatprep.mubr.bf16.mxu1 %v9168_v8  ;;  %v9101_v8 = vld [vmem:[%s12746_s28 + $0xd4] ss:$24 sps:$4 sm:$0xff]  }
 0x21a   : > { %7708 = vmatprep.mubr.msk.bf16.mxu0 %vm2968_vm0, %v9089_v0  ;;  %v9095_v0 = vld [vmem:[%s12746_s28 + $0xa4] ss:$24 sps:$4 sm:$0xff]   ;;  %8312 = vmatmul.mubr.bf16.gmra.mrb[56].mxu1 %v9169_v42  ;;  %v9103_v42 = vld [vmem:[%s12746_s28 + $0xd0] ss:$24 sps:$4 sm:$0xff]  }
 0x21b   : > { %6819 = vperm.xlu0 %8861, %v6785_v17   ;;  %v11183_v17 = vpop.permute.xlu0 %5419 }
 0x21c   : > { %6824 = vperm.xlu1 %8862, %v6786_v9   ;;  %12836 = vst [vmem:[#allocation96_spill] sm:$0xff] %v11183_v17  ;;  %v11185_v9 = vpop.permute.xlu1 %5424  ;;  %v9144_v17 = vld [vmem:[%s12746_s28 + $0x280] ss:$24 sps:$4 sm:$0xff]  }
 0x21d   : > { %12837 = vst [vmem:[#allocation97_spill] sm:$0xff] %v11185_v9  ;;  %v9115_v9 = vld [vmem:[%s12746_s28 + $0x130] ss:$24 sps:$4 sm:$0xff]  }
 0x21f   : > { %5902 = vperm.xlu0 %8861, %v5898_v34   ;;  %v9107_v34 = vld [vmem:[%s12746_s28 + $0x104] ss:$24 sps:$4 sm:$0xff]  }
 0x220   : > { %5907 = vperm.xlu1 %8862, %v5899_v40   ;;  %v9177_v40 = vld [vmem:[%s12829_s11 + $0x28] sm:$0xff]  }
 0x221   : > { %3692 = vmatmul.mubr.bf16.gmra.mrb[8].mxu0 %v9091_v63  ;;  %v9097_v63 = vld [vmem:[%s12746_s28 + $0xa0] ss:$24 sps:$4 sm:$0xff]  }
 0x222   : > { %7709 = vmatprep.mubr.msk.bf16.mxu0 %vm2968_vm0, %v9095_v0  ;;  %v9176_v0 = vld [vmem:[%s12829_s11 + $0x20] sm:$0xff]  }
 0x223   : > { %8315 = vmatprep.mubr.bf16.mxu1 %v9176_v0  ;;  %v9185_v0 = vld [vmem:[%s12829_s11 + $0x38] sm:$0xff]  }
 0x224   : > { %8316 = vmatmul.mubr.bf16.gmra.mrb[60].mxu1 %v9177_v40  ;;  %v9121_v40 = vld [vmem:[%s12746_s28 + $0x160] ss:$24 sps:$4 sm:$0xff]  }
 0x229   : > { %3700 = vmatmul.mubr.bf16.gmra.mrb[12].mxu0 %v9097_v63  ;;  %v9109_v63 = vld [vmem:[%s12746_s28 + $0x100] ss:$24 sps:$4 sm:$0xff]  }
 0x22a   : > { %7710 = vmatprep.mubr.msk.bf16.mxu0 %vm2968_vm0, %v9101_v8  ;;  %v9113_v8 = vld [vmem:[%s12746_s28 + $0x134] ss:$24 sps:$4 sm:$0xff]  }
 0x231   : > { %3708 = vmatmul.mubr.bf16.gmra.mrb[16].mxu0 %v9103_v42  ;;  %v9119_v42 = vld [vmem:[%s12746_s28 + $0x164] ss:$24 sps:$4 sm:$0xff]  }
 0x232   : > { %7711 = vmatprep.mubr.msk.bf16.mxu0 %vm2968_vm0, %v9107_v34  ;;  %v9184_v34 = vld [vmem:[%s12829_s11 + $0x30] sm:$0xff]  }
 0x233   : > { %8319 = vmatprep.mubr.bf16.mxu1 %v9184_v34  ;;  %v9193_v34 = vld [vmem:[%s12829_s11 + $0x48] sm:$0xff]  }
 0x234   : > { %8320 = vmatmul.mubr.bf16.gmra.mrb[64].mxu1 %v9185_v0  ;;  %v9130_v0 = vld [vmem:[%s12746_s28 + $0x1c0] ss:$24 sps:$4 sm:$0xff]  }
 0x239   : > { %3716 = vmatmul.mubr.bf16.gmra.mrb[20].mxu0 %v9109_v63  ;;  %v9125_v63 = vld [vmem:[%s12746_s28 + $0x194] ss:$24 sps:$4 sm:$0xff]  }
 0x23a   : > { %7712 = vmatprep.mubr.msk.bf16.mxu0 %vm2968_vm0, %v9113_v8  ;;  %v9127_v8 = vld [vmem:[%s12746_s28 + $0x190] ss:$24 sps:$4 sm:$0xff]  }
 0x241   : > { %3724 = vmatmul.mubr.bf16.gmra.mrb[24].mxu0 %v9115_v9  ;;  %v9128_v9 = vld [vmem:[%s12746_s28 + $0x1c4] ss:$24 sps:$4 sm:$0xff]  }
 0x242   : > { %7713 = vmatprep.mubr.msk.bf16.mxu0 %vm2968_vm0, %v9119_v42  ;;  %v9192_v42 = vld [vmem:[%s12829_s11 + $0x40] sm:$0xff]  }
 0x243   : > { %8323 = vmatprep.mubr.bf16.mxu1 %v9192_v42  ;;  %v9201_v42 = vld [vmem:[%s12829_s11 + $0x58] sm:$0xff]  }
 0x244   : > { %8324 = vmatmul.mubr.bf16.gmra.mrb[68].mxu1 %v9193_v34  ;;  %v9136_v34 = vld [vmem:[%s12746_s28 + $0x220] ss:$24 sps:$4 sm:$0xff]  }
 0x249   : > { %3732 = vmatmul.mubr.bf16.gmra.mrb[28].mxu0 %v9121_v40  ;;  %v9131_v40 = vld [vmem:[%s12746_s28 + $0x1f4] ss:$24 sps:$4 sm:$0xff]  }
 0x24a   : > { %7714 = vmatprep.mubr.msk.bf16.mxu0 %vm2968_vm0, %v9125_v63  ;;  %v9133_v63 = vld [vmem:[%s12746_s28 + $0x1f0] ss:$24 sps:$4 sm:$0xff]  }
 0x251   : > { %3740 = vmatmul.mubr.bf16.gmra.mrb[32].mxu0 %v9127_v8  ;;  %v9134_v8 = vld [vmem:[%s12746_s28 + $0x224] ss:$24 sps:$4 sm:$0xff]  }
 0x252   : > { %7715 = vmatprep.mubr.msk.bf16.mxu0 %vm2968_vm0, %v9128_v9  ;;  %v9200_v9 = vld [vmem:[%s12829_s11 + $0x50] sm:$0xff]  }
 0x253   : > { %8327 = vmatprep.mubr.bf16.mxu1 %v9200_v9  ;;  %v9209_v9 = vld [vmem:[%s12829_s11 + $0x68] sm:$0xff]  }
 0x254   : > { %8328 = vmatmul.mubr.bf16.gmra.mrb[72].mxu1 %v9201_v42  ;;  %v11286_v42 = vpop.f32.mrb[0].mxu1 }
 0x259   : > { %3748 = vmatmul.mubr.bf16.gmra.mrb[36].mxu0 %v9130_v0  ;;  %v9137_v0 = vld [vmem:[%s12746_s28 + $0x254] ss:$24 sps:$4 sm:$0xff]  }
 0x25a   : > { %7716 = vmatprep.mubr.msk.bf16.mxu0 %vm2968_vm0, %v9131_v40  ;;  %v9139_v40 = vld [vmem:[%s12746_s28 + $0x250] ss:$24 sps:$4 sm:$0xff]  }
 0x261   : > { %3756 = vmatmul.mubr.bf16.gmra.mrb[40].mxu0 %v9133_v63  ;;  %v9142_v63 = vld [vmem:[%s12746_s28 + $0x284] ss:$24 sps:$4 sm:$0xff]  }
 0x262   : > { %7717 = vmatprep.mubr.msk.bf16.mxu0 %vm2968_vm0, %v9134_v8  ;;  %v9208_v8 = vld [vmem:[%s12829_s11 + $0x60] sm:$0xff]  }
 0x263   : > { %8331 = vmatprep.mubr.bf16.mxu1 %v9208_v8 }
 0x264   : > { %8332 = vmatmul.mubr.bf16.gmra.mrb[76].mxu1 %v9209_v9 }
 0x269   : > { %3764 = vmatmul.mubr.bf16.gmra.mrb[44].mxu0 %v9136_v34  ;;  %v3253_v34 = vpop.f32.mrb[1].mxu1 }
 0x26a   : > { %7718 = vmatprep.mubr.msk.bf16.mxu0 %vm2968_vm0, %v9137_v0  ;;  %v11289_v0 = vpop.f32.mrb[2].mxu1 }
 0x26b   : > { %v3256_v30 = vpop.f32.mrb[3].mxu1 }
 0x26c   : > { %v11297_v54 = vpop.f32.mrb[4].mxu1  ;;  %v9149_v30 = vld [vmem:[%s12746_s28 + $0x2b0] ss:$24 sps:$4 sm:$0xff]  }
 0x271   : > { %3772 = vmatmul.mubr.bf16.gmra.mrb[48].mxu0 %v9139_v40  ;;  %v3261_v40 = vpop.f32.mrb[5].mxu1 }
 0x272   : > { %7719 = vmatprep.mubr.msk.bf16.mxu0 %vm2968_vm0, %v9142_v63  ;;  %v11299_v52 = vpop.f32.mrb[6].mxu1  ;;  %v9152_v40 = vld [vmem:[%s12746_s28 + $0x2e4] ss:$24 sps:$4 sm:$0xff]  }
 0x273   : > { %12838 = vst [vmem:[#allocation98_spill] sm:$0xff] %v11299_v52  ;;  %v3264_v63 = vpop.f32.mrb[7].mxu1 }
 0x274   : > { %v11302_v8 = vpop.f32.mrb[8].mxu1 }
 0x275   : > { %12839 = vst [vmem:[#allocation99_spill] sm:$0xff] %v11302_v8  ;;  %v3269_v9 = vpop.f32.mrb[9].mxu1 }
 0x276   : > { %v11304_v34 = vpop.f32.mrb[10].mxu1  ;;  %v9217_v9 = vld [vmem:[%s12829_s11 + $0x78] sm:$0xff]  }
 0x277   : > { %12840 = vst [vmem:[#allocation100_spill] sm:$0xff] %v11304_v34  ;;  %v3272_v14 = vpop.f32.mrb[11].mxu1 }
 0x278   : > { %v11312_v47 = vpop.f32.mrb[12].mxu1 }
 0x279   : > { %3780 = vmatmul.mubr.bf16.gmra.mrb[52].mxu0 %v9144_v17  ;;  %12841 = vst [vmem:[#allocation101_spill] sm:$0xff] %v11312_v47  ;;  %v3277_v17 = vpop.f32.mrb[13].mxu1 }
 0x27a   : > { %7720 = vmatprep.mubr.msk.bf16.mxu0 %vm2968_vm0, %v9147_v46  ;;  %v9216_v46 = vld [vmem:[%s12829_s11 + $0x70] sm:$0xff]   ;;  %v11317_v63 = vpop.f32.mrb[14].mxu1 }
 0x27b   : > { %12842 = vst [vmem:[#allocation102_spill] sm:$0xff] %v11317_v63  ;;  %v3280_v24 = vpop.f32.mrb[15].mxu1  ;;  %8335 = vmatprep.mubr.bf16.mxu1 %v9216_v46  ;;  %v9157_v63 = vld [vmem:[%s12746_s28 + $0x314] ss:$24 sps:$4 sm:$0xff]  }
 0x27c   : > { %v11323_v14 = vpop.f32.mrb[16].mxu1  ;;  %8336 = vmatmul.mubr.bf16.gmra.mrb[80].mxu1 %v9217_v9 }
 0x27d   : > { %12843 = vst [vmem:[#allocation103_spill] sm:$0xff] %v11323_v14  ;;  %v3285_v57 = vpop.f32.mrb[17].mxu1 }
 0x27e   : > { %v11325_v17 = vpop.f32.mrb[18].mxu1 }
 0x27f   : > { %12844 = vst [vmem:[#allocation104_spill] sm:$0xff] %v11325_v17  ;;  %v3288_v35 = vpop.f32.mrb[19].mxu1 }
 0x280   : > { %v9159_v35 = vld [vmem:[%s12746_s28 + $0x310] ss:$24 sps:$4 sm:$0xff]  }
 0x281   : > { %3788 = vmatmul.mubr.bf16.gmra.mrb[56].mxu0 %v9149_v30  ;;  %v11333_v30 = vpop.f32.mrb[20].mxu1 }
 0x282   : > { %7721 = vmatprep.mubr.msk.bf16.mxu0 %vm2968_vm0, %v9152_v40  ;;  %12845 = vst [vmem:[#allocation105_spill] sm:$0xff] %v11333_v30  ;;  %v3293_v24 = vpop.f32.mrb[21].mxu1 }
 0x283   : > { %v11335_v46 = vpop.f32.mrb[22].mxu1  ;;  %v9162_v24 = vld [vmem:[%s12746_s28 + $0x344] ss:$24 sps:$4 sm:$0xff]  }
 0x284   : > { %12846 = vst [vmem:[#allocation106_spill] sm:$0xff] %v11335_v46  ;;  %v3296_v40 = vpop.f32.mrb[23].mxu1 }
 0x285   : > { %v11338_v57 = vpop.f32.mrb[24].mxu1 }
 0x286   : > { %12847 = vst [vmem:[#allocation107_spill] sm:$0xff] %v11338_v57  ;;  %v3301_v9 = vpop.f32.mrb[25].mxu1 }
 0x287   : > { %v11340_v17 = vpop.f32.mrb[26].mxu1 }
 0x288   : > { %12848 = vst [vmem:[#allocation108_spill] sm:$0xff] %v11340_v17  ;;  %v3304_v14 = vpop.f32.mrb[27].mxu1 }
 0x289   : > { %3796 = vmatmul.mubr.bf16.gmra.mrb[60].mxu0 %v9154_v1  ;;  %v11348_v30 = vpop.f32.mrb[28].mxu1  ;;  %v9164_v14 = vld [vmem:[%s12746_s28 + $0x340] ss:$24 sps:$4 sm:$0xff]  }
 0x28a   : > { %7722 = vmatprep.mubr.msk.bf16.mxu0 %vm2968_vm0, %v9157_v63  ;;  %12849 = vst [vmem:[#allocation109_spill] sm:$0xff] %v11348_v30  ;;  %v3309_v1 = vpop.f32.mrb[29].mxu1 }
 0x28b   : > { %v11350_v40 = vpop.f32.mrb[30].mxu1  ;;  %v9165_v1 = vld [vmem:[%s12746_s28 + $0x374] ss:$24 sps:$4 sm:$0xff]  }
 0x28c   : > { %12850 = vst [vmem:[#allocation110_spill] sm:$0xff] %v11350_v40  ;;  %v3312_v63 = vpop.f32.mrb[31].mxu1 }
 0x28d   : > { %v11353_v9 = vpop.f32.mrb[32].mxu1 }
 0x28e   : > { %12851 = vst [vmem:[#allocation111_spill] sm:$0xff] %v11353_v9  ;;  %v3317_v17 = vpop.f32.mrb[33].mxu1 }
 0x28f   : > { %v11355_v57 = vpop.f32.mrb[34].mxu1 }
 0x290   : > { %12852 = vst [vmem:[#allocation112_spill] sm:$0xff] %v11355_v57  ;;  %v3320_v46 = vpop.f32.mrb[35].mxu1 }
 0x291   : > { %3804 = vmatmul.mubr.bf16.gmra.mrb[64].mxu0 %v9159_v35  ;;  %v11363_v30 = vpop.f32.mrb[36].mxu1  ;;  %v9167_v46 = vld [vmem:[%s12746_s28 + $0x370] ss:$24 sps:$4 sm:$0xff]  }
 0x292   : > { %7723 = vmatprep.mubr.msk.bf16.mxu0 %vm2968_vm0, %v9162_v24  ;;  %12853 = vst [vmem:[#allocation113_spill] sm:$0xff] %v11363_v30  ;;  %v3325_v35 = vpop.f32.mrb[37].mxu1 }
 0x293   : > { %v11365_v63 = vpop.f32.mrb[38].mxu1  ;;  %v9170_v35 = vld [vmem:[%s12746_s28 + $0x3a4] ss:$24 sps:$4 sm:$0xff]  }
 0x294   : > { %12854 = vst [vmem:[#allocation114_spill] sm:$0xff] %v11365_v63  ;;  %v3328_v24 = vpop.f32.mrb[39].mxu1 }
 0x295   : > { %v11368_v17 = vpop.f32.mrb[40].mxu1 }
 0x296   : > { %12855 = vst [vmem:[#allocation115_spill] sm:$0xff] %v11368_v17  ;;  %v3333_v57 = vpop.f32.mrb[41].mxu1 }
 0x297   : > { %v11370_v9 = vpop.f32.mrb[42].mxu1 }
 0x298   : > { %12856 = vst [vmem:[#allocation116_spill] sm:$0xff] %v11370_v9  ;;  %v3336_v40 = vpop.f32.mrb[43].mxu1 }
 0x299   : > { %3812 = vmatmul.mubr.bf16.gmra.mrb[68].mxu0 %v9164_v14  ;;  %v11378_v30 = vpop.f32.mrb[44].mxu1  ;;  %v9172_v40 = vld [vmem:[%s12746_s28 + $0x3a0] ss:$24 sps:$4 sm:$0xff]  }
 0x29a   : > { %7724 = vmatprep.mubr.msk.bf16.mxu0 %vm2968_vm0, %v9165_v1  ;;  %12857 = vst [vmem:[#allocation117_spill] sm:$0xff] %v11378_v30  ;;  %v3341_v14 = vpop.f32.mrb[45].mxu1 }
 0x29b   : > { %v11380_v24 = vpop.f32.mrb[46].mxu1  ;;  %v9173_v14 = vld [vmem:[%s12746_s28 + $0x3d4] ss:$24 sps:$4 sm:$0xff]  }
 0x29c   : > { %12858 = vst [vmem:[#allocation118_spill] sm:$0xff] %v11380_v24  ;;  %v3344_v1 = vpop.f32.mrb[47].mxu1 }
 0x29d   : > { %v9183_v1 = vld [vmem:[%s12746_s28 + $0x430] ss:$24 sps:$4 sm:$0xff]  }
 0x29e   : > { %v11383_v57 = vpop.f32.mrb[48].mxu1 }
 0x29f   : > { %12859 = vst [vmem:[#allocation119_spill] sm:$0xff] %v11383_v57  ;;  %v3349_v9 = vpop.f32.mrb[49].mxu1  ;;  %v9205_v57 = vld [vmem:[%s12746_s28 + $0x554] ss:$24 sps:$4 sm:$0xff]  }
 0x2a0   : > { %v11385_v17 = vpop.f32.mrb[50].mxu1  ;;  %v9178_v9 = vld [vmem:[%s12746_s28 + $0x404] ss:$24 sps:$4 sm:$0xff]  }
 0x2a1   : > { %3820 = vmatmul.mubr.bf16.gmra.mrb[72].mxu0 %v9167_v46  ;;  %12860 = vst [vmem:[#allocation120_spill] sm:$0xff] %v11385_v17  ;;  %v3352_v63 = vpop.f32.mrb[51].mxu1  ;;  %v9175_v46 = vld [vmem:[%s12746_s28 + $0x3d0] ss:$24 sps:$4 sm:$0xff]  }
 0x2a2   : > { %7725 = vmatprep.mubr.msk.bf16.mxu0 %vm2968_vm0, %v9170_v35  ;;  %v9180_v63 = vld [vmem:[%s12746_s28 + $0x400] ss:$24 sps:$4 sm:$0xff]   ;;  %v9181_v35 = vld [vmem:[%s12746_s28 + $0x434] ss:$24 sps:$4 sm:$0xff]  }
 0x2a9   : > { %3828 = vmatmul.mubr.bf16.gmra.mrb[76].mxu0 %v9172_v40  ;;  %v9186_v40 = vld [vmem:[%s12746_s28 + $0x464] ss:$24 sps:$4 sm:$0xff]  }
 0x2aa   : > { %7726 = vmatprep.mubr.msk.bf16.mxu0 %vm2968_vm0, %v9173_v14  ;;  %v9188_v14 = vld [vmem:[%s12746_s28 + $0x460] ss:$24 sps:$4 sm:$0xff]  }
 0x2b1   : > { %3836 = vmatmul.mubr.bf16.gmra.mrb[80].mxu0 %v9175_v46  ;;  %v9189_v46 = vld [vmem:[%s12746_s28 + $0x494] ss:$24 sps:$4 sm:$0xff]  }
 0x2b2   : > { %7727 = vmatprep.mubr.msk.bf16.mxu0 %vm2968_vm0, %v9178_v9  ;;  %v9191_v9 = vld [vmem:[%s12746_s28 + $0x490] ss:$24 sps:$4 sm:$0xff]  }
 0x2b9   : > { %3844 = vmatmul.mubr.bf16.gmra.mrb[84].mxu0 %v9180_v63  ;;  %v9194_v63 = vld [vmem:[%s12746_s28 + $0x4c4] ss:$24 sps:$4 sm:$0xff]  }
 0x2ba   : > { %7728 = vmatprep.mubr.msk.bf16.mxu0 %vm2968_vm0, %v9181_v35  ;;  %v9196_v35 = vld [vmem:[%s12746_s28 + $0x4c0] ss:$24 sps:$4 sm:$0xff]  }
 0x2c1   : > { %3852 = vmatmul.mubr.bf16.gmra.mrb[88].mxu0 %v9183_v1  ;;  %v9197_v1 = vld [vmem:[%s12746_s28 + $0x4f4] ss:$24 sps:$4 sm:$0xff]  }
 0x2c2   : > { %7729 = vmatprep.mubr.msk.bf16.mxu0 %vm2968_vm0, %v9186_v40  ;;  %v9199_v40 = vld [vmem:[%s12746_s28 + $0x4f0] ss:$24 sps:$4 sm:$0xff]  }
 0x2c9   : > { %3860 = vmatmul.mubr.bf16.gmra.mrb[92].mxu0 %v9188_v14  ;;  %v9202_v14 = vld [vmem:[%s12746_s28 + $0x524] ss:$24 sps:$4 sm:$0xff]  }
 0x2ca   : > { %7730 = vmatprep.mubr.msk.bf16.mxu0 %vm2968_vm0, %v9189_v46 }
 0x2d1   : > { %3868 = vmatmul.mubr.bf16.gmra.mrb[96].mxu0 %v9191_v9 }
 0x2d2   : > { %7731 = vmatprep.mubr.msk.bf16.mxu0 %vm2968_vm0, %v9194_v63 }
 0x2d9   : > { %3876 = vmatmul.mubr.bf16.gmra.mrb[100].mxu0 %v9196_v35  ;;  %v9204_v35 = vld [vmem:[%s12746_s28 + $0x520] ss:$24 sps:$4 sm:$0xff]  }
 0x2da   : > { %7732 = vmatprep.mubr.msk.bf16.mxu0 %vm2968_vm0, %v9197_v1 }
 0x2de   : > { %v11447_v1 = vpop.f32.mrb[52].mxu1 }
 0x2df   : > { %v11452_v24 = vpop.f32.mrb[53].mxu1 }
 0x2e1   : > { %3884 = vmatmul.mubr.bf16.gmra.mrb[104].mxu0 %v9199_v40  ;;  %v9223_v40 = vld [vmem:[%s12861_s10 + $0x4] ss:$8 sps:$4 sm:$0xff]  }
 0x2e2   : > { %7733 = vmatprep.mubr.msk.bf16.mxu0 %vm2968_vm0, %v9202_v14  ;;  %4813 = vmatprep.mubr.bf16.mxu1 %v9223_v40  ;;  %v9210_v40 = vld [vmem:[%s12746_s28 + $0x584] ss:$24 sps:$4 sm:$0xff]  }
 0x2e4   : > { %v3677_v46 = vpop.f32.mrb[0].mxu0 }
 0x2e5   : > { %v8499_v9 = vadd.f32 %v3677_v46, %v10136_v7  ;;  %v3679_v63 = vpop.f32.mrb[1].mxu0  ;;  %v11458_v46 = vpop.f32.mrb[54].mxu1 }
 0x2e6   : > { %v3680_v17 = vpop.f32.mrb[2].mxu0  ;;  %v11460_v63 = vpop.f32.mrb[55].mxu1 }
 0x2e7   : > { %v8500_v7 = vadd.f32 %v3680_v17, %v10152_v13  ;;  %v3682_v14 = vpop.f32.mrb[3].mxu0  ;;  %v3932_v30 = vmax.f32 %v8499_v9, 0.0  ;;  %v9207_v13 = vld [vmem:[%s12746_s28 + $0x550] ss:$24 sps:$4 sm:$0xff]  }
 0x2e9   : > { %v3933_v53 = vmax.f32 %v8500_v7, 0.0  ;;  %3892 = vmatmul.mubr.bf16.gmra.mrb[108].mxu0 %v9204_v35 }
 0x2ea   : > { %7734 = vmatprep.mubr.msk.bf16.mxu0 %vm2968_vm0, %v9205_v57 }
 0x2eb   : > { %v11463_v47 = vpack.c.bf16 %v3933_v53, %v3932_v30  ;;  %v9212_v30 = vld [vmem:[%s12746_s28 + $0x580] ss:$24 sps:$4 sm:$0xff]  }
 0x2ec   : > { %v3685_v5 = vpop.f32.mrb[4].mxu0 }
 0x2ed   : > { %v8501_v34 = vadd.f32 %v3685_v5, %v10176_v22  ;;  %v3687_v51 = vpop.f32.mrb[5].mxu0  ;;  %v11480_v14 = vpop.f32.mrb[56].mxu1 }
 0x2ee   : > { %v3688_v17 = vpop.f32.mrb[6].mxu0 }
 0x2ef   : > { %v8502_v9 = vadd.f32 %v3688_v17, %v10178_v23  ;;  %v3690_v35 = vpop.f32.mrb[7].mxu0  ;;  %v3934_v7 = vmax.f32 %v8501_v34, 0.0  ;;  %v9213_v23 = vld [vmem:[%s12746_s28 + $0x5b4] ss:$24 sps:$4 sm:$0xff]   ;;  %v11485_v34 = vpop.f32.mrb[57].mxu1 }
 0x2f1   : > { %v3935_v57 = vmax.f32 %v8502_v9, 0.0  ;;  %3900 = vmatmul.mubr.bf16.gmra.mrb[112].mxu0 %v9207_v13 }
 0x2f2   : > { %7735 = vmatprep.mubr.msk.bf16.mxu0 %vm2968_vm0, %v9210_v40  ;;  %v11488_v40 = vpop.f32.mrb[58].mxu1 }
 0x2f3   : > { %v11474_v53 = vpack.c.bf16 %v3935_v57, %v3934_v7 }
 0x2f4   : > { %v3693_v22 = vpop.f32.mrb[8].mxu0 }
 0x2f5   : > { %v8503_v51 = vadd.f32 %v3693_v22, %v10202_v32  ;;  %v3695_v5 = vpop.f32.mrb[9].mxu0  ;;  %v11490_v32 = vpop.f32.mrb[59].mxu1 }
 0x2f6   : > { %v3696_v8 = vpop.f32.mrb[10].mxu0 }
 0x2f7   : > { %v8504_v13 = vadd.f32 %v3696_v8, %v10204_v33  ;;  %v3698_v17 = vpop.f32.mrb[11].mxu0  ;;  %v3936_v9 = vmax.f32 %v8503_v51, 0.0  ;;  %v9215_v33 = vld [vmem:[%s12746_s28 + $0x5b0] ss:$24 sps:$4 sm:$0xff]   ;;  %v11510_v31 = vpop.f32.mrb[60].mxu1 }
 0x2f8   : > { %v9218_v17 = vld [vmem:[%s12746_s28 + $0x5e4] ss:$24 sps:$4 sm:$0xff]   ;;  %12862 = vst [vmem:[#allocation121_spill] sm:$0xff] %v11510_v31 }
 0x2f9   : > { %v3937_v35 = vmax.f32 %v8504_v13, 0.0  ;;  %3908 = vmatmul.mubr.bf16.gmra.mrb[116].mxu0 %v9212_v30 }
 0x2fa   : > { %7736 = vmatprep.mubr.msk.bf16.mxu0 %vm2968_vm0, %v9213_v23 }
 0x2fb   : > { %v11493_v7 = vpack.c.bf16 %v3937_v35, %v3936_v9 }
 0x2fc   : > { %v3701_v57 = vpop.f32.mrb[12].mxu0 }
 0x2fd   : > { %v8505_v22 = vadd.f32 %v3701_v57, %v10229_v43  ;;  %v3703_v5 = vpop.f32.mrb[13].mxu0 }
 0x2fe   : > { %v3704_v8 = vpop.f32.mrb[14].mxu0  ;;  %v9220_v5 = vld [vmem:[%s12746_s28 + $0x5e0] ss:$24 sps:$4 sm:$0xff]  }
 0x2ff   : > { %v8506_v51 = vadd.f32 %v3704_v8, %v10231_v44  ;;  %v3706_v30 = vpop.f32.mrb[15].mxu0  ;;  %v3938_v13 = vmax.f32 %v8505_v22, 0.0  ;;  %v11512_v44 = vpop.f32.mrb[61].mxu1 }
 0x300   : > { %12863 = vst [vmem:[#allocation122_spill] sm:$0xff] %v11512_v44  ;;  %v11515_v8 = vpop.f32.mrb[62].mxu1 }
 0x301   : > { %v3939_v23 = vmax.f32 %v8506_v51, 0.0  ;;  %3916 = vmatmul.mubr.bf16.gmra.mrb[120].mxu0 %v9215_v33  ;;  %12864 = vst [vmem:[#allocation123_spill] sm:$0xff] %v11515_v8 }
 0x302   : > { %7737 = vmatprep.mubr.msk.bf16.mxu0 %vm2968_vm0, %v9218_v17  ;;  %v11517_v17 = vpop.f32.mrb[63].mxu1 }
 0x303   : > { %v11504_v9 = vpack.c.bf16 %v3939_v23, %v3938_v13 }
 0x304   : > { %v3709_v43 = vpop.f32.mrb[16].mxu0 }
 0x305   : > { %v8507_v35 = vadd.f32 %v3709_v43, %v10258_v55  ;;  %v3711_v57 = vpop.f32.mrb[17].mxu0 }
 0x306   : > { %v3712_v52 = vpop.f32.mrb[18].mxu0 }
 0x307   : > { %v8508_v22 = vadd.f32 %v3712_v52, %v10261_v56  ;;  %v3714_v33 = vpop.f32.mrb[19].mxu0  ;;  %v3940_v51 = vmax.f32 %v8507_v35, 0.0 }
 0x309   : > { %v3941_v30 = vmax.f32 %v8508_v22, 0.0  ;;  %3924 = vmatmul.mubr.bf16.gmra.mrb[124].mxu0 %v9220_v5  ;;  %v11526_v22 = vpop.f32.mrb[64].mxu1 }
 0x30a   : > { %12865 = vst [vmem:[#allocation124_spill] sm:$0xff] %v11526_v22 }
 0x30b   : > { %v11519_v55 = vpack.c.bf16 %v3941_v30, %v3940_v51  ;;  %v11528_v51 = vpop.f32.mrb[65].mxu1 }
 0x30c   : > { %v3717_v13 = vpop.f32.mrb[20].mxu0 }
 0x30d   : > { %v8509_v23 = vadd.f32 %v3717_v13, %v10287_v3  ;;  %v3719_v43 = vpop.f32.mrb[21].mxu0  ;;  %v11531_v13 = vpop.f32.mrb[66].mxu1 }
 0x30e   : > { %v3720_v57 = vpop.f32.mrb[22].mxu0  ;;  %12866 = vst [vmem:[#allocation125_spill] sm:$0xff] %v11531_v13 }
 0x30f   : > { %v8510_v31 = vadd.f32 %v3720_v57, %v10290_v6  ;;  %v3722_v44 = vpop.f32.mrb[23].mxu0  ;;  %v3942_v41 = vmax.f32 %v8509_v23, 0.0  ;;  %v11533_v6 = vpop.f32.mrb[67].mxu1 }
 0x311   : > { %v3943_v56 = vmax.f32 %v8510_v31, 0.0 }
 0x313   : > { %v11523_v52 = vpack.c.bf16 %v3943_v56, %v3942_v41 }
 0x314   : > { %v3725_v33 = vpop.f32.mrb[24].mxu0 }
 0x315   : > { %v8511_v8 = vadd.f32 %v3725_v33, %v10316_v20  ;;  %v3727_v35 = vpop.f32.mrb[25].mxu0 }
 0x316   : > { %v3728_v5 = vpop.f32.mrb[26].mxu0 }
 0x317   : > { %v8512_v3 = vadd.f32 %v3728_v5, %v10318_v21  ;;  %v3730_v30 = vpop.f32.mrb[27].mxu0  ;;  %v3944_v44 = vmax.f32 %v8511_v8, 0.0  ;;  %v11542_v8 = vpop.f32.mrb[68].mxu1 }
 0x319   : > { %v3945_v31 = vmax.f32 %v8512_v3, 0.0 }
 0x31b   : > { %v11535_v41 = vpack.c.bf16 %v3945_v31, %v3944_v44  ;;  %v11544_v44 = vpop.f32.mrb[69].mxu1 }
 0x31c   : > { %v3733_v23 = vpop.f32.mrb[28].mxu0 }
 0x31d   : > { %v8513_v20 = vadd.f32 %v3733_v23, %v10342_v37  ;;  %v3735_v43 = vpop.f32.mrb[29].mxu0  ;;  %v11547_v23 = vpop.f32.mrb[70].mxu1 }
 0x31e   : > { %v3736_v57 = vpop.f32.mrb[30].mxu0  ;;  %12867 = vst [vmem:[#allocation126_spill] sm:$0xff] %v11547_v23 }
 0x31f   : > { %v8514_v56 = vadd.f32 %v3736_v57, %v10344_v38  ;;  %v3738_v33 = vpop.f32.mrb[31].mxu0  ;;  %v3946_v35 = vmax.f32 %v8513_v20, 0.0  ;;  %v11549_v38 = vpop.f32.mrb[71].mxu1 }
 0x321   : > { %v3947_v22 = vmax.f32 %v8514_v56, 0.0 }
 0x323   : > { %v11539_v21 = vpack.c.bf16 %v3947_v22, %v3946_v35 }
 0x324   : > { %v3741_v5 = vpop.f32.mrb[32].mxu0 }
 0x325   : > { %v8515_v30 = vadd.f32 %v3741_v5, %v10128_v4  ;;  %v3743_v13 = vpop.f32.mrb[33].mxu0 }
 0x326   : > { %v3744_v3 = vpop.f32.mrb[34].mxu0 }
 0x327   : > { %v8516_v37 = vadd.f32 %v3744_v3, %v10150_v12  ;;  %v3746_v31 = vpop.f32.mrb[35].mxu0  ;;  %v3948_v20 = vmax.f32 %v8515_v30, 0.0 }
 0x329   : > { %v3949_v43 = vmax.f32 %v8516_v37, 0.0  ;;  %v11555_v37 = vpop.f32.mrb[72].mxu1 }
 0x32b   : > { %v3972_v22 = vpack.c.bf16 %v3949_v43, %v3948_v20 }
 0x32c   : > { %v3749_v57 = vpop.f32.mrb[36].mxu0 }
 0x32d   : > { %v8517_v56 = vadd.f32 %v3749_v57, %v10160_v16  ;;  %v3751_v4 = vpop.f32.mrb[37].mxu0  ;;  %7917 = vmatprep.subr.bf16.mxu1 %v3972_v22  ;;  %v11558_v16 = vpop.f32.mrb[73].mxu1 }
 0x32e   : > { %v3752_v13 = vpop.f32.mrb[38].mxu0  ;;  %7918 = vmatpush3.bf16.msra.mxu1 %v11463_v47 }
 0x32f   : > { %v8518_v33 = vadd.f32 %v3752_v13, %v10168_v19  ;;  %v3754_v35 = vpop.f32.mrb[39].mxu0  ;;  %v3950_v12 = vmax.f32 %v8517_v56, 0.0  ;;  %v11561_v19 = vpop.f32.mrb[74].mxu1 }
 0x330   : > { %v11563_v22 = vpop.f32.mrb[75].mxu1 }
 0x331   : > { %v3951_v5 = vmax.f32 %v8518_v33, 0.0 }
 0x333   : > { %v3973_v3 = vpack.c.bf16 %v3951_v5, %v3950_v12 }
 0x334   : > { %v3757_v31 = vpop.f32.mrb[40].mxu0 }
 0x335   : > { %v8519_v23 = vadd.f32 %v3757_v31, %v10186_v26  ;;  %v3759_v30 = vpop.f32.mrb[41].mxu0  ;;  %7919 = vmatprep.subr.bf16.mxu1 %v3973_v3 }
 0x336   : > { %v3760_v20 = vpop.f32.mrb[42].mxu0  ;;  %7920 = vmatpush3.bf16.msra.mxu1 %v11474_v53 }
 0x337   : > { %v8520_v47 = vadd.f32 %v3760_v20, %v10194_v29  ;;  %v3762_v43 = vpop.f32.mrb[43].mxu0  ;;  %v3952_v57 = vmax.f32 %v8519_v23, 0.0  ;;  %v11569_v20 = vpop.f32.mrb[76].mxu1 }
 0x339   : > { %v3953_v56 = vmax.f32 %v8520_v47, 0.0 }
 0x33b   : > { %v3974_v4 = vpack.c.bf16 %v3953_v56, %v3952_v57 }
 0x33c   : > { %v3765_v26 = vpop.f32.mrb[44].mxu0 }
 0x33d   : > { %v8521_v13 = vadd.f32 %v3765_v26, %v10212_v36  ;;  %v3767_v33 = vpop.f32.mrb[45].mxu0  ;;  %7921 = vmatprep.subr.bf16.mxu1 %v3974_v4  ;;  %v11572_v36 = vpop.f32.mrb[77].mxu1 }
 0x33e   : > { %v3768_v35 = vpop.f32.mrb[46].mxu0  ;;  %7922 = vmatpush3.bf16.msra.mxu1 %v11493_v7 }
 0x33f   : > { %v8522_v53 = vadd.f32 %v3768_v35, %v10220_v39  ;;  %v3770_v12 = vpop.f32.mrb[47].mxu0  ;;  %v3954_v29 = vmax.f32 %v8521_v13, 0.0  ;;  %v11575_v39 = vpop.f32.mrb[78].mxu1 }
 0x340   : > { %v11577_v57 = vpop.f32.mrb[79].mxu1 }
 0x341   : > { %v3955_v5 = vmax.f32 %v8522_v53, 0.0 }
 0x343   : > { %v3975_v3 = vpack.c.bf16 %v3955_v5, %v3954_v29 }
 0x344   : > { %v3773_v31 = vpop.f32.mrb[48].mxu0 }
 0x345   : > { %v8523_v30 = vadd.f32 %v3773_v31, %v10240_v48  ;;  %v3775_v23 = vpop.f32.mrb[49].mxu0  ;;  %7923 = vmatprep.subr.bf16.mxu1 %v3975_v3 }
 0x346   : > { %v3776_v47 = vpop.f32.mrb[50].mxu0  ;;  %7924 = vmatpush3.bf16.msra.mxu1 %v11504_v9 }
 0x347   : > { %v8524_v7 = vadd.f32 %v3776_v47, %v10243_v49  ;;  %v3778_v43 = vpop.f32.mrb[51].mxu0  ;;  %v3956_v56 = vmax.f32 %v8523_v30, 0.0 }
 0x349   : > { %v3957_v4 = vmax.f32 %v8524_v7, 0.0 }
 0x34b   : > { %v3976_v26 = vpack.c.bf16 %v3957_v4, %v3956_v56 }
 0x34c   : > { %v3781_v48 = vpop.f32.mrb[52].mxu0 }
 0x34d   : > { %v8525_v13 = vadd.f32 %v3781_v48, %v10270_v60  ;;  %v3783_v33 = vpop.f32.mrb[53].mxu0  ;;  %7925 = vmatprep.subr.bf16.mxu1 %v3976_v26 }
 0x34e   : > { %v3784_v35 = vpop.f32.mrb[54].mxu0  ;;  %7926 = vmatpush3.bf16.msra.mxu1 %v11519_v55 }
 0x34f   : > { %v8526_v9 = vadd.f32 %v3784_v35, %v10273_v61  ;;  %v3786_v53 = vpop.f32.mrb[55].mxu0  ;;  %v3958_v49 = vmax.f32 %v8525_v13, 0.0  ;;  %v11583_v30 = vpop.f32.mrb[80].mxu1 }
 0x350   : > { %v11586_v60 = vpop.f32.mrb[81].mxu1 }
 0x351   : > { %v3959_v12 = vmax.f32 %v8526_v9, 0.0  ;;  %v11589_v61 = vpop.f32.mrb[82].mxu1 }
 0x352   : > { %v11591_v7 = vpop.f32.mrb[83].mxu1 }
 0x353   : > { %v3977_v29 = vpack.c.bf16 %v3959_v12, %v3958_v49 }
 0x354   : > { %v3789_v5 = vpop.f32.mrb[56].mxu0 }
 0x355   : > { %v8527_v3 = vadd.f32 %v3789_v5, %v10299_v10  ;;  %v3791_v31 = vpop.f32.mrb[57].mxu0  ;;  %7927 = vmatprep.subr.bf16.mxu1 %v3977_v29 }
 0x356   : > { %v3792_v23 = vpop.f32.mrb[58].mxu0  ;;  %7928 = vmatpush3.bf16.msra.mxu1 %v11523_v52 }
 0x357   : > { %v8528_v55 = vadd.f32 %v3792_v23, %v10301_v11  ;;  %v3794_v47 = vpop.f32.mrb[59].mxu0  ;;  %v3960_v43 = vmax.f32 %v8527_v3, 0.0 }
 0x359   : > { %v3961_v56 = vmax.f32 %v8528_v55, 0.0 }
 0x35b   : > { %v3978_v4 = vpack.c.bf16 %v3961_v56, %v3960_v43  ;;  %v9226_v56 = vld [vmem:[%s12861_s10 + $0x10] ss:$8 sps:$4 sm:$0xff]  }
 0x35c   : > { %v3797_v10 = vpop.f32.mrb[60].mxu0 }
 0x35d   : > { %v8529_v26 = vadd.f32 %v3797_v10, %v10326_v27  ;;  %v3799_v48 = vpop.f32.mrb[61].mxu0  ;;  %7929 = vmatprep.subr.bf16.mxu1 %v3978_v4  ;;  %v9221_v27 = vld [vmem:[%s12861_s10] ss:$8 sps:$4 sm:$0xff]  }
 0x35e   : > { %v3800_v13 = vpop.f32.mrb[62].mxu0  ;;  %7930 = vmatpush3.bf16.msra.mxu1 %v11535_v41 }
 0x35f   : > { %v8530_v52 = vadd.f32 %v3800_v13, %v10328_v28  ;;  %v3802_v33 = vpop.f32.mrb[63].mxu0  ;;  %v3962_v11 = vmax.f32 %v8529_v26, 0.0  ;;  %v9224_v28 = vld [vmem:[%s12861_s10 + $0x14] ss:$8 sps:$4 sm:$0xff]  }
 0x361   : > { %v3963_v35 = vmax.f32 %v8530_v52, 0.0 }
 0x363   : > { %v3979_v9 = vpack.c.bf16 %v3963_v35, %v3962_v11  ;;  %v9229_v35 = vld [vmem:[%s12861_s10 + $0x20] ss:$8 sps:$4 sm:$0xff]  }
 0x364   : > { %v3805_v53 = vpop.f32.mrb[64].mxu0 }
 0x365   : > { %v8531_v49 = vadd.f32 %v3805_v53, %v10649_v58  ;;  %v3807_v12 = vpop.f32.mrb[65].mxu0  ;;  %7931 = vmatprep.subr.bf16.mxu1 %v3979_v9 }
 0x366   : > { %v3808_v29 = vpop.f32.mrb[66].mxu0  ;;  %7932 = vmatpush3.bf16.msra.mxu1 %v11539_v21 }
 0x367   : > { %v8532_v41 = vadd.f32 %v3808_v29, %v10652_v25  ;;  %v4317_v5 = vadd.f32 %v8531_v49, %v11452_v24  ;;  %v3810_v3 = vpop.f32.mrb[67].mxu0  ;;  %v9227_v24 = vld [vmem:[%s12861_s10 + $0x24] ss:$8 sps:$4 sm:$0xff]  }
 0x368   : > { %v9233_v3 = vld [vmem:[%s12861_s10 + $0x44] ss:$8 sps:$4 sm:$0xff]  }
 0x369   : > { %v4318_v58 = vadd.f32 %v8532_v41, %v11460_v63  ;;  %4814 = vmatmul.mubr.bf16.vlgmr.msra.gmra.mrb[84].mxu1 %v9221_v27  ;;  %v4349_v31 = vmax.f32 %v4317_v5, 0.0  ;;  %v3252_v27 = vadd.f32 %v11286_v42, %v10785_v62 }
 0x36a   : > { %4821 = vmatprep.mubr.bf16.mxu1 %v9224_v28 }
 0x36b   : > { %v4350_v23 = vmax.f32 %v4318_v58, 0.0 }
 0x36c   : > { %v3813_v55 = vpop.f32.mrb[68].mxu0 }
 0x36d   : > { %v11607_v47 = vpack.c.bf16 %v4350_v23, %v4349_v31  ;;  %v8533_v21 = vadd.f32 %v3813_v55, %v10697_v15  ;;  %v3815_v43 = vpop.f32.mrb[69].mxu0 }
 0x36e   : > { %v3816_v25 = vpop.f32.mrb[70].mxu0 }
 0x36f   : > { %v4319_v63 = vadd.f32 %v8533_v21, %v11447_v1  ;;  %v8534_v4 = vadd.f32 %v3816_v25, %v10699_v59  ;;  %v3818_v10 = vpop.f32.mrb[71].mxu0  ;;  %v9230_v59 = vld [vmem:[%s12861_s10 + $0x34] ss:$8 sps:$4 sm:$0xff]  }
 0x370   : > { %v12868_v25 = vld [vmem:[#allocation61_spill] sm:$0xff] }
 0x371   : > { %v4320_v26 = vadd.f32 %v8534_v4, %v11458_v46  ;;  %4822 = vmatmul.mubr.bf16.gmra.mrb[88].mxu1 %v9226_v56  ;;  %v4351_v15 = vmax.f32 %v4319_v63, 0.0  ;;  %v9236_v4 = vld [vmem:[%s12861_s10 + $0x54] ss:$8 sps:$4 sm:$0xff]  }
 0x372   : > { %4829 = vmatprep.mubr.bf16.mxu1 %v9227_v24  ;;  %v12869_v24 = vld [vmem:[#allocation98_spill] sm:$0xff] }
 0x373   : > { %v4352_v48 = vmax.f32 %v4320_v26, 0.0  ;;  %v3263_v63 = vadd.f32 %v12869_v24, %v12868_v25  ;;  %v12870_v26 = vld [vmem:[#allocation122_spill] sm:$0xff] }
 0x374   : > { %v3821_v13 = vpop.f32.mrb[72].mxu0  ;;  %v9241_v24 = vld [vmem:[%s12861_s10 + $0x60] ss:$8 sps:$4 sm:$0xff]  }
 0x375   : > { %v11619_v52 = vpack.c.bf16 %v4352_v48, %v4351_v15  ;;  %v8535_v33 = vadd.f32 %v3821_v13, %v10741_v2  ;;  %v3823_v11 = vpop.f32.mrb[73].mxu0 }
 0x376   : > { %v3824_v1 = vpop.f32.mrb[74].mxu0  ;;  %v12872_v11 = vld [vmem:[#allocation99_spill] sm:$0xff] }
 0x377   : > { %v8536_v46 = vadd.f32 %v3824_v1, %v10743_v45  ;;  %v4321_v9 = vadd.f32 %v8535_v33, %v11485_v34  ;;  %v3826_v53 = vpop.f32.mrb[75].mxu0  ;;  %v3255_v45 = vadd.f32 %v11289_v0, %v10787_v50  ;;  %v9232_v34 = vld [vmem:[%s12861_s10 + $0x30] ss:$8 sps:$4 sm:$0xff]   ;;  %v3260_v50 = vadd.f32 %v11297_v54, %v10829_v18 }
 0x378   : > { %v12871_v33 = vld [vmem:[#allocation64_spill] sm:$0xff]  ;;  %v12873_v53 = vld [vmem:[#allocation65_spill] sm:$0xff] }
 0x379   : > { %v4322_v49 = vadd.f32 %v8536_v46, %v11490_v32  ;;  %4830 = vmatmul.mubr.bf16.gmra.mrb[92].mxu1 %v9229_v35  ;;  %v4353_v2 = vmax.f32 %v4321_v9, 0.0  ;;  %v3268_v35 = vadd.f32 %v12872_v11, %v12871_v33 }
 0x37a   : > { %4837 = vmatprep.mubr.bf16.mxu1 %v9230_v59 }
 0x37b   : > { %v4354_v12 = vmax.f32 %v4322_v49, 0.0  ;;  %v12874_v49 = vld [vmem:[#allocation100_spill] sm:$0xff] }
 0x37c   : > { %v3829_v29 = vpop.f32.mrb[76].mxu0 }
 0x37d   : > { %v11633_v28 = vpack.c.bf16 %v4354_v12, %v4353_v2  ;;  %v8538_v41 = vadd.f32 %v3829_v29, %v3252_v27  ;;  %v3831_v5 = vpop.f32.mrb[77].mxu0  ;;  %v3271_v2 = vadd.f32 %v12874_v49, %v12873_v53  ;;  %v9238_v12 = vld [vmem:[%s12861_s10 + $0x50] ss:$8 sps:$4 sm:$0xff]   ;;  %v9239_v27 = vld [vmem:[%s12861_s10 + $0x64] ss:$8 sps:$4 sm:$0xff]  }
 0x37e   : > { %v3832_v32 = vpop.f32.mrb[78].mxu0  ;;  %v12875_v29 = vld [vmem:[#allocation121_spill] sm:$0xff]  ;;  %v9245_v49 = vld [vmem:[%s12861_s10 + $0x84] ss:$8 sps:$4 sm:$0xff]  }
 0x37f   : > { %v4323_v58 = vadd.f32 %v8538_v41, %v11480_v14  ;;  %v8540_v62 = vadd.f32 %v3832_v32, %v3255_v45  ;;  %v3834_v42 = vpop.f32.mrb[79].mxu0  ;;  %v9235_v14 = vld [vmem:[%s12861_s10 + $0x40] ss:$8 sps:$4 sm:$0xff]  }
 0x380   : > { %v12878_v42 = vld [vmem:[#allocation101_spill] sm:$0xff] }
 0x381   : > { %v4324_v31 = vadd.f32 %v8540_v62, %v11488_v40  ;;  %4838 = vmatmul.mubr.bf16.gmra.mrb[96].mxu1 %v9232_v34  ;;  %v4355_v23 = vmax.f32 %v4323_v58, 0.0  ;;  %v12876_v34 = vld [vmem:[#allocation123_spill] sm:$0xff]  ;;  %v12877_v62 = vld [vmem:[#allocation68_spill] sm:$0xff] }
 0x382   : > { %4845 = vmatprep.mubr.bf16.mxu1 %v9233_v3 }
 0x383   : > { %v4356_v55 = vmax.f32 %v4324_v31, 0.0  ;;  %v3276_v31 = vadd.f32 %v12878_v42, %v12877_v62 }
 0x384   : > { %v3837_v0 = vpop.f32.mrb[80].mxu0 }
 0x385   : > { %v11647_v21 = vpack.c.bf16 %v4356_v55, %v4355_v23  ;;  %v8542_v43 = vadd.f32 %v3837_v0, %v3260_v50  ;;  %v3839_v56 = vpop.f32.mrb[81].mxu0 }
 0x386   : > { %v3840_v40 = vpop.f32.mrb[82].mxu0  ;;  %v12880_v56 = vld [vmem:[#allocation102_spill] sm:$0xff] }
 0x387   : > { %v8544_v10 = vadd.f32 %v3840_v40, %v3263_v63  ;;  %v4325_v18 = vadd.f32 %v8542_v43, %v12870_v26  ;;  %v3842_v54 = vpop.f32.mrb[83].mxu0  ;;  %v12879_v43 = vld [vmem:[#allocation69_spill] sm:$0xff] }
 0x388   : > { %v3279_v25 = vadd.f32 %v12880_v56, %v12879_v43  ;;  %v9247_v43 = vld [vmem:[%s12861_s10 + $0x80] ss:$8 sps:$4 sm:$0xff]  }
 0x389   : > { %v4326_v15 = vadd.f32 %v8544_v10, %v11517_v17  ;;  %4846 = vmatmul.mubr.bf16.gmra.mrb[100].mxu1 %v9235_v14  ;;  %v4357_v48 = vmax.f32 %v4325_v18, 0.0  ;;  %v9242_v14 = vld [vmem:[%s12861_s10 + $0x74] ss:$8 sps:$4 sm:$0xff]  }
 0x38a   : > { %4853 = vmatprep.mubr.bf16.mxu1 %v9236_v4 }
 0x38b   : > { %v4358_v13 = vmax.f32 %v4326_v15, 0.0  ;;  %v12881_v15 = vld [vmem:[#allocation72_spill] sm:$0xff] }
 0x38c   : > { %v3845_v1 = vpop.f32.mrb[84].mxu0 }
 0x38d   : > { %v11661_v59 = vpack.c.bf16 %v4358_v13, %v4357_v48  ;;  %v8546_v46 = vadd.f32 %v3845_v1, %v3268_v35  ;;  %v3847_v9 = vpop.f32.mrb[85].mxu0  ;;  %v12882_v48 = vld [vmem:[#allocation103_spill] sm:$0xff] }
 0x38e   : > { %v3848_v17 = vpop.f32.mrb[86].mxu0  ;;  %v3284_v13 = vadd.f32 %v12882_v48, %v12881_v15  ;;  %v12884_v9 = vld [vmem:[#allocation104_spill] sm:$0xff] }
 0x38f   : > { %v4327_v41 = vadd.f32 %v8546_v46, %v12875_v29  ;;  %v8548_v5 = vadd.f32 %v3848_v17, %v3271_v2  ;;  %v3850_v45 = vpop.f32.mrb[87].mxu0  ;;  %v12883_v46 = vld [vmem:[#allocation73_spill] sm:$0xff]  ;;  %v12885_v2 = vld [vmem:[#allocation124_spill] sm:$0xff] }
 0x390   : > { %v3287_v53 = vadd.f32 %v12884_v9, %v12883_v46  ;;  %v12886_v29 = vld [vmem:[#allocation125_spill] sm:$0xff]  ;;  %v9251_v9 = vld [vmem:[%s12861_s10 + $0xa4] ss:$8 sps:$4 sm:$0xff]  }
 0x391   : > { %v4328_v32 = vadd.f32 %v8548_v5, %v12876_v34  ;;  %4854 = vmatmul.mubr.bf16.gmra.mrb[104].mxu1 %v9238_v12  ;;  %v4359_v3 = vmax.f32 %v4327_v41, 0.0  ;;  %v12887_v34 = vld [vmem:[#allocation51_spill] sm:$0xff] }
 0x392   : > { %4861 = vmatprep.mubr.bf16.mxu1 %v9239_v27 }
 0x393   : > { %v4360_v58 = vmax.f32 %v4328_v32, 0.0  ;;  %v12888_v32 = vld [vmem:[#allocation105_spill] sm:$0xff] }
 0x394   : > { %v3853_v23 = vpop.f32.mrb[88].mxu0 }
 0x395   : > { %v11675_v55 = vpack.c.bf16 %v4360_v58, %v4359_v3  ;;  %v8550_v50 = vadd.f32 %v3853_v23, %v3276_v31  ;;  %v3855_v0 = vpop.f32.mrb[89].mxu0  ;;  %v3292_v3 = vadd.f32 %v12888_v32, %v12887_v34  ;;  %v12889_v23 = vld [vmem:[#allocation52_spill] sm:$0xff] }
 0x396   : > { %v3856_v63 = vpop.f32.mrb[90].mxu0  ;;  %v12898_v32 = vld [vmem:[#allocation56_spill] sm:$0xff] }
 0x397   : > { %v8552_v40 = vadd.f32 %v3856_v63, %v3279_v25  ;;  %v4329_v4 = vadd.f32 %v8550_v50, %v11528_v51  ;;  %v3858_v10 = vpop.f32.mrb[91].mxu0  ;;  %v9244_v51 = vld [vmem:[%s12861_s10 + $0x70] ss:$8 sps:$4 sm:$0xff]   ;;  %v9248_v25 = vld [vmem:[%s12861_s10 + $0x94] ss:$8 sps:$4 sm:$0xff]  }
 0x398   : > { %v12890_v50 = vld [vmem:[#allocation106_spill] sm:$0xff] }
 0x399   : > { %v4330_v26 = vadd.f32 %v8552_v40, %v11533_v6  ;;  %4862 = vmatmul.mubr.bf16.gmra.mrb[108].mxu1 %v9241_v24  ;;  %v4361_v18 = vmax.f32 %v4329_v4, 0.0  ;;  %v3295_v0 = vadd.f32 %v12890_v50, %v12889_v23  ;;  %v9254_v23 = vld [vmem:[%s12861_s10 + $0xb4] ss:$8 sps:$4 sm:$0xff]  }
 0x39a   : > { %4869 = vmatprep.mubr.bf16.mxu1 %v9242_v14 }
 0x39b   : > { %v4362_v54 = vmax.f32 %v4330_v26, 0.0  ;;  %v12891_v26 = vld [vmem:[#allocation53_spill] sm:$0xff] }
 0x39c   : > { %v3861_v33 = vpop.f32.mrb[92].mxu0 }
 0x39d   : > { %v11689_v11 = vpack.c.bf16 %v4362_v54, %v4361_v18  ;;  %v8554_v35 = vadd.f32 %v3861_v33, %v3284_v13  ;;  %v3863_v1 = vpop.f32.mrb[93].mxu0  ;;  %v12892_v18 = vld [vmem:[#allocation107_spill] sm:$0xff] }
 0x39e   : > { %v3864_v6 = vpop.f32.mrb[94].mxu0  ;;  %v3300_v54 = vadd.f32 %v12892_v18, %v12891_v26  ;;  %v12894_v1 = vld [vmem:[#allocation108_spill] sm:$0xff] }
 0x39f   : > { %v4331_v12 = vadd.f32 %v8554_v35, %v12885_v2  ;;  %v8556_v17 = vadd.f32 %v3864_v6, %v3287_v53  ;;  %v3866_v27 = vpop.f32.mrb[95].mxu0  ;;  %v12893_v35 = vld [vmem:[#allocation54_spill] sm:$0xff] }
 0x3a0   : > { %v3303_v46 = vadd.f32 %v12894_v1, %v12893_v35  ;;  %v12896_v27 = vld [vmem:[#allocation55_spill] sm:$0xff] }
 0x3a1   : > { %v4332_v41 = vadd.f32 %v8556_v17, %v12886_v29  ;;  %4870 = vmatmul.mubr.bf16.gmra.mrb[112].mxu1 %v9244_v51  ;;  %v4363_v5 = vmax.f32 %v4331_v12, 0.0  ;;  %v12897_v29 = vld [vmem:[#allocation109_spill] sm:$0xff] }
 0x3a2   : > { %4877 = vmatprep.mubr.bf16.mxu1 %v9245_v49  ;;  %v12895_v49 = vld [vmem:[#allocation126_spill] sm:$0xff] }
 0x3a3   : > { %v4364_v45 = vmax.f32 %v4332_v41, 0.0  ;;  %v3308_v41 = vadd.f32 %v12897_v29, %v12896_v27  ;;  %v12907_v27 = vld [vmem:[#allocation114_spill] sm:$0xff] }
 0x3a4   : > { %v3869_v58 = vpop.f32.mrb[96].mxu0 }
 0x3a5   : > { %v11703_v62 = vpack.c.bf16 %v4364_v45, %v4363_v5  ;;  %v8558_v42 = vadd.f32 %v3869_v58, %v3292_v3  ;;  %v3871_v31 = vpop.f32.mrb[97].mxu0  ;;  %v12899_v3 = vld [vmem:[#allocation110_spill] sm:$0xff] }
 0x3a6   : > { %v3872_v56 = vpop.f32.mrb[98].mxu0  ;;  %v3311_v58 = vadd.f32 %v12899_v3, %v12898_v32 }
 0x3a7   : > { %v8560_v24 = vadd.f32 %v3872_v56, %v3295_v0  ;;  %v4333_v63 = vadd.f32 %v8558_v42, %v11544_v44  ;;  %v3874_v14 = vpop.f32.mrb[99].mxu0  ;;  %v9250_v44 = vld [vmem:[%s12861_s10 + $0x90] ss:$8 sps:$4 sm:$0xff]  }
 0x3a8   : > { %v12901_v14 = vld [vmem:[#allocation111_spill] sm:$0xff] }
 0x3a9   : > { %v4334_v40 = vadd.f32 %v8560_v24, %v11549_v38  ;;  %4878 = vmatmul.mubr.bf16.gmra.mrb[116].mxu1 %v9247_v43  ;;  %v4365_v4 = vmax.f32 %v4333_v63, 0.0  ;;  %v12900_v63 = vld [vmem:[#allocation57_spill] sm:$0xff] }
 0x3aa   : > { %4885 = vmatprep.mubr.bf16.mxu1 %v9248_v25 }
 0x3ab   : > { %v4366_v10 = vmax.f32 %v4334_v40, 0.0  ;;  %v3316_v40 = vadd.f32 %v12901_v14, %v12900_v63  ;;  %v12911_v63 = vld [vmem:[#allocation116_spill] sm:$0xff] }
 0x3ac   : > { %v3877_v15 = vpop.f32.mrb[100].mxu0 }
 0x3ad   : > { %v11717_v48 = vpack.c.bf16 %v4366_v10, %v4365_v4  ;;  %v8562_v13 = vadd.f32 %v3877_v15, %v3300_v54  ;;  %v3879_v33 = vpop.f32.mrb[101].mxu0  ;;  %v12902_v54 = vld [vmem:[#allocation58_spill] sm:$0xff]  ;;  %v12903_v15 = vld [vmem:[#allocation112_spill] sm:$0xff] }
 0x3ae   : > { %v3880_v38 = vpop.f32.mrb[102].mxu0  ;;  %v9257_v33 = vld [vmem:[%s12861_s10 + $0xc4] ss:$8 sps:$4 sm:$0xff]  }
 0x3af   : > { %v4335_v53 = vadd.f32 %v8562_v13, %v11542_v8  ;;  %v8564_v51 = vadd.f32 %v3880_v38, %v3303_v46  ;;  %v3882_v6 = vpop.f32.mrb[103].mxu0  ;;  %v9253_v8 = vld [vmem:[%s12861_s10 + $0xa0] ss:$8 sps:$4 sm:$0xff]   ;;  %v3319_v13 = vadd.f32 %v12903_v15, %v12902_v54 }
 0x3b1   : > { %v4336_v2 = vadd.f32 %v8564_v51, %v12895_v49  ;;  %4886 = vmatmul.mubr.bf16.gmra.mrb[120].mxu1 %v9250_v44  ;;  %v4367_v12 = vmax.f32 %v4335_v53, 0.0  ;;  %v12904_v53 = vld [vmem:[#allocation59_spill] sm:$0xff]  ;;  %v12905_v51 = vld [vmem:[#allocation113_spill] sm:$0xff] }
 0x3b2   : > { %4893 = vmatprep.mubr.bf16.mxu1 %v9251_v9  ;;  %v3324_v6 = vadd.f32 %v12905_v51, %v12904_v53  ;;  %v9266_v51 = vld [vmem:[%s12861_s10 + $0xf4] ss:$8 sps:$4 sm:$0xff]  }
 0x3b3   : > { %v4368_v17 = vmax.f32 %v4336_v2, 0.0 }
 0x3b4   : > { %v3885_v5 = vpop.f32.mrb[104].mxu0 }
 0x3b5   : > { %v8566_v45 = vadd.f32 %v3885_v5, %v3308_v41  ;;  %v3887_v34 = vpop.f32.mrb[105].mxu0  ;;  %v11736_v42 = vpack.c.bf16 %v4368_v17, %v4367_v12  ;;  %v12906_v17 = vld [vmem:[#allocation60_spill] sm:$0xff]  ;;  %v9260_v5 = vld [vmem:[%s12861_s10 + $0xd4] ss:$8 sps:$4 sm:$0xff]  }
 0x3b6   : > { %v3888_v31 = vpop.f32.mrb[106].mxu0  ;;  %v3327_v29 = vadd.f32 %v12907_v27, %v12906_v17 }
 0x3b7   : > { %v8568_v50 = vadd.f32 %v3888_v31, %v3311_v58  ;;  %v4337_v0 = vadd.f32 %v8566_v45, %v11558_v16  ;;  %v3890_v43 = vpop.f32.mrb[107].mxu0  ;;  %v9256_v16 = vld [vmem:[%s12861_s10 + $0xb0] ss:$8 sps:$4 sm:$0xff]  }
 0x3b8   : > { %v12908_v31 = vld [vmem:[#allocation62_spill] sm:$0xff] }
 0x3b9   : > { %v4338_v56 = vadd.f32 %v8568_v50, %v11563_v22  ;;  %4894 = vmatmul.mubr.bf16.gmra.mrb[124].mxu1 %v9253_v8  ;;  %v4369_v25 = vmax.f32 %v4337_v0, 0.0 }
 0x3ba   : > { %4901 = vmatprep.mubr.bf16.mxu1 %v9254_v23  ;;  %v12909_v23 = vld [vmem:[#allocation115_spill] sm:$0xff] }
 0x3bb   : > { %v4370_v24 = vmax.f32 %v4338_v56, 0.0  ;;  %v3332_v50 = vadd.f32 %v12909_v23, %v12908_v31 }
 0x3bc   : > { %v3893_v4 = vpop.f32.mrb[108].mxu0 }
 0x3bd   : > { %v11745_v10 = vpack.c.bf16 %v4370_v24, %v4369_v25  ;;  %v8570_v26 = vadd.f32 %v3893_v4, %v3316_v40  ;;  %v3895_v18 = vpop.f32.mrb[109].mxu0  ;;  %v12910_v24 = vld [vmem:[#allocation63_spill] sm:$0xff] }
 0x3be   : > { %v3896_v22 = vpop.f32.mrb[110].mxu0  ;;  %v3335_v14 = vadd.f32 %v12911_v63, %v12910_v24  ;;  %v9263_v40 = vld [vmem:[%s12861_s10 + $0xe4] ss:$8 sps:$4 sm:$0xff]  }
 0x3bf   : > { %v4339_v35 = vadd.f32 %v8570_v26, %v11555_v37  ;;  %v8572_v1 = vadd.f32 %v3896_v22, %v3319_v13  ;;  %v3898_v46 = vpop.f32.mrb[111].mxu0  ;;  %v9259_v37 = vld [vmem:[%s12861_s10 + $0xc0] ss:$8 sps:$4 sm:$0xff]   ;;  %v12913_v22 = vld [vmem:[#allocation117_spill] sm:$0xff] }
 0x3c1   : > { %v4340_v44 = vadd.f32 %v8572_v1, %v11561_v19  ;;  %4902 = vmatmul.mubr.bf16.gmra.mrb[128].mxu1 %v9256_v16  ;;  %v4371_v38 = vmax.f32 %v4339_v35, 0.0  ;;  %v12912_v16 = vld [vmem:[#allocation66_spill] sm:$0xff] }
 0x3c2   : > { %4909 = vmatprep.mubr.bf16.mxu1 %v9257_v33  ;;  %v3340_v33 = vadd.f32 %v12913_v22, %v12912_v16 }
 0x3c3   : > { %v4372_v9 = vmax.f32 %v4340_v44, 0.0  ;;  %v12914_v44 = vld [vmem:[#allocation67_spill] sm:$0xff] }
 0x3c4   : > { %v3901_v49 = vpop.f32.mrb[112].mxu0 }
 0x3c5   : > { %v8574_v2 = vadd.f32 %v3901_v49, %v3324_v6  ;;  %v3903_v12 = vpop.f32.mrb[113].mxu0  ;;  %v11764_v41 = vpack.c.bf16 %v4372_v9, %v4371_v38  ;;  %v12915_v38 = vld [vmem:[#allocation118_spill] sm:$0xff] }
 0x3c6   : > { %v3904_v19 = vpop.f32.mrb[114].mxu0  ;;  %v3343_v9 = vadd.f32 %v12915_v38, %v12914_v44  ;;  %v12923_v44 = vld [vmem:[#allocation25_spill] sm:$0xff] }
 0x3c7   : > { %v8576_v45 = vadd.f32 %v3904_v19, %v3327_v29  ;;  %v4341_v34 = vadd.f32 %v8574_v2, %v11572_v36  ;;  %v3906_v32 = vpop.f32.mrb[115].mxu0  ;;  %v9262_v36 = vld [vmem:[%s12861_s10 + $0xd0] ss:$8 sps:$4 sm:$0xff]  }
 0x3c8   : > { %v12916_v29 = vld [vmem:[#allocation70_spill] sm:$0xff] }
 0x3c9   : > { %v4342_v3 = vadd.f32 %v8576_v45, %v11577_v57  ;;  %4910 = vmatmul.mubr.bf16.gmra.mrb[132].mxu1 %v9259_v37  ;;  %v4373_v58 = vmax.f32 %v4341_v34, 0.0  ;;  %v12917_v37 = vld [vmem:[#allocation119_spill] sm:$0xff] }
 0x3ca   : > { %4917 = vmatprep.mubr.bf16.mxu1 %v9260_v5  ;;  %v3348_v19 = vadd.f32 %v12917_v37, %v12916_v29  ;;  %v12925_v37 = vld [vmem:[#allocation29_spill] sm:$0xff] }
 0x3cb   : > { %v4374_v8 = vmax.f32 %v4342_v3, 0.0  ;;  %v12918_v3 = vld [vmem:[#allocation71_spill] sm:$0xff] }
 0x3cc   : > { %v3909_v0 = vpop.f32.mrb[116].mxu0 }
 0x3cd   : > { %v11773_v43 = vpack.c.bf16 %v4374_v8, %v4373_v58  ;;  %v8578_v56 = vadd.f32 %v3909_v0, %v3332_v50  ;;  %v3911_v25 = vpop.f32.mrb[117].mxu0  ;;  %v12919_v58 = vld [vmem:[#allocation120_spill] sm:$0xff] }
 0x3ce   : > { %v3912_v57 = vpop.f32.mrb[118].mxu0  ;;  %v3351_v8 = vadd.f32 %v12919_v58, %v12918_v3 }
 0x3cf   : > { %v4343_v4 = vadd.f32 %v8578_v56, %v11569_v20  ;;  %v8580_v26 = vadd.f32 %v3912_v57, %v3335_v14  ;;  %v3914_v18 = vpop.f32.mrb[119].mxu0  ;;  %v9265_v20 = vld [vmem:[%s12861_s10 + $0xe0] ss:$8 sps:$4 sm:$0xff]  }
 0x3d1   : > { %v4344_v54 = vadd.f32 %v8580_v26, %v11575_v39  ;;  %4918 = vmatmul.mubr.bf16.gmra.mrb[136].mxu1 %v9262_v36  ;;  %v4375_v15 = vmax.f32 %v4343_v4, 0.0  ;;  %v12920_v4 = vld [vmem:[#allocation21_spill] sm:$0xff] }
 0x3d2   : > { %4925 = vmatprep.mubr.bf16.mxu1 %v9263_v40 }
 0x3d3   : > { %v4376_v13 = vmax.f32 %v4344_v54, 0.0  ;;  %v12922_v54 = vld [vmem:[#allocation22_spill] sm:$0xff] }
 0x3d4   : > { %v3917_v35 = vpop.f32.mrb[120].mxu0 }
 0x3d5   : > { %v8582_v1 = vadd.f32 %v3917_v35, %v3340_v33  ;;  %v3919_v46 = vpop.f32.mrb[121].mxu0  ;;  %v11792_v53 = vpack.c.bf16 %v4376_v13, %v4375_v15 }
 0x3d6   : > { %v3920_v39 = vpop.f32.mrb[122].mxu0 }
 0x3d7   : > { %v8584_v6 = vadd.f32 %v3920_v39, %v3343_v9  ;;  %v4345_v49 = vadd.f32 %v8582_v1, %v11586_v60  ;;  %v3922_v2 = vpop.f32.mrb[123].mxu0  ;;  %v9268_v60 = vld [vmem:[%s12861_s10 + $0xf0] ss:$8 sps:$4 sm:$0xff]   ;;  %s9388_s10 = scalar_lea.vmem %s9387_s7, 2048 }
 0x3d8   : > { %p9390_p2 = scmp.lt.s32.totalorder %s9388_s10, %s9382_s3 }
 0x3d9   : > { %v4346_v12 = vadd.f32 %v8584_v6, %v11591_v7  ;;  %4926 = vmatmul.mubr.bf16.gmra.mrb[140].mxu1 %v9265_v20  ;;  %v4377_v17 = vmax.f32 %v4345_v49, 0.0  ;;  %v12924_v20 = vld [vmem:[#allocation26_spill] sm:$0xff] }
 0x3da   : > { %4933 = vmatprep.mubr.bf16.mxu1 %v9266_v51  ;;  %p9391_p3 = por %p9390_p2, %p9389_p1 }
 0x3db   : > { %v4378_v27 = vmax.f32 %v4346_v12, 0.0 }
 0x3dc   : > { %v3925_v5 = vpop.f32.mrb[124].mxu0  ;;  %p9392_p5 = pnand %p9391_p3, %p9385_p0 }
 0x3dd   : > { %v11801_v45 = vpack.c.bf16 %v4378_v27, %v4377_v17  ;;  %v8586_v34 = vadd.f32 %v3925_v5, %v3348_v19  ;;  %v3927_v32 = vpop.f32.mrb[125].mxu0 }
 0x3de   : > { %v3928_v7 = vpop.f32.mrb[126].mxu0 }
 0x3df   : > { %v4347_v31 = vadd.f32 %v8586_v34, %v11583_v30  ;;  %v8588_v23 = vadd.f32 %v3928_v7, %v3351_v8  ;;  %v3930_v50 = vpop.f32.mrb[127].mxu0  ;;  %v9271_v30 = vld [vmem:[%s12921_s2 + $0x4] ss:$8 sps:$4 sm:$0xff]   ;;  %v12926_v34 = vld [vmem:[#allocation30_spill] sm:$0xff] }
 0x3e1   : > { %v4348_v0 = vadd.f32 %v8588_v23, %v11589_v61  ;;  %4934 = vmatmul.mubr.bf16.gmra.mrb[144].mxu1 %v9268_v60  ;;  %v4379_v56 = vmax.f32 %v4347_v31, 0.0 }
 0x3e2   : > { %5214 = vmatprep.mubr.bf16.mxu1 %v9271_v30 }
 0x3e3   : > { %v4380_v25 = vmax.f32 %v4348_v0, 0.0  ;;  %v12927_v0 = vld [vmem:[#allocation33_spill] sm:$0xff] }
 0x3e5   : > { %v11810_v24 = vpack.c.bf16 %v4380_v25, %v4379_v56 }
 0x43c   : > { %v7933_v63 = vpop.f32.mrb[84].mxu1 }
 0x43d   : > { %v7934_v14 = vpop.f32.mrb[85].mxu1 }
 0x43e   : > { %v7935_v36 = vadd.f32 %v7934_v14, %v7933_v63  ;;  %v7936_v57 = vpop.f32.mrb[86].mxu1  ;;  %v12928_v63 = vld [vmem:[#allocation34_spill] sm:$0xff] }
 0x43f   : > { %v7937_v40 = vpop.f32.mrb[87].mxu1 }
 0x440   : > { %v4816_v26 = vadd.f32 %v7935_v36, %v12920_v4  ;;  %v7938_v18 = vadd.f32 %v7937_v40, %v7936_v57 }
 0x442   : > { %v4819_v15 = vadd.f32 %v7938_v18, %v12922_v54  ;;  %v4942_v61 = vmax.f32 %v4816_v26, 0.0 }
 0x444   : > { %v4943_v13 = vmax.f32 %v4819_v15, 0.0  ;;  %v7939_v16 = vpop.f32.mrb[88].mxu1  ;;  %v12929_v15 = vld [vmem:[#allocation37_spill] sm:$0xff] }
 0x445   : > { %v7940_v22 = vpop.f32.mrb[89].mxu1 }
 0x446   : > { %v11817_v33 = vpack.c.bf16 %v4943_v13, %v4942_v61  ;;  %v7941_v35 = vadd.f32 %v7940_v22, %v7939_v16  ;;  %v7942_v1 = vpop.f32.mrb[90].mxu1  ;;  %v12930_v16 = vld [vmem:[#allocation38_spill] sm:$0xff] }
 0x447   : > { %v7943_v46 = vpop.f32.mrb[91].mxu1 }
 0x448   : > { %v4824_v38 = vadd.f32 %v7941_v35, %v12923_v44  ;;  %v7944_v9 = vadd.f32 %v7943_v46, %v7942_v1 }
 0x44a   : > { %v4827_v39 = vadd.f32 %v7944_v9, %v12924_v20  ;;  %v4944_v51 = vmax.f32 %v4824_v38, 0.0 }
 0x44c   : > { %v4945_v6 = vmax.f32 %v4827_v39, 0.0  ;;  %v7945_v49 = vpop.f32.mrb[92].mxu1 }
 0x44d   : > { %v7946_v2 = vpop.f32.mrb[93].mxu1 }
 0x44e   : > { %v11821_v12 = vpack.c.bf16 %v4945_v6, %v4944_v51  ;;  %v7947_v17 = vadd.f32 %v7946_v2, %v7945_v49  ;;  %v7948_v27 = vpop.f32.mrb[94].mxu1  ;;  %v12931_v51 = vld [vmem:[#allocation41_spill] sm:$0xff]  ;;  %v12932_v2 = vld [vmem:[#allocation42_spill] sm:$0xff] }
 0x44f   : > { %v7949_v29 = vpop.f32.mrb[95].mxu1 }
 0x450   : > { %v4832_v19 = vadd.f32 %v7947_v17, %v12925_v37  ;;  %v7950_v5 = vadd.f32 %v7949_v29, %v7948_v27 }
 0x452   : > { %v4835_v32 = vadd.f32 %v7950_v5, %v12926_v34  ;;  %v4946_v3 = vmax.f32 %v4832_v19, 0.0 }
 0x454   : > { %v4947_v58 = vmax.f32 %v4835_v32, 0.0  ;;  %v7951_v8 = vpop.f32.mrb[96].mxu1 }
 0x455   : > { %v7952_v60 = vpop.f32.mrb[97].mxu1 }
 0x456   : > { %v11825_v7 = vpack.c.bf16 %v4947_v58, %v4946_v3  ;;  %v7953_v31 = vadd.f32 %v7952_v60, %v7951_v8  ;;  %v7954_v23 = vpop.f32.mrb[98].mxu1  ;;  %v12933_v58 = vld [vmem:[#allocation45_spill] sm:$0xff] }
 0x457   : > { %v7955_v50 = vpop.f32.mrb[99].mxu1 }
 0x458   : > { %v4840_v56 = vadd.f32 %v7953_v31, %v12927_v0  ;;  %v7956_v25 = vadd.f32 %v7955_v50, %v7954_v23  ;;  %v12934_v31 = vld [vmem:[#allocation46_spill] sm:$0xff] }
 0x45a   : > { %v4843_v14 = vadd.f32 %v7956_v25, %v12928_v63  ;;  %v4948_v36 = vmax.f32 %v4840_v56, 0.0 }
 0x45c   : > { %v4949_v57 = vmax.f32 %v4843_v14, 0.0  ;;  %v7957_v40 = vpop.f32.mrb[100].mxu1 }
 0x45d   : > { %v7958_v4 = vpop.f32.mrb[101].mxu1 }
 0x45e   : > { %v11829_v26 = vpack.c.bf16 %v4949_v57, %v4948_v36  ;;  %v7959_v18 = vadd.f32 %v7958_v4, %v7957_v40  ;;  %v7960_v30 = vpop.f32.mrb[102].mxu1  ;;  %v12935_v40 = vld [vmem:[#allocation49_spill] sm:$0xff] }
 0x45f   : > { %v7961_v54 = vpop.f32.mrb[103].mxu1 }
 0x460   : > { %v4848_v61 = vadd.f32 %v7959_v18, %v12929_v15  ;;  %v7962_v13 = vadd.f32 %v7961_v54, %v7960_v30  ;;  %v12936_v30 = vld [vmem:[#allocation50_spill] sm:$0xff] }
 0x462   : > { %v4851_v22 = vadd.f32 %v7962_v13, %v12930_v16  ;;  %v4950_v35 = vmax.f32 %v4848_v61, 0.0 }
 0x464   : > { %v4951_v1 = vmax.f32 %v4851_v22, 0.0  ;;  %v7963_v46 = vpop.f32.mrb[104].mxu1 }
 0x465   : > { %v7964_v44 = vpop.f32.mrb[105].mxu1 }
 0x466   : > { %v11833_v38 = vpack.c.bf16 %v4951_v1, %v4950_v35  ;;  %v7965_v9 = vadd.f32 %v7964_v44, %v7963_v46  ;;  %v7966_v20 = vpop.f32.mrb[106].mxu1  ;;  %v12937_v44 = vld [vmem:[#allocation19_spill] sm:$0xff] }
 0x467   : > { %v7967_v39 = vpop.f32.mrb[107].mxu1 }
 0x468   : > { %v4856_v6 = vadd.f32 %v7965_v9, %v12931_v51  ;;  %v7968_v49 = vadd.f32 %v7967_v39, %v7966_v20  ;;  %v12938_v39 = vld [vmem:[#allocation20_spill] sm:$0xff] }
 0x46a   : > { %v4859_v17 = vadd.f32 %v7968_v49, %v12932_v2  ;;  %v4952_v27 = vmax.f32 %v4856_v6, 0.0 }
 0x46c   : > { %v4953_v29 = vmax.f32 %v4859_v17, 0.0  ;;  %v7969_v37 = vpop.f32.mrb[108].mxu1 }
 0x46d   : > { %v7970_v19 = vpop.f32.mrb[109].mxu1 }
 0x46e   : > { %v11837_v5 = vpack.c.bf16 %v4953_v29, %v4952_v27  ;;  %v7971_v34 = vadd.f32 %v7970_v19, %v7969_v37  ;;  %v7972_v32 = vpop.f32.mrb[110].mxu1 }
 0x46f   : > { %v7973_v3 = vpop.f32.mrb[111].mxu1 }
 0x470   : > { %v4864_v8 = vadd.f32 %v7971_v34, %v12933_v58  ;;  %v7974_v60 = vadd.f32 %v7973_v3, %v7972_v32  ;;  %v12939_v34 = vld [vmem:[#allocation23_spill] sm:$0xff]  ;;  %v12940_v58 = vld [vmem:[#allocation24_spill] sm:$0xff] }
 0x472   : > { %v4867_v23 = vadd.f32 %v7974_v60, %v12934_v31  ;;  %v4954_v50 = vmax.f32 %v4864_v8, 0.0 }
 0x474   : > { %v4955_v0 = vmax.f32 %v4867_v23, 0.0  ;;  %v7975_v56 = vpop.f32.mrb[112].mxu1 }
 0x475   : > { %v7976_v25 = vpop.f32.mrb[113].mxu1 }
 0x476   : > { %v11841_v63 = vpack.c.bf16 %v4955_v0, %v4954_v50  ;;  %v7977_v14 = vadd.f32 %v7976_v25, %v7975_v56  ;;  %v7978_v36 = vpop.f32.mrb[114].mxu1 }
 0x477   : > { %v7979_v57 = vpop.f32.mrb[115].mxu1 }
 0x478   : > { %v4872_v4 = vadd.f32 %v7977_v14, %v12935_v40  ;;  %v7980_v18 = vadd.f32 %v7979_v57, %v7978_v36  ;;  %v12941_v36 = vld [vmem:[#allocation27_spill] sm:$0xff] }
 0x47a   : > { %v4875_v54 = vadd.f32 %v7980_v18, %v12936_v30  ;;  %v4956_v15 = vmax.f32 %v4872_v4, 0.0  ;;  %v12942_v4 = vld [vmem:[#allocation28_spill] sm:$0xff] }
 0x47c   : > { %v4957_v61 = vmax.f32 %v4875_v54, 0.0  ;;  %v7981_v13 = vpop.f32.mrb[116].mxu1 }
 0x47d   : > { %v7982_v16 = vpop.f32.mrb[117].mxu1 }
 0x47e   : > { %v11845_v22 = vpack.c.bf16 %v4957_v61, %v4956_v15  ;;  %v7983_v35 = vadd.f32 %v7982_v16, %v7981_v13  ;;  %v7984_v1 = vpop.f32.mrb[118].mxu1 }
 0x47f   : > { %v7985_v46 = vpop.f32.mrb[119].mxu1 }
 0x480   : > { %v4880_v9 = vadd.f32 %v7983_v35, %v12937_v44  ;;  %v7986_v20 = vadd.f32 %v7985_v46, %v7984_v1  ;;  %v12943_v1 = vld [vmem:[#allocation31_spill] sm:$0xff] }
 0x482   : > { %v4883_v51 = vadd.f32 %v7986_v20, %v12938_v39  ;;  %v4958_v6 = vmax.f32 %v4880_v9, 0.0  ;;  %v12944_v9 = vld [vmem:[#allocation32_spill] sm:$0xff] }
 0x484   : > { %v4959_v49 = vmax.f32 %v4883_v51, 0.0  ;;  %v7987_v2 = vpop.f32.mrb[120].mxu1 }
 0x485   : > { %v7988_v17 = vpop.f32.mrb[121].mxu1 }
 0x486   : > { %v7989_v27 = vadd.f32 %v7988_v17, %v7987_v2  ;;  %v7990_v29 = vpop.f32.mrb[122].mxu1  ;;  %v4982_v37 = vpack.c.bf16 %v4959_v49, %v4958_v6 }
 0x487   : > { %v7991_v19 = vpop.f32.mrb[123].mxu1 }
 0x488   : > { %v4888_v32 = vadd.f32 %v7989_v27, %v12939_v34  ;;  %v7992_v3 = vadd.f32 %v7991_v19, %v7990_v29  ;;  %8029 = vmatprep.subr.bf16.mxu1 %v4982_v37  ;;  %v12945_v29 = vld [vmem:[#allocation35_spill] sm:$0xff]  ;;  %v12946_v34 = vld [vmem:[#allocation36_spill] sm:$0xff] }
 0x489   : > { %8030 = vmatpush3.bf16.msra.mxu1 %v11817_v33 }
 0x48a   : > { %v4891_v8 = vadd.f32 %v7992_v3, %v12940_v58  ;;  %v4960_v60 = vmax.f32 %v4888_v32, 0.0 }
 0x48c   : > { %v4961_v31 = vmax.f32 %v4891_v8, 0.0  ;;  %v7993_v23 = vpop.f32.mrb[124].mxu1 }
 0x48d   : > { %v7994_v50 = vpop.f32.mrb[125].mxu1 }
 0x48e   : > { %v7995_v0 = vadd.f32 %v7994_v50, %v7993_v23  ;;  %v7996_v56 = vpop.f32.mrb[126].mxu1  ;;  %v4983_v25 = vpack.c.bf16 %v4961_v31, %v4960_v60 }
 0x48f   : > { %v7997_v14 = vpop.f32.mrb[127].mxu1 }
 0x490   : > { %v4896_v57 = vadd.f32 %v7995_v0, %v12941_v36  ;;  %v7998_v40 = vadd.f32 %v7997_v14, %v7996_v56  ;;  %8031 = vmatprep.subr.bf16.mxu1 %v4983_v25  ;;  %v12947_v0 = vld [vmem:[#allocation39_spill] sm:$0xff]  ;;  %v12948_v14 = vld [vmem:[#allocation40_spill] sm:$0xff] }
 0x491   : > { %8032 = vmatpush3.bf16.msra.mxu1 %v11821_v12 }
 0x492   : > { %v4899_v18 = vadd.f32 %v7998_v40, %v12942_v4  ;;  %v4962_v30 = vmax.f32 %v4896_v57, 0.0 }
 0x494   : > { %v4963_v33 = vmax.f32 %v4899_v18, 0.0  ;;  %v7999_v54 = vpop.f32.mrb[128].mxu1 }
 0x495   : > { %v8000_v15 = vpop.f32.mrb[129].mxu1 }
 0x496   : > { %v8001_v61 = vadd.f32 %v8000_v15, %v7999_v54  ;;  %v8002_v13 = vpop.f32.mrb[130].mxu1  ;;  %v4984_v16 = vpack.c.bf16 %v4963_v33, %v4962_v30  ;;  %v12949_v15 = vld [vmem:[#allocation43_spill] sm:$0xff] }
 0x497   : > { %v8003_v35 = vpop.f32.mrb[131].mxu1 }
 0x498   : > { %v4904_v46 = vadd.f32 %v8001_v61, %v12943_v1  ;;  %v8004_v44 = vadd.f32 %v8003_v35, %v8002_v13  ;;  %8033 = vmatprep.subr.bf16.mxu1 %v4984_v16  ;;  %v12950_v16 = vld [vmem:[#allocation44_spill] sm:$0xff] }
 0x499   : > { %8034 = vmatpush3.bf16.msra.mxu1 %v11825_v7 }
 0x49a   : > { %v4907_v20 = vadd.f32 %v8004_v44, %v12944_v9  ;;  %v4964_v39 = vmax.f32 %v4904_v46, 0.0 }
 0x49c   : > { %v4965_v12 = vmax.f32 %v4907_v20, 0.0  ;;  %v8005_v51 = vpop.f32.mrb[132].mxu1 }
 0x49d   : > { %v8006_v6 = vpop.f32.mrb[133].mxu1 }
 0x49e   : > { %v8007_v49 = vadd.f32 %v8006_v6, %v8005_v51  ;;  %v8008_v2 = vpop.f32.mrb[134].mxu1  ;;  %v4985_v17 = vpack.c.bf16 %v4965_v12, %v4964_v39  ;;  %v12951_v51 = vld [vmem:[#allocation47_spill] sm:$0xff] }
 0x49f   : > { %v8009_v27 = vpop.f32.mrb[135].mxu1 }
 0x4a0   : > { %v4912_v37 = vadd.f32 %v8007_v49, %v12945_v29  ;;  %v8010_v19 = vadd.f32 %v8009_v27, %v8008_v2  ;;  %8035 = vmatprep.subr.bf16.mxu1 %v4985_v17  ;;  %v12952_v2 = vld [vmem:[#allocation48_spill] sm:$0xff] }
 0x4a1   : > { %8036 = vmatpush3.bf16.msra.mxu1 %v11829_v26 }
 0x4a2   : > { %v4915_v32 = vadd.f32 %v8010_v19, %v12946_v34  ;;  %v4966_v3 = vmax.f32 %v4912_v37, 0.0  ;;  %v9269_v37 = vld [vmem:[%s12921_s2] ss:$8 sps:$4 sm:$0xff]   ;;  %v9272_v19 = vld [vmem:[%s12921_s2 + $0x14] ss:$8 sps:$4 sm:$0xff]  }
 0x4a3   : > { %v9301_v34 = vld [vmem:[%s12953_s12 + $0x20] ss:$8 sps:$4 sm:$0xff]  }
 0x4a4   : > { %v4967_v7 = vmax.f32 %v4915_v32, 0.0  ;;  %v8011_v58 = vpop.f32.mrb[136].mxu1  ;;  %v9302_v32 = vld [vmem:[%s12953_s12 + $0x34] ss:$8 sps:$4 sm:$0xff]  }
 0x4a5   : > { %v8012_v8 = vpop.f32.mrb[137].mxu1 }
 0x4a6   : > { %v8013_v60 = vadd.f32 %v8012_v8, %v8011_v58  ;;  %v8014_v31 = vpop.f32.mrb[138].mxu1  ;;  %v4986_v23 = vpack.c.bf16 %v4967_v7, %v4966_v3  ;;  %v9304_v3 = vld [vmem:[%s12953_s12 + $0x30] ss:$8 sps:$4 sm:$0xff]   ;;  %v9305_v7 = vld [vmem:[%s12953_s12 + $0x44] ss:$8 sps:$4 sm:$0xff]  }
 0x4a7   : > { %v8015_v50 = vpop.f32.mrb[139].mxu1  ;;  %v9307_v58 = vld [vmem:[%s12953_s12 + $0x40] ss:$8 sps:$4 sm:$0xff]   ;;  %v9308_v8 = vld [vmem:[%s12953_s12 + $0x54] ss:$8 sps:$4 sm:$0xff]  }
 0x4a8   : > { %v4920_v56 = vadd.f32 %v8013_v60, %v12947_v0  ;;  %v8016_v25 = vadd.f32 %v8015_v50, %v8014_v31  ;;  %8037 = vmatprep.subr.bf16.mxu1 %v4986_v23  ;;  %v9310_v60 = vld [vmem:[%s12953_s12 + $0x50] ss:$8 sps:$4 sm:$0xff]   ;;  %v9311_v31 = vld [vmem:[%s12953_s12 + $0x64] ss:$8 sps:$4 sm:$0xff]   ;;  %v9313_v23 = vld [vmem:[%s12953_s12 + $0x60] ss:$8 sps:$4 sm:$0xff]  }
 0x4a9   : > { %8038 = vmatpush3.bf16.msra.mxu1 %v11833_v38  ;;  %v9314_v50 = vld [vmem:[%s12953_s12 + $0x74] ss:$8 sps:$4 sm:$0xff]   ;;  %v9316_v0 = vld [vmem:[%s12953_s12 + $0x70] ss:$8 sps:$4 sm:$0xff]  }
 0x4aa   : > { %v4923_v36 = vadd.f32 %v8016_v25, %v12948_v14  ;;  %v4968_v57 = vmax.f32 %v4920_v56, 0.0  ;;  %v9317_v56 = vld [vmem:[%s12953_s12 + $0x84] ss:$8 sps:$4 sm:$0xff]   ;;  %v9319_v25 = vld [vmem:[%s12953_s12 + $0x80] ss:$8 sps:$4 sm:$0xff]  }
 0x4ab   : > { %v9320_v14 = vld [vmem:[%s12953_s12 + $0x94] ss:$8 sps:$4 sm:$0xff]  }
 0x4ac   : > { %v4969_v26 = vmax.f32 %v4923_v36, 0.0  ;;  %v8017_v40 = vpop.f32.mrb[140].mxu1  ;;  %v9322_v36 = vld [vmem:[%s12953_s12 + $0x90] ss:$8 sps:$4 sm:$0xff]  }
 0x4ad   : > { %v8018_v4 = vpop.f32.mrb[141].mxu1 }
 0x4ae   : > { %v8019_v18 = vadd.f32 %v8018_v4, %v8017_v40  ;;  %v8020_v30 = vpop.f32.mrb[142].mxu1  ;;  %v4987_v33 = vpack.c.bf16 %v4969_v26, %v4968_v57  ;;  %v9323_v57 = vld [vmem:[%s12953_s12 + $0xa4] ss:$8 sps:$4 sm:$0xff]   ;;  %v9325_v26 = vld [vmem:[%s12953_s12 + $0xa0] ss:$8 sps:$4 sm:$0xff]  }
 0x4af   : > { %v8021_v54 = vpop.f32.mrb[143].mxu1  ;;  %v9326_v40 = vld [vmem:[%s12953_s12 + $0xb4] ss:$8 sps:$4 sm:$0xff]   ;;  %v9328_v4 = vld [vmem:[%s12953_s12 + $0xb0] ss:$8 sps:$4 sm:$0xff]  }
 0x4b0   : > { %v4928_v61 = vadd.f32 %v8019_v18, %v12949_v15  ;;  %v8022_v13 = vadd.f32 %v8021_v54, %v8020_v30  ;;  %8039 = vmatprep.subr.bf16.mxu1 %v4987_v33  ;;  %v9329_v18 = vld [vmem:[%s12953_s12 + $0xc4] ss:$8 sps:$4 sm:$0xff]   ;;  %v9331_v30 = vld [vmem:[%s12953_s12 + $0xc0] ss:$8 sps:$4 sm:$0xff]   ;;  %v9332_v33 = vld [vmem:[%s12953_s12 + $0xd4] ss:$8 sps:$4 sm:$0xff]  }
 0x4b1   : > { %8040 = vmatpush3.bf16.msra.mxu1 %v11837_v5  ;;  %v9334_v54 = vld [vmem:[%s12953_s12 + $0xd0] ss:$8 sps:$4 sm:$0xff]   ;;  %v9335_v15 = vld [vmem:[%s12953_s12 + $0xe4] ss:$8 sps:$4 sm:$0xff]  }
 0x4b2   : > { %v4931_v35 = vadd.f32 %v8022_v13, %v12950_v16  ;;  %v4970_v1 = vmax.f32 %v4928_v61, 0.0  ;;  %v9337_v61 = vld [vmem:[%s12953_s12 + $0xe0] ss:$8 sps:$4 sm:$0xff]   ;;  %v9338_v13 = vld [vmem:[%s12953_s12 + $0xf4] ss:$8 sps:$4 sm:$0xff]  }
 0x4b3   : > { %v9340_v16 = vld [vmem:[%s12953_s12 + $0xf0] ss:$8 sps:$4 sm:$0xff]  }
 0x4b4   : > { %v4971_v38 = vmax.f32 %v4931_v35, 0.0  ;;  %v8023_v46 = vpop.f32.mrb[144].mxu1  ;;  %v12028_v35 = vpop.permute.xlu0 %5509 }
 0x4b5   : > { %v8024_v44 = vpop.f32.mrb[145].mxu1 }
 0x4b6   : > { %v8025_v9 = vadd.f32 %v8024_v44, %v8023_v46  ;;  %v8026_v20 = vpop.f32.mrb[146].mxu1  ;;  %v4988_v39 = vpack.c.bf16 %v4971_v38, %v4970_v1  ;;  %v12030_v1 = vpop.permute.xlu1 %5514 }
 0x4b7   : > { %v8027_v12 = vpop.f32.mrb[147].mxu1 }
 0x4b8   : > { %v4936_v6 = vadd.f32 %v8025_v9, %v12951_v51  ;;  %v8028_v49 = vadd.f32 %v8027_v12, %v8026_v20  ;;  %8041 = vmatprep.subr.bf16.mxu1 %v4988_v39  ;;  %v12032_v38 = vpop.permute.xlu0 %5429 }
 0x4b9   : > { %8042 = vmatpush3.bf16.msra.mxu1 %v11841_v63  ;;  %v9274_v63 = vld [vmem:[%s12921_s2 + $0x10] ss:$8 sps:$4 sm:$0xff]  }
 0x4ba   : > { %v4939_v17 = vadd.f32 %v8028_v49, %v12952_v2  ;;  %v4972_v27 = vmax.f32 %v4936_v6, 0.0  ;;  %v12034_v46 = vpop.permute.xlu1 %5434 }
 0x4bc   : > { %v4973_v5 = vmax.f32 %v4939_v17, 0.0  ;;  %v12036_v44 = vpop.permute.xlu0 %5519 }
 0x4be   : > { %v4989_v29 = vpack.c.bf16 %v4973_v5, %v4972_v27  ;;  %v12038_v9 = vpop.permute.xlu1 %5524 }
 0x4c0   : > { %8043 = vmatprep.subr.bf16.mxu1 %v4989_v29  ;;  %v12040_v20 = vpop.permute.xlu0 %5439 }
 0x4c1   : > { %8044 = vmatpush3.bf16.msra.mxu1 %v11845_v22  ;;  %v9275_v22 = vld [vmem:[%s12921_s2 + $0x24] ss:$8 sps:$4 sm:$0xff]  }
 0x4c2   : > { %8093 = vmatprep.subr.bf16.mxu1 %v11717_v48  ;;  %v9286_v48 = vld [vmem:[%s12921_s2 + $0x50] ss:$8 sps:$4 sm:$0xff]   ;;  %v12042_v39 = vpop.permute.xlu1 %5444 }
 0x4c4   : > { %5215 = vmatmul.mubr.bf16.vlgmr.msra.gmra.mrb[148].mxu1 %v9269_v37  ;;  %v5025_v2 = vpop.permute.xlu0 %5024 }
 0x4c5   : > { %8094 = vmatpush3.bf16.msra.mxu1 %v11607_v47  ;;  %5222 = vmatprep.mubr.bf16.mxu1 %v9272_v19  ;;  %v9277_v47 = vld [vmem:[%s12921_s2 + $0x20] ss:$8 sps:$4 sm:$0xff]  }
 0x4c6   : > { %8095 = vmatprep.subr.bf16.mxu1 %v11736_v42  ;;  %v9290_v42 = vld [vmem:[%s12921_s2 + $0x74] ss:$8 sps:$4 sm:$0xff]   ;;  %v5030_v29 = vpop.permute.xlu1 %5029 }
 0x4c9   : > { %8096 = vmatpush3.bf16.msra.mxu1 %v11619_v52  ;;  %v9278_v52 = vld [vmem:[%s12921_s2 + $0x34] ss:$8 sps:$4 sm:$0xff]  }
 0x4ca   : > { %8097 = vmatprep.subr.bf16.mxu1 %v11745_v10  ;;  %v9292_v10 = vld [vmem:[%s12921_s2 + $0x70] ss:$8 sps:$4 sm:$0xff]  }
 0x4cc   : > { %5223 = vmatmul.mubr.bf16.gmra.mrb[152].mxu1 %v9274_v63 }
 0x4cd   : > { %8098 = vmatpush3.bf16.msra.mxu1 %v11633_v28  ;;  %5230 = vmatprep.mubr.bf16.mxu1 %v9275_v22  ;;  %v9280_v28 = vld [vmem:[%s12921_s2 + $0x30] ss:$8 sps:$4 sm:$0xff]  }
 0x4ce   : > { %8099 = vmatprep.subr.bf16.mxu1 %v11764_v41  ;;  %v9295_v41 = vld [vmem:[%s12953_s12 + $0x4] ss:$8 sps:$4 sm:$0xff]  }
 0x4d1   : > { %8100 = vmatpush3.bf16.msra.mxu1 %v11647_v21  ;;  %v9281_v21 = vld [vmem:[%s12921_s2 + $0x44] ss:$8 sps:$4 sm:$0xff]  }
 0x4d2   : > { %8101 = vmatprep.subr.bf16.mxu1 %v11773_v43  ;;  %v9293_v43 = vld [vmem:[%s12953_s12] ss:$8 sps:$4 sm:$0xff]  }
 0x4d4   : > { %5231 = vmatmul.mubr.bf16.gmra.mrb[156].mxu1 %v9277_v47 }
 0x4d5   : > { %8102 = vmatpush3.bf16.msra.mxu1 %v11661_v59  ;;  %5238 = vmatprep.mubr.bf16.mxu1 %v9278_v52  ;;  %v9283_v59 = vld [vmem:[%s12921_s2 + $0x40] ss:$8 sps:$4 sm:$0xff]  }
 0x4d6   : > { %8103 = vmatprep.subr.bf16.mxu1 %v11792_v53  ;;  %v9296_v53 = vld [vmem:[%s12953_s12 + $0x14] ss:$8 sps:$4 sm:$0xff]  }
 0x4d9   : > { %8104 = vmatpush3.bf16.msra.mxu1 %v11675_v55  ;;  %v9284_v55 = vld [vmem:[%s12921_s2 + $0x54] ss:$8 sps:$4 sm:$0xff]  }
 0x4da   : > { %8105 = vmatprep.subr.bf16.mxu1 %v11801_v45  ;;  %v9298_v45 = vld [vmem:[%s12953_s12 + $0x10] ss:$8 sps:$4 sm:$0xff]  }
 0x4dc   : > { %5239 = vmatmul.mubr.bf16.gmra.mrb[160].mxu1 %v9280_v28 }
 0x4dd   : > { %8106 = vmatpush3.bf16.msra.mxu1 %v11689_v11  ;;  %5246 = vmatprep.mubr.bf16.mxu1 %v9281_v21  ;;  %v9287_v11 = vld [vmem:[%s12921_s2 + $0x64] ss:$8 sps:$4 sm:$0xff]  }
 0x4de   : > { %8107 = vmatprep.subr.bf16.mxu1 %v11810_v24  ;;  %v9299_v24 = vld [vmem:[%s12953_s12 + $0x24] ss:$8 sps:$4 sm:$0xff]  }
 0x4e1   : > { %8108 = vmatpush3.bf16.msra.mxu1 %v11703_v62  ;;  %v9289_v62 = vld [vmem:[%s12921_s2 + $0x60] ss:$8 sps:$4 sm:$0xff]  }
 0x4e4   : > { %5247 = vmatmul.mubr.bf16.gmra.mrb[164].mxu1 %v9283_v59  ;;  %v5035_v59 = vpop.permute.xlu0 %5034 }
 0x4e5   : > { %5254 = vmatprep.mubr.bf16.mxu1 %v9284_v55 }
 0x4ec   : > { %5255 = vmatmul.mubr.bf16.gmra.mrb[168].mxu1 %v9286_v48 }
 0x4ed   : > { %5262 = vmatprep.mubr.bf16.mxu1 %v9287_v11 }
 0x4f4   : > { %5263 = vmatmul.mubr.bf16.gmra.mrb[172].mxu1 %v9289_v62  ;;  %v5040_v62 = vpop.permute.xlu1 %5039 }
 0x4f5   : > { %5270 = vmatprep.mubr.bf16.mxu1 %v9290_v42 }
 0x4fc   : > { %5271 = vmatmul.mubr.bf16.gmra.mrb[176].mxu1 %v9292_v10 }
 0x4fd   : > { %5719 = vmatprep.mubr.bf16.mxu1 %v9295_v41 }
 0x504   : > { %5720 = vmatmul.mubr.bf16.vlgmr.msra.gmra.mrb[180].mxu1 %v9293_v43 }
 0x505   : > { %5727 = vmatprep.mubr.bf16.mxu1 %v9296_v53 }
 0x50c   : > { %5728 = vmatmul.mubr.bf16.gmra.mrb[184].mxu1 %v9298_v45 }
 0x50d   : > { %5735 = vmatprep.mubr.bf16.mxu1 %v9299_v24 }
 0x514   : > { %5736 = vmatmul.mubr.bf16.gmra.mrb[188].mxu1 %v9301_v34 }
 0x515   : > { %5743 = vmatprep.mubr.bf16.mxu1 %v9302_v32  ;;  %v5045_v32 = vpop.permute.xlu0 %5044 }
 0x51c   : > { %5744 = vmatmul.mubr.bf16.gmra.mrb[192].mxu1 %v9304_v3 }
 0x51d   : > { %5751 = vmatprep.mubr.bf16.mxu1 %v9305_v7 }
 0x524   : > { %5752 = vmatmul.mubr.bf16.gmra.mrb[196].mxu1 %v9307_v58 }
 0x525   : > { %5759 = vmatprep.mubr.bf16.mxu1 %v9308_v8  ;;  %v5050_v8 = vpop.permute.xlu1 %5049 }
 0x52c   : > { %5760 = vmatmul.mubr.bf16.gmra.mrb[200].mxu1 %v9310_v60 }
 0x52d   : > { %5767 = vmatprep.mubr.bf16.mxu1 %v9311_v31 }
 0x534   : > { %5768 = vmatmul.mubr.bf16.gmra.mrb[204].mxu1 %v9313_v23 }
 0x535   : > { %5775 = vmatprep.mubr.bf16.mxu1 %v9314_v50 }
 0x53c   : > { %5776 = vmatmul.mubr.bf16.gmra.mrb[208].mxu1 %v9316_v0 }
 0x53d   : > { %5783 = vmatprep.mubr.bf16.mxu1 %v9317_v56 }
 0x544   : > { %5784 = vmatmul.mubr.bf16.gmra.mrb[212].mxu1 %v9319_v25 }
 0x545   : > { %5791 = vmatprep.mubr.bf16.mxu1 %v9320_v14 }
 0x54c   : > { %5792 = vmatmul.mubr.bf16.gmra.mrb[216].mxu1 %v9322_v36  ;;  %v5055_v36 = vpop.permute.xlu0 %5054 }
 0x54d   : > { %5799 = vmatprep.mubr.bf16.mxu1 %v9323_v57 }
 0x554   : > { %5800 = vmatmul.mubr.bf16.gmra.mrb[220].mxu1 %v9325_v26 }
 0x555   : > { %5807 = vmatprep.mubr.bf16.mxu1 %v9326_v40 }
 0x55c   : > { %5808 = vmatmul.mubr.bf16.gmra.mrb[224].mxu1 %v9328_v4  ;;  %v5060_v4 = vpop.permute.xlu1 %5059 }
 0x55d   : > { %5815 = vmatprep.mubr.bf16.mxu1 %v9329_v18 }
 0x564   : > { %5816 = vmatmul.mubr.bf16.gmra.mrb[228].mxu1 %v9331_v30 }
 0x565   : > { %5823 = vmatprep.mubr.bf16.mxu1 %v9332_v33 }
 0x56c   : > { %5824 = vmatmul.mubr.bf16.gmra.mrb[232].mxu1 %v9334_v54 }
 0x56d   : > { %5831 = vmatprep.mubr.bf16.mxu1 %v9335_v15 }
 0x574   : > { %5832 = vmatmul.mubr.bf16.gmra.mrb[236].mxu1 %v9337_v61 }
 0x575   : > { %5839 = vmatprep.mubr.bf16.mxu1 %v9338_v13 }
 0x57c   : > { %5840 = vmatmul.mubr.bf16.gmra.mrb[240].mxu1 %v9340_v16 }
 0x597   : > { %v8045_v12 = vpop.f32.mrb[148].mxu1 }
 0x598   : > { %v8046_v51 = vpop.f32.mrb[149].mxu1 }
 0x599   : > { %v8047_v6 = vadd.f32 %v8046_v51, %v8045_v12  ;;  %v8048_v49 = vpop.f32.mrb[150].mxu1  ;;  %v5065_v12 = vpop.permute.xlu0 %5064 }
 0x59a   : > { %v8049_v17 = vpop.f32.mrb[151].mxu1 }
 0x59b   : > { %v5217_v27 = vadd.f32 %v8047_v6, %v5025_v2  ;;  %v8050_v5 = vadd.f32 %v8049_v17, %v8048_v49  ;;  %v5070_v2 = vpop.permute.xlu1 %5069 }
 0x59d   : > { %v5220_v37 = vadd.f32 %v8050_v5, %v5030_v29  ;;  %v5279_v19 = vmax.f32 %v5217_v27, 0.0 }
 0x59f   : > { %v5280_v63 = vmax.f32 %v5220_v37, 0.0  ;;  %v8051_v22 = vpop.f32.mrb[152].mxu1 }
 0x5a0   : > { %v8052_v47 = vpop.f32.mrb[153].mxu1 }
 0x5a1   : > { %v8053_v52 = vadd.f32 %v8052_v47, %v8051_v22  ;;  %v8054_v28 = vpop.f32.mrb[154].mxu1  ;;  %v12044_v21 = vpack.c.bf16 %v5280_v63, %v5279_v19  ;;  %v5075_v47 = vpop.permute.xlu0 %5074 }
 0x5a2   : > { %v8055_v55 = vpop.f32.mrb[155].mxu1 }
 0x5a3   : > { %v5225_v48 = vadd.f32 %v8053_v52, %v5035_v59  ;;  %v8056_v11 = vadd.f32 %v8055_v55, %v8054_v28  ;;  %v5080_v55 = vpop.permute.xlu1 %5079 }
 0x5a5   : > { %v5228_v42 = vadd.f32 %v8056_v11, %v5040_v62  ;;  %v5281_v10 = vmax.f32 %v5225_v48, 0.0 }
 0x5a7   : > { %v5282_v41 = vmax.f32 %v5228_v42, 0.0  ;;  %v8057_v43 = vpop.f32.mrb[156].mxu1 }
 0x5a8   : > { %v8058_v53 = vpop.f32.mrb[157].mxu1 }
 0x5a9   : > { %v8059_v45 = vadd.f32 %v8058_v53, %v8057_v43  ;;  %v8060_v24 = vpop.f32.mrb[158].mxu1  ;;  %v12046_v34 = vpack.c.bf16 %v5282_v41, %v5281_v10 }
 0x5aa   : > { %v8061_v3 = vpop.f32.mrb[159].mxu1 }
 0x5ab   : > { %v5233_v7 = vadd.f32 %v8059_v45, %v5045_v32  ;;  %v8062_v58 = vadd.f32 %v8061_v3, %v8060_v24  ;;  %v5085_v45 = vpop.permute.xlu0 %5084 }
 0x5ad   : > { %v5236_v60 = vadd.f32 %v8062_v58, %v5050_v8  ;;  %v5283_v31 = vmax.f32 %v5233_v7, 0.0  ;;  %v5090_v7 = vpop.permute.xlu1 %5089 }
 0x5af   : > { %v5284_v23 = vmax.f32 %v5236_v60, 0.0  ;;  %v8063_v50 = vpop.f32.mrb[160].mxu1 }
 0x5b0   : > { %v8064_v0 = vpop.f32.mrb[161].mxu1 }
 0x5b1   : > { %v8065_v56 = vadd.f32 %v8064_v0, %v8063_v50  ;;  %v8066_v25 = vpop.f32.mrb[162].mxu1  ;;  %v12048_v14 = vpack.c.bf16 %v5284_v23, %v5283_v31 }
 0x5b2   : > { %v8067_v57 = vpop.f32.mrb[163].mxu1 }
 0x5b3   : > { %v5241_v26 = vadd.f32 %v8065_v56, %v5055_v36  ;;  %v8068_v40 = vadd.f32 %v8067_v57, %v8066_v25  ;;  %v5095_v25 = vpop.permute.xlu0 %5094 }
 0x5b5   : > { %v5244_v18 = vadd.f32 %v8068_v40, %v5060_v4  ;;  %v5285_v30 = vmax.f32 %v5241_v26, 0.0  ;;  %v5100_v40 = vpop.permute.xlu1 %5099 }
 0x5b7   : > { %v5286_v33 = vmax.f32 %v5244_v18, 0.0  ;;  %v8069_v54 = vpop.f32.mrb[164].mxu1 }
 0x5b8   : > { %v8070_v15 = vpop.f32.mrb[165].mxu1 }
 0x5b9   : > { %v8071_v61 = vadd.f32 %v8070_v15, %v8069_v54  ;;  %v8072_v13 = vpop.f32.mrb[166].mxu1  ;;  %v12050_v16 = vpack.c.bf16 %v5286_v33, %v5285_v30 }
 0x5ba   : > { %v8073_v51 = vpop.f32.mrb[167].mxu1 }
 0x5bb   : > { %v5249_v6 = vadd.f32 %v8071_v61, %v5065_v12  ;;  %v8074_v49 = vadd.f32 %v8073_v51, %v8072_v13  ;;  %v12954_v51 = vld [vmem:[#allocation76_spill] sm:$0xff] }
 0x5bd   : > { %v5252_v17 = vadd.f32 %v8074_v49, %v5070_v2  ;;  %v5287_v27 = vmax.f32 %v5249_v6, 0.0  ;;  %v9343_v2 = vld [vmem:[%s12955_s14 + $0x4] ss:$8 sps:$4 sm:$0xff]  }
 0x5be   : > { %5952 = vmatprep.mubr.bf16.mxu1 %v9343_v2 }
 0x5bf   : > { %v5288_v5 = vmax.f32 %v5252_v17, 0.0  ;;  %v8075_v29 = vpop.f32.mrb[168].mxu1  ;;  %v12956_v17 = vld [vmem:[#allocation77_spill] sm:$0xff] }
 0x5c0   : > { %v8076_v37 = vpop.f32.mrb[169].mxu1 }
 0x5c1   : > { %v8077_v19 = vadd.f32 %v8076_v37, %v8075_v29  ;;  %v8078_v63 = vpop.f32.mrb[170].mxu1  ;;  %v12052_v22 = vpack.c.bf16 %v5288_v5, %v5287_v27 }
 0x5c2   : > { %v8079_v52 = vpop.f32.mrb[171].mxu1 }
 0x5c3   : > { %v5257_v28 = vadd.f32 %v8077_v19, %v5075_v47  ;;  %v8080_v59 = vadd.f32 %v8079_v52, %v8078_v63 }
 0x5c5   : > { %v5260_v48 = vadd.f32 %v8080_v59, %v5080_v55  ;;  %v5289_v11 = vmax.f32 %v5257_v28, 0.0  ;;  %v12957_v59 = vld [vmem:[#allocation80_spill] sm:$0xff] }
 0x5c7   : > { %v5290_v62 = vmax.f32 %v5260_v48, 0.0  ;;  %v8081_v42 = vpop.f32.mrb[172].mxu1 }
 0x5c8   : > { %v8082_v10 = vpop.f32.mrb[173].mxu1 }
 0x5c9   : > { %v8083_v41 = vadd.f32 %v8082_v10, %v8081_v42  ;;  %v8084_v43 = vpop.f32.mrb[174].mxu1  ;;  %v12054_v53 = vpack.c.bf16 %v5290_v62, %v5289_v11  ;;  %v12958_v11 = vld [vmem:[#allocation81_spill] sm:$0xff] }
 0x5ca   : > { %v8085_v24 = vpop.f32.mrb[175].mxu1 }
 0x5cb   : > { %v5265_v32 = vadd.f32 %v8083_v41, %v5085_v45  ;;  %v8086_v3 = vadd.f32 %v8085_v24, %v8084_v43 }
 0x5cd   : > { %v5268_v58 = vadd.f32 %v8086_v3, %v5090_v7  ;;  %v5291_v8 = vmax.f32 %v5265_v32, 0.0  ;;  %v12959_v7 = vld [vmem:[#allocation84_spill] sm:$0xff] }
 0x5cf   : > { %v5292_v60 = vmax.f32 %v5268_v58, 0.0  ;;  %v8087_v31 = vpop.f32.mrb[176].mxu1 }
 0x5d0   : > { %v8088_v23 = vpop.f32.mrb[177].mxu1 }
 0x5d1   : > { %v8089_v50 = vadd.f32 %v8088_v23, %v8087_v31  ;;  %v8090_v0 = vpop.f32.mrb[178].mxu1  ;;  %v12056_v56 = vpack.c.bf16 %v5292_v60, %v5291_v8  ;;  %v12960_v60 = vld [vmem:[#allocation85_spill] sm:$0xff] }
 0x5d2   : > { %v8091_v36 = vpop.f32.mrb[179].mxu1 }
 0x5d3   : > { %v5273_v57 = vadd.f32 %v8089_v50, %v5095_v25  ;;  %v8092_v26 = vadd.f32 %v8091_v36, %v8090_v0 }
 0x5d5   : > { %v5276_v4 = vadd.f32 %v8092_v26, %v5100_v40  ;;  %v5293_v18 = vmax.f32 %v5273_v57, 0.0 }
 0x5d7   : > { %v5294_v30 = vmax.f32 %v5276_v4, 0.0  ;;  %v8109_v33 = vpop.f32.mrb[180].mxu1  ;;  %v12961_v4 = vld [vmem:[#allocation88_spill] sm:$0xff] }
 0x5d8   : > { %v8110_v54 = vpop.f32.mrb[181].mxu1 }
 0x5d9   : > { %v8111_v15 = vadd.f32 %v8110_v54, %v8109_v33  ;;  %v8112_v61 = vpop.f32.mrb[182].mxu1  ;;  %v12058_v13 = vpack.c.bf16 %v5294_v30, %v5293_v18  ;;  %v12962_v33 = vld [vmem:[#allocation89_spill] sm:$0xff] }
 0x5da   : > { %v8113_v12 = vpop.f32.mrb[183].mxu1 }
 0x5db   : > { %v5722_v6 = vadd.f32 %v8111_v15, %v12954_v51  ;;  %v8114_v49 = vadd.f32 %v8113_v12, %v8112_v61 }
 0x5dd   : > { %v5725_v27 = vadd.f32 %v8114_v49, %v12956_v17  ;;  %v5848_v5 = vmax.f32 %v5722_v6, 0.0 }
 0x5df   : > { %v5849_v29 = vmax.f32 %v5725_v27, 0.0  ;;  %v8115_v37 = vpop.f32.mrb[184].mxu1  ;;  %v12963_v27 = vld [vmem:[#allocation92_spill] sm:$0xff] }
 0x5e0   : > { %v8116_v19 = vpop.f32.mrb[185].mxu1 }
 0x5e1   : > { %v12065_v63 = vpack.c.bf16 %v5849_v29, %v5848_v5  ;;  %v8117_v47 = vadd.f32 %v8116_v19, %v8115_v37  ;;  %v8118_v52 = vpop.f32.mrb[186].mxu1  ;;  %v12964_v37 = vld [vmem:[#allocation93_spill] sm:$0xff] }
 0x5e2   : > { %v8119_v28 = vpop.f32.mrb[187].mxu1 }
 0x5e3   : > { %v5730_v55 = vadd.f32 %v8117_v47, %v12957_v59  ;;  %v8120_v48 = vadd.f32 %v8119_v28, %v8118_v52 }
 0x5e5   : > { %v5733_v62 = vadd.f32 %v8120_v48, %v12958_v11  ;;  %v5850_v42 = vmax.f32 %v5730_v55, 0.0 }
 0x5e7   : > { %v5851_v10 = vmax.f32 %v5733_v62, 0.0  ;;  %v8121_v41 = vpop.f32.mrb[188].mxu1 }
 0x5e8   : > { %v8122_v43 = vpop.f32.mrb[189].mxu1 }
 0x5e9   : > { %v12069_v45 = vpack.c.bf16 %v5851_v10, %v5850_v42  ;;  %v8123_v24 = vadd.f32 %v8122_v43, %v8121_v41  ;;  %v8124_v32 = vpop.f32.mrb[190].mxu1  ;;  %v12965_v42 = vld [vmem:[#allocation96_spill] sm:$0xff]  ;;  %v12966_v43 = vld [vmem:[#allocation97_spill] sm:$0xff] }
 0x5ea   : > { %v8125_v3 = vpop.f32.mrb[191].mxu1 }
 0x5eb   : > { %v5738_v58 = vadd.f32 %v8123_v24, %v12959_v7  ;;  %v8126_v8 = vadd.f32 %v8125_v3, %v8124_v32 }
 0x5ed   : > { %v5741_v31 = vadd.f32 %v8126_v8, %v12960_v60  ;;  %v5852_v23 = vmax.f32 %v5738_v58, 0.0 }
 0x5ef   : > { %v5853_v50 = vmax.f32 %v5741_v31, 0.0  ;;  %v8127_v0 = vpop.f32.mrb[192].mxu1 }
 0x5f0   : > { %v8128_v25 = vpop.f32.mrb[193].mxu1 }
 0x5f1   : > { %v12073_v36 = vpack.c.bf16 %v5853_v50, %v5852_v23  ;;  %v8129_v57 = vadd.f32 %v8128_v25, %v8127_v0  ;;  %v8130_v26 = vpop.f32.mrb[194].mxu1 }
 0x5f2   : > { %v8131_v40 = vpop.f32.mrb[195].mxu1 }
 0x5f3   : > { %v5746_v18 = vadd.f32 %v8129_v57, %v12961_v4  ;;  %v8132_v30 = vadd.f32 %v8131_v40, %v8130_v26 }
 0x5f5   : > { %v5749_v54 = vadd.f32 %v8132_v30, %v12962_v33  ;;  %v5854_v15 = vmax.f32 %v5746_v18, 0.0 }
 0x5f7   : > { %v5855_v61 = vmax.f32 %v5749_v54, 0.0  ;;  %v8133_v12 = vpop.f32.mrb[196].mxu1 }
 0x5f8   : > { %v8134_v51 = vpop.f32.mrb[197].mxu1 }
 0x5f9   : > { %v12077_v6 = vpack.c.bf16 %v5855_v61, %v5854_v15  ;;  %v8135_v49 = vadd.f32 %v8134_v51, %v8133_v12  ;;  %v8136_v2 = vpop.f32.mrb[198].mxu1 }
 0x5fa   : > { %v8137_v17 = vpop.f32.mrb[199].mxu1 }
 0x5fb   : > { %v5754_v5 = vadd.f32 %v8135_v49, %v12963_v27  ;;  %v8138_v29 = vadd.f32 %v8137_v17, %v8136_v2 }
 0x5fd   : > { %v5757_v19 = vadd.f32 %v8138_v29, %v12964_v37  ;;  %v5856_v47 = vmax.f32 %v5754_v5, 0.0  ;;  %v12967_v29 = vld [vmem:[#allocation74_spill] sm:$0xff] }
 0x5ff   : > { %v5857_v52 = vmax.f32 %v5757_v19, 0.0  ;;  %v8139_v28 = vpop.f32.mrb[200].mxu1 }
 0x600   : > { %v8140_v59 = vpop.f32.mrb[201].mxu1 }
 0x601   : > { %v12081_v55 = vpack.c.bf16 %v5857_v52, %v5856_v47  ;;  %v8141_v48 = vadd.f32 %v8140_v59, %v8139_v28  ;;  %v8142_v11 = vpop.f32.mrb[202].mxu1  ;;  %v12968_v47 = vld [vmem:[#allocation75_spill] sm:$0xff] }
 0x602   : > { %v8143_v62 = vpop.f32.mrb[203].mxu1 }
 0x603   : > { %v5762_v10 = vadd.f32 %v8141_v48, %v12965_v42  ;;  %v8144_v41 = vadd.f32 %v8143_v62, %v8142_v11 }
 0x605   : > { %v5765_v24 = vadd.f32 %v8144_v41, %v12966_v43  ;;  %v5858_v32 = vmax.f32 %v5762_v10, 0.0  ;;  %v12969_v10 = vld [vmem:[#allocation78_spill] sm:$0xff] }
 0x607   : > { %v5859_v3 = vmax.f32 %v5765_v24, 0.0  ;;  %v8145_v7 = vpop.f32.mrb[204].mxu1  ;;  %v12970_v24 = vld [vmem:[#allocation79_spill] sm:$0xff] }
 0x608   : > { %v8146_v58 = vpop.f32.mrb[205].mxu1 }
 0x609   : > { %v12085_v8 = vpack.c.bf16 %v5859_v3, %v5858_v32  ;;  %v8147_v60 = vadd.f32 %v8146_v58, %v8145_v7  ;;  %v8148_v31 = vpop.f32.mrb[206].mxu1 }
 0x60a   : > { %v8149_v23 = vpop.f32.mrb[207].mxu1 }
 0x60b   : > { %v5770_v50 = vadd.f32 %v8147_v60, %v12032_v38  ;;  %v8150_v0 = vadd.f32 %v8149_v23, %v8148_v31 }
 0x60d   : > { %v5773_v25 = vadd.f32 %v8150_v0, %v12034_v46  ;;  %v5860_v57 = vmax.f32 %v5770_v50, 0.0 }
 0x60f   : > { %v5861_v26 = vmax.f32 %v5773_v25, 0.0  ;;  %v8151_v40 = vpop.f32.mrb[208].mxu1  ;;  %v12971_v25 = vld [vmem:[#allocation82_spill] sm:$0xff] }
 0x610   : > { %v8152_v4 = vpop.f32.mrb[209].mxu1 }
 0x611   : > { %v12089_v18 = vpack.c.bf16 %v5861_v26, %v5860_v57  ;;  %v8153_v30 = vadd.f32 %v8152_v4, %v8151_v40  ;;  %v8154_v33 = vpop.f32.mrb[210].mxu1  ;;  %v12972_v40 = vld [vmem:[#allocation83_spill] sm:$0xff] }
 0x612   : > { %v8155_v54 = vpop.f32.mrb[211].mxu1 }
 0x613   : > { %v5778_v15 = vadd.f32 %v8153_v30, %v12040_v20  ;;  %v8156_v61 = vadd.f32 %v8155_v54, %v8154_v33 }
 0x615   : > { %v5781_v12 = vadd.f32 %v8156_v61, %v12042_v39  ;;  %v5862_v51 = vmax.f32 %v5778_v15, 0.0 }
 0x617   : > { %v5863_v49 = vmax.f32 %v5781_v12, 0.0  ;;  %v8157_v38 = vpop.f32.mrb[212].mxu1 }
 0x618   : > { %v8158_v2 = vpop.f32.mrb[213].mxu1 }
 0x619   : > { %v12093_v17 = vpack.c.bf16 %v5863_v49, %v5862_v51  ;;  %v8159_v46 = vadd.f32 %v8158_v2, %v8157_v38  ;;  %v8160_v27 = vpop.f32.mrb[214].mxu1  ;;  %v12973_v49 = vld [vmem:[#allocation86_spill] sm:$0xff] }
 0x61a   : > { %v8161_v5 = vpop.f32.mrb[215].mxu1 }
 0x61b   : > { %v5786_v37 = vadd.f32 %v8159_v46, %v12967_v29  ;;  %v8162_v19 = vadd.f32 %v8161_v5, %v8160_v27  ;;  %v12974_v46 = vld [vmem:[#allocation87_spill] sm:$0xff] }
 0x61d   : > { %v5789_v52 = vadd.f32 %v8162_v19, %v12968_v47  ;;  %v5864_v28 = vmax.f32 %v5786_v37, 0.0 }
 0x61f   : > { %v5865_v59 = vmax.f32 %v5789_v52, 0.0  ;;  %v8163_v20 = vpop.f32.mrb[216].mxu1 }
 0x620   : > { %v8164_v48 = vpop.f32.mrb[217].mxu1 }
 0x621   : > { %v8165_v11 = vadd.f32 %v8164_v48, %v8163_v20  ;;  %v8166_v39 = vpop.f32.mrb[218].mxu1  ;;  %v5888_v62 = vpack.c.bf16 %v5865_v59, %v5864_v28  ;;  %v12975_v59 = vld [vmem:[#allocation90_spill] sm:$0xff] }
 0x622   : > { %v8167_v42 = vpop.f32.mrb[219].mxu1 }
 0x623   : > { %v5794_v41 = vadd.f32 %v8165_v11, %v12969_v10  ;;  %v8168_v43 = vadd.f32 %v8167_v42, %v8166_v39  ;;  %8205 = vmatprep.subr.bf16.mxu1 %v5888_v62  ;;  %v12976_v11 = vld [vmem:[#allocation91_spill] sm:$0xff] }
 0x624   : > { %8206 = vmatpush3.bf16.msra.mxu1 %v12065_v63 }
 0x625   : > { %v5797_v32 = vadd.f32 %v8168_v43, %v12970_v24  ;;  %v5866_v3 = vmax.f32 %v5794_v41, 0.0 }
 0x627   : > { %v5867_v7 = vmax.f32 %v5797_v32, 0.0  ;;  %v8169_v58 = vpop.f32.mrb[220].mxu1 }
 0x628   : > { %v8170_v60 = vpop.f32.mrb[221].mxu1 }
 0x629   : > { %v8171_v31 = vadd.f32 %v8170_v60, %v8169_v58  ;;  %v8172_v23 = vpop.f32.mrb[222].mxu1  ;;  %v5889_v50 = vpack.c.bf16 %v5867_v7, %v5866_v3  ;;  %v12977_v3 = vld [vmem:[#allocation94_spill] sm:$0xff]  ;;  %v12978_v60 = vld [vmem:[#allocation95_spill] sm:$0xff] }
 0x62a   : > { %v8173_v0 = vpop.f32.mrb[223].mxu1 }
 0x62b   : > { %v5802_v57 = vadd.f32 %v8171_v31, %v12971_v25  ;;  %v8174_v26 = vadd.f32 %v8173_v0, %v8172_v23  ;;  %8207 = vmatprep.subr.bf16.mxu1 %v5889_v50 }
 0x62c   : > { %8208 = vmatpush3.bf16.msra.mxu1 %v12069_v45 }
 0x62d   : > { %v5805_v4 = vadd.f32 %v8174_v26, %v12972_v40  ;;  %v5868_v30 = vmax.f32 %v5802_v57, 0.0 }
 0x62f   : > { %v5869_v63 = vmax.f32 %v5805_v4, 0.0  ;;  %v8175_v33 = vpop.f32.mrb[224].mxu1 }
 0x630   : > { %v8176_v54 = vpop.f32.mrb[225].mxu1 }
 0x631   : > { %v8177_v15 = vadd.f32 %v8176_v54, %v8175_v33  ;;  %v8178_v61 = vpop.f32.mrb[226].mxu1  ;;  %v5890_v12 = vpack.c.bf16 %v5869_v63, %v5868_v30 }
 0x632   : > { %v8179_v51 = vpop.f32.mrb[227].mxu1 }
 0x633   : > { %v5810_v38 = vadd.f32 %v8177_v15, %v12973_v49  ;;  %v8180_v2 = vadd.f32 %v8179_v51, %v8178_v61  ;;  %8209 = vmatprep.subr.bf16.mxu1 %v5890_v12 }
 0x634   : > { %8210 = vmatpush3.bf16.msra.mxu1 %v12073_v36 }
 0x635   : > { %v5813_v27 = vadd.f32 %v8180_v2, %v12974_v46  ;;  %v5870_v5 = vmax.f32 %v5810_v38, 0.0 }
 0x637   : > { %v5871_v45 = vmax.f32 %v5813_v27, 0.0  ;;  %v8181_v29 = vpop.f32.mrb[228].mxu1 }
 0x638   : > { %v8182_v37 = vpop.f32.mrb[229].mxu1 }
 0x639   : > { %v8183_v19 = vadd.f32 %v8182_v37, %v8181_v29  ;;  %v8184_v47 = vpop.f32.mrb[230].mxu1  ;;  %v5891_v52 = vpack.c.bf16 %v5871_v45, %v5870_v5  ;;  %v12125_v5 = vpop.permute.xlu0 %6027 }
 0x63a   : > { %v8185_v28 = vpop.f32.mrb[231].mxu1 }
 0x63b   : > { %v5818_v20 = vadd.f32 %v8183_v19, %v12975_v59  ;;  %v8186_v48 = vadd.f32 %v8185_v28, %v8184_v47  ;;  %8211 = vmatprep.subr.bf16.mxu1 %v5891_v52  ;;  %v9347_v52 = vld [vmem:[%s12673_s16 + $0x18] sm:$0xff]  }
 0x63c   : > { %8212 = vmatpush3.bf16.msra.mxu1 %v12077_v6 }
 0x63d   : > { %v5821_v39 = vadd.f32 %v8186_v48, %v12976_v11  ;;  %v5872_v62 = vmax.f32 %v5818_v20, 0.0  ;;  %v9349_v20 = vld [vmem:[%s12673_s16 + $0x28] sm:$0xff]   ;;  %v9350_v48 = vld [vmem:[%s12673_s16 + $0x30] sm:$0xff]  }
 0x63f   : > { %v5873_v36 = vmax.f32 %v5821_v39, 0.0  ;;  %v8187_v42 = vpop.f32.mrb[232].mxu1 }
 0x640   : > { %v8188_v10 = vpop.f32.mrb[233].mxu1 }
 0x641   : > { %v8189_v41 = vadd.f32 %v8188_v10, %v8187_v42  ;;  %v8190_v43 = vpop.f32.mrb[234].mxu1  ;;  %v5892_v24 = vpack.c.bf16 %v5873_v36, %v5872_v62  ;;  %v9351_v36 = vld [vmem:[%s12673_s16 + $0x38] sm:$0xff]   ;;  %v9352_v42 = vld [vmem:[%s12673_s16 + $0x40] sm:$0xff]  }
 0x642   : > { %v8191_v32 = vpop.f32.mrb[235].mxu1 }
 0x643   : > { %v5826_v7 = vadd.f32 %v8189_v41, %v12977_v3  ;;  %v8192_v58 = vadd.f32 %v8191_v32, %v8190_v43  ;;  %8213 = vmatprep.subr.bf16.mxu1 %v5892_v24  ;;  %v9353_v24 = vld [vmem:[%s12673_s16 + $0x48] sm:$0xff]   ;;  %v9354_v32 = vld [vmem:[%s12673_s16 + $0x50] sm:$0xff]  }
 0x644   : > { %8214 = vmatpush3.bf16.msra.mxu1 %v12081_v55 }
 0x645   : > { %v5829_v31 = vadd.f32 %v8192_v58, %v12978_v60  ;;  %v5874_v23 = vmax.f32 %v5826_v7, 0.0  ;;  %v9355_v58 = vld [vmem:[%s12673_s16 + $0x58] sm:$0xff]   ;;  %v9356_v60 = vld [vmem:[%s12673_s16 + $0x60] sm:$0xff]  }
 0x647   : > { %v5875_v6 = vmax.f32 %v5829_v31, 0.0  ;;  %v8193_v50 = vpop.f32.mrb[236].mxu1 }
 0x648   : > { %v8194_v0 = vpop.f32.mrb[237].mxu1 }
 0x649   : > { %v8195_v25 = vadd.f32 %v8194_v0, %v8193_v50  ;;  %v8196_v57 = vpop.f32.mrb[238].mxu1  ;;  %v5893_v26 = vpack.c.bf16 %v5875_v6, %v5874_v23  ;;  %v9357_v50 = vld [vmem:[%s12673_s16 + $0x68] sm:$0xff]   ;;  %v9358_v0 = vld [vmem:[%s12673_s16 + $0x70] sm:$0xff]  }
 0x64a   : > { %v8197_v40 = vpop.f32.mrb[239].mxu1 }
 0x64b   : > { %v5834_v4 = vadd.f32 %v8195_v25, %v12028_v35  ;;  %v8198_v30 = vadd.f32 %v8197_v40, %v8196_v57  ;;  %8215 = vmatprep.subr.bf16.mxu1 %v5893_v26  ;;  %v9359_v40 = vld [vmem:[%s12673_s16 + $0x78] sm:$0xff]  }
 0x64c   : > { %8216 = vmatpush3.bf16.msra.mxu1 %v12085_v8 }
 0x64d   : > { %v5837_v63 = vadd.f32 %v8198_v30, %v12030_v1  ;;  %v5876_v33 = vmax.f32 %v5834_v4, 0.0  ;;  %v9341_v1 = vld [vmem:[%s12955_s14] ss:$8 sps:$4 sm:$0xff]  }
 0x64f   : > { %v5877_v55 = vmax.f32 %v5837_v63, 0.0  ;;  %v8199_v54 = vpop.f32.mrb[240].mxu1 }
 0x650   : > { %v8200_v15 = vpop.f32.mrb[241].mxu1 }
 0x651   : > { %v8201_v61 = vadd.f32 %v8200_v15, %v8199_v54  ;;  %v8202_v12 = vpop.f32.mrb[242].mxu1  ;;  %v5894_v51 = vpack.c.bf16 %v5877_v55, %v5876_v33 }
 0x652   : > { %v8203_v49 = vpop.f32.mrb[243].mxu1 }
 0x653   : > { %v5842_v38 = vadd.f32 %v8201_v61, %v12036_v44  ;;  %v8204_v2 = vadd.f32 %v8203_v49, %v8202_v12  ;;  %8217 = vmatprep.subr.bf16.mxu1 %v5894_v51  ;;  %v9344_v44 = vld [vmem:[%s12673_s16] sm:$0xff]  }
 0x654   : > { %8218 = vmatpush3.bf16.msra.mxu1 %v12089_v18  ;;  %v12128_v18 = vpop.permute.xlu1 %6032 }
 0x655   : > { %v5845_v35 = vadd.f32 %v8204_v2, %v12038_v9  ;;  %v5878_v46 = vmax.f32 %v5842_v38, 0.0  ;;  %v12132_v9 = vpop.permute.xlu0 %6037 }
 0x657   : > { %v5879_v8 = vmax.f32 %v5845_v35, 0.0 }
 0x659   : > { %v5895_v27 = vpack.c.bf16 %v5879_v8, %v5878_v46  ;;  %v12139_v45 = vpop.permute.xlu0 %6047 }
 0x65b   : > { %8219 = vmatprep.subr.bf16.mxu1 %v5895_v27 }
 0x65c   : > { %8220 = vmatpush3.bf16.msra.mxu1 %v12093_v17  ;;  %v12135_v17 = vpop.permute.xlu1 %6042 }
 0x65d   : > { %8339 = vmatprep.subr.bf16.mxu1 %v12044_v21 }
 0x65f   : > { %5953 = vmatmul.mubr.bf16.vlgmr.msra.gmra.mrb[244].mxu1 %v9341_v1 }
 0x660   : > { %8340 = vmatpush3.bf16.msra.mxu1 %v12044_v21  ;;  %8355 = vmatprep.mubr.bf16.mxu1 %v9344_v44  ;;  %v12142_v29 = vpop.permute.xlu1 %6052  ;;  %v12146_v21 = vpop.permute.xlu0 %6057 }
 0x661   : > { %8341 = vmatprep.subr.bf16.mxu1 %v12046_v34 }
 0x664   : > { %8342 = vmatpush3.bf16.msra.mxu1 %v12046_v34  ;;  %v12149_v34 = vpop.permute.xlu1 %6062 }
 0x665   : > { %8343 = vmatprep.subr.bf16.mxu1 %v12048_v14 }
 0x668   : > { %8344 = vmatpush3.bf16.msra.mxu1 %v12048_v14  ;;  %v12153_v14 = vpop.permute.xlu0 %6067  ;;  %v12156_v37 = vpop.permute.xlu1 %6072 }
 0x669   : > { %8345 = vmatprep.subr.bf16.mxu1 %v12050_v16 }
 0x66c   : > { %8346 = vmatpush3.bf16.msra.mxu1 %v12050_v16  ;;  %v12160_v16 = vpop.permute.xlu0 %6077  ;;  %v12169_v19 = vpop.permute.xlu1 %6082 }
 0x66d   : > { %8347 = vmatprep.subr.bf16.mxu1 %v12052_v22 }
 0x670   : > { %8348 = vmatpush3.bf16.msra.mxu1 %v12052_v22  ;;  %v9345_v22 = vld [vmem:[%s12673_s16 + $0x8] sm:$0xff]   ;;  %v12171_v47 = vpop.permute.xlu0 %6087 }
 0x671   : > { %8349 = vmatprep.subr.bf16.mxu1 %v12054_v53 }
 0x674   : > { %8350 = vmatpush3.bf16.msra.mxu1 %v12054_v53  ;;  %v9346_v53 = vld [vmem:[%s12673_s16 + $0x10] sm:$0xff]   ;;  %v12181_v28 = vpop.permute.xlu0 %6097 }
 0x675   : > { %8351 = vmatprep.subr.bf16.mxu1 %v12056_v56 }
 0x678   : > { %8352 = vmatpush3.bf16.msra.mxu1 %v12056_v56  ;;  %v12173_v56 = vpop.permute.xlu1 %6092  ;;  %v12191_v11 = vpop.permute.xlu0 %6524 }
 0x679   : > { %8353 = vmatprep.subr.bf16.mxu1 %v12058_v13 }
 0x67c   : > { %8354 = vmatpush3.bf16.msra.mxu1 %v12058_v13  ;;  %v9348_v13 = vld [vmem:[%s12673_s16 + $0x20] sm:$0xff]   ;;  %v12183_v59 = vpop.permute.xlu1 %6102  ;;  %v12195_v62 = vpop.permute.xlu0 %6534 }
 0x67f   : > { %8356 = vmatmul.mubr.bf16.vlgmr.msra.gmra.mrb[248].mxu1 %v9345_v22 }
 0x680   : > { %8359 = vmatprep.mubr.bf16.mxu1 %v9346_v53  ;;  %v12193_v39 = vpop.permute.xlu1 %6529  ;;  %v12205_v41 = vpop.permute.xlu0 %6544 }
 0x684   : > { %v12203_v10 = vpop.permute.xlu1 %6539  ;;  %v12215_v3 = vpop.permute.xlu0 %6554 }
 0x687   : > { %8360 = vmatmul.mubr.bf16.gmra.mrb[252].mxu1 %v9347_v52 }
 0x688   : > { %8363 = vmatprep.mubr.bf16.mxu1 %v9348_v13  ;;  %v12207_v43 = vpop.permute.xlu1 %6549  ;;  %v12225_v31 = vpop.permute.xlu0 %6564 }
 0x68c   : > { %v12217_v7 = vpop.permute.xlu1 %6559  ;;  %v12229_v6 = vpop.permute.xlu0 %6574 }
 0x68f   : > { %8364 = vmatmul.mubr.bf16.gmra.mrb[0].mxu1 %v9349_v20  ;;  %v9360_v20 = vld [vmem:[%s12675_s18] sm:$0xff]  }
 0x690   : > { %8367 = vmatprep.mubr.bf16.mxu1 %v9350_v48  ;;  %v12227_v23 = vpop.permute.xlu1 %6569  ;;  %v12239_v57 = vpop.permute.xlu0 %6584 }
 0x694   : > { %v12237_v25 = vpop.permute.xlu1 %6579  ;;  %v12246_v4 = vpop.permute.xlu0 %6594 }
 0x697   : > { %8368 = vmatmul.mubr.bf16.gmra.mrb[4].mxu1 %v9351_v36 }
 0x698   : > { %8371 = vmatprep.mubr.bf16.mxu1 %v9352_v42  ;;  %v12241_v26 = vpop.permute.xlu1 %6589  ;;  %v12250_v63 = vpop.permute.xlu0 %6107 }
 0x699   : > { %12979 = vst [vmem:[#allocation61_spill] sm:$0xff] %v12241_v26 }
 0x69c   : > { %v12248_v30 = vpop.permute.xlu1 %6599  ;;  %v12254_v55 = vpop.permute.xlu0 %6117 }
 0x69f   : > { %8372 = vmatmul.mubr.bf16.gmra.mrb[8].mxu1 %v9353_v24 }
 0x6a0   : > { %8375 = vmatprep.mubr.bf16.mxu1 %v9354_v32  ;;  %v12252_v33 = vpop.permute.xlu1 %6112  ;;  %v12258_v15 = vpop.permute.xlu0 %6127 }
 0x6a4   : > { %v12256_v54 = vpop.permute.xlu1 %6122  ;;  %v12262_v12 = vpop.permute.xlu0 %6137 }
 0x6a7   : > { %8376 = vmatmul.mubr.bf16.gmra.mrb[12].mxu1 %v9355_v58 }
 0x6a8   : > { %8379 = vmatprep.mubr.bf16.mxu1 %v9356_v60  ;;  %v12260_v61 = vpop.permute.xlu1 %6132  ;;  %v12266_v49 = vpop.permute.xlu0 %6147 }
 0x6ac   : > { %v12264_v51 = vpop.permute.xlu1 %6142  ;;  %v12270_v2 = vpop.permute.xlu0 %6157 }
 0x6af   : > { %8380 = vmatmul.mubr.bf16.gmra.mrb[16].mxu1 %v9357_v50 }
 0x6b0   : > { %8383 = vmatprep.mubr.bf16.mxu1 %v9358_v0  ;;  %v12268_v38 = vpop.permute.xlu1 %6152  ;;  %v12274_v46 = vpop.permute.xlu0 %6167 }
 0x6b4   : > { %v12272_v35 = vpop.permute.xlu1 %6162  ;;  %v12278_v27 = vpop.permute.xlu0 %6177 }
 0x6b7   : > { %8384 = vmatmul.mubr.bf16.gmra.mrb[20].mxu1 %v9359_v40 }
 0x6b8   : > { %v12276_v8 = vpop.permute.xlu1 %6172  ;;  %v12282_v44 = vpop.permute.xlu0 %6965  ;;  %8403 = vmatprep.mubr.bf16.mxu1 %v9360_v20 }
 0x6b9   : > { %12980 = vst [vmem:[#allocation98_spill] sm:$0xff] %v12282_v44 }
 0x6bc   : > { %v12280_v1 = vpop.permute.xlu1 %6182  ;;  %v12286_v53 = vpop.permute.xlu0 %6975 }
 0x6bd   : > { %12982 = vst [vmem:[#allocation64_spill] sm:$0xff] %v12286_v53 }
 0x6c0   : > { %v12284_v22 = vpop.permute.xlu1 %6970  ;;  %v12290_v13 = vpop.permute.xlu0 %7110 }
 0x6c1   : > { %12981 = vst [vmem:[#allocation122_spill] sm:$0xff] %v12284_v22  ;;  %12984 = vst [vmem:[#allocation65_spill] sm:$0xff] %v12290_v13 }
 0x6c4   : > { %v12288_v52 = vpop.permute.xlu1 %6980  ;;  %v12297_v36 = vpop.permute.xlu0 %6985 }
 0x6c5   : > { %12983 = vst [vmem:[#allocation99_spill] sm:$0xff] %v12288_v52  ;;  %12986 = vst [vmem:[#allocation121_spill] sm:$0xff] %v12297_v36 }
 0x6c8   : > { %v12295_v48 = vpop.permute.xlu1 %7115  ;;  %v12301_v24 = vpop.permute.xlu0 %6990 }
 0x6c9   : > { %12985 = vst [vmem:[#allocation100_spill] sm:$0xff] %v12295_v48  ;;  %12988 = vst [vmem:[#allocation68_spill] sm:$0xff] %v12301_v24 }
 0x6cc   : > { %v12299_v42 = vpop.permute.xlu1 %7120  ;;  %v12305_v58 = vpop.permute.xlu0 %6995 }
 0x6cd   : > { %12987 = vst [vmem:[#allocation123_spill] sm:$0xff] %v12299_v42  ;;  %12990 = vst [vmem:[#allocation69_spill] sm:$0xff] %v12305_v58 }
 0x6d0   : > { %v12303_v32 = vpop.permute.xlu1 %7125  ;;  %v12309_v50 = vpop.permute.xlu0 %7000 }
 0x6d1   : > { %12989 = vst [vmem:[#allocation101_spill] sm:$0xff] %v12303_v32  ;;  %12992 = vst [vmem:[#allocation72_spill] sm:$0xff] %v12309_v50 }
 0x6d4   : > { %v12307_v60 = vpop.permute.xlu1 %7130  ;;  %v12313_v40 = vpop.permute.xlu0 %6789 }
 0x6d5   : > { %12991 = vst [vmem:[#allocation102_spill] sm:$0xff] %v12307_v60  ;;  %12994 = vst [vmem:[#allocation73_spill] sm:$0xff] %v12313_v40 }
 0x6d8   : > { %v12311_v0 = vpop.permute.xlu1 %7135  ;;  %v12317_v36 = vpop.permute.xlu0 %7140 }
 0x6d9   : > { %12993 = vst [vmem:[#allocation103_spill] sm:$0xff] %v12311_v0  ;;  %12996 = vst [vmem:[#allocation124_spill] sm:$0xff] %v12317_v36 }
 0x6dc   : > { %v12315_v20 = vpop.permute.xlu1 %6794  ;;  %v12321_v48 = vpop.permute.xlu0 %7145 }
 0x6dd   : > { %12995 = vst [vmem:[#allocation104_spill] sm:$0xff] %v12315_v20  ;;  %12998 = vst [vmem:[#allocation51_spill] sm:$0xff] %v12321_v48 }
 0x6e0   : > { %v12319_v42 = vpop.permute.xlu1 %6799  ;;  %v12325_v32 = vpop.permute.xlu0 %6809 }
 0x6e1   : > { %12997 = vst [vmem:[#allocation125_spill] sm:$0xff] %v12319_v42  ;;  %13000 = vst [vmem:[#allocation52_spill] sm:$0xff] %v12325_v32 }
 0x6e4   : > { %v12323_v24 = vpop.permute.xlu1 %6804  ;;  %v12329_v60 = vpop.permute.xlu0 %6819 }
 0x6e5   : > { %12999 = vst [vmem:[#allocation105_spill] sm:$0xff] %v12323_v24  ;;  %13002 = vst [vmem:[#allocation53_spill] sm:$0xff] %v12329_v60 }
 0x6e8   : > { %v12327_v58 = vpop.permute.xlu1 %6814  ;;  %v5903_v52 = vpop.permute.xlu0 %5902 }
 0x6e9   : > { %13001 = vst [vmem:[#allocation106_spill] sm:$0xff] %v12327_v58 }
 0x6ec   : > { %v12334_v0 = vpop.permute.xlu1 %6824 }
 0x6ed   : > { %13003 = vst [vmem:[#allocation107_spill] sm:$0xff] %v12334_v0 }
 0x6f0   : > { %v5908_v24 = vpop.permute.xlu1 %5907 }
 0x732   : > { %v8221_v50 = vpop.f32.mrb[244].mxu1 }
 0x733   : > { %v8222_v36 = vpop.f32.mrb[245].mxu1 }
 0x734   : > { %v8223_v13 = vadd.f32 %v8222_v36, %v8221_v50  ;;  %v8224_v22 = vpop.f32.mrb[246].mxu1 }
 0x735   : > { %v8225_v48 = vpop.f32.mrb[247].mxu1 }
 0x736   : > { %v5955_v44 = vadd.f32 %v8223_v13, %v5903_v52  ;;  %v8226_v53 = vadd.f32 %v8225_v48, %v8224_v22 }
 0x738   : > { %7184 = vst [vmem:[%s12337_s5] sm:$0xff] %v5955_v44  ;;  %v5958_v58 = vadd.f32 %v8226_v53, %v5908_v24 }
 0x73a   : > { %7185 = vst [vmem:[%s12337_s5 + $0x8] sm:$0xff] %v5958_v58 }
 0x752   : > { %v8357_v60 = vpop.f32.mrb[248].mxu1 }
 0x753   : > { %v6324_v0 = vadd.f32 %v8357_v60, %v12132_v9  ;;  %v6315_v32 = vpop.f32.mrb[249].mxu1 }
 0x754   : > { %v6316_v20 = vadd.f32 %v6315_v32, %v12125_v5  ;;  %v8358_v36 = vpop.f32.mrb[250].mxu1 }
 0x755   : > { %v6327_v50 = vadd.f32 %v8358_v36, %v12135_v17  ;;  %v6318_v42 = vpop.f32.mrb[251].mxu1  ;;  %v6444_v52 = vmax.f32 %v6324_v0, 0.0 }
 0x756   : > { %v6319_v22 = vadd.f32 %v6318_v42, %v12128_v18  ;;  %v6442_v48 = vmax.f32 %v6316_v20, 0.0 }
 0x757   : > { %v6445_v13 = vmax.f32 %v6327_v50, 0.0 }
 0x758   : > { %v6443_v40 = vmax.f32 %v6319_v22, 0.0 }
 0x759   : > { %v6475_v26 = vpack.c.bf16 %v6445_v13, %v6444_v52 }
 0x75a   : > { %v6474_v44 = vpack.c.bf16 %v6443_v40, %v6442_v48  ;;  %v8361_v53 = vpop.f32.mrb[252].mxu1 }
 0x75b   : > { %v6340_v24 = vadd.f32 %v8361_v53, %v12146_v21  ;;  %v6331_v58 = vpop.f32.mrb[253].mxu1 }
 0x75c   : > { %v6332_v9 = vadd.f32 %v6331_v58, %v12139_v45  ;;  %v8362_v60 = vpop.f32.mrb[254].mxu1  ;;  %8387 = vmatprep.subr.bf16.mxu1 %v6474_v44 }
 0x75d   : > { %v6343_v5 = vadd.f32 %v8362_v60, %v12149_v34  ;;  %v6334_v17 = vpop.f32.mrb[255].mxu1  ;;  %8388 = vmatpush3.bf16.msra.mxu1 %v6474_v44  ;;  %v6448_v42 = vmax.f32 %v6340_v24, 0.0 }
 0x75e   : > { %v6335_v18 = vadd.f32 %v6334_v17, %v12142_v29  ;;  %8389 = vmatprep.subr.bf16.mxu1 %v6475_v26  ;;  %v6446_v0 = vmax.f32 %v6332_v9, 0.0 }
 0x75f   : > { %v6449_v32 = vmax.f32 %v6343_v5, 0.0 }
 0x760   : > { %v6447_v20 = vmax.f32 %v6335_v18, 0.0 }
 0x761   : > { %v6477_v40 = vpack.c.bf16 %v6449_v32, %v6448_v42  ;;  %8390 = vmatpush3.bf16.msra.mxu1 %v6475_v26 }
 0x762   : > { %v6476_v36 = vpack.c.bf16 %v6447_v20, %v6446_v0  ;;  %v8365_v21 = vpop.f32.mrb[0].mxu1 }
 0x763   : > { %v6356_v50 = vadd.f32 %v8365_v21, %v12160_v16  ;;  %v6347_v45 = vpop.f32.mrb[1].mxu1 }
 0x764   : > { %v6348_v22 = vadd.f32 %v6347_v45, %v12153_v14  ;;  %v8366_v52 = vpop.f32.mrb[2].mxu1  ;;  %8391 = vmatprep.subr.bf16.mxu1 %v6476_v36 }
 0x765   : > { %v6359_v34 = vadd.f32 %v8366_v52, %v12169_v19  ;;  %v6350_v13 = vpop.f32.mrb[3].mxu1  ;;  %8392 = vmatpush3.bf16.msra.mxu1 %v6476_v36  ;;  %v6452_v48 = vmax.f32 %v6356_v50, 0.0 }
 0x766   : > { %v6351_v29 = vadd.f32 %v6350_v13, %v12156_v37  ;;  %8393 = vmatprep.subr.bf16.mxu1 %v6477_v40  ;;  %v6450_v53 = vmax.f32 %v6348_v22, 0.0 }
 0x767   : > { %v6453_v44 = vmax.f32 %v6359_v34, 0.0 }
 0x768   : > { %v6451_v26 = vmax.f32 %v6351_v29, 0.0 }
 0x769   : > { %v6479_v24 = vpack.c.bf16 %v6453_v44, %v6452_v48  ;;  %8394 = vmatpush3.bf16.msra.mxu1 %v6477_v40 }
 0x76a   : > { %v6478_v58 = vpack.c.bf16 %v6451_v26, %v6450_v53  ;;  %v8369_v16 = vpop.f32.mrb[4].mxu1 }
 0x76b   : > { %v6372_v9 = vadd.f32 %v8369_v16, %v12181_v28  ;;  %v6363_v14 = vpop.f32.mrb[5].mxu1 }
 0x76c   : > { %v6364_v60 = vadd.f32 %v6363_v14, %v12171_v47  ;;  %v8370_v5 = vpop.f32.mrb[6].mxu1  ;;  %8395 = vmatprep.subr.bf16.mxu1 %v6478_v58 }
 0x76d   : > { %v6375_v19 = vadd.f32 %v8370_v5, %v12183_v59  ;;  %v6366_v17 = vpop.f32.mrb[7].mxu1  ;;  %8396 = vmatpush3.bf16.msra.mxu1 %v6478_v58  ;;  %v6456_v18 = vmax.f32 %v6372_v9, 0.0 }
 0x76e   : > { %v6367_v37 = vadd.f32 %v6366_v17, %v12173_v56  ;;  %8397 = vmatprep.subr.bf16.mxu1 %v6479_v24  ;;  %v6454_v32 = vmax.f32 %v6364_v60, 0.0 }
 0x76f   : > { %v6457_v42 = vmax.f32 %v6375_v19, 0.0  ;;  %v9363_v19 = vld [vmem:[%s12675_s18 + $0x18] sm:$0xff]  }
 0x770   : > { %v6455_v0 = vmax.f32 %v6367_v37, 0.0 }
 0x771   : > { %v6481_v20 = vpack.c.bf16 %v6457_v42, %v6456_v18  ;;  %8398 = vmatpush3.bf16.msra.mxu1 %v6479_v24 }
 0x772   : > { %v6480_v40 = vpack.c.bf16 %v6455_v0, %v6454_v32  ;;  %v8373_v28 = vpop.f32.mrb[8].mxu1 }
 0x773   : > { %v6388_v36 = vadd.f32 %v8373_v28, %v12254_v55  ;;  %v6379_v47 = vpop.f32.mrb[9].mxu1  ;;  %v9361_v55 = vld [vmem:[%s12675_s18 + $0x8] sm:$0xff]  }
 0x774   : > { %v6380_v21 = vadd.f32 %v6379_v47, %v12250_v63  ;;  %v8374_v50 = vpop.f32.mrb[10].mxu1  ;;  %8399 = vmatprep.subr.bf16.mxu1 %v6480_v40  ;;  %v9362_v63 = vld [vmem:[%s12675_s18 + $0x10] sm:$0xff]  }
 0x775   : > { %v6391_v59 = vadd.f32 %v8374_v50, %v12256_v54  ;;  %v6382_v45 = vpop.f32.mrb[11].mxu1  ;;  %8400 = vmatpush3.bf16.msra.mxu1 %v6480_v40  ;;  %v6460_v22 = vmax.f32 %v6388_v36, 0.0 }
 0x776   : > { %v6383_v56 = vadd.f32 %v6382_v45, %v12252_v33  ;;  %8401 = vmatprep.subr.bf16.mxu1 %v6481_v20  ;;  %v6458_v34 = vmax.f32 %v6380_v21, 0.0  ;;  %v9365_v21 = vld [vmem:[%s12675_s18 + $0x28] sm:$0xff]  }
 0x777   : > { %v6461_v52 = vmax.f32 %v6391_v59, 0.0 }
 0x778   : > { %v6459_v13 = vmax.f32 %v6383_v56, 0.0 }
 0x779   : > { %v12364_v29 = vpack.c.bf16 %v6461_v52, %v6460_v22  ;;  %8402 = vmatpush3.bf16.msra.mxu1 %v6481_v20 }
 0x77a   : > { %v12369_v54 = vpack.c.bf16 %v6459_v13, %v6458_v34  ;;  %v8377_v48 = vpop.f32.mrb[12].mxu1 }
 0x77b   : > { %v6404_v33 = vadd.f32 %v8377_v48, %v12262_v12  ;;  %v6395_v44 = vpop.f32.mrb[13].mxu1 }
 0x77c   : > { %v6396_v53 = vadd.f32 %v6395_v44, %v12258_v15  ;;  %v8378_v26 = vpop.f32.mrb[14].mxu1  ;;  %8404 = vmatmul.mubr.bf16.vlgmr.msra.gmra.mrb[24].mxu1 %v9361_v55  ;;  %v9364_v15 = vld [vmem:[%s12675_s18 + $0x20] sm:$0xff]  }
 0x77d   : > { %v6407_v24 = vadd.f32 %v8378_v26, %v12264_v51  ;;  %v6398_v58 = vpop.f32.mrb[15].mxu1  ;;  %8407 = vmatprep.mubr.bf16.mxu1 %v9362_v63  ;;  %v6464_v9 = vmax.f32 %v6404_v33, 0.0  ;;  %v9367_v33 = vld [vmem:[%s12675_s18 + $0x38] sm:$0xff]  }
 0x77e   : > { %v6399_v16 = vadd.f32 %v6398_v58, %v12260_v61  ;;  %v6462_v60 = vmax.f32 %v6396_v53, 0.0 }
 0x77f   : > { %v6465_v14 = vmax.f32 %v6407_v24, 0.0 }
 0x780   : > { %v6463_v5 = vmax.f32 %v6399_v16, 0.0 }
 0x781   : > { %v12378_v12 = vpack.c.bf16 %v6465_v14, %v6464_v9 }
 0x782   : > { %v12383_v17 = vpack.c.bf16 %v6463_v5, %v6462_v60  ;;  %v8381_v51 = vpop.f32.mrb[16].mxu1 }
 0x783   : > { %v6420_v37 = vadd.f32 %v8381_v51, %v12270_v2  ;;  %v6411_v61 = vpop.f32.mrb[17].mxu1 }
 0x784   : > { %v6412_v18 = vadd.f32 %v6411_v61, %v12266_v49  ;;  %v8382_v42 = vpop.f32.mrb[18].mxu1  ;;  %8408 = vmatmul.mubr.bf16.gmra.mrb[28].mxu1 %v9363_v19  ;;  %v9366_v49 = vld [vmem:[%s12675_s18 + $0x30] sm:$0xff]  }
 0x785   : > { %v6423_v32 = vadd.f32 %v8382_v42, %v12272_v35  ;;  %v6414_v0 = vpop.f32.mrb[19].mxu1  ;;  %8411 = vmatprep.mubr.bf16.mxu1 %v9364_v15  ;;  %v6468_v40 = vmax.f32 %v6420_v37, 0.0 }
 0x786   : > { %v6415_v20 = vadd.f32 %v6414_v0, %v12268_v38  ;;  %v6466_v36 = vmax.f32 %v6412_v18, 0.0 }
 0x787   : > { %v6469_v28 = vmax.f32 %v6423_v32, 0.0 }
 0x788   : > { %v6467_v47 = vmax.f32 %v6415_v20, 0.0 }
 0x789   : > { %v12392_v2 = vpack.c.bf16 %v6469_v28, %v6468_v40 }
 0x78a   : > { %v12397_v50 = vpack.c.bf16 %v6467_v47, %v6466_v36  ;;  %v8385_v35 = vpop.f32.mrb[20].mxu1 }
 0x78b   : > { %v6436_v59 = vadd.f32 %v8385_v35, %v12278_v27  ;;  %v6427_v38 = vpop.f32.mrb[21].mxu1 }
 0x78c   : > { %v6428_v45 = vadd.f32 %v6427_v38, %v12274_v46  ;;  %v8386_v56 = vpop.f32.mrb[22].mxu1  ;;  %8412 = vmatmul.mubr.bf16.gmra.mrb[32].mxu1 %v9365_v21  ;;  %v9368_v46 = vld [vmem:[%s12677_s20] sm:$0xff]  }
 0x78d   : > { %v6439_v22 = vadd.f32 %v8386_v56, %v12280_v1  ;;  %v6430_v52 = vpop.f32.mrb[23].mxu1  ;;  %8415 = vmatprep.mubr.bf16.mxu1 %v9366_v49  ;;  %v6472_v13 = vmax.f32 %v6436_v59, 0.0 }
 0x78e   : > { %v6431_v34 = vadd.f32 %v6430_v52, %v12276_v8  ;;  %v6470_v63 = vmax.f32 %v6428_v45, 0.0 }
 0x78f   : > { %v6473_v55 = vmax.f32 %v6439_v22, 0.0 }
 0x790   : > { %v6471_v48 = vmax.f32 %v6431_v34, 0.0 }
 0x791   : > { %v12406_v27 = vpack.c.bf16 %v6473_v55, %v6472_v13 }
 0x792   : > { %v12408_v44 = vpack.c.bf16 %v6471_v48, %v6470_v63 }
 0x794   : > { %8416 = vmatmul.mubr.bf16.gmra.mrb[36].mxu1 %v9367_v33 }
 0x795   : > { %8435 = vmatprep.mubr.bf16.mxu1 %v9368_v46 }
 0x84f   : > { %v8405_v1 = vpop.f32.mrb[24].mxu1 }
 0x850   : > { %v6693_v8 = vadd.f32 %v8405_v1, %v12195_v62  ;;  %v6684_v53 = vpop.f32.mrb[25].mxu1 }
 0x851   : > { %v6685_v26 = vadd.f32 %v6684_v53, %v12191_v11  ;;  %v8406_v24 = vpop.f32.mrb[26].mxu1 }
 0x852   : > { %v6696_v58 = vadd.f32 %v8406_v24, %v12203_v10  ;;  %v6687_v16 = vpop.f32.mrb[27].mxu1  ;;  %v6749_v14 = vmax.f32 %v6693_v8, 0.0  ;;  %v9372_v24 = vld [vmem:[%s12679_s22] sm:$0xff]  }
 0x853   : > { %v6688_v9 = vadd.f32 %v6687_v16, %v12193_v39  ;;  %v6747_v5 = vmax.f32 %v6685_v26, 0.0 }
 0x854   : > { %v6750_v60 = vmax.f32 %v6696_v58, 0.0 }
 0x855   : > { %v6748_v19 = vmax.f32 %v6688_v9, 0.0  ;;  %v13006_v9 = vld [vmem:[#allocation125_spill] sm:$0xff] }
 0x856   : > { %v6764_v15 = vpack.c.bf16 %v6750_v60, %v6749_v14  ;;  %v13007_v14 = vld [vmem:[#allocation104_spill] sm:$0xff] }
 0x857   : > { %v6763_v51 = vpack.c.bf16 %v6748_v19, %v6747_v5  ;;  %v8409_v37 = vpop.f32.mrb[28].mxu1  ;;  %v13008_v19 = vld [vmem:[#allocation105_spill] sm:$0xff] }
 0x858   : > { %v6709_v61 = vadd.f32 %v8409_v37, %v12215_v3  ;;  %v6700_v18 = vpop.f32.mrb[29].mxu1 }
 0x859   : > { %v6701_v62 = vadd.f32 %v6700_v18, %v12205_v41  ;;  %v8410_v42 = vpop.f32.mrb[30].mxu1  ;;  %8419 = vmatprep.subr.bf16.mxu1 %v6763_v51 }
 0x85a   : > { %v6712_v11 = vadd.f32 %v8410_v42, %v12217_v7  ;;  %v6703_v10 = vpop.f32.mrb[31].mxu1  ;;  %8420 = vmatpush3.bf16.msra.mxu1 %v6763_v51  ;;  %v6753_v32 = vmax.f32 %v6709_v61, 0.0 }
 0x85b   : > { %v6704_v39 = vadd.f32 %v6703_v10, %v12207_v43  ;;  %8421 = vmatprep.subr.bf16.mxu1 %v6764_v15  ;;  %v6751_v20 = vmax.f32 %v6701_v62, 0.0  ;;  %v13009_v10 = vld [vmem:[#allocation52_spill] sm:$0xff] }
 0x85c   : > { %v6754_v0 = vmax.f32 %v6712_v11, 0.0 }
 0x85d   : > { %v6752_v40 = vmax.f32 %v6704_v39, 0.0 }
 0x85e   : > { %v6766_v28 = vpack.c.bf16 %v6754_v0, %v6753_v32  ;;  %8422 = vmatpush3.bf16.msra.mxu1 %v6764_v15 }
 0x85f   : > { %v6765_v36 = vpack.c.bf16 %v6752_v40, %v6751_v20  ;;  %v8413_v3 = vpop.f32.mrb[32].mxu1  ;;  %v13010_v20 = vld [vmem:[#allocation53_spill] sm:$0xff] }
 0x860   : > { %v6725_v47 = vadd.f32 %v8413_v3, %v12229_v6  ;;  %v6716_v41 = vpop.f32.mrb[33].mxu1  ;;  %v13011_v3 = vld [vmem:[#allocation106_spill] sm:$0xff] }
 0x861   : > { %v6717_v21 = vadd.f32 %v6716_v41, %v12225_v31  ;;  %v8414_v49 = vpop.f32.mrb[34].mxu1  ;;  %8423 = vmatprep.subr.bf16.mxu1 %v6765_v36 }
 0x862   : > { %v6728_v7 = vadd.f32 %v8414_v49, %v12237_v25  ;;  %v6719_v35 = vpop.f32.mrb[35].mxu1  ;;  %8424 = vmatpush3.bf16.msra.mxu1 %v6765_v36  ;;  %v6757_v59 = vmax.f32 %v6725_v47, 0.0 }
 0x863   : > { %v6720_v43 = vadd.f32 %v6719_v35, %v12227_v23  ;;  %8425 = vmatprep.subr.bf16.mxu1 %v6766_v28  ;;  %v6755_v45 = vmax.f32 %v6717_v21, 0.0  ;;  %v13004_v23 = vld [vmem:[#allocation61_spill] sm:$0xff]  ;;  %v13012_v21 = vld [vmem:[#allocation107_spill] sm:$0xff] }
 0x864   : > { %v6758_v38 = vmax.f32 %v6728_v7, 0.0 }
 0x865   : > { %v6756_v56 = vmax.f32 %v6720_v43, 0.0 }
 0x866   : > { %v6768_v22 = vpack.c.bf16 %v6758_v38, %v6757_v59  ;;  %8426 = vmatpush3.bf16.msra.mxu1 %v6766_v28 }
 0x867   : > { %v6767_v52 = vpack.c.bf16 %v6756_v56, %v6755_v45  ;;  %v8417_v6 = vpop.f32.mrb[36].mxu1 }
 0x868   : > { %v6741_v34 = vadd.f32 %v8417_v6, %v12246_v4  ;;  %v6732_v31 = vpop.f32.mrb[37].mxu1  ;;  %v9370_v4 = vld [vmem:[%s12677_s20 + $0x10] sm:$0xff]  }
 0x869   : > { %v6733_v13 = vadd.f32 %v6732_v31, %v12239_v57  ;;  %v8418_v55 = vpop.f32.mrb[38].mxu1  ;;  %8427 = vmatprep.subr.bf16.mxu1 %v6767_v52  ;;  %v9369_v57 = vld [vmem:[%s12677_s20 + $0x8] sm:$0xff]  }
 0x86a   : > { %v6744_v25 = vadd.f32 %v8418_v55, %v12248_v30  ;;  %v6735_v63 = vpop.f32.mrb[39].mxu1  ;;  %8428 = vmatpush3.bf16.msra.mxu1 %v6767_v52  ;;  %v6761_v33 = vmax.f32 %v6741_v34, 0.0  ;;  %v9371_v30 = vld [vmem:[%s12677_s20 + $0x18] sm:$0xff]  }
 0x86b   : > { %v6736_v48 = vadd.f32 %v6735_v63, %v13004_v23  ;;  %8429 = vmatprep.subr.bf16.mxu1 %v6768_v22  ;;  %v6759_v1 = vmax.f32 %v6733_v13, 0.0  ;;  %v13013_v63 = vld [vmem:[#allocation64_spill] sm:$0xff] }
 0x86c   : > { %v6762_v46 = vmax.f32 %v6744_v25, 0.0 }
 0x86d   : > { %v6760_v8 = vmax.f32 %v6736_v48, 0.0  ;;  %v13014_v48 = vld [vmem:[#allocation98_spill] sm:$0xff] }
 0x86e   : > { %v6770_v53 = vpack.c.bf16 %v6762_v46, %v6761_v33  ;;  %8430 = vmatpush3.bf16.msra.mxu1 %v6768_v22 }
 0x86f   : > { %v6769_v26 = vpack.c.bf16 %v6760_v8, %v6759_v1 }
 0x871   : > { %8431 = vmatprep.subr.bf16.mxu1 %v6769_v26 }
 0x872   : > { %8432 = vmatpush3.bf16.msra.mxu1 %v6769_v26 }
 0x873   : > { %8433 = vmatprep.subr.bf16.mxu1 %v6770_v53 }
 0x876   : > { %8434 = vmatpush3.bf16.msra.mxu1 %v6770_v53  ;;  %v13015_v53 = vld [vmem:[#allocation99_spill] sm:$0xff] }
 0x877   : > { %8443 = vmatprep.subr.bf16.mxu1 %v12369_v54 }
 0x879   : > { %8436 = vmatmul.mubr.bf16.vlgmr.msra.gmra.mrb[40].mxu1 %v9369_v57  ;;  %v13016_v57 = vld [vmem:[#allocation122_spill] sm:$0xff] }
 0x87a   : > { %8444 = vmatpush3.bf16.msra.mxu1 %v12369_v54  ;;  %8439 = vmatprep.mubr.bf16.mxu1 %v9370_v4  ;;  %v9374_v54 = vld [vmem:[%s12679_s22 + $0x10] sm:$0xff]  }
 0x87b   : > { %8445 = vmatprep.subr.bf16.mxu1 %v12364_v29 }
 0x87e   : > { %8446 = vmatpush3.bf16.msra.mxu1 %v12364_v29  ;;  %v9373_v29 = vld [vmem:[%s12679_s22 + $0x8] sm:$0xff]  }
 0x87f   : > { %8447 = vmatprep.subr.bf16.mxu1 %v12383_v17 }
 0x881   : > { %8440 = vmatmul.mubr.bf16.gmra.mrb[44].mxu1 %v9371_v30 }
 0x882   : > { %8448 = vmatpush3.bf16.msra.mxu1 %v12383_v17  ;;  %8459 = vmatprep.mubr.bf16.mxu1 %v9372_v24 }
 0x883   : > { %8449 = vmatprep.subr.bf16.mxu1 %v12378_v12 }
 0x886   : > { %8450 = vmatpush3.bf16.msra.mxu1 %v12378_v12  ;;  %v9375_v12 = vld [vmem:[%s12679_s22 + $0x18] sm:$0xff]  }
 0x887   : > { %8451 = vmatprep.subr.bf16.mxu1 %v12397_v50 }
 0x88a   : > { %8452 = vmatpush3.bf16.msra.mxu1 %v12397_v50  ;;  %v13005_v50 = vld [vmem:[#allocation73_spill] sm:$0xff] }
 0x88b   : > { %8453 = vmatprep.subr.bf16.mxu1 %v12392_v2 }
 0x88e   : > { %8454 = vmatpush3.bf16.msra.mxu1 %v12392_v2 }
 0x88f   : > { %8455 = vmatprep.subr.bf16.mxu1 %v12408_v44 }
 0x892   : > { %8456 = vmatpush3.bf16.msra.mxu1 %v12408_v44 }
 0x893   : > { %8457 = vmatprep.subr.bf16.mxu1 %v12406_v27 }
 0x896   : > { %8458 = vmatpush3.bf16.msra.mxu1 %v12406_v27 }
 0x899   : > { %8460 = vmatmul.mubr.bf16.vlgmr.msra.gmra.mrb[48].mxu1 %v9373_v29  ;;  %v13017_v29 = vld [vmem:[#allocation65_spill] sm:$0xff] }
 0x89a   : > { %8463 = vmatprep.mubr.bf16.mxu1 %v9374_v54 }
 0x8a1   : > { %8464 = vmatmul.mubr.bf16.gmra.mrb[52].mxu1 %v9375_v12 }
 0x94c   : > { %v8437_v17 = vpop.f32.mrb[40].mxu1 }
 0x94d   : > { %v6885_v2 = vpop.f32.mrb[41].mxu1  ;;  %v12470_v27 = vadd.f32 %v8437_v17, %v13006_v9  ;;  %v13018_v17 = vld [vmem:[#allocation100_spill] sm:$0xff] }
 0x94e   : > { %v12467_v44 = vadd.f32 %v6885_v2, %v13005_v50  ;;  %v8438_v58 = vpop.f32.mrb[42].mxu1 }
 0x94f   : > { %v6888_v16 = vpop.f32.mrb[43].mxu1  ;;  %v12478_v15 = vadd.f32 %v8438_v58, %v13008_v19  ;;  %v6918_v37 = vmul.f32 %v12470_v27, %v12470_v27 }
 0x950   : > { %v12473_v60 = vadd.f32 %v6888_v16, %v13007_v14  ;;  %v6916_v5 = vmul.f32 %v12467_v44, %v12467_v44  ;;  %v13020_v16 = vld [vmem:[#allocation123_spill] sm:$0xff] }
 0x951   : > { %v6919_v42 = vmul.f32 %v12478_v15, %v12478_v15 }
 0x952   : > { %v6917_v51 = vmul.f32 %v12473_v60, %v12473_v60 }
 0x954   : > { %v6924_v61 = vadd.f32 %v6917_v51, %v6916_v5  ;;  %v8441_v18 = vpop.f32.mrb[44].mxu1  ;;  %v13021_v5 = vld [vmem:[#allocation69_spill] sm:$0xff] }
 0x955   : > { %v6901_v62 = vpop.f32.mrb[45].mxu1  ;;  %v12490_v40 = vadd.f32 %v8441_v18, %v13010_v20  ;;  %v13022_v51 = vld [vmem:[#allocation121_spill] sm:$0xff]  ;;  %v13023_v18 = vld [vmem:[#allocation72_spill] sm:$0xff] }
 0x956   : > { %v6925_v11 = vadd.f32 %v6924_v61, %v6918_v37  ;;  %v12487_v39 = vadd.f32 %v6901_v62, %v13009_v10  ;;  %v8442_v32 = vpop.f32.mrb[46].mxu1  ;;  %v13025_v20 = vld [vmem:[#allocation68_spill] sm:$0xff] }
 0x957   : > { %v6904_v0 = vpop.f32.mrb[47].mxu1  ;;  %v12496_v49 = vadd.f32 %v8442_v32, %v13012_v21  ;;  %v6922_v35 = vmul.f32 %v12490_v40, %v12490_v40 }
 0x958   : > { %v6920_v28 = vmul.f32 %v12487_v39, %v12487_v39  ;;  %v6926_v36 = vadd.f32 %v6925_v11, %v6919_v42  ;;  %v6905_v47 = vadd.f32 %v6904_v0, %v13011_v3  ;;  %v13024_v11 = vld [vmem:[#allocation101_spill] sm:$0xff] }
 0x959   : > { %v6923_v59 = vmul.f32 %v12496_v49, %v12496_v49 }
 0x95a   : > { %v6927_v41 = vadd.f32 %v6926_v36, %v6920_v28  ;;  %v6921_v7 = vmul.f32 %v6905_v47, %v6905_v47 }
 0x95c   : > { %v6928_v43 = vadd.f32 %v6927_v41, %v6921_v7  ;;  %v13026_v41 = vld [vmem:[#allocation102_spill] sm:$0xff] }
 0x95e   : > { %v6929_v38 = vadd.f32 %v6928_v43, %v6922_v35 }
 0x960   : > { %v6930_v45 = vadd.f32 %v6929_v38, %v6923_v59 }
 0x962   : > { %v6931_v56 = vrot.slane %v6930_v45, 4 }
 0x964   : > { %v6932_v22 = vadd.f32 %v6931_v56, %v6930_v45 }
 0x966   : > { %v6933_v52 = vrot.slane %v6932_v22, 2 }
 0x968   : > { %v6934_v6 = vadd.f32 %v6933_v52, %v6932_v22  ;;  %v13027_v22 = vld [vmem:[#allocation103_spill] sm:$0xff] }
 0x96a   : > { %v6935_v34 = vrot.slane %v6934_v6, 1 }
 0x96c   : > { %v6936_v31 = vadd.f32 %v6935_v34, %v6934_v6  ;;  %v8461_v13 = vpop.f32.mrb[48].mxu1 }
 0x96d   : > { %v7061_v55 = vpop.f32.mrb[49].mxu1  ;;  %v7070_v23 = vadd.f32 %v8461_v13, %v13013_v63  ;;  %v13032_v13 = vld [vmem:[#allocation51_spill] sm:$0xff] }
 0x96e   : > { %v6937_v25 = vmax.f32 %v6936_v31, 1e-24  ;;  %v7062_v33 = vadd.f32 %v7061_v55, %v13014_v48  ;;  %v8462_v46 = vpop.f32.mrb[50].mxu1 }
 0x96f   : > { %v7064_v1 = vpop.f32.mrb[51].mxu1  ;;  %v7073_v26 = vadd.f32 %v8462_v46, %v13015_v53  ;;  %v7094_v30 = vmax.f32 %v7070_v23, 0.0 }
 0x970   : > { %9376 = vrsqrt.f32 %v6937_v25  ;;  %v7092_v8 = vmax.f32 %v7062_v33, 0.0  ;;  %v7065_v4 = vadd.f32 %v7064_v1, %v13016_v57 }
 0x971   : > { %v7095_v12 = vmax.f32 %v7073_v26, 0.0  ;;  %v7150_v9 = vmul.f32 %v13020_v16, %v7094_v30 }
 0x972   : > { %v7093_v24 = vmax.f32 %v7065_v4, 0.0  ;;  %v7148_v54 = vmul.f32 %v13017_v29, %v7092_v8 }
 0x973   : > { %v7151_v10 = vmul.f32 %v13024_v11, %v7095_v12 }
 0x974   : > { %v7149_v2 = vmul.f32 %v13018_v17, %v7093_v24  ;;  %v8465_v50 = vpop.f32.mrb[52].mxu1 }
 0x975   : > { %v7077_v58 = vpop.f32.mrb[53].mxu1  ;;  %v7086_v19 = vadd.f32 %v8465_v50, %v13021_v5 }
 0x976   : > { %v7156_v14 = vadd.f32 %v7149_v2, %v7148_v54  ;;  %v7078_v37 = vadd.f32 %v7077_v58, %v13022_v51  ;;  %v8466_v61 = vpop.f32.mrb[54].mxu1 }
 0x977   : > { %v7089_v62 = vadd.f32 %v8466_v61, %v13023_v18  ;;  %v7080_v42 = vpop.f32.mrb[55].mxu1  ;;  %v7098_v3 = vmax.f32 %v7086_v19, 0.0 }
 0x978   : > { %v7157_v32 = vadd.f32 %v7156_v14, %v7150_v9  ;;  %v7096_v0 = vmax.f32 %v7078_v37, 0.0  ;;  %v7081_v28 = vadd.f32 %v7080_v42, %v13025_v20 }
 0x979   : > { %v7099_v59 = vmax.f32 %v7089_v62, 0.0 }
 0x97a   : > { %v9377_v36 = vpop.eup %9376  ;;  %v7152_v21 = vmul.f32 %v13026_v41, %v7096_v0  ;;  %v7158_v7 = vadd.f32 %v7157_v32, %v7151_v10  ;;  %v7097_v35 = vmax.f32 %v7081_v28, 0.0 }
 0x97b   : > { %v6944_v43 = vmul.f32 %v9377_v36, %v6905_v47  ;;  %v6939_v38 = vmul.f32 %v9377_v36, %v12467_v44  ;;  %v6940_v45 = vmul.f32 %v9377_v36, %v12473_v60  ;;  %v6941_v6 = vmul.f32 %v9377_v36, %v12470_v27  ;;  %v13031_v27 = vld [vmem:[#allocation124_spill] sm:$0xff] }
 0x97c   : > { %v7159_v56 = vadd.f32 %v7158_v7, %v7152_v21  ;;  %v7153_v52 = vmul.f32 %v13027_v22, %v7097_v35  ;;  %v6942_v34 = vmul.f32 %v9377_v36, %v12478_v15  ;;  %v6943_v44 = vmul.f32 %v9377_v36, %v12487_v39 }
 0x97d   : > { %7180 = vst [vmem:[%s933_s9 + $0x28] sm:$0xff] %v6944_v43  ;;  %v6945_v60 = vmul.f32 %v9377_v36, %v12490_v40  ;;  %v6946_v47 = vmul.f32 %v9377_v36, %v12496_v49  ;;  %7175 = vst [vmem:[%s933_s9] sm:$0xff] %v6939_v38  ;;  %v7154_v15 = vmul.f32 %v13031_v27, %v7098_v3 }
 0x97e   : > { %7176 = vst [vmem:[%s933_s9 + $0x8] sm:$0xff] %v6940_v45  ;;  %v7160_v31 = vadd.f32 %v7159_v56, %v7153_v52  ;;  %7177 = vst [vmem:[%s933_s9 + $0x10] sm:$0xff] %v6941_v6  ;;  %v7155_v55 = vmul.f32 %v13032_v13, %v7099_v59 }
 0x97f   : > { %7178 = vst [vmem:[%s933_s9 + $0x18] sm:$0xff] %v6942_v34  ;;  %7179 = vst [vmem:[%s933_s9 + $0x20] sm:$0xff] %v6943_v44 }
 0x980   : > { %7181 = vst [vmem:[%s933_s9 + $0x30] sm:$0xff] %v6945_v60  ;;  %7182 = vst [vmem:[%s933_s9 + $0x38] sm:$0xff] %v6946_v47  ;;  %v7161_v39 = vadd.f32 %v7160_v31, %v7154_v15 }
 0x981   : > { %9395 = shalt.err (!%p9392_p5)
}
 0x982   : > { %s9396_s9 = scalar_lea.hbm %s12527_s30, 1024  ;;  %s9400_s6 = scalar_lea.hbm %s13029_s1, 2048 }
 0x983   : > { %p9397_p6 = scmp.ne.s32.totalorder %s12527_s30, %s9396_s9  ;;  %p9401_p10 = scmp.lt.u32.totalorder %s12527_s30, %s13029_s1 }
 0x984   : > { %p9402_p11 = scmp.lt.u32.totalorder %s9400_s6, %s9396_s9  ;;  %p9404_p13 = scmp.lt.u32.totalorder %s9396_s9, %s12527_s30 }
 0x985   : > { %p9398_p7 = pnand %p9397_p6, %p9710_p4 }
 0x986   : > { %p9403_p12 = por %p9402_p11, %p9401_p10 }
 0x987   : > { %p9399_p9 = pneg %p9398_p7 }
 0x988   : > { %p9405_p0 = por %p9404_p13, %p9403_p12 }
 0x98a   : > { %p9406_p1 = pnand %p9405_p0, %p9399_p9 }
 0x98c   : > { %9409 = shalt.err (!%p9406_p1)
}
 0x98d   : > { %s12714_s10 = smov 128   ;;  %s13033_s3 = sld [smem:[#allocation14_spill]]  ;;  %v7162_v40 = vadd.f32 %v7161_v39, %v7155_v55 }
 0x98e   : > { %s12715_s13 = smov 8   ;;  %s13034_s12 = scalar_lea.sflag [#allocation4], %s12332_s8 }
 0x98f   : > { %8793 = dma.vmem_to_hbm [thread:$0]  (%p9710_p4), %s12519_s27, 1024, %s12527_s30, %s13034_s12, %s12714_s10, %s12714_s10, %s12715_s13   ;;  %v7163_v49 = vrot.slane %v7162_v40, 4 }
 0x990   : > { %s7881_s27 = sshll.u32 %s13019_s26, 4  ;;  %s939_s30 = scalar_lea.vmem [#allocation5], %s12332_s8 }
 0x991   : > { %v7164_v25 = vadd.f32 %v7163_v49, %v7162_v40  ;;  %s7227_s9 = sshll.u32 %s939_s30, 4  ;;  %s7241_s6 = sshll.u32 %s12337_s5, 4  ;;  %s12574_s9 = int_to_ptr.vmem [resolvable:$true] %s7227_s9  ;;  %s12576_s6 = int_to_ptr.vmem [resolvable:$true] %s7241_s6 }
 0x992   : > { %s7892_s7 = sshll.u32 %s13019_s26, 8  ;;  %s13036_s13 = sld [smem:[#allocation143_spill]] }
 0x993   : > { %v7165_v63 = vrot.slane %v7164_v25, 2  ;;  %s13035_s11 = sadd.s32 4294967295, %s13033_s3   ;;  %s13037_s14 = sld [smem:[#allocation144_spill]] }
 0x994   : > { %s12563_s0 = sand.u32 1, %s13035_s11   ;;  %s9410_s26 = scalar_lea.vmem %s12574_s9, 16 }
 0x995   : > { %v7166_v23 = vadd.f32 %v7165_v63, %v7164_v25  ;;  %s7192_s5 = scalar_lea.sflag [#allocation6], %s12563_s0  ;;  %p9411_p2 = scmp.ne.s32.totalorder %s12574_s9, %s9410_s26 }
 0x996   : > { %s9526_s10 = smov [#allocation5]  }
 0x997   : > { %v7167_v48 = vrot.slane %v7166_v23, 1  ;;  %p9412_p3 = pnand %p9411_p2, %p9710_p4 }
 0x998   : > { %s12572_s1 = scalar_lea.hbm %s13036_s13, %s7881_s27  ;;  %s9414_s27 = sshll.u32 %s9526_s10, 4  ;;  %s9415_s27 = int_to_ptr.vmem [resolvable:$false] %s9414_s27 }
 0x999   : > { %v7168_v33 = vadd.f32 %v7167_v48, %v7166_v23  ;;  %s12581_s8 = scalar_lea.hbm %s13037_s14, %s7892_s7  ;;  %p9413_p5 = pneg %p9412_p3 }
 0x99a   : > { %s9416_s12 = scalar_lea.vmem %s9415_s27, 32  ;;  %p9417_p6 = scmp.lt.s32.totalorder %s12574_s9, %s9415_s27 }
 0x99b   : > { %v7876_v46 = vmul.f32 -1.442695, %v7168_v33  ;;  %p9418_p7 = scmp.lt.s32.totalorder %s9416_s12, %s9410_s26 }
 0x99d   : > { %9378 = vpow2.f32 %v7876_v46  ;;  %p9419_p9 = por %p9418_p7, %p9417_p6 }
 0x99f   : > { %p9420_p10 = pnand %p9419_p9, %p9413_p5 }
 0x9a7   : > { %v9379_v1 = vpop.eup %9378 }
 0x9a8   : > { %v7172_v8 = vadd.f32 1.0, %v9379_v1 }
 0x9aa   : > { %9380 = vrcp.f32 %v7172_v8 }
 0x9b4   : > { %v9381_v53 = vpop.eup %9380 }
 0x9b5   : > { %7183 = vst [vmem:[%s939_s30] sm:$0x1] %v9381_v53 }
 0x9b6   : > { %9423 = shalt.err (!%p9420_p10)
}
 0x9b7   : > { %s9424_s30 = scalar_lea.hbm %s12572_s1, 16  ;;  %s9428_s11 = scalar_lea.hbm %s13036_s13, 32 }
 0x9b8   : > { %p9425_p11 = scmp.ne.s32.totalorder %s12572_s1, %s9424_s30  ;;  %p9429_p0 = scmp.lt.u32.totalorder %s12572_s1, %s13036_s13 }
 0x9b9   : > { %p9430_p1 = scmp.lt.u32.totalorder %s9428_s11, %s9424_s30  ;;  %p9432_p3 = scmp.lt.u32.totalorder %s9424_s30, %s12572_s1 }
 0x9ba   : > { %p9426_p12 = pnand %p9425_p11, %p9710_p4 }
 0x9bb   : > { %p9431_p2 = por %p9430_p1, %p9429_p0 }
 0x9bc   : > { %p9427_p13 = pneg %p9426_p12 }
 0x9bd   : > { %p9433_p5 = por %p9432_p3, %p9431_p2 }
 0x9bf   : > { %p9434_p6 = pnand %p9433_p5, %p9427_p13 }
 0x9c1   : > { %9437 = shalt.err (!%p9434_p6)
}
 0x9c2   : > { %8794 = dma.vmem_to_hbm [thread:$0]  (%p9710_p4), %s12574_s9, 16, %s12572_s1, %s7192_s5  }
 0x9c3   : > { %s9438_s26 = scalar_lea.vmem %s12576_s6, 256  ;;  %s9527_s12 = smov [#allocation7]  }
 0x9c4   : > { %p9439_p7 = scmp.ne.s32.totalorder %s12576_s6, %s9438_s26  ;;  %s9442_s30 = sshll.u32 %s9527_s12, 4  ;;  %s9443_s30 = int_to_ptr.vmem [resolvable:$false] %s9442_s30 }
 0x9c5   : > { %s9444_s7 = scalar_lea.vmem %s9443_s30, 512  ;;  %p9445_p11 = scmp.lt.s32.totalorder %s12576_s6, %s9443_s30 }
 0x9c6   : > { %p9440_p9 = pnand %p9439_p7, %p9710_p4  ;;  %p9446_p12 = scmp.lt.s32.totalorder %s9444_s7, %s9438_s26 }
 0x9c8   : > { %p9441_p10 = pneg %p9440_p9  ;;  %p9447_p13 = por %p9446_p12, %p9445_p11 }
 0x9ca   : > { %p9448_p0 = pnand %p9447_p13, %p9441_p10 }
 0x9cc   : > { %9451 = shalt.err (!%p9448_p0)
}
 0x9cd   : > { %s9452_s1 = scalar_lea.hbm %s12581_s8, 256  ;;  %s9456_s11 = scalar_lea.hbm %s13037_s14, 512 }
 0x9ce   : > { %p9453_p1 = scmp.ne.s32.totalorder %s12581_s8, %s9452_s1  ;;  %p9457_p5 = scmp.lt.u32.totalorder %s12581_s8, %s13037_s14 }
 0x9cf   : > { %p9458_p6 = scmp.lt.u32.totalorder %s9456_s11, %s9452_s1  ;;  %p9460_p9 = scmp.lt.u32.totalorder %s9452_s1, %s12581_s8 }
 0x9d0   : > { %p9454_p2 = pnand %p9453_p1, %p9710_p4 }
 0x9d1   : > { %p9459_p7 = por %p9458_p6, %p9457_p5 }
 0x9d2   : > { %p9455_p3 = pneg %p9454_p2 }
 0x9d3   : > { %p9461_p10 = por %p9460_p9, %p9459_p7 }
 0x9d5   : > { %p9462_p11 = pnand %p9461_p10, %p9455_p3 }
 0x9d7   : > { %9465 = shalt.err (!%p9462_p11)
}
 0x9d8   : > { %s13038_s26 = smov 8   ;;  %s13039_s12 = smov 128  }
 0x9d9   : > { %8795 = dma.vmem_to_hbm [thread:$0]  (%p9710_p4), %s12576_s6, 256, %s12581_s8, %s7192_s5, %s13039_s12, %s13039_s12, %s13038_s26  }
 0x9da PF: > { %s13040_s30 = sld [smem:[#allocation14_spill]]  ;;  %s13041_s7 = sld [smem:[#allocation10_spill]] }
 0x9e0   : > { %p8809_p12 = scmp.ge.s32.totalorder %s13040_s30, 2  ;;  %s7256_s3 = sand.u32 1, %s13041_s7  }
 0x9e1   : > { %s7257_s1 = scalar_lea.sflag [#allocation4], %s7256_s3 }
 0x9e2   : > { %p8800_p13 = pnand %p8809_p12, %p9719_p8 }
 0x9e4   : > { %9491 = dma.done.wait (!%p8800_p13), %s7257_s1, 1024  }
 0x9e5   : > { %9493 = vsyncadd (!%p8800_p13), %s7257_s1, 4294966272  ;;  %s13043_s2 = sadd.s32 4294967294, %s13040_s30  }
 0x9e6   : > { %s7265_s11 = sand.u32 1, %s13043_s2  }
 0x9e7   : > { %s7266_s10 = scalar_lea.sflag [#allocation6], %s7265_s11 }
 0x9e8   : > { %9495 = dma.done.wait (!%p8800_p13), %s7266_s10, 272  }
 0x9e9   : > { %9497 = vsyncadd (!%p8800_p13), %s7266_s10, 4294967024  ;;  %s44_s5 = sadd.s32 1, %s13040_s30   ;;  %s13044_s0 = sld [smem:[#allocation11_spill]] }
 0x9ea   : > { %p41_p4 = scmp.ge.s32.totalorder %s44_s5, 4   ;;  %s13045_s8 = sld [smem:[#allocation18_spill]] }
 0x9eb   : > { %s13046_s30 = sld [smem:[#allocation13_spill]]  ;;  %s13047_s9 = sld [smem:[#allocation15_spill]] }
 0x9ec   : > { %s13048_s7 = smov %s9504_s4  ;;  %43 = sbr.rel (!%p41_p4) target bundleno = 25 (0x19), region = 199 }
 0x9ef   : > { %s13049_s4 = smov %s13044_s0 }
 0x9f3   :  { %7279 = vsyncpa [#allocation4], 1 }
 0x9f4   :  { %7281 = vsyncpa [#allocation4 + $0x1], 1 }
 0x9f5   :  { %7282 = vsyncpa [#allocation6], 1 }
 0x9f6   :  { %7284 = vsyncpa [#allocation6 + $0x1], 1 }

</bundles_post_ra>
